<compile_context>
chip_gen: v5e
topology: v5e:2x2
jax: 0.10.0
libtpu: 0.0.40
codegen_flags: <defaults>
</compile_context>

<pallas_src>
import functools

import numpy as np
import jax
import jax.numpy as jnp
from jax.experimental import pallas as pl
from jax.experimental.pallas import tpu as pltpu  # noqa: F401  (TPU backend)

# ----------------------------------------------------------------------------
# Model configuration (constructor arguments of the PyTorch TransformerModel)
# ----------------------------------------------------------------------------
D_MODEL = 128               # d_model  (multiple of 128 -> lane dense)
N_HEADS = 4                 # nheads   (head_dim = 32)
HEAD_DIM = D_MODEL // N_HEADS
NUM_LAYERS = 2              # num_layers
OUT_DIM = 128               # out_dim
DIM_FF = 2048               # nn.TransformerEncoderLayer default dim_feedforward
MAX_LEN = 50                # PositionalEncoding max_len
LN_EPS = 1e-5               # nn.LayerNorm default eps
GEMM_DTYPE = jnp.bfloat16   # matmul operand dtype; accumulation stays float32


# ----------------------------------------------------------------------------
# In-kernel helpers
# ----------------------------------------------------------------------------
def _mm(x, w):
    """Matmul with operands in the weight dtype, f32 accumulation."""
    return jnp.dot(x.astype(w.dtype), w, preferred_element_type=jnp.float32)


def _layer_norm(x, g, b, eps):
    """Row-wise LayerNorm over the last dim (f32 math)."""
    mu = jnp.mean(x, axis=-1, keepdims=True)
    var = jnp.mean(jnp.square(x - mu), axis=-1, keepdims=True)
    return (x - mu) * jax.lax.rsqrt(var + eps) * g + b


# ----------------------------------------------------------------------------
# The single fused forward kernel
# ----------------------------------------------------------------------------
def _fused_forward_kernel(src_ref, emb_w_ref, emb_b_ref, pe_ref,
                          wq_ref, bq_ref, wk_ref, bk_ref, wv_ref, bv_ref,
                          wo_ref, bo_ref, g1_ref, be1_ref,
                          w1_ref, bf1_ref, w2_ref, bf2_ref, g2_ref, be2_ref,
                          fcw_ref, fcb_ref, o_ref, *,
                          num_layers, num_heads, eps):
    B, N, _ = src_ref.shape
    D = emb_w_ref.shape[-1]
    hd = wq_ref.shape[-1]
    M = B * N

    # ---- embedding (Linear(1, D)) + positional encoding --------------------
    src = src_ref[...].astype(jnp.float32)                       # (B, N, 1)
    x = (src * emb_w_ref[...][None, :, :]
         + emb_b_ref[...][None, :, :]
         + pe_ref[...][None, :, :])                              # (B, N, D) f32
    x2 = x.reshape(M, D)

    # NOTE: the PyTorch reference permutes to (N, B, D) and back around the
    # encoder; attention is per-sequence so batch-first is mathematically
    # identical and avoids two relayouts.
    for l in range(num_layers):                                  # static unroll
        xb = x2.astype(GEMM_DTYPE)

        # ---- multi-head self-attention via per-head weight blocks ---------
        # head split / merge is done by the GEMMs (no lane slices, no concat)
        attn = jnp.zeros((M, D), jnp.float32)
        for h in range(num_heads):                               # static unroll
            qh = (_mm(xb, wq_ref[l, h]) + bq_ref[l, h]).reshape(B, N, hd)
            kh = (_mm(xb, wk_ref[l, h]) + bk_ref[l, h]).reshape(B, N, hd)
            vh = (_mm(xb, wv_ref[l, h]) + bv_ref[l, h]).reshape(B, N, hd)
            # 1/sqrt(hd) already folded into wq/bq at init time.
            s = jnp.einsum("bnd,bmd->bnm",
                           qh.astype(GEMM_DTYPE), kh.astype(GEMM_DTYPE),
                           preferred_element_type=jnp.float32)   # (B, N, N) f32
            s = s - jnp.max(s, axis=-1, keepdims=True)
            p = jnp.exp(s)
            p = p * pl.reciprocal(jnp.sum(p, axis=-1, keepdims=True),
                                  approx=True)
            pv = jnp.einsum("bnm,bmd->bnd",
                            p.astype(GEMM_DTYPE), vh.astype(GEMM_DTYPE),
                            preferred_element_type=jnp.float32)  # (B, N, hd)
            attn = attn + _mm(pv.reshape(M, hd), wo_ref[l, h])   # heads merged
        attn = attn + bo_ref[l]

        # ---- residual + LayerNorm1 (post-norm) -----------------------------
        h1 = _layer_norm(x2 + attn, g1_ref[l], be1_ref[l], eps)

        # ---- FFN (fc1 + ReLU + fc2) + residual + LayerNorm2 -----------------
        f = _mm(h1, w1_ref[l]) + bf1_ref[l]
        f = jnp.maximum(f, 0.0)
        f = _mm(f, w2_ref[l]) + bf2_ref[l]
        x2 = _layer_norm(h1 + f, g2_ref[l], be2_ref[l], eps)

    # ---- AdaptiveAvgPool1d(1) over tokens + final Linear --------------------
    pooled = jnp.mean(x2.reshape(B, N, D), axis=1)               # (B, D)
    o_ref[...] = _mm(pooled, fcw_ref[...]) + fcb_ref[...]        # (B, out_dim)


def transformer_forward(params, src):
    """src: (B, N) float32 -> (B, OUT_DIM) float32."""
    B, N = src.shape
    pe = params["pe"][:N]                                        # (N, D)
    kern = functools.partial(_fused_forward_kernel,
                             num_layers=NUM_LAYERS,
                             num_heads=N_HEADS,
                             eps=LN_EPS)
    return pl.pallas_call(
        kern,
        out_shape=jax.ShapeDtypeStruct((B, OUT_DIM), jnp.float32),
    )(src[..., None],
      params["embed_w"], params["embed_b"], pe,
      params["w_q"], params["b_q"], params["w_k"], params["b_k"],
      params["w_v"], params["b_v"], params["w_o"], params["b_o"],
      params["ln1_g"], params["ln1_b"],
      params["w_ff1"], params["b_ff1"], params["w_ff2"], params["b_ff2"],
      params["ln2_g"], params["ln2_b"],
      params["fc_w"], params["fc_b"])


# ----------------------------------------------------------------------------
# Host-side constants & deterministic parameter init
# ----------------------------------------------------------------------------
def _sinusoidal_pe(max_len, d_model):
    pe = np.zeros((max_len, d_model), np.float32)
    position = np.arange(max_len, dtype=np.float32)[:, None]
    div_term = np.exp(np.arange(0, d_model, 2, dtype=np.float32)
                      * (-np.log(10000.0) / d_model))
    pe[:, 0::2] = np.sin(position * div_term)
    pe[:, 1::2] = np.cos(position * div_term)
    return jnp.asarray(pe)


def init_params(key):
    keys = iter(jax.random.split(key, 64))

    def nrm(shape, std=0.02):
        return jax.random.normal(next(keys), shape, jnp.float32) * std

    L, H, D, hd = NUM_LAYERS, N_HEADS, D_MODEL, HEAD_DIM
    scale = float(hd) ** -0.5   # folded into Q weights/bias (f32, pre-bf16 cast)

    params = {
        # nn.Linear(1, d_model): weight (d,1) stored transposed as (1, d)
        "embed_w": nrm((1, D)),
        "embed_b": nrm((1, D)),
        "pe": _sinusoidal_pe(MAX_LEN, D),
        # MultiheadAttention in_proj, split per head (layer-stacked, transposed):
        # head h of layer l projects with (D, hd) weight blocks.
        "w_q": (nrm((L, H, D, hd)) * scale).astype(GEMM_DTYPE),
        "b_q": nrm((L, H, 1, hd)) * scale,
        "w_k": nrm((L, H, D, hd)).astype(GEMM_DTYPE),
        "b_k": nrm((L, H, 1, hd)),
        "w_v": nrm((L, H, D, hd)).astype(GEMM_DTYPE),
        "b_v": nrm((L, H, 1, hd)),
        # out_proj split into per-head (hd, D) row blocks; summed in-kernel.
        "w_o": nrm((L, H, hd, D)).astype(GEMM_DTYPE),
        "b_o": nrm((L, 1, D)),
        "ln1_g": jnp.ones((L, 1, D), jnp.float32),
        "ln1_b": jnp.zeros((L, 1, D), jnp.float32),
        "w_ff1": nrm((L, D, DIM_FF)).astype(GEMM_DTYPE),
        "b_ff1": nrm((L, 1, DIM_FF)),
        "w_ff2": nrm((L, DIM_FF, D)).astype(GEMM_DTYPE),
        "b_ff2": nrm((L, 1, D)),
        "ln2_g": jnp.ones((L, 1, D), jnp.float32),
        "ln2_b": jnp.zeros((L, 1, D), jnp.float32),
        # final nn.Linear(d_model, out_dim), weight stored transposed
        "fc_w": nrm((D, OUT_DIM)).astype(GEMM_DTYPE),
        "fc_b": nrm((1, OUT_DIM)),
    }
    return params


# ----------------------------------------------------------------------------
if __name__ == "__main__":
    key = jax.random.PRNGKey(0)
    kp, kx = jax.random.split(key)
    params = init_params(kp)

    B, N = 2, 16                              # src: (B, N), N <= max_length=50
    src = jax.random.normal(kx, (B, N), jnp.float32)

    fwd = jax.jit(transformer_forward)
    out = fwd(params, src)
    out = jax.block_until_ready(out)

    assert out.shape == (B, OUT_DIM), out.shape
    assert bool(jnp.all(jnp.isfinite(out)))
    print("KERNEL_OK")
</pallas_src>

<mosaic_0001>
module attributes {stable_mosaic.version = 11 : i64} {
  func.func @_fused_forward_kernel(%arg0: memref<2x16x1xf32, #tpu.memory_space<vmem>>, %arg1: memref<1x128xf32, #tpu.memory_space<vmem>>, %arg2: memref<1x128xf32, #tpu.memory_space<vmem>>, %arg3: memref<16x128xf32, #tpu.memory_space<vmem>>, %arg4: memref<2x4x128x32xbf16, #tpu.memory_space<vmem>>, %arg5: memref<2x4x1x32xf32, #tpu.memory_space<vmem>>, %arg6: memref<2x4x128x32xbf16, #tpu.memory_space<vmem>>, %arg7: memref<2x4x1x32xf32, #tpu.memory_space<vmem>>, %arg8: memref<2x4x128x32xbf16, #tpu.memory_space<vmem>>, %arg9: memref<2x4x1x32xf32, #tpu.memory_space<vmem>>, %arg10: memref<2x4x32x128xbf16, #tpu.memory_space<vmem>>, %arg11: memref<2x1x128xf32, #tpu.memory_space<vmem>>, %arg12: memref<2x1x128xf32, #tpu.memory_space<vmem>>, %arg13: memref<2x1x128xf32, #tpu.memory_space<vmem>>, %arg14: memref<2x128x2048xbf16, #tpu.memory_space<vmem>>, %arg15: memref<2x1x2048xf32, #tpu.memory_space<vmem>>, %arg16: memref<2x2048x128xbf16, #tpu.memory_space<vmem>>, %arg17: memref<2x1x128xf32, #tpu.memory_space<vmem>>, %arg18: memref<2x1x128xf32, #tpu.memory_space<vmem>>, %arg19: memref<2x1x128xf32, #tpu.memory_space<vmem>>, %arg20: memref<128x128xbf16, #tpu.memory_space<vmem>>, %arg21: memref<1x128xf32, #tpu.memory_space<vmem>>, %arg22: memref<2x128xf32, #tpu.memory_space<vmem>>) attributes {dimension_semantics = [], scalar_prefetch = 0 : i64, scratch_operands = 0 : i64, tpu.core_type = #tpu.core_type<tc>} {
    %c0 = arith.constant 0 : index
    %c0_0 = arith.constant 0 : index
    %c0_1 = arith.constant 0 : index
    %0 = vector.load %arg0[%c0, %c0_0, %c0_1] : memref<2x16x1xf32, #tpu.memory_space<vmem>>, vector<2x16x1xf32>
    %c0_2 = arith.constant 0 : index
    %c0_3 = arith.constant 0 : index
    %1 = vector.load %arg1[%c0_2, %c0_3] : memref<1x128xf32, #tpu.memory_space<vmem>>, vector<1x128xf32>
    %2 = vector.shape_cast %1 : vector<1x128xf32> to vector<1x1x128xf32>
    %3 = vector.broadcast %0 : vector<2x16x1xf32> to vector<2x16x128xf32>
    %4 = vector.broadcast %2 : vector<1x1x128xf32> to vector<2x16x128xf32>
    %5 = arith.mulf %3, %4 : vector<2x16x128xf32>
    %c0_4 = arith.constant 0 : index
    %c0_5 = arith.constant 0 : index
    %6 = vector.load %arg2[%c0_4, %c0_5] : memref<1x128xf32, #tpu.memory_space<vmem>>, vector<1x128xf32>
    %7 = vector.shape_cast %6 : vector<1x128xf32> to vector<1x1x128xf32>
    %8 = vector.broadcast %7 : vector<1x1x128xf32> to vector<2x16x128xf32>
    %9 = arith.addf %5, %8 : vector<2x16x128xf32>
    %c0_6 = arith.constant 0 : index
    %c0_7 = arith.constant 0 : index
    %10 = vector.load %arg3[%c0_6, %c0_7] : memref<16x128xf32, #tpu.memory_space<vmem>>, vector<16x128xf32>
    %11 = vector.shape_cast %10 : vector<16x128xf32> to vector<1x16x128xf32>
    %12 = vector.broadcast %11 : vector<1x16x128xf32> to vector<2x16x128xf32>
    %13 = arith.addf %9, %12 : vector<2x16x128xf32>
    %14 = vector.shape_cast %13 : vector<2x16x128xf32> to vector<32x128xf32>
    %15 = arith.truncf %14 : vector<32x128xf32> to vector<32x128xbf16>
    %cst = arith.constant 0.000000e+00 : f32
    %16 = vector.broadcast %cst : f32 to vector<32x128xf32>
    %c0_8 = arith.constant 0 : index
    %c0_9 = arith.constant 0 : index
    %c0_10 = arith.constant 0 : index
    %c0_11 = arith.constant 0 : index
    %17 = vector.load %arg4[%c0_8, %c0_9, %c0_10, %c0_11] : memref<2x4x128x32xbf16, #tpu.memory_space<vmem>>, vector<1x1x128x32xbf16>
    %18 = vector.shape_cast %17 : vector<1x1x128x32xbf16> to vector<128x32xbf16>
    %cst_12 = arith.constant dense<0.000000e+00> : vector<32x32xf32>
    %19 = tpu.matmul %15, %18, %cst_12 {dimension_numbers = #tpu.dot_dimension_numbers<[1], [0], [0], [1], [0, 0, 1, 1], [], []>} : vector<32x128xbf16>, vector<128x32xbf16>, vector<32x32xf32> -> vector<32x32xf32>
    %c0_13 = arith.constant 0 : index
    %c0_14 = arith.constant 0 : index
    %c0_15 = arith.constant 0 : index
    %c0_16 = arith.constant 0 : index
    %20 = vector.load %arg5[%c0_13, %c0_14, %c0_15, %c0_16] : memref<2x4x1x32xf32, #tpu.memory_space<vmem>>, vector<1x1x1x32xf32>
    %21 = vector.shape_cast %20 : vector<1x1x1x32xf32> to vector<1x32xf32>
    %22 = vector.broadcast %21 : vector<1x32xf32> to vector<32x32xf32>
    %23 = arith.addf %19, %22 : vector<32x32xf32>
    %24 = vector.shape_cast %23 : vector<32x32xf32> to vector<2x16x32xf32>
    %c0_17 = arith.constant 0 : index
    %c0_18 = arith.constant 0 : index
    %c0_19 = arith.constant 0 : index
    %c0_20 = arith.constant 0 : index
    %25 = vector.load %arg6[%c0_17, %c0_18, %c0_19, %c0_20] : memref<2x4x128x32xbf16, #tpu.memory_space<vmem>>, vector<1x1x128x32xbf16>
    %26 = vector.shape_cast %25 : vector<1x1x128x32xbf16> to vector<128x32xbf16>
    %cst_21 = arith.constant dense<0.000000e+00> : vector<32x32xf32>
    %27 = tpu.matmul %15, %26, %cst_21 {dimension_numbers = #tpu.dot_dimension_numbers<[1], [0], [0], [1], [0, 0, 1, 1], [], []>} : vector<32x128xbf16>, vector<128x32xbf16>, vector<32x32xf32> -> vector<32x32xf32>
    %c0_22 = arith.constant 0 : index
    %c0_23 = arith.constant 0 : index
    %c0_24 = arith.constant 0 : index
    %c0_25 = arith.constant 0 : index
    %28 = vector.load %arg7[%c0_22, %c0_23, %c0_24, %c0_25] : memref<2x4x1x32xf32, #tpu.memory_space<vmem>>, vector<1x1x1x32xf32>
    %29 = vector.shape_cast %28 : vector<1x1x1x32xf32> to vector<1x32xf32>
    %30 = vector.broadcast %29 : vector<1x32xf32> to vector<32x32xf32>
    %31 = arith.addf %27, %30 : vector<32x32xf32>
    %32 = vector.shape_cast %31 : vector<32x32xf32> to vector<2x16x32xf32>
    %c0_26 = arith.constant 0 : index
    %c0_27 = arith.constant 0 : index
    %c0_28 = arith.constant 0 : index
    %c0_29 = arith.constant 0 : index
    %33 = vector.load %arg8[%c0_26, %c0_27, %c0_28, %c0_29] : memref<2x4x128x32xbf16, #tpu.memory_space<vmem>>, vector<1x1x128x32xbf16>
    %34 = vector.shape_cast %33 : vector<1x1x128x32xbf16> to vector<128x32xbf16>
    %cst_30 = arith.constant dense<0.000000e+00> : vector<32x32xf32>
    %35 = tpu.matmul %15, %34, %cst_30 {dimension_numbers = #tpu.dot_dimension_numbers<[1], [0], [0], [1], [0, 0, 1, 1], [], []>} : vector<32x128xbf16>, vector<128x32xbf16>, vector<32x32xf32> -> vector<32x32xf32>
    %c0_31 = arith.constant 0 : index
    %c0_32 = arith.constant 0 : index
    %c0_33 = arith.constant 0 : index
    %c0_34 = arith.constant 0 : index
    %36 = vector.load %arg9[%c0_31, %c0_32, %c0_33, %c0_34] : memref<2x4x1x32xf32, #tpu.memory_space<vmem>>, vector<1x1x1x32xf32>
    %37 = vector.shape_cast %36 : vector<1x1x1x32xf32> to vector<1x32xf32>
    %38 = vector.broadcast %37 : vector<1x32xf32> to vector<32x32xf32>
    %39 = arith.addf %35, %38 : vector<32x32xf32>
    %40 = vector.shape_cast %39 : vector<32x32xf32> to vector<2x16x32xf32>
    %41 = arith.truncf %24 : vector<2x16x32xf32> to vector<2x16x32xbf16>
    %42 = arith.truncf %32 : vector<2x16x32xf32> to vector<2x16x32xbf16>
    "tpu.trace_start"() <{level = 10 : i32, message = "bnd,bmd->bnm"}> : () -> ()
    %cst_35 = arith.constant dense<0.000000e+00> : vector<2x16x16xf32>
    %43 = tpu.matmul %41, %42, %cst_35 {dimension_numbers = #tpu.dot_dimension_numbers<[2], [2], [1], [1], [0, 0, 0, 1, 1, 1], [0], [0]>} : vector<2x16x32xbf16>, vector<2x16x32xbf16>, vector<2x16x16xf32> -> vector<2x16x16xf32>
    "tpu.trace_stop"() : () -> ()
    %cst_36 = arith.constant dense<0xFF800000> : vector<2x16xf32>
    %44 = vector.multi_reduction <maximumf>, %43, %cst_36 [2] : vector<2x16x16xf32> to vector<2x16xf32>
    %45 = vector.shape_cast %44 : vector<2x16xf32> to vector<2x16x1xf32>
    %46 = vector.broadcast %45 : vector<2x16x1xf32> to vector<2x16x16xf32>
    %47 = arith.subf %43, %46 : vector<2x16x16xf32>
    %48 = math.exp %47 : vector<2x16x16xf32>
    %cst_37 = arith.constant dense<0.000000e+00> : vector<2x16xf32>
    %49 = vector.multi_reduction <add>, %48, %cst_37 [2] : vector<2x16x16xf32> to vector<2x16xf32>
    %50 = vector.shape_cast %49 : vector<2x16xf32> to vector<2x16x1xf32>
    %51 = tpu.reciprocal %50 {approx = true} : vector<2x16x1xf32> -> vector<2x16x1xf32>
    %52 = vector.broadcast %51 : vector<2x16x1xf32> to vector<2x16x16xf32>
    %53 = arith.mulf %48, %52 : vector<2x16x16xf32>
    %54 = arith.truncf %53 : vector<2x16x16xf32> to vector<2x16x16xbf16>
    %55 = arith.truncf %40 : vector<2x16x32xf32> to vector<2x16x32xbf16>
    "tpu.trace_start"() <{level = 10 : i32, message = "bnm,bmd->bnd"}> : () -> ()
    %cst_38 = arith.constant dense<0.000000e+00> : vector<2x16x32xf32>
    %56 = tpu.matmul %54, %55, %cst_38 {dimension_numbers = #tpu.dot_dimension_numbers<[2], [1], [1], [2], [0, 0, 0, 1, 1, 2], [0], [0]>} : vector<2x16x16xbf16>, vector<2x16x32xbf16>, vector<2x16x32xf32> -> vector<2x16x32xf32>
    "tpu.trace_stop"() : () -> ()
    %57 = vector.shape_cast %56 : vector<2x16x32xf32> to vector<32x32xf32>
    %c0_39 = arith.constant 0 : index
    %c0_40 = arith.constant 0 : index
    %c0_41 = arith.constant 0 : index
    %c0_42 = arith.constant 0 : index
    %58 = vector.load %arg10[%c0_39, %c0_40, %c0_41, %c0_42] : memref<2x4x32x128xbf16, #tpu.memory_space<vmem>>, vector<1x1x32x128xbf16>
    %59 = vector.shape_cast %58 : vector<1x1x32x128xbf16> to vector<32x128xbf16>
    %60 = arith.truncf %57 : vector<32x32xf32> to vector<32x32xbf16>
    %cst_43 = arith.constant dense<0.000000e+00> : vector<32x128xf32>
    %61 = tpu.matmul %60, %59, %cst_43 {dimension_numbers = #tpu.dot_dimension_numbers<[1], [0], [0], [1], [0, 0, 1, 1], [], []>} : vector<32x32xbf16>, vector<32x128xbf16>, vector<32x128xf32> -> vector<32x128xf32>
    %62 = arith.addf %16, %61 : vector<32x128xf32>
    %c0_44 = arith.constant 0 : index
    %c1 = arith.constant 1 : index
    %c0_45 = arith.constant 0 : index
    %c0_46 = arith.constant 0 : index
    %63 = vector.load %arg4[%c0_44, %c1, %c0_45, %c0_46] : memref<2x4x128x32xbf16, #tpu.memory_space<vmem>>, vector<1x1x128x32xbf16>
    %64 = vector.shape_cast %63 : vector<1x1x128x32xbf16> to vector<128x32xbf16>
    %cst_47 = arith.constant dense<0.000000e+00> : vector<32x32xf32>
    %65 = tpu.matmul %15, %64, %cst_47 {dimension_numbers = #tpu.dot_dimension_numbers<[1], [0], [0], [1], [0, 0, 1, 1], [], []>} : vector<32x128xbf16>, vector<128x32xbf16>, vector<32x32xf32> -> vector<32x32xf32>
    %c0_48 = arith.constant 0 : index
    %c1_49 = arith.constant 1 : index
    %c0_50 = arith.constant 0 : index
    %c0_51 = arith.constant 0 : index
    %66 = vector.load %arg5[%c0_48, %c1_49, %c0_50, %c0_51] : memref<2x4x1x32xf32, #tpu.memory_space<vmem>>, vector<1x1x1x32xf32>
    %67 = vector.shape_cast %66 : vector<1x1x1x32xf32> to vector<1x32xf32>
    %68 = vector.broadcast %67 : vector<1x32xf32> to vector<32x32xf32>
    %69 = arith.addf %65, %68 : vector<32x32xf32>
    %70 = vector.shape_cast %69 : vector<32x32xf32> to vector<2x16x32xf32>
    %c0_52 = arith.constant 0 : index
    %c1_53 = arith.constant 1 : index
    %c0_54 = arith.constant 0 : index
    %c0_55 = arith.constant 0 : index
    %71 = vector.load %arg6[%c0_52, %c1_53, %c0_54, %c0_55] : memref<2x4x128x32xbf16, #tpu.memory_space<vmem>>, vector<1x1x128x32xbf16>
    %72 = vector.shape_cast %71 : vector<1x1x128x32xbf16> to vector<128x32xbf16>
    %cst_56 = arith.constant dense<0.000000e+00> : vector<32x32xf32>
    %73 = tpu.matmul %15, %72, %cst_56 {dimension_numbers = #tpu.dot_dimension_numbers<[1], [0], [0], [1], [0, 0, 1, 1], [], []>} : vector<32x128xbf16>, vector<128x32xbf16>, vector<32x32xf32> -> vector<32x32xf32>
    %c0_57 = arith.constant 0 : index
    %c1_58 = arith.constant 1 : index
    %c0_59 = arith.constant 0 : index
    %c0_60 = arith.constant 0 : index
    %74 = vector.load %arg7[%c0_57, %c1_58, %c0_59, %c0_60] : memref<2x4x1x32xf32, #tpu.memory_space<vmem>>, vector<1x1x1x32xf32>
    %75 = vector.shape_cast %74 : vector<1x1x1x32xf32> to vector<1x32xf32>
    %76 = vector.broadcast %75 : vector<1x32xf32> to vector<32x32xf32>
    %77 = arith.addf %73, %76 : vector<32x32xf32>
    %78 = vector.shape_cast %77 : vector<32x32xf32> to vector<2x16x32xf32>
    %c0_61 = arith.constant 0 : index
    %c1_62 = arith.constant 1 : index
    %c0_63 = arith.constant 0 : index
    %c0_64 = arith.constant 0 : index
    %79 = vector.load %arg8[%c0_61, %c1_62, %c0_63, %c0_64] : memref<2x4x128x32xbf16, #tpu.memory_space<vmem>>, vector<1x1x128x32xbf16>
    %80 = vector.shape_cast %79 : vector<1x1x128x32xbf16> to vector<128x32xbf16>
    %cst_65 = arith.constant dense<0.000000e+00> : vector<32x32xf32>
    %81 = tpu.matmul %15, %80, %cst_65 {dimension_numbers = #tpu.dot_dimension_numbers<[1], [0], [0], [1], [0, 0, 1, 1], [], []>} : vector<32x128xbf16>, vector<128x32xbf16>, vector<32x32xf32> -> vector<32x32xf32>
    %c0_66 = arith.constant 0 : index
    %c1_67 = arith.constant 1 : index
    %c0_68 = arith.constant 0 : index
    %c0_69 = arith.constant 0 : index
    %82 = vector.load %arg9[%c0_66, %c1_67, %c0_68, %c0_69] : memref<2x4x1x32xf32, #tpu.memory_space<vmem>>, vector<1x1x1x32xf32>
    %83 = vector.shape_cast %82 : vector<1x1x1x32xf32> to vector<1x32xf32>
    %84 = vector.broadcast %83 : vector<1x32xf32> to vector<32x32xf32>
    %85 = arith.addf %81, %84 : vector<32x32xf32>
    %86 = vector.shape_cast %85 : vector<32x32xf32> to vector<2x16x32xf32>
    %87 = arith.truncf %70 : vector<2x16x32xf32> to vector<2x16x32xbf16>
    %88 = arith.truncf %78 : vector<2x16x32xf32> to vector<2x16x32xbf16>
    "tpu.trace_start"() <{level = 10 : i32, message = "bnd,bmd->bnm"}> : () -> ()
    %cst_70 = arith.constant dense<0.000000e+00> : vector<2x16x16xf32>
    %89 = tpu.matmul %87, %88, %cst_70 {dimension_numbers = #tpu.dot_dimension_numbers<[2], [2], [1], [1], [0, 0, 0, 1, 1, 1], [0], [0]>} : vector<2x16x32xbf16>, vector<2x16x32xbf16>, vector<2x16x16xf32> -> vector<2x16x16xf32>
    "tpu.trace_stop"() : () -> ()
    %cst_71 = arith.constant dense<0xFF800000> : vector<2x16xf32>
    %90 = vector.multi_reduction <maximumf>, %89, %cst_71 [2] : vector<2x16x16xf32> to vector<2x16xf32>
    %91 = vector.shape_cast %90 : vector<2x16xf32> to vector<2x16x1xf32>
    %92 = vector.broadcast %91 : vector<2x16x1xf32> to vector<2x16x16xf32>
    %93 = arith.subf %89, %92 : vector<2x16x16xf32>
    %94 = math.exp %93 : vector<2x16x16xf32>
    %cst_72 = arith.constant dense<0.000000e+00> : vector<2x16xf32>
    %95 = vector.multi_reduction <add>, %94, %cst_72 [2] : vector<2x16x16xf32> to vector<2x16xf32>
    %96 = vector.shape_cast %95 : vector<2x16xf32> to vector<2x16x1xf32>
    %97 = tpu.reciprocal %96 {approx = true} : vector<2x16x1xf32> -> vector<2x16x1xf32>
    %98 = vector.broadcast %97 : vector<2x16x1xf32> to vector<2x16x16xf32>
    %99 = arith.mulf %94, %98 : vector<2x16x16xf32>
    %100 = arith.truncf %99 : vector<2x16x16xf32> to vector<2x16x16xbf16>
    %101 = arith.truncf %86 : vector<2x16x32xf32> to vector<2x16x32xbf16>
    "tpu.trace_start"() <{level = 10 : i32, message = "bnm,bmd->bnd"}> : () -> ()
    %cst_73 = arith.constant dense<0.000000e+00> : vector<2x16x32xf32>
    %102 = tpu.matmul %100, %101, %cst_73 {dimension_numbers = #tpu.dot_dimension_numbers<[2], [1], [1], [2], [0, 0, 0, 1, 1, 2], [0], [0]>} : vector<2x16x16xbf16>, vector<2x16x32xbf16>, vector<2x16x32xf32> -> vector<2x16x32xf32>
    "tpu.trace_stop"() : () -> ()
    %103 = vector.shape_cast %102 : vector<2x16x32xf32> to vector<32x32xf32>
    %c0_74 = arith.constant 0 : index
    %c1_75 = arith.constant 1 : index
    %c0_76 = arith.constant 0 : index
    %c0_77 = arith.constant 0 : index
    %104 = vector.load %arg10[%c0_74, %c1_75, %c0_76, %c0_77] : memref<2x4x32x128xbf16, #tpu.memory_space<vmem>>, vector<1x1x32x128xbf16>
    %105 = vector.shape_cast %104 : vector<1x1x32x128xbf16> to vector<32x128xbf16>
    %106 = arith.truncf %103 : vector<32x32xf32> to vector<32x32xbf16>
    %cst_78 = arith.constant dense<0.000000e+00> : vector<32x128xf32>
    %107 = tpu.matmul %106, %105, %cst_78 {dimension_numbers = #tpu.dot_dimension_numbers<[1], [0], [0], [1], [0, 0, 1, 1], [], []>} : vector<32x32xbf16>, vector<32x128xbf16>, vector<32x128xf32> -> vector<32x128xf32>
    %108 = arith.addf %62, %107 : vector<32x128xf32>
    %c0_79 = arith.constant 0 : index
    %c2 = arith.constant 2 : index
    %c0_80 = arith.constant 0 : index
    %c0_81 = arith.constant 0 : index
    %109 = vector.load %arg4[%c0_79, %c2, %c0_80, %c0_81] : memref<2x4x128x32xbf16, #tpu.memory_space<vmem>>, vector<1x1x128x32xbf16>
    %110 = vector.shape_cast %109 : vector<1x1x128x32xbf16> to vector<128x32xbf16>
    %cst_82 = arith.constant dense<0.000000e+00> : vector<32x32xf32>
    %111 = tpu.matmul %15, %110, %cst_82 {dimension_numbers = #tpu.dot_dimension_numbers<[1], [0], [0], [1], [0, 0, 1, 1], [], []>} : vector<32x128xbf16>, vector<128x32xbf16>, vector<32x32xf32> -> vector<32x32xf32>
    %c0_83 = arith.constant 0 : index
    %c2_84 = arith.constant 2 : index
    %c0_85 = arith.constant 0 : index
    %c0_86 = arith.constant 0 : index
    %112 = vector.load %arg5[%c0_83, %c2_84, %c0_85, %c0_86] : memref<2x4x1x32xf32, #tpu.memory_space<vmem>>, vector<1x1x1x32xf32>
    %113 = vector.shape_cast %112 : vector<1x1x1x32xf32> to vector<1x32xf32>
    %114 = vector.broadcast %113 : vector<1x32xf32> to vector<32x32xf32>
    %115 = arith.addf %111, %114 : vector<32x32xf32>
    %116 = vector.shape_cast %115 : vector<32x32xf32> to vector<2x16x32xf32>
    %c0_87 = arith.constant 0 : index
    %c2_88 = arith.constant 2 : index
    %c0_89 = arith.constant 0 : index
    %c0_90 = arith.constant 0 : index
    %117 = vector.load %arg6[%c0_87, %c2_88, %c0_89, %c0_90] : memref<2x4x128x32xbf16, #tpu.memory_space<vmem>>, vector<1x1x128x32xbf16>
    %118 = vector.shape_cast %117 : vector<1x1x128x32xbf16> to vector<128x32xbf16>
    %cst_91 = arith.constant dense<0.000000e+00> : vector<32x32xf32>
    %119 = tpu.matmul %15, %118, %cst_91 {dimension_numbers = #tpu.dot_dimension_numbers<[1], [0], [0], [1], [0, 0, 1, 1], [], []>} : vector<32x128xbf16>, vector<128x32xbf16>, vector<32x32xf32> -> vector<32x32xf32>
    %c0_92 = arith.constant 0 : index
    %c2_93 = arith.constant 2 : index
    %c0_94 = arith.constant 0 : index
    %c0_95 = arith.constant 0 : index
    %120 = vector.load %arg7[%c0_92, %c2_93, %c0_94, %c0_95] : memref<2x4x1x32xf32, #tpu.memory_space<vmem>>, vector<1x1x1x32xf32>
    %121 = vector.shape_cast %120 : vector<1x1x1x32xf32> to vector<1x32xf32>
    %122 = vector.broadcast %121 : vector<1x32xf32> to vector<32x32xf32>
    %123 = arith.addf %119, %122 : vector<32x32xf32>
    %124 = vector.shape_cast %123 : vector<32x32xf32> to vector<2x16x32xf32>
    %c0_96 = arith.constant 0 : index
    %c2_97 = arith.constant 2 : index
    %c0_98 = arith.constant 0 : index
    %c0_99 = arith.constant 0 : index
    %125 = vector.load %arg8[%c0_96, %c2_97, %c0_98, %c0_99] : memref<2x4x128x32xbf16, #tpu.memory_space<vmem>>, vector<1x1x128x32xbf16>
    %126 = vector.shape_cast %125 : vector<1x1x128x32xbf16> to vector<128x32xbf16>
    %cst_100 = arith.constant dense<0.000000e+00> : vector<32x32xf32>
    %127 = tpu.matmul %15, %126, %cst_100 {dimension_numbers = #tpu.dot_dimension_numbers<[1], [0], [0], [1], [0, 0, 1, 1], [], []>} : vector<32x128xbf16>, vector<128x32xbf16>, vector<32x32xf32> -> vector<32x32xf32>
    %c0_101 = arith.constant 0 : index
    %c2_102 = arith.constant 2 : index
    %c0_103 = arith.constant 0 : index
    %c0_104 = arith.constant 0 : index
    %128 = vector.load %arg9[%c0_101, %c2_102, %c0_103, %c0_104] : memref<2x4x1x32xf32, #tpu.memory_space<vmem>>, vector<1x1x1x32xf32>
    %129 = vector.shape_cast %128 : vector<1x1x1x32xf32> to vector<1x32xf32>
    %130 = vector.broadcast %129 : vector<1x32xf32> to vector<32x32xf32>
    %131 = arith.addf %127, %130 : vector<32x32xf32>
    %132 = vector.shape_cast %131 : vector<32x32xf32> to vector<2x16x32xf32>
    %133 = arith.truncf %116 : vector<2x16x32xf32> to vector<2x16x32xbf16>
    %134 = arith.truncf %124 : vector<2x16x32xf32> to vector<2x16x32xbf16>
    "tpu.trace_start"() <{level = 10 : i32, message = "bnd,bmd->bnm"}> : () -> ()
    %cst_105 = arith.constant dense<0.000000e+00> : vector<2x16x16xf32>
    %135 = tpu.matmul %133, %134, %cst_105 {dimension_numbers = #tpu.dot_dimension_numbers<[2], [2], [1], [1], [0, 0, 0, 1, 1, 1], [0], [0]>} : vector<2x16x32xbf16>, vector<2x16x32xbf16>, vector<2x16x16xf32> -> vector<2x16x16xf32>
    "tpu.trace_stop"() : () -> ()
    %cst_106 = arith.constant dense<0xFF800000> : vector<2x16xf32>
    %136 = vector.multi_reduction <maximumf>, %135, %cst_106 [2] : vector<2x16x16xf32> to vector<2x16xf32>
    %137 = vector.shape_cast %136 : vector<2x16xf32> to vector<2x16x1xf32>
    %138 = vector.broadcast %137 : vector<2x16x1xf32> to vector<2x16x16xf32>
    %139 = arith.subf %135, %138 : vector<2x16x16xf32>
    %140 = math.exp %139 : vector<2x16x16xf32>
    %cst_107 = arith.constant dense<0.000000e+00> : vector<2x16xf32>
    %141 = vector.multi_reduction <add>, %140, %cst_107 [2] : vector<2x16x16xf32> to vector<2x16xf32>
    %142 = vector.shape_cast %141 : vector<2x16xf32> to vector<2x16x1xf32>
    %143 = tpu.reciprocal %142 {approx = true} : vector<2x16x1xf32> -> vector<2x16x1xf32>
    %144 = vector.broadcast %143 : vector<2x16x1xf32> to vector<2x16x16xf32>
    %145 = arith.mulf %140, %144 : vector<2x16x16xf32>
    %146 = arith.truncf %145 : vector<2x16x16xf32> to vector<2x16x16xbf16>
    %147 = arith.truncf %132 : vector<2x16x32xf32> to vector<2x16x32xbf16>
    "tpu.trace_start"() <{level = 10 : i32, message = "bnm,bmd->bnd"}> : () -> ()
    %cst_108 = arith.constant dense<0.000000e+00> : vector<2x16x32xf32>
    %148 = tpu.matmul %146, %147, %cst_108 {dimension_numbers = #tpu.dot_dimension_numbers<[2], [1], [1], [2], [0, 0, 0, 1, 1, 2], [0], [0]>} : vector<2x16x16xbf16>, vector<2x16x32xbf16>, vector<2x16x32xf32> -> vector<2x16x32xf32>
    "tpu.trace_stop"() : () -> ()
    %149 = vector.shape_cast %148 : vector<2x16x32xf32> to vector<32x32xf32>
    %c0_109 = arith.constant 0 : index
    %c2_110 = arith.constant 2 : index
    %c0_111 = arith.constant 0 : index
    %c0_112 = arith.constant 0 : index
    %150 = vector.load %arg10[%c0_109, %c2_110, %c0_111, %c0_112] : memref<2x4x32x128xbf16, #tpu.memory_space<vmem>>, vector<1x1x32x128xbf16>
    %151 = vector.shape_cast %150 : vector<1x1x32x128xbf16> to vector<32x128xbf16>
    %152 = arith.truncf %149 : vector<32x32xf32> to vector<32x32xbf16>
    %cst_113 = arith.constant dense<0.000000e+00> : vector<32x128xf32>
    %153 = tpu.matmul %152, %151, %cst_113 {dimension_numbers = #tpu.dot_dimension_numbers<[1], [0], [0], [1], [0, 0, 1, 1], [], []>} : vector<32x32xbf16>, vector<32x128xbf16>, vector<32x128xf32> -> vector<32x128xf32>
    %154 = arith.addf %108, %153 : vector<32x128xf32>
    %c0_114 = arith.constant 0 : index
    %c3 = arith.constant 3 : index
    %c0_115 = arith.constant 0 : index
    %c0_116 = arith.constant 0 : index
    %155 = vector.load %arg4[%c0_114, %c3, %c0_115, %c0_116] : memref<2x4x128x32xbf16, #tpu.memory_space<vmem>>, vector<1x1x128x32xbf16>
    %156 = vector.shape_cast %155 : vector<1x1x128x32xbf16> to vector<128x32xbf16>
    %cst_117 = arith.constant dense<0.000000e+00> : vector<32x32xf32>
    %157 = tpu.matmul %15, %156, %cst_117 {dimension_numbers = #tpu.dot_dimension_numbers<[1], [0], [0], [1], [0, 0, 1, 1], [], []>} : vector<32x128xbf16>, vector<128x32xbf16>, vector<32x32xf32> -> vector<32x32xf32>
    %c0_118 = arith.constant 0 : index
    %c3_119 = arith.constant 3 : index
    %c0_120 = arith.constant 0 : index
    %c0_121 = arith.constant 0 : index
    %158 = vector.load %arg5[%c0_118, %c3_119, %c0_120, %c0_121] : memref<2x4x1x32xf32, #tpu.memory_space<vmem>>, vector<1x1x1x32xf32>
    %159 = vector.shape_cast %158 : vector<1x1x1x32xf32> to vector<1x32xf32>
    %160 = vector.broadcast %159 : vector<1x32xf32> to vector<32x32xf32>
    %161 = arith.addf %157, %160 : vector<32x32xf32>
    %162 = vector.shape_cast %161 : vector<32x32xf32> to vector<2x16x32xf32>
    %c0_122 = arith.constant 0 : index
    %c3_123 = arith.constant 3 : index
    %c0_124 = arith.constant 0 : index
    %c0_125 = arith.constant 0 : index
    %163 = vector.load %arg6[%c0_122, %c3_123, %c0_124, %c0_125] : memref<2x4x128x32xbf16, #tpu.memory_space<vmem>>, vector<1x1x128x32xbf16>
    %164 = vector.shape_cast %163 : vector<1x1x128x32xbf16> to vector<128x32xbf16>
    %cst_126 = arith.constant dense<0.000000e+00> : vector<32x32xf32>
    %165 = tpu.matmul %15, %164, %cst_126 {dimension_numbers = #tpu.dot_dimension_numbers<[1], [0], [0], [1], [0, 0, 1, 1], [], []>} : vector<32x128xbf16>, vector<128x32xbf16>, vector<32x32xf32> -> vector<32x32xf32>
    %c0_127 = arith.constant 0 : index
    %c3_128 = arith.constant 3 : index
    %c0_129 = arith.constant 0 : index
    %c0_130 = arith.constant 0 : index
    %166 = vector.load %arg7[%c0_127, %c3_128, %c0_129, %c0_130] : memref<2x4x1x32xf32, #tpu.memory_space<vmem>>, vector<1x1x1x32xf32>
    %167 = vector.shape_cast %166 : vector<1x1x1x32xf32> to vector<1x32xf32>
    %168 = vector.broadcast %167 : vector<1x32xf32> to vector<32x32xf32>
    %169 = arith.addf %165, %168 : vector<32x32xf32>
    %170 = vector.shape_cast %169 : vector<32x32xf32> to vector<2x16x32xf32>
    %c0_131 = arith.constant 0 : index
    %c3_132 = arith.constant 3 : index
    %c0_133 = arith.constant 0 : index
    %c0_134 = arith.constant 0 : index
    %171 = vector.load %arg8[%c0_131, %c3_132, %c0_133, %c0_134] : memref<2x4x128x32xbf16, #tpu.memory_space<vmem>>, vector<1x1x128x32xbf16>
    %172 = vector.shape_cast %171 : vector<1x1x128x32xbf16> to vector<128x32xbf16>
    %cst_135 = arith.constant dense<0.000000e+00> : vector<32x32xf32>
    %173 = tpu.matmul %15, %172, %cst_135 {dimension_numbers = #tpu.dot_dimension_numbers<[1], [0], [0], [1], [0, 0, 1, 1], [], []>} : vector<32x128xbf16>, vector<128x32xbf16>, vector<32x32xf32> -> vector<32x32xf32>
    %c0_136 = arith.constant 0 : index
    %c3_137 = arith.constant 3 : index
    %c0_138 = arith.constant 0 : index
    %c0_139 = arith.constant 0 : index
    %174 = vector.load %arg9[%c0_136, %c3_137, %c0_138, %c0_139] : memref<2x4x1x32xf32, #tpu.memory_space<vmem>>, vector<1x1x1x32xf32>
    %175 = vector.shape_cast %174 : vector<1x1x1x32xf32> to vector<1x32xf32>
    %176 = vector.broadcast %175 : vector<1x32xf32> to vector<32x32xf32>
    %177 = arith.addf %173, %176 : vector<32x32xf32>
    %178 = vector.shape_cast %177 : vector<32x32xf32> to vector<2x16x32xf32>
    %179 = arith.truncf %162 : vector<2x16x32xf32> to vector<2x16x32xbf16>
    %180 = arith.truncf %170 : vector<2x16x32xf32> to vector<2x16x32xbf16>
    "tpu.trace_start"() <{level = 10 : i32, message = "bnd,bmd->bnm"}> : () -> ()
    %cst_140 = arith.constant dense<0.000000e+00> : vector<2x16x16xf32>
    %181 = tpu.matmul %179, %180, %cst_140 {dimension_numbers = #tpu.dot_dimension_numbers<[2], [2], [1], [1], [0, 0, 0, 1, 1, 1], [0], [0]>} : vector<2x16x32xbf16>, vector<2x16x32xbf16>, vector<2x16x16xf32> -> vector<2x16x16xf32>
    "tpu.trace_stop"() : () -> ()
    %cst_141 = arith.constant dense<0xFF800000> : vector<2x16xf32>
    %182 = vector.multi_reduction <maximumf>, %181, %cst_141 [2] : vector<2x16x16xf32> to vector<2x16xf32>
    %183 = vector.shape_cast %182 : vector<2x16xf32> to vector<2x16x1xf32>
    %184 = vector.broadcast %183 : vector<2x16x1xf32> to vector<2x16x16xf32>
    %185 = arith.subf %181, %184 : vector<2x16x16xf32>
    %186 = math.exp %185 : vector<2x16x16xf32>
    %cst_142 = arith.constant dense<0.000000e+00> : vector<2x16xf32>
    %187 = vector.multi_reduction <add>, %186, %cst_142 [2] : vector<2x16x16xf32> to vector<2x16xf32>
    %188 = vector.shape_cast %187 : vector<2x16xf32> to vector<2x16x1xf32>
    %189 = tpu.reciprocal %188 {approx = true} : vector<2x16x1xf32> -> vector<2x16x1xf32>
    %190 = vector.broadcast %189 : vector<2x16x1xf32> to vector<2x16x16xf32>
    %191 = arith.mulf %186, %190 : vector<2x16x16xf32>
    %192 = arith.truncf %191 : vector<2x16x16xf32> to vector<2x16x16xbf16>
    %193 = arith.truncf %178 : vector<2x16x32xf32> to vector<2x16x32xbf16>
    "tpu.trace_start"() <{level = 10 : i32, message = "bnm,bmd->bnd"}> : () -> ()
    %cst_143 = arith.constant dense<0.000000e+00> : vector<2x16x32xf32>
    %194 = tpu.matmul %192, %193, %cst_143 {dimension_numbers = #tpu.dot_dimension_numbers<[2], [1], [1], [2], [0, 0, 0, 1, 1, 2], [0], [0]>} : vector<2x16x16xbf16>, vector<2x16x32xbf16>, vector<2x16x32xf32> -> vector<2x16x32xf32>
    "tpu.trace_stop"() : () -> ()
    %195 = vector.shape_cast %194 : vector<2x16x32xf32> to vector<32x32xf32>
    %c0_144 = arith.constant 0 : index
    %c3_145 = arith.constant 3 : index
    %c0_146 = arith.constant 0 : index
    %c0_147 = arith.constant 0 : index
    %196 = vector.load %arg10[%c0_144, %c3_145, %c0_146, %c0_147] : memref<2x4x32x128xbf16, #tpu.memory_space<vmem>>, vector<1x1x32x128xbf16>
    %197 = vector.shape_cast %196 : vector<1x1x32x128xbf16> to vector<32x128xbf16>
    %198 = arith.truncf %195 : vector<32x32xf32> to vector<32x32xbf16>
    %cst_148 = arith.constant dense<0.000000e+00> : vector<32x128xf32>
    %199 = tpu.matmul %198, %197, %cst_148 {dimension_numbers = #tpu.dot_dimension_numbers<[1], [0], [0], [1], [0, 0, 1, 1], [], []>} : vector<32x32xbf16>, vector<32x128xbf16>, vector<32x128xf32> -> vector<32x128xf32>
    %200 = arith.addf %154, %199 : vector<32x128xf32>
    %c0_149 = arith.constant 0 : index
    %c0_150 = arith.constant 0 : index
    %c0_151 = arith.constant 0 : index
    %201 = vector.load %arg11[%c0_149, %c0_150, %c0_151] : memref<2x1x128xf32, #tpu.memory_space<vmem>>, vector<1x1x128xf32>
    %202 = vector.shape_cast %201 : vector<1x1x128xf32> to vector<1x128xf32>
    %203 = vector.broadcast %202 : vector<1x128xf32> to vector<32x128xf32>
    %204 = arith.addf %200, %203 : vector<32x128xf32>
    %205 = arith.addf %14, %204 : vector<32x128xf32>
    %c0_152 = arith.constant 0 : index
    %c0_153 = arith.constant 0 : index
    %c0_154 = arith.constant 0 : index
    %206 = vector.load %arg12[%c0_152, %c0_153, %c0_154] : memref<2x1x128xf32, #tpu.memory_space<vmem>>, vector<1x1x128xf32>
    %207 = vector.shape_cast %206 : vector<1x1x128xf32> to vector<1x128xf32>
    %c0_155 = arith.constant 0 : index
    %c0_156 = arith.constant 0 : index
    %c0_157 = arith.constant 0 : index
    %208 = vector.load %arg13[%c0_155, %c0_156, %c0_157] : memref<2x1x128xf32, #tpu.memory_space<vmem>>, vector<1x1x128xf32>
    %209 = vector.shape_cast %208 : vector<1x1x128xf32> to vector<1x128xf32>
    %cst_158 = arith.constant dense<0.000000e+00> : vector<32xf32>
    %210 = vector.multi_reduction <add>, %205, %cst_158 [1] : vector<32x128xf32> to vector<32xf32>
    %211 = vector.shape_cast %210 : vector<32xf32> to vector<32x1xf32>
    %cst_159 = arith.constant 1.280000e+02 : f32
    %212 = vector.broadcast %cst_159 : f32 to vector<32x1xf32>
    %213 = arith.divf %211, %212 : vector<32x1xf32>
    %214 = vector.broadcast %213 : vector<32x1xf32> to vector<32x128xf32>
    %215 = arith.subf %205, %214 : vector<32x128xf32>
    %216 = arith.mulf %215, %215 : vector<32x128xf32>
    %cst_160 = arith.constant dense<0.000000e+00> : vector<32xf32>
    %217 = vector.multi_reduction <add>, %216, %cst_160 [1] : vector<32x128xf32> to vector<32xf32>
    %218 = vector.shape_cast %217 : vector<32xf32> to vector<32x1xf32>
    %cst_161 = arith.constant 1.280000e+02 : f32
    %219 = vector.broadcast %cst_161 : f32 to vector<32x1xf32>
    %220 = arith.divf %218, %219 : vector<32x1xf32>
    %221 = vector.broadcast %213 : vector<32x1xf32> to vector<32x128xf32>
    %222 = arith.subf %205, %221 : vector<32x128xf32>
    %cst_162 = arith.constant 9.99999974E-6 : f32
    %223 = vector.broadcast %cst_162 : f32 to vector<32x1xf32>
    %224 = arith.addf %220, %223 : vector<32x1xf32>
    %225 = math.rsqrt %224 : vector<32x1xf32>
    %226 = vector.broadcast %225 : vector<32x1xf32> to vector<32x128xf32>
    %227 = arith.mulf %222, %226 : vector<32x128xf32>
    %228 = vector.broadcast %207 : vector<1x128xf32> to vector<32x128xf32>
    %229 = arith.mulf %227, %228 : vector<32x128xf32>
    %230 = vector.broadcast %209 : vector<1x128xf32> to vector<32x128xf32>
    %231 = arith.addf %229, %230 : vector<32x128xf32>
    %c0_163 = arith.constant 0 : index
    %c0_164 = arith.constant 0 : index
    %c0_165 = arith.constant 0 : index
    %232 = vector.load %arg14[%c0_163, %c0_164, %c0_165] : memref<2x128x2048xbf16, #tpu.memory_space<vmem>>, vector<1x128x2048xbf16>
    %233 = vector.shape_cast %232 : vector<1x128x2048xbf16> to vector<128x2048xbf16>
    %234 = arith.truncf %231 : vector<32x128xf32> to vector<32x128xbf16>
    %cst_166 = arith.constant dense<0.000000e+00> : vector<32x2048xf32>
    %235 = tpu.matmul %234, %233, %cst_166 {dimension_numbers = #tpu.dot_dimension_numbers<[1], [0], [0], [1], [0, 0, 1, 1], [], []>} : vector<32x128xbf16>, vector<128x2048xbf16>, vector<32x2048xf32> -> vector<32x2048xf32>
    %c0_167 = arith.constant 0 : index
    %c0_168 = arith.constant 0 : index
    %c0_169 = arith.constant 0 : index
    %236 = vector.load %arg15[%c0_167, %c0_168, %c0_169] : memref<2x1x2048xf32, #tpu.memory_space<vmem>>, vector<1x1x2048xf32>
    %237 = vector.shape_cast %236 : vector<1x1x2048xf32> to vector<1x2048xf32>
    %238 = vector.broadcast %237 : vector<1x2048xf32> to vector<32x2048xf32>
    %239 = arith.addf %235, %238 : vector<32x2048xf32>
    %cst_170 = arith.constant 0.000000e+00 : f32
    %240 = vector.broadcast %cst_170 : f32 to vector<32x2048xf32>
    %241 = arith.maximumf %239, %240 : vector<32x2048xf32>
    %c0_171 = arith.constant 0 : index
    %c0_172 = arith.constant 0 : index
    %c0_173 = arith.constant 0 : index
    %242 = vector.load %arg16[%c0_171, %c0_172, %c0_173] : memref<2x2048x128xbf16, #tpu.memory_space<vmem>>, vector<1x2048x128xbf16>
    %243 = vector.shape_cast %242 : vector<1x2048x128xbf16> to vector<2048x128xbf16>
    %244 = arith.truncf %241 : vector<32x2048xf32> to vector<32x2048xbf16>
    %cst_174 = arith.constant dense<0.000000e+00> : vector<32x128xf32>
    %245 = tpu.matmul %244, %243, %cst_174 {dimension_numbers = #tpu.dot_dimension_numbers<[1], [0], [0], [1], [0, 0, 1, 1], [], []>} : vector<32x2048xbf16>, vector<2048x128xbf16>, vector<32x128xf32> -> vector<32x128xf32>
    %c0_175 = arith.constant 0 : index
    %c0_176 = arith.constant 0 : index
    %c0_177 = arith.constant 0 : index
    %246 = vector.load %arg17[%c0_175, %c0_176, %c0_177] : memref<2x1x128xf32, #tpu.memory_space<vmem>>, vector<1x1x128xf32>
    %247 = vector.shape_cast %246 : vector<1x1x128xf32> to vector<1x128xf32>
    %248 = vector.broadcast %247 : vector<1x128xf32> to vector<32x128xf32>
    %249 = arith.addf %245, %248 : vector<32x128xf32>
    %250 = arith.addf %231, %249 : vector<32x128xf32>
    %c0_178 = arith.constant 0 : index
    %c0_179 = arith.constant 0 : index
    %c0_180 = arith.constant 0 : index
    %251 = vector.load %arg18[%c0_178, %c0_179, %c0_180] : memref<2x1x128xf32, #tpu.memory_space<vmem>>, vector<1x1x128xf32>
    %252 = vector.shape_cast %251 : vector<1x1x128xf32> to vector<1x128xf32>
    %c0_181 = arith.constant 0 : index
    %c0_182 = arith.constant 0 : index
    %c0_183 = arith.constant 0 : index
    %253 = vector.load %arg19[%c0_181, %c0_182, %c0_183] : memref<2x1x128xf32, #tpu.memory_space<vmem>>, vector<1x1x128xf32>
    %254 = vector.shape_cast %253 : vector<1x1x128xf32> to vector<1x128xf32>
    %cst_184 = arith.constant dense<0.000000e+00> : vector<32xf32>
    %255 = vector.multi_reduction <add>, %250, %cst_184 [1] : vector<32x128xf32> to vector<32xf32>
    %256 = vector.shape_cast %255 : vector<32xf32> to vector<32x1xf32>
    %cst_185 = arith.constant 1.280000e+02 : f32
    %257 = vector.broadcast %cst_185 : f32 to vector<32x1xf32>
    %258 = arith.divf %256, %257 : vector<32x1xf32>
    %259 = vector.broadcast %258 : vector<32x1xf32> to vector<32x128xf32>
    %260 = arith.subf %250, %259 : vector<32x128xf32>
    %261 = arith.mulf %260, %260 : vector<32x128xf32>
    %cst_186 = arith.constant dense<0.000000e+00> : vector<32xf32>
    %262 = vector.multi_reduction <add>, %261, %cst_186 [1] : vector<32x128xf32> to vector<32xf32>
    %263 = vector.shape_cast %262 : vector<32xf32> to vector<32x1xf32>
    %cst_187 = arith.constant 1.280000e+02 : f32
    %264 = vector.broadcast %cst_187 : f32 to vector<32x1xf32>
    %265 = arith.divf %263, %264 : vector<32x1xf32>
    %266 = vector.broadcast %258 : vector<32x1xf32> to vector<32x128xf32>
    %267 = arith.subf %250, %266 : vector<32x128xf32>
    %cst_188 = arith.constant 9.99999974E-6 : f32
    %268 = vector.broadcast %cst_188 : f32 to vector<32x1xf32>
    %269 = arith.addf %265, %268 : vector<32x1xf32>
    %270 = math.rsqrt %269 : vector<32x1xf32>
    %271 = vector.broadcast %270 : vector<32x1xf32> to vector<32x128xf32>
    %272 = arith.mulf %267, %271 : vector<32x128xf32>
    %273 = vector.broadcast %252 : vector<1x128xf32> to vector<32x128xf32>
    %274 = arith.mulf %272, %273 : vector<32x128xf32>
    %275 = vector.broadcast %254 : vector<1x128xf32> to vector<32x128xf32>
    %276 = arith.addf %274, %275 : vector<32x128xf32>
    %277 = arith.truncf %276 : vector<32x128xf32> to vector<32x128xbf16>
    %cst_189 = arith.constant 0.000000e+00 : f32
    %278 = vector.broadcast %cst_189 : f32 to vector<32x128xf32>
    %c1_190 = arith.constant 1 : index
    %c0_191 = arith.constant 0 : index
    %c0_192 = arith.constant 0 : index
    %c0_193 = arith.constant 0 : index
    %279 = vector.load %arg4[%c1_190, %c0_191, %c0_192, %c0_193] : memref<2x4x128x32xbf16, #tpu.memory_space<vmem>>, vector<1x1x128x32xbf16>
    %280 = vector.shape_cast %279 : vector<1x1x128x32xbf16> to vector<128x32xbf16>
    %cst_194 = arith.constant dense<0.000000e+00> : vector<32x32xf32>
    %281 = tpu.matmul %277, %280, %cst_194 {dimension_numbers = #tpu.dot_dimension_numbers<[1], [0], [0], [1], [0, 0, 1, 1], [], []>} : vector<32x128xbf16>, vector<128x32xbf16>, vector<32x32xf32> -> vector<32x32xf32>
    %c1_195 = arith.constant 1 : index
    %c0_196 = arith.constant 0 : index
    %c0_197 = arith.constant 0 : index
    %c0_198 = arith.constant 0 : index
    %282 = vector.load %arg5[%c1_195, %c0_196, %c0_197, %c0_198] : memref<2x4x1x32xf32, #tpu.memory_space<vmem>>, vector<1x1x1x32xf32>
    %283 = vector.shape_cast %282 : vector<1x1x1x32xf32> to vector<1x32xf32>
    %284 = vector.broadcast %283 : vector<1x32xf32> to vector<32x32xf32>
    %285 = arith.addf %281, %284 : vector<32x32xf32>
    %286 = vector.shape_cast %285 : vector<32x32xf32> to vector<2x16x32xf32>
    %c1_199 = arith.constant 1 : index
    %c0_200 = arith.constant 0 : index
    %c0_201 = arith.constant 0 : index
    %c0_202 = arith.constant 0 : index
    %287 = vector.load %arg6[%c1_199, %c0_200, %c0_201, %c0_202] : memref<2x4x128x32xbf16, #tpu.memory_space<vmem>>, vector<1x1x128x32xbf16>
    %288 = vector.shape_cast %287 : vector<1x1x128x32xbf16> to vector<128x32xbf16>
    %cst_203 = arith.constant dense<0.000000e+00> : vector<32x32xf32>
    %289 = tpu.matmul %277, %288, %cst_203 {dimension_numbers = #tpu.dot_dimension_numbers<[1], [0], [0], [1], [0, 0, 1, 1], [], []>} : vector<32x128xbf16>, vector<128x32xbf16>, vector<32x32xf32> -> vector<32x32xf32>
    %c1_204 = arith.constant 1 : index
    %c0_205 = arith.constant 0 : index
    %c0_206 = arith.constant 0 : index
    %c0_207 = arith.constant 0 : index
    %290 = vector.load %arg7[%c1_204, %c0_205, %c0_206, %c0_207] : memref<2x4x1x32xf32, #tpu.memory_space<vmem>>, vector<1x1x1x32xf32>
    %291 = vector.shape_cast %290 : vector<1x1x1x32xf32> to vector<1x32xf32>
    %292 = vector.broadcast %291 : vector<1x32xf32> to vector<32x32xf32>
    %293 = arith.addf %289, %292 : vector<32x32xf32>
    %294 = vector.shape_cast %293 : vector<32x32xf32> to vector<2x16x32xf32>
    %c1_208 = arith.constant 1 : index
    %c0_209 = arith.constant 0 : index
    %c0_210 = arith.constant 0 : index
    %c0_211 = arith.constant 0 : index
    %295 = vector.load %arg8[%c1_208, %c0_209, %c0_210, %c0_211] : memref<2x4x128x32xbf16, #tpu.memory_space<vmem>>, vector<1x1x128x32xbf16>
    %296 = vector.shape_cast %295 : vector<1x1x128x32xbf16> to vector<128x32xbf16>
    %cst_212 = arith.constant dense<0.000000e+00> : vector<32x32xf32>
    %297 = tpu.matmul %277, %296, %cst_212 {dimension_numbers = #tpu.dot_dimension_numbers<[1], [0], [0], [1], [0, 0, 1, 1], [], []>} : vector<32x128xbf16>, vector<128x32xbf16>, vector<32x32xf32> -> vector<32x32xf32>
    %c1_213 = arith.constant 1 : index
    %c0_214 = arith.constant 0 : index
    %c0_215 = arith.constant 0 : index
    %c0_216 = arith.constant 0 : index
    %298 = vector.load %arg9[%c1_213, %c0_214, %c0_215, %c0_216] : memref<2x4x1x32xf32, #tpu.memory_space<vmem>>, vector<1x1x1x32xf32>
    %299 = vector.shape_cast %298 : vector<1x1x1x32xf32> to vector<1x32xf32>
    %300 = vector.broadcast %299 : vector<1x32xf32> to vector<32x32xf32>
    %301 = arith.addf %297, %300 : vector<32x32xf32>
    %302 = vector.shape_cast %301 : vector<32x32xf32> to vector<2x16x32xf32>
    %303 = arith.truncf %286 : vector<2x16x32xf32> to vector<2x16x32xbf16>
    %304 = arith.truncf %294 : vector<2x16x32xf32> to vector<2x16x32xbf16>
    "tpu.trace_start"() <{level = 10 : i32, message = "bnd,bmd->bnm"}> : () -> ()
    %cst_217 = arith.constant dense<0.000000e+00> : vector<2x16x16xf32>
    %305 = tpu.matmul %303, %304, %cst_217 {dimension_numbers = #tpu.dot_dimension_numbers<[2], [2], [1], [1], [0, 0, 0, 1, 1, 1], [0], [0]>} : vector<2x16x32xbf16>, vector<2x16x32xbf16>, vector<2x16x16xf32> -> vector<2x16x16xf32>
    "tpu.trace_stop"() : () -> ()
    %cst_218 = arith.constant dense<0xFF800000> : vector<2x16xf32>
    %306 = vector.multi_reduction <maximumf>, %305, %cst_218 [2] : vector<2x16x16xf32> to vector<2x16xf32>
    %307 = vector.shape_cast %306 : vector<2x16xf32> to vector<2x16x1xf32>
    %308 = vector.broadcast %307 : vector<2x16x1xf32> to vector<2x16x16xf32>
    %309 = arith.subf %305, %308 : vector<2x16x16xf32>
    %310 = math.exp %309 : vector<2x16x16xf32>
    %cst_219 = arith.constant dense<0.000000e+00> : vector<2x16xf32>
    %311 = vector.multi_reduction <add>, %310, %cst_219 [2] : vector<2x16x16xf32> to vector<2x16xf32>
    %312 = vector.shape_cast %311 : vector<2x16xf32> to vector<2x16x1xf32>
    %313 = tpu.reciprocal %312 {approx = true} : vector<2x16x1xf32> -> vector<2x16x1xf32>
    %314 = vector.broadcast %313 : vector<2x16x1xf32> to vector<2x16x16xf32>
    %315 = arith.mulf %310, %314 : vector<2x16x16xf32>
    %316 = arith.truncf %315 : vector<2x16x16xf32> to vector<2x16x16xbf16>
    %317 = arith.truncf %302 : vector<2x16x32xf32> to vector<2x16x32xbf16>
    "tpu.trace_start"() <{level = 10 : i32, message = "bnm,bmd->bnd"}> : () -> ()
    %cst_220 = arith.constant dense<0.000000e+00> : vector<2x16x32xf32>
    %318 = tpu.matmul %316, %317, %cst_220 {dimension_numbers = #tpu.dot_dimension_numbers<[2], [1], [1], [2], [0, 0, 0, 1, 1, 2], [0], [0]>} : vector<2x16x16xbf16>, vector<2x16x32xbf16>, vector<2x16x32xf32> -> vector<2x16x32xf32>
    "tpu.trace_stop"() : () -> ()
    %319 = vector.shape_cast %318 : vector<2x16x32xf32> to vector<32x32xf32>
    %c1_221 = arith.constant 1 : index
    %c0_222 = arith.constant 0 : index
    %c0_223 = arith.constant 0 : index
    %c0_224 = arith.constant 0 : index
    %320 = vector.load %arg10[%c1_221, %c0_222, %c0_223, %c0_224] : memref<2x4x32x128xbf16, #tpu.memory_space<vmem>>, vector<1x1x32x128xbf16>
    %321 = vector.shape_cast %320 : vector<1x1x32x128xbf16> to vector<32x128xbf16>
    %322 = arith.truncf %319 : vector<32x32xf32> to vector<32x32xbf16>
    %cst_225 = arith.constant dense<0.000000e+00> : vector<32x128xf32>
    %323 = tpu.matmul %322, %321, %cst_225 {dimension_numbers = #tpu.dot_dimension_numbers<[1], [0], [0], [1], [0, 0, 1, 1], [], []>} : vector<32x32xbf16>, vector<32x128xbf16>, vector<32x128xf32> -> vector<32x128xf32>
    %324 = arith.addf %278, %323 : vector<32x128xf32>
    %c1_226 = arith.constant 1 : index
    %c1_227 = arith.constant 1 : index
    %c0_228 = arith.constant 0 : index
    %c0_229 = arith.constant 0 : index
    %325 = vector.load %arg4[%c1_226, %c1_227, %c0_228, %c0_229] : memref<2x4x128x32xbf16, #tpu.memory_space<vmem>>, vector<1x1x128x32xbf16>
    %326 = vector.shape_cast %325 : vector<1x1x128x32xbf16> to vector<128x32xbf16>
    %cst_230 = arith.constant dense<0.000000e+00> : vector<32x32xf32>
    %327 = tpu.matmul %277, %326, %cst_230 {dimension_numbers = #tpu.dot_dimension_numbers<[1], [0], [0], [1], [0, 0, 1, 1], [], []>} : vector<32x128xbf16>, vector<128x32xbf16>, vector<32x32xf32> -> vector<32x32xf32>
    %c1_231 = arith.constant 1 : index
    %c1_232 = arith.constant 1 : index
    %c0_233 = arith.constant 0 : index
    %c0_234 = arith.constant 0 : index
    %328 = vector.load %arg5[%c1_231, %c1_232, %c0_233, %c0_234] : memref<2x4x1x32xf32, #tpu.memory_space<vmem>>, vector<1x1x1x32xf32>
    %329 = vector.shape_cast %328 : vector<1x1x1x32xf32> to vector<1x32xf32>
    %330 = vector.broadcast %329 : vector<1x32xf32> to vector<32x32xf32>
    %331 = arith.addf %327, %330 : vector<32x32xf32>
    %332 = vector.shape_cast %331 : vector<32x32xf32> to vector<2x16x32xf32>
    %c1_235 = arith.constant 1 : index
    %c1_236 = arith.constant 1 : index
    %c0_237 = arith.constant 0 : index
    %c0_238 = arith.constant 0 : index
    %333 = vector.load %arg6[%c1_235, %c1_236, %c0_237, %c0_238] : memref<2x4x128x32xbf16, #tpu.memory_space<vmem>>, vector<1x1x128x32xbf16>
    %334 = vector.shape_cast %333 : vector<1x1x128x32xbf16> to vector<128x32xbf16>
    %cst_239 = arith.constant dense<0.000000e+00> : vector<32x32xf32>
    %335 = tpu.matmul %277, %334, %cst_239 {dimension_numbers = #tpu.dot_dimension_numbers<[1], [0], [0], [1], [0, 0, 1, 1], [], []>} : vector<32x128xbf16>, vector<128x32xbf16>, vector<32x32xf32> -> vector<32x32xf32>
    %c1_240 = arith.constant 1 : index
    %c1_241 = arith.constant 1 : index
    %c0_242 = arith.constant 0 : index
    %c0_243 = arith.constant 0 : index
    %336 = vector.load %arg7[%c1_240, %c1_241, %c0_242, %c0_243] : memref<2x4x1x32xf32, #tpu.memory_space<vmem>>, vector<1x1x1x32xf32>
    %337 = vector.shape_cast %336 : vector<1x1x1x32xf32> to vector<1x32xf32>
    %338 = vector.broadcast %337 : vector<1x32xf32> to vector<32x32xf32>
    %339 = arith.addf %335, %338 : vector<32x32xf32>
    %340 = vector.shape_cast %339 : vector<32x32xf32> to vector<2x16x32xf32>
    %c1_244 = arith.constant 1 : index
    %c1_245 = arith.constant 1 : index
    %c0_246 = arith.constant 0 : index
    %c0_247 = arith.constant 0 : index
    %341 = vector.load %arg8[%c1_244, %c1_245, %c0_246, %c0_247] : memref<2x4x128x32xbf16, #tpu.memory_space<vmem>>, vector<1x1x128x32xbf16>
    %342 = vector.shape_cast %341 : vector<1x1x128x32xbf16> to vector<128x32xbf16>
    %cst_248 = arith.constant dense<0.000000e+00> : vector<32x32xf32>
    %343 = tpu.matmul %277, %342, %cst_248 {dimension_numbers = #tpu.dot_dimension_numbers<[1], [0], [0], [1], [0, 0, 1, 1], [], []>} : vector<32x128xbf16>, vector<128x32xbf16>, vector<32x32xf32> -> vector<32x32xf32>
    %c1_249 = arith.constant 1 : index
    %c1_250 = arith.constant 1 : index
    %c0_251 = arith.constant 0 : index
    %c0_252 = arith.constant 0 : index
    %344 = vector.load %arg9[%c1_249, %c1_250, %c0_251, %c0_252] : memref<2x4x1x32xf32, #tpu.memory_space<vmem>>, vector<1x1x1x32xf32>
    %345 = vector.shape_cast %344 : vector<1x1x1x32xf32> to vector<1x32xf32>
    %346 = vector.broadcast %345 : vector<1x32xf32> to vector<32x32xf32>
    %347 = arith.addf %343, %346 : vector<32x32xf32>
    %348 = vector.shape_cast %347 : vector<32x32xf32> to vector<2x16x32xf32>
    %349 = arith.truncf %332 : vector<2x16x32xf32> to vector<2x16x32xbf16>
    %350 = arith.truncf %340 : vector<2x16x32xf32> to vector<2x16x32xbf16>
    "tpu.trace_start"() <{level = 10 : i32, message = "bnd,bmd->bnm"}> : () -> ()
    %cst_253 = arith.constant dense<0.000000e+00> : vector<2x16x16xf32>
    %351 = tpu.matmul %349, %350, %cst_253 {dimension_numbers = #tpu.dot_dimension_numbers<[2], [2], [1], [1], [0, 0, 0, 1, 1, 1], [0], [0]>} : vector<2x16x32xbf16>, vector<2x16x32xbf16>, vector<2x16x16xf32> -> vector<2x16x16xf32>
    "tpu.trace_stop"() : () -> ()
    %cst_254 = arith.constant dense<0xFF800000> : vector<2x16xf32>
    %352 = vector.multi_reduction <maximumf>, %351, %cst_254 [2] : vector<2x16x16xf32> to vector<2x16xf32>
    %353 = vector.shape_cast %352 : vector<2x16xf32> to vector<2x16x1xf32>
    %354 = vector.broadcast %353 : vector<2x16x1xf32> to vector<2x16x16xf32>
    %355 = arith.subf %351, %354 : vector<2x16x16xf32>
    %356 = math.exp %355 : vector<2x16x16xf32>
    %cst_255 = arith.constant dense<0.000000e+00> : vector<2x16xf32>
    %357 = vector.multi_reduction <add>, %356, %cst_255 [2] : vector<2x16x16xf32> to vector<2x16xf32>
    %358 = vector.shape_cast %357 : vector<2x16xf32> to vector<2x16x1xf32>
    %359 = tpu.reciprocal %358 {approx = true} : vector<2x16x1xf32> -> vector<2x16x1xf32>
    %360 = vector.broadcast %359 : vector<2x16x1xf32> to vector<2x16x16xf32>
    %361 = arith.mulf %356, %360 : vector<2x16x16xf32>
    %362 = arith.truncf %361 : vector<2x16x16xf32> to vector<2x16x16xbf16>
    %363 = arith.truncf %348 : vector<2x16x32xf32> to vector<2x16x32xbf16>
    "tpu.trace_start"() <{level = 10 : i32, message = "bnm,bmd->bnd"}> : () -> ()
    %cst_256 = arith.constant dense<0.000000e+00> : vector<2x16x32xf32>
    %364 = tpu.matmul %362, %363, %cst_256 {dimension_numbers = #tpu.dot_dimension_numbers<[2], [1], [1], [2], [0, 0, 0, 1, 1, 2], [0], [0]>} : vector<2x16x16xbf16>, vector<2x16x32xbf16>, vector<2x16x32xf32> -> vector<2x16x32xf32>
    "tpu.trace_stop"() : () -> ()
    %365 = vector.shape_cast %364 : vector<2x16x32xf32> to vector<32x32xf32>
    %c1_257 = arith.constant 1 : index
    %c1_258 = arith.constant 1 : index
    %c0_259 = arith.constant 0 : index
    %c0_260 = arith.constant 0 : index
    %366 = vector.load %arg10[%c1_257, %c1_258, %c0_259, %c0_260] : memref<2x4x32x128xbf16, #tpu.memory_space<vmem>>, vector<1x1x32x128xbf16>
    %367 = vector.shape_cast %366 : vector<1x1x32x128xbf16> to vector<32x128xbf16>
    %368 = arith.truncf %365 : vector<32x32xf32> to vector<32x32xbf16>
    %cst_261 = arith.constant dense<0.000000e+00> : vector<32x128xf32>
    %369 = tpu.matmul %368, %367, %cst_261 {dimension_numbers = #tpu.dot_dimension_numbers<[1], [0], [0], [1], [0, 0, 1, 1], [], []>} : vector<32x32xbf16>, vector<32x128xbf16>, vector<32x128xf32> -> vector<32x128xf32>
    %370 = arith.addf %324, %369 : vector<32x128xf32>
    %c1_262 = arith.constant 1 : index
    %c2_263 = arith.constant 2 : index
    %c0_264 = arith.constant 0 : index
    %c0_265 = arith.constant 0 : index
    %371 = vector.load %arg4[%c1_262, %c2_263, %c0_264, %c0_265] : memref<2x4x128x32xbf16, #tpu.memory_space<vmem>>, vector<1x1x128x32xbf16>
    %372 = vector.shape_cast %371 : vector<1x1x128x32xbf16> to vector<128x32xbf16>
    %cst_266 = arith.constant dense<0.000000e+00> : vector<32x32xf32>
    %373 = tpu.matmul %277, %372, %cst_266 {dimension_numbers = #tpu.dot_dimension_numbers<[1], [0], [0], [1], [0, 0, 1, 1], [], []>} : vector<32x128xbf16>, vector<128x32xbf16>, vector<32x32xf32> -> vector<32x32xf32>
    %c1_267 = arith.constant 1 : index
    %c2_268 = arith.constant 2 : index
    %c0_269 = arith.constant 0 : index
    %c0_270 = arith.constant 0 : index
    %374 = vector.load %arg5[%c1_267, %c2_268, %c0_269, %c0_270] : memref<2x4x1x32xf32, #tpu.memory_space<vmem>>, vector<1x1x1x32xf32>
    %375 = vector.shape_cast %374 : vector<1x1x1x32xf32> to vector<1x32xf32>
    %376 = vector.broadcast %375 : vector<1x32xf32> to vector<32x32xf32>
    %377 = arith.addf %373, %376 : vector<32x32xf32>
    %378 = vector.shape_cast %377 : vector<32x32xf32> to vector<2x16x32xf32>
    %c1_271 = arith.constant 1 : index
    %c2_272 = arith.constant 2 : index
    %c0_273 = arith.constant 0 : index
    %c0_274 = arith.constant 0 : index
    %379 = vector.load %arg6[%c1_271, %c2_272, %c0_273, %c0_274] : memref<2x4x128x32xbf16, #tpu.memory_space<vmem>>, vector<1x1x128x32xbf16>
    %380 = vector.shape_cast %379 : vector<1x1x128x32xbf16> to vector<128x32xbf16>
    %cst_275 = arith.constant dense<0.000000e+00> : vector<32x32xf32>
    %381 = tpu.matmul %277, %380, %cst_275 {dimension_numbers = #tpu.dot_dimension_numbers<[1], [0], [0], [1], [0, 0, 1, 1], [], []>} : vector<32x128xbf16>, vector<128x32xbf16>, vector<32x32xf32> -> vector<32x32xf32>
    %c1_276 = arith.constant 1 : index
    %c2_277 = arith.constant 2 : index
    %c0_278 = arith.constant 0 : index
    %c0_279 = arith.constant 0 : index
    %382 = vector.load %arg7[%c1_276, %c2_277, %c0_278, %c0_279] : memref<2x4x1x32xf32, #tpu.memory_space<vmem>>, vector<1x1x1x32xf32>
    %383 = vector.shape_cast %382 : vector<1x1x1x32xf32> to vector<1x32xf32>
    %384 = vector.broadcast %383 : vector<1x32xf32> to vector<32x32xf32>
    %385 = arith.addf %381, %384 : vector<32x32xf32>
    %386 = vector.shape_cast %385 : vector<32x32xf32> to vector<2x16x32xf32>
    %c1_280 = arith.constant 1 : index
    %c2_281 = arith.constant 2 : index
    %c0_282 = arith.constant 0 : index
    %c0_283 = arith.constant 0 : index
    %387 = vector.load %arg8[%c1_280, %c2_281, %c0_282, %c0_283] : memref<2x4x128x32xbf16, #tpu.memory_space<vmem>>, vector<1x1x128x32xbf16>
    %388 = vector.shape_cast %387 : vector<1x1x128x32xbf16> to vector<128x32xbf16>
    %cst_284 = arith.constant dense<0.000000e+00> : vector<32x32xf32>
    %389 = tpu.matmul %277, %388, %cst_284 {dimension_numbers = #tpu.dot_dimension_numbers<[1], [0], [0], [1], [0, 0, 1, 1], [], []>} : vector<32x128xbf16>, vector<128x32xbf16>, vector<32x32xf32> -> vector<32x32xf32>
    %c1_285 = arith.constant 1 : index
    %c2_286 = arith.constant 2 : index
    %c0_287 = arith.constant 0 : index
    %c0_288 = arith.constant 0 : index
    %390 = vector.load %arg9[%c1_285, %c2_286, %c0_287, %c0_288] : memref<2x4x1x32xf32, #tpu.memory_space<vmem>>, vector<1x1x1x32xf32>
    %391 = vector.shape_cast %390 : vector<1x1x1x32xf32> to vector<1x32xf32>
    %392 = vector.broadcast %391 : vector<1x32xf32> to vector<32x32xf32>
    %393 = arith.addf %389, %392 : vector<32x32xf32>
    %394 = vector.shape_cast %393 : vector<32x32xf32> to vector<2x16x32xf32>
    %395 = arith.truncf %378 : vector<2x16x32xf32> to vector<2x16x32xbf16>
    %396 = arith.truncf %386 : vector<2x16x32xf32> to vector<2x16x32xbf16>
    "tpu.trace_start"() <{level = 10 : i32, message = "bnd,bmd->bnm"}> : () -> ()
    %cst_289 = arith.constant dense<0.000000e+00> : vector<2x16x16xf32>
    %397 = tpu.matmul %395, %396, %cst_289 {dimension_numbers = #tpu.dot_dimension_numbers<[2], [2], [1], [1], [0, 0, 0, 1, 1, 1], [0], [0]>} : vector<2x16x32xbf16>, vector<2x16x32xbf16>, vector<2x16x16xf32> -> vector<2x16x16xf32>
    "tpu.trace_stop"() : () -> ()
    %cst_290 = arith.constant dense<0xFF800000> : vector<2x16xf32>
    %398 = vector.multi_reduction <maximumf>, %397, %cst_290 [2] : vector<2x16x16xf32> to vector<2x16xf32>
    %399 = vector.shape_cast %398 : vector<2x16xf32> to vector<2x16x1xf32>
    %400 = vector.broadcast %399 : vector<2x16x1xf32> to vector<2x16x16xf32>
    %401 = arith.subf %397, %400 : vector<2x16x16xf32>
    %402 = math.exp %401 : vector<2x16x16xf32>
    %cst_291 = arith.constant dense<0.000000e+00> : vector<2x16xf32>
    %403 = vector.multi_reduction <add>, %402, %cst_291 [2] : vector<2x16x16xf32> to vector<2x16xf32>
    %404 = vector.shape_cast %403 : vector<2x16xf32> to vector<2x16x1xf32>
    %405 = tpu.reciprocal %404 {approx = true} : vector<2x16x1xf32> -> vector<2x16x1xf32>
    %406 = vector.broadcast %405 : vector<2x16x1xf32> to vector<2x16x16xf32>
    %407 = arith.mulf %402, %406 : vector<2x16x16xf32>
    %408 = arith.truncf %407 : vector<2x16x16xf32> to vector<2x16x16xbf16>
    %409 = arith.truncf %394 : vector<2x16x32xf32> to vector<2x16x32xbf16>
    "tpu.trace_start"() <{level = 10 : i32, message = "bnm,bmd->bnd"}> : () -> ()
    %cst_292 = arith.constant dense<0.000000e+00> : vector<2x16x32xf32>
    %410 = tpu.matmul %408, %409, %cst_292 {dimension_numbers = #tpu.dot_dimension_numbers<[2], [1], [1], [2], [0, 0, 0, 1, 1, 2], [0], [0]>} : vector<2x16x16xbf16>, vector<2x16x32xbf16>, vector<2x16x32xf32> -> vector<2x16x32xf32>
    "tpu.trace_stop"() : () -> ()
    %411 = vector.shape_cast %410 : vector<2x16x32xf32> to vector<32x32xf32>
    %c1_293 = arith.constant 1 : index
    %c2_294 = arith.constant 2 : index
    %c0_295 = arith.constant 0 : index
    %c0_296 = arith.constant 0 : index
    %412 = vector.load %arg10[%c1_293, %c2_294, %c0_295, %c0_296] : memref<2x4x32x128xbf16, #tpu.memory_space<vmem>>, vector<1x1x32x128xbf16>
    %413 = vector.shape_cast %412 : vector<1x1x32x128xbf16> to vector<32x128xbf16>
    %414 = arith.truncf %411 : vector<32x32xf32> to vector<32x32xbf16>
    %cst_297 = arith.constant dense<0.000000e+00> : vector<32x128xf32>
    %415 = tpu.matmul %414, %413, %cst_297 {dimension_numbers = #tpu.dot_dimension_numbers<[1], [0], [0], [1], [0, 0, 1, 1], [], []>} : vector<32x32xbf16>, vector<32x128xbf16>, vector<32x128xf32> -> vector<32x128xf32>
    %416 = arith.addf %370, %415 : vector<32x128xf32>
    %c1_298 = arith.constant 1 : index
    %c3_299 = arith.constant 3 : index
    %c0_300 = arith.constant 0 : index
    %c0_301 = arith.constant 0 : index
    %417 = vector.load %arg4[%c1_298, %c3_299, %c0_300, %c0_301] : memref<2x4x128x32xbf16, #tpu.memory_space<vmem>>, vector<1x1x128x32xbf16>
    %418 = vector.shape_cast %417 : vector<1x1x128x32xbf16> to vector<128x32xbf16>
    %cst_302 = arith.constant dense<0.000000e+00> : vector<32x32xf32>
    %419 = tpu.matmul %277, %418, %cst_302 {dimension_numbers = #tpu.dot_dimension_numbers<[1], [0], [0], [1], [0, 0, 1, 1], [], []>} : vector<32x128xbf16>, vector<128x32xbf16>, vector<32x32xf32> -> vector<32x32xf32>
    %c1_303 = arith.constant 1 : index
    %c3_304 = arith.constant 3 : index
    %c0_305 = arith.constant 0 : index
    %c0_306 = arith.constant 0 : index
    %420 = vector.load %arg5[%c1_303, %c3_304, %c0_305, %c0_306] : memref<2x4x1x32xf32, #tpu.memory_space<vmem>>, vector<1x1x1x32xf32>
    %421 = vector.shape_cast %420 : vector<1x1x1x32xf32> to vector<1x32xf32>
    %422 = vector.broadcast %421 : vector<1x32xf32> to vector<32x32xf32>
    %423 = arith.addf %419, %422 : vector<32x32xf32>
    %424 = vector.shape_cast %423 : vector<32x32xf32> to vector<2x16x32xf32>
    %c1_307 = arith.constant 1 : index
    %c3_308 = arith.constant 3 : index
    %c0_309 = arith.constant 0 : index
    %c0_310 = arith.constant 0 : index
    %425 = vector.load %arg6[%c1_307, %c3_308, %c0_309, %c0_310] : memref<2x4x128x32xbf16, #tpu.memory_space<vmem>>, vector<1x1x128x32xbf16>
    %426 = vector.shape_cast %425 : vector<1x1x128x32xbf16> to vector<128x32xbf16>
    %cst_311 = arith.constant dense<0.000000e+00> : vector<32x32xf32>
    %427 = tpu.matmul %277, %426, %cst_311 {dimension_numbers = #tpu.dot_dimension_numbers<[1], [0], [0], [1], [0, 0, 1, 1], [], []>} : vector<32x128xbf16>, vector<128x32xbf16>, vector<32x32xf32> -> vector<32x32xf32>
    %c1_312 = arith.constant 1 : index
    %c3_313 = arith.constant 3 : index
    %c0_314 = arith.constant 0 : index
    %c0_315 = arith.constant 0 : index
    %428 = vector.load %arg7[%c1_312, %c3_313, %c0_314, %c0_315] : memref<2x4x1x32xf32, #tpu.memory_space<vmem>>, vector<1x1x1x32xf32>
    %429 = vector.shape_cast %428 : vector<1x1x1x32xf32> to vector<1x32xf32>
    %430 = vector.broadcast %429 : vector<1x32xf32> to vector<32x32xf32>
    %431 = arith.addf %427, %430 : vector<32x32xf32>
    %432 = vector.shape_cast %431 : vector<32x32xf32> to vector<2x16x32xf32>
    %c1_316 = arith.constant 1 : index
    %c3_317 = arith.constant 3 : index
    %c0_318 = arith.constant 0 : index
    %c0_319 = arith.constant 0 : index
    %433 = vector.load %arg8[%c1_316, %c3_317, %c0_318, %c0_319] : memref<2x4x128x32xbf16, #tpu.memory_space<vmem>>, vector<1x1x128x32xbf16>
    %434 = vector.shape_cast %433 : vector<1x1x128x32xbf16> to vector<128x32xbf16>
    %cst_320 = arith.constant dense<0.000000e+00> : vector<32x32xf32>
    %435 = tpu.matmul %277, %434, %cst_320 {dimension_numbers = #tpu.dot_dimension_numbers<[1], [0], [0], [1], [0, 0, 1, 1], [], []>} : vector<32x128xbf16>, vector<128x32xbf16>, vector<32x32xf32> -> vector<32x32xf32>
    %c1_321 = arith.constant 1 : index
    %c3_322 = arith.constant 3 : index
    %c0_323 = arith.constant 0 : index
    %c0_324 = arith.constant 0 : index
    %436 = vector.load %arg9[%c1_321, %c3_322, %c0_323, %c0_324] : memref<2x4x1x32xf32, #tpu.memory_space<vmem>>, vector<1x1x1x32xf32>
    %437 = vector.shape_cast %436 : vector<1x1x1x32xf32> to vector<1x32xf32>
    %438 = vector.broadcast %437 : vector<1x32xf32> to vector<32x32xf32>
    %439 = arith.addf %435, %438 : vector<32x32xf32>
    %440 = vector.shape_cast %439 : vector<32x32xf32> to vector<2x16x32xf32>
    %441 = arith.truncf %424 : vector<2x16x32xf32> to vector<2x16x32xbf16>
    %442 = arith.truncf %432 : vector<2x16x32xf32> to vector<2x16x32xbf16>
    "tpu.trace_start"() <{level = 10 : i32, message = "bnd,bmd->bnm"}> : () -> ()
    %cst_325 = arith.constant dense<0.000000e+00> : vector<2x16x16xf32>
    %443 = tpu.matmul %441, %442, %cst_325 {dimension_numbers = #tpu.dot_dimension_numbers<[2], [2], [1], [1], [0, 0, 0, 1, 1, 1], [0], [0]>} : vector<2x16x32xbf16>, vector<2x16x32xbf16>, vector<2x16x16xf32> -> vector<2x16x16xf32>
    "tpu.trace_stop"() : () -> ()
    %cst_326 = arith.constant dense<0xFF800000> : vector<2x16xf32>
    %444 = vector.multi_reduction <maximumf>, %443, %cst_326 [2] : vector<2x16x16xf32> to vector<2x16xf32>
    %445 = vector.shape_cast %444 : vector<2x16xf32> to vector<2x16x1xf32>
    %446 = vector.broadcast %445 : vector<2x16x1xf32> to vector<2x16x16xf32>
    %447 = arith.subf %443, %446 : vector<2x16x16xf32>
    %448 = math.exp %447 : vector<2x16x16xf32>
    %cst_327 = arith.constant dense<0.000000e+00> : vector<2x16xf32>
    %449 = vector.multi_reduction <add>, %448, %cst_327 [2] : vector<2x16x16xf32> to vector<2x16xf32>
    %450 = vector.shape_cast %449 : vector<2x16xf32> to vector<2x16x1xf32>
    %451 = tpu.reciprocal %450 {approx = true} : vector<2x16x1xf32> -> vector<2x16x1xf32>
    %452 = vector.broadcast %451 : vector<2x16x1xf32> to vector<2x16x16xf32>
    %453 = arith.mulf %448, %452 : vector<2x16x16xf32>
    %454 = arith.truncf %453 : vector<2x16x16xf32> to vector<2x16x16xbf16>
    %455 = arith.truncf %440 : vector<2x16x32xf32> to vector<2x16x32xbf16>
    "tpu.trace_start"() <{level = 10 : i32, message = "bnm,bmd->bnd"}> : () -> ()
    %cst_328 = arith.constant dense<0.000000e+00> : vector<2x16x32xf32>
    %456 = tpu.matmul %454, %455, %cst_328 {dimension_numbers = #tpu.dot_dimension_numbers<[2], [1], [1], [2], [0, 0, 0, 1, 1, 2], [0], [0]>} : vector<2x16x16xbf16>, vector<2x16x32xbf16>, vector<2x16x32xf32> -> vector<2x16x32xf32>
    "tpu.trace_stop"() : () -> ()
    %457 = vector.shape_cast %456 : vector<2x16x32xf32> to vector<32x32xf32>
    %c1_329 = arith.constant 1 : index
    %c3_330 = arith.constant 3 : index
    %c0_331 = arith.constant 0 : index
    %c0_332 = arith.constant 0 : index
    %458 = vector.load %arg10[%c1_329, %c3_330, %c0_331, %c0_332] : memref<2x4x32x128xbf16, #tpu.memory_space<vmem>>, vector<1x1x32x128xbf16>
    %459 = vector.shape_cast %458 : vector<1x1x32x128xbf16> to vector<32x128xbf16>
    %460 = arith.truncf %457 : vector<32x32xf32> to vector<32x32xbf16>
    %cst_333 = arith.constant dense<0.000000e+00> : vector<32x128xf32>
    %461 = tpu.matmul %460, %459, %cst_333 {dimension_numbers = #tpu.dot_dimension_numbers<[1], [0], [0], [1], [0, 0, 1, 1], [], []>} : vector<32x32xbf16>, vector<32x128xbf16>, vector<32x128xf32> -> vector<32x128xf32>
    %462 = arith.addf %416, %461 : vector<32x128xf32>
    %c1_334 = arith.constant 1 : index
    %c0_335 = arith.constant 0 : index
    %c0_336 = arith.constant 0 : index
    %463 = vector.load %arg11[%c1_334, %c0_335, %c0_336] : memref<2x1x128xf32, #tpu.memory_space<vmem>>, vector<1x1x128xf32>
    %464 = vector.shape_cast %463 : vector<1x1x128xf32> to vector<1x128xf32>
    %465 = vector.broadcast %464 : vector<1x128xf32> to vector<32x128xf32>
    %466 = arith.addf %462, %465 : vector<32x128xf32>
    %467 = arith.addf %276, %466 : vector<32x128xf32>
    %c1_337 = arith.constant 1 : index
    %c0_338 = arith.constant 0 : index
    %c0_339 = arith.constant 0 : index
    %468 = vector.load %arg12[%c1_337, %c0_338, %c0_339] : memref<2x1x128xf32, #tpu.memory_space<vmem>>, vector<1x1x128xf32>
    %469 = vector.shape_cast %468 : vector<1x1x128xf32> to vector<1x128xf32>
    %c1_340 = arith.constant 1 : index
    %c0_341 = arith.constant 0 : index
    %c0_342 = arith.constant 0 : index
    %470 = vector.load %arg13[%c1_340, %c0_341, %c0_342] : memref<2x1x128xf32, #tpu.memory_space<vmem>>, vector<1x1x128xf32>
    %471 = vector.shape_cast %470 : vector<1x1x128xf32> to vector<1x128xf32>
    %cst_343 = arith.constant dense<0.000000e+00> : vector<32xf32>
    %472 = vector.multi_reduction <add>, %467, %cst_343 [1] : vector<32x128xf32> to vector<32xf32>
    %473 = vector.shape_cast %472 : vector<32xf32> to vector<32x1xf32>
    %cst_344 = arith.constant 1.280000e+02 : f32
    %474 = vector.broadcast %cst_344 : f32 to vector<32x1xf32>
    %475 = arith.divf %473, %474 : vector<32x1xf32>
    %476 = vector.broadcast %475 : vector<32x1xf32> to vector<32x128xf32>
    %477 = arith.subf %467, %476 : vector<32x128xf32>
    %478 = arith.mulf %477, %477 : vector<32x128xf32>
    %cst_345 = arith.constant dense<0.000000e+00> : vector<32xf32>
    %479 = vector.multi_reduction <add>, %478, %cst_345 [1] : vector<32x128xf32> to vector<32xf32>
    %480 = vector.shape_cast %479 : vector<32xf32> to vector<32x1xf32>
    %cst_346 = arith.constant 1.280000e+02 : f32
    %481 = vector.broadcast %cst_346 : f32 to vector<32x1xf32>
    %482 = arith.divf %480, %481 : vector<32x1xf32>
    %483 = vector.broadcast %475 : vector<32x1xf32> to vector<32x128xf32>
    %484 = arith.subf %467, %483 : vector<32x128xf32>
    %cst_347 = arith.constant 9.99999974E-6 : f32
    %485 = vector.broadcast %cst_347 : f32 to vector<32x1xf32>
    %486 = arith.addf %482, %485 : vector<32x1xf32>
    %487 = math.rsqrt %486 : vector<32x1xf32>
    %488 = vector.broadcast %487 : vector<32x1xf32> to vector<32x128xf32>
    %489 = arith.mulf %484, %488 : vector<32x128xf32>
    %490 = vector.broadcast %469 : vector<1x128xf32> to vector<32x128xf32>
    %491 = arith.mulf %489, %490 : vector<32x128xf32>
    %492 = vector.broadcast %471 : vector<1x128xf32> to vector<32x128xf32>
    %493 = arith.addf %491, %492 : vector<32x128xf32>
    %c1_348 = arith.constant 1 : index
    %c0_349 = arith.constant 0 : index
    %c0_350 = arith.constant 0 : index
    %494 = vector.load %arg14[%c1_348, %c0_349, %c0_350] : memref<2x128x2048xbf16, #tpu.memory_space<vmem>>, vector<1x128x2048xbf16>
    %495 = vector.shape_cast %494 : vector<1x128x2048xbf16> to vector<128x2048xbf16>
    %496 = arith.truncf %493 : vector<32x128xf32> to vector<32x128xbf16>
    %cst_351 = arith.constant dense<0.000000e+00> : vector<32x2048xf32>
    %497 = tpu.matmul %496, %495, %cst_351 {dimension_numbers = #tpu.dot_dimension_numbers<[1], [0], [0], [1], [0, 0, 1, 1], [], []>} : vector<32x128xbf16>, vector<128x2048xbf16>, vector<32x2048xf32> -> vector<32x2048xf32>
    %c1_352 = arith.constant 1 : index
    %c0_353 = arith.constant 0 : index
    %c0_354 = arith.constant 0 : index
    %498 = vector.load %arg15[%c1_352, %c0_353, %c0_354] : memref<2x1x2048xf32, #tpu.memory_space<vmem>>, vector<1x1x2048xf32>
    %499 = vector.shape_cast %498 : vector<1x1x2048xf32> to vector<1x2048xf32>
    %500 = vector.broadcast %499 : vector<1x2048xf32> to vector<32x2048xf32>
    %501 = arith.addf %497, %500 : vector<32x2048xf32>
    %cst_355 = arith.constant 0.000000e+00 : f32
    %502 = vector.broadcast %cst_355 : f32 to vector<32x2048xf32>
    %503 = arith.maximumf %501, %502 : vector<32x2048xf32>
    %c1_356 = arith.constant 1 : index
    %c0_357 = arith.constant 0 : index
    %c0_358 = arith.constant 0 : index
    %504 = vector.load %arg16[%c1_356, %c0_357, %c0_358] : memref<2x2048x128xbf16, #tpu.memory_space<vmem>>, vector<1x2048x128xbf16>
    %505 = vector.shape_cast %504 : vector<1x2048x128xbf16> to vector<2048x128xbf16>
    %506 = arith.truncf %503 : vector<32x2048xf32> to vector<32x2048xbf16>
    %cst_359 = arith.constant dense<0.000000e+00> : vector<32x128xf32>
    %507 = tpu.matmul %506, %505, %cst_359 {dimension_numbers = #tpu.dot_dimension_numbers<[1], [0], [0], [1], [0, 0, 1, 1], [], []>} : vector<32x2048xbf16>, vector<2048x128xbf16>, vector<32x128xf32> -> vector<32x128xf32>
    %c1_360 = arith.constant 1 : index
    %c0_361 = arith.constant 0 : index
    %c0_362 = arith.constant 0 : index
    %508 = vector.load %arg17[%c1_360, %c0_361, %c0_362] : memref<2x1x128xf32, #tpu.memory_space<vmem>>, vector<1x1x128xf32>
    %509 = vector.shape_cast %508 : vector<1x1x128xf32> to vector<1x128xf32>
    %510 = vector.broadcast %509 : vector<1x128xf32> to vector<32x128xf32>
    %511 = arith.addf %507, %510 : vector<32x128xf32>
    %512 = arith.addf %493, %511 : vector<32x128xf32>
    %c1_363 = arith.constant 1 : index
    %c0_364 = arith.constant 0 : index
    %c0_365 = arith.constant 0 : index
    %513 = vector.load %arg18[%c1_363, %c0_364, %c0_365] : memref<2x1x128xf32, #tpu.memory_space<vmem>>, vector<1x1x128xf32>
    %514 = vector.shape_cast %513 : vector<1x1x128xf32> to vector<1x128xf32>
    %c1_366 = arith.constant 1 : index
    %c0_367 = arith.constant 0 : index
    %c0_368 = arith.constant 0 : index
    %515 = vector.load %arg19[%c1_366, %c0_367, %c0_368] : memref<2x1x128xf32, #tpu.memory_space<vmem>>, vector<1x1x128xf32>
    %516 = vector.shape_cast %515 : vector<1x1x128xf32> to vector<1x128xf32>
    %cst_369 = arith.constant dense<0.000000e+00> : vector<32xf32>
    %517 = vector.multi_reduction <add>, %512, %cst_369 [1] : vector<32x128xf32> to vector<32xf32>
    %518 = vector.shape_cast %517 : vector<32xf32> to vector<32x1xf32>
    %cst_370 = arith.constant 1.280000e+02 : f32
    %519 = vector.broadcast %cst_370 : f32 to vector<32x1xf32>
    %520 = arith.divf %518, %519 : vector<32x1xf32>
    %521 = vector.broadcast %520 : vector<32x1xf32> to vector<32x128xf32>
    %522 = arith.subf %512, %521 : vector<32x128xf32>
    %523 = arith.mulf %522, %522 : vector<32x128xf32>
    %cst_371 = arith.constant dense<0.000000e+00> : vector<32xf32>
    %524 = vector.multi_reduction <add>, %523, %cst_371 [1] : vector<32x128xf32> to vector<32xf32>
    %525 = vector.shape_cast %524 : vector<32xf32> to vector<32x1xf32>
    %cst_372 = arith.constant 1.280000e+02 : f32
    %526 = vector.broadcast %cst_372 : f32 to vector<32x1xf32>
    %527 = arith.divf %525, %526 : vector<32x1xf32>
    %528 = vector.broadcast %520 : vector<32x1xf32> to vector<32x128xf32>
    %529 = arith.subf %512, %528 : vector<32x128xf32>
    %cst_373 = arith.constant 9.99999974E-6 : f32
    %530 = vector.broadcast %cst_373 : f32 to vector<32x1xf32>
    %531 = arith.addf %527, %530 : vector<32x1xf32>
    %532 = math.rsqrt %531 : vector<32x1xf32>
    %533 = vector.broadcast %532 : vector<32x1xf32> to vector<32x128xf32>
    %534 = arith.mulf %529, %533 : vector<32x128xf32>
    %535 = vector.broadcast %514 : vector<1x128xf32> to vector<32x128xf32>
    %536 = arith.mulf %534, %535 : vector<32x128xf32>
    %537 = vector.broadcast %516 : vector<1x128xf32> to vector<32x128xf32>
    %538 = arith.addf %536, %537 : vector<32x128xf32>
    %539 = vector.shape_cast %538 : vector<32x128xf32> to vector<2x16x128xf32>
    %cst_374 = arith.constant dense<0.000000e+00> : vector<2x128xf32>
    %540 = vector.multi_reduction <add>, %539, %cst_374 [1] : vector<2x16x128xf32> to vector<2x128xf32>
    %cst_375 = arith.constant 1.600000e+01 : f32
    %541 = vector.broadcast %cst_375 : f32 to vector<2x128xf32>
    %542 = arith.divf %540, %541 : vector<2x128xf32>
    %c0_376 = arith.constant 0 : index
    %c0_377 = arith.constant 0 : index
    %543 = vector.load %arg20[%c0_376, %c0_377] : memref<128x128xbf16, #tpu.memory_space<vmem>>, vector<128x128xbf16>
    %544 = arith.truncf %542 : vector<2x128xf32> to vector<2x128xbf16>
    %cst_378 = arith.constant dense<0.000000e+00> : vector<2x128xf32>
    %545 = tpu.matmul %544, %543, %cst_378 {dimension_numbers = #tpu.dot_dimension_numbers<[1], [0], [0], [1], [0, 0, 1, 1], [], []>} : vector<2x128xbf16>, vector<128x128xbf16>, vector<2x128xf32> -> vector<2x128xf32>
    %c0_379 = arith.constant 0 : index
    %c0_380 = arith.constant 0 : index
    %546 = vector.load %arg21[%c0_379, %c0_380] : memref<1x128xf32, #tpu.memory_space<vmem>>, vector<1x128xf32>
    %547 = vector.broadcast %546 : vector<1x128xf32> to vector<2x128xf32>
    %548 = arith.addf %545, %547 : vector<2x128xf32>
    %c0_381 = arith.constant 0 : index
    %c0_382 = arith.constant 0 : index
    %549 = vector.load %arg22[%c0_381, %c0_382] : memref<2x128xf32, #tpu.memory_space<vmem>>, vector<2x128xf32>
    tpu.vector_store %arg22[%c0_381, %c0_382], %548 {strides = array<i32>} : memref<2x128xf32, #tpu.memory_space<vmem>>, vector<2x128xf32>,
    return
  }
}

</mosaic_0001>

<bundles_post_ra>
// kernel: transformer_forward.1
= control target key start
LH: loop header
LB: loop body
LE: loop exit
PB: predicated region body
PF: predicated region fallthrough
CT: control target
= control target key end

     0   :  { %s15890_s0 = inlined_call_operand.vmem [shape: f32[2,16,1], index: 0, kind: input, shape index: {}]   ;;  %s15891_s1 = inlined_call_operand.vmem [shape: f32[1,128], index: 1, kind: input, shape index: {}]   ;;  %s15892_s2 = inlined_call_operand.vmem [shape: f32[1,128], index: 2, kind: input, shape index: {}]   ;;  %s15893_s3 = inlined_call_operand.vmem [shape: f32[16,128], index: 3, kind: input, shape index: {}]   ;;  %s15894_s4 = inlined_call_operand.vmem [shape: bf16[2,4,128,32], index: 4, kind: input, shape index: {}]   ;;  %s15895_s5 = inlined_call_operand.vmem [shape: f32[2,4,1,32], index: 5, kind: input, shape index: {}]   ;;  %s15896_s6 = inlined_call_operand.vmem [shape: bf16[2,4,128,32], index: 6, kind: input, shape index: {}]   ;;  %s15897_s7 = inlined_call_operand.vmem [shape: f32[2,4,1,32], index: 7, kind: input, shape index: {}]   ;;  %s15898_s8 = inlined_call_operand.vmem [shape: bf16[2,4,128,32], index: 8, kind: input, shape index: {}]   ;;  %s15899_s9 = inlined_call_operand.vmem [shape: f32[2,4,1,32], index: 9, kind: input, shape index: {}]   ;;  %s15900_s10 = inlined_call_operand.vmem [shape: bf16[2,4,32,128], index: 10, kind: input, shape index: {}]   ;;  %s15901_s11 = inlined_call_operand.vmem [shape: f32[2,1,128], index: 11, kind: input, shape index: {}]   ;;  %s15902_s12 = inlined_call_operand.vmem [shape: f32[2,1,128], index: 12, kind: input, shape index: {}]   ;;  %s15903_s13 = inlined_call_operand.vmem [shape: f32[2,1,128], index: 13, kind: input, shape index: {}]   ;;  %s15904_s14 = inlined_call_operand.hbm [shape: bf16[2,128,2048], index: 14, kind: input, shape index: {}]   ;;  %s15905_s15 = inlined_call_operand.vmem [shape: f32[2,1,2048], index: 15, kind: input, shape index: {}]   ;;  %s15906_s16 = inlined_call_operand.hbm [shape: bf16[2,2048,128], index: 16, kind: input, shape index: {}]   ;;  %s15907_s17 = inlined_call_operand.vmem [shape: f32[2,1,128], index: 17, kind: input, shape index: {}]   ;;  %s15908_s18 = inlined_call_operand.vmem [shape: f32[2,1,128], index: 18, kind: input, shape index: {}]   ;;  %s15909_s19 = inlined_call_operand.vmem [shape: f32[2,1,128], index: 19, kind: input, shape index: {}]   ;;  %s15910_s20 = inlined_call_operand.vmem [shape: bf16[128,128], index: 20, kind: input, shape index: {}]   ;;  %s15911_s21 = inlined_call_operand.vmem [shape: f32[1,128], index: 21, kind: input, shape index: {}]   ;;  %s15912_s22 = inlined_call_operand.hbm [shape: f32[2,128], index: 22, kind: output, shape index: {}]  }
   0x1   :  { %15918 = sst [smem:[#allocation11_spill]] %s15890_s0 }
   0x2   :  { %15919 = sst [smem:[#allocation12_spill]] %s15891_s1 }
   0x3   :  { %15920 = sst [smem:[#allocation13_spill]] %s15892_s2 }
   0x4   :  { %15921 = sst [smem:[#allocation14_spill]] %s15893_s3 }
   0x5   :  { %15922 = sst [smem:[#allocation15_spill]] %s15894_s4 }
   0x6   :  { %15923 = sst [smem:[#allocation16_spill]] %s15895_s5 }
   0x7   :  { %15924 = sst [smem:[#allocation17_spill]] %s15896_s6 }
   0x8   :  { %27 = vsyncpa [#allocation3], 0 }
   0x9   :  { %28 = vsyncpa [#allocation6], 0 }
   0xa   :  { %29 = vsyncpa [#allocation4], 0  ;;  %s62_s29 = sshll.u32 %s15904_s14, 4  ;;  %s14076_s30 = smov [#allocation2]   ;;  %s63_s29 = int_to_ptr.hbm [resolvable:$true] %s62_s29 }
   0xb   :  { %s64_s4 = sshll.u32 %s14076_s30, 4  ;;  %s77_s1 = sshll.u32 %s15906_s16, 4  ;;  %s65_s4 = int_to_ptr.vmem [resolvable:$true] %s64_s4  ;;  %s78_s1 = int_to_ptr.hbm [resolvable:$true] %s77_s1 }
   0xc   :  { %s14077_s5 = smov 1024   ;;  %s14078_s24 = smov 64  }
   0xd   :  { %70 = dma.hbm_to_vmem [thread:$0]  %s63_s29, 32768, %s65_s4, [#allocation3], %s14077_s5, %s14077_s5, %s14078_s24  }
   0xe   :  { %s14079_s6 = smov [#allocation5]   ;;  %s14080_s26 = smov 4  }
   0xf   :  { %s79_s25 = sshll.u32 %s14079_s6, 4  ;;  %s80_s25 = int_to_ptr.vmem [resolvable:$true] %s79_s25 }
  0x10   :  { %85 = dma.hbm_to_vmem [thread:$0]  %s78_s1, 32768, %s80_s25, [#allocation6], %s14078_s24, %s14078_s24, %s14080_s26  }
  0x11   :  { %14070 = dma.done.wait [#allocation3], 32768  }
  0x12   :  { %14071 = vsyncadd [#allocation3], 4294934528 }
  0x13   :  { %14072 = dma.done.wait [#allocation6], 32768  }
  0x14   :  { %14073 = vsyncadd [#allocation6], 4294934528  ;;  %v14081_v0 = vmov 0   ;;  %s15925_s27 = sld [smem:[#allocation11_spill]]  ;;  %v13079_v5 = vld [vmem:[%s15898_s8 + $0x38] sm:$0xff]  ;;  %v13078_v9 = vld [vmem:[%s15898_s8 + $0x30] sm:$0xff] }
  0x15   :  { %13793 = vset.pattern.permute.xlu0 %v14081_v0  ;;  %13794 = vset.pattern.permute.xlu1 %v14081_v0  ;;  %s15926_s30 = sld [smem:[#allocation15_spill]]  ;;  %v13077_v13 = vld [vmem:[%s15898_s8 + $0x28] sm:$0xff]  ;;  %v13076_v16 = vld [vmem:[%s15898_s8 + $0x20] sm:$0xff]  ;;  %v13075_v19 = vld [vmem:[%s15898_s8 + $0x18] sm:$0xff]  ;;  %vm432_vm0 = vcmask 261120   ;;  %vm483_vm1 = vcmask 130048  }
  0x16   :  { %s15927_s23 = sld [smem:[#allocation17_spill]]  ;;  %395 = vmatpush.bf16.msra.mxu2 %v13079_v5  ;;  %v13074_v22 = vld [vmem:[%s15898_s8 + $0x10] sm:$0xff]  ;;  %v13073_v25 = vld [vmem:[%s15898_s8 + $0x8] sm:$0xff]  ;;  %v13072_v28 = vld [vmem:[%s15898_s8] sm:$0xff]  ;;  %s14084_s24 = smov [#allocation7]  }
  0x17   :  { %v13105_v31 = vld [vmem:[%s15898_s8 + $0x78] sm:$0xff]  ;;  %v13104_v34 = vld [vmem:[%s15898_s8 + $0x70] sm:$0xff]  ;;  %v13103_v37 = vld [vmem:[%s15898_s8 + $0x68] sm:$0xff]  ;;  %s15928_s1 = sld [smem:[#allocation12_spill]]  ;;  %s9692_s25 = sshll.u32 %s15912_s22, 4  ;;  %s9693_s25 = int_to_ptr.hbm [resolvable:$true] %s9692_s25 }
  0x18   :  { %v13102_v40 = vld [vmem:[%s15898_s8 + $0x60] sm:$0xff]  ;;  %v13101_v45 = vld [vmem:[%s15898_s8 + $0x58] sm:$0xff]  ;;  %v13100_v48 = vld [vmem:[%s15898_s8 + $0x50] sm:$0xff]  ;;  %s15930_s16 = sld [smem:[#allocation14_spill]] }
  0x19   :  { %v13099_v55 = vld [vmem:[%s15898_s8 + $0x48] sm:$0xff]  ;;  %v13098_v63 = vld [vmem:[%s15898_s8 + $0x40] sm:$0xff]  ;;  %s15931_s14 = sld [smem:[#allocation16_spill]] }
  0x1a   :  { %v105_v1 = vld [vmem:[%s15925_s27] sm:$0xff]  ;;  %v107_v2 = vld [vmem:[%s15925_s27 + $0x10] sm:$0xff]  ;;  %v106_v8 = vld [vmem:[%s15925_s27 + $0x8] sm:$0xff]  ;;  %396 = vmatpush.bf16.msra.mxu2 %v13078_v9 }
  0x1b   :  { %112 = vperm.xlu0 %13793, %v105_v1   ;;  %122 = vperm.xlu1 %13794, %v107_v2   ;;  %v13063_v3 = vld [vmem:[%s15926_s30 + $0x38] sm:$0xff]  ;;  %v13062_v6 = vld [vmem:[%s15926_s30 + $0x30] sm:$0xff]  ;;  %v13061_v11 = vld [vmem:[%s15926_s30 + $0x28] sm:$0xff] }
  0x1c   :  { %v13071_v4 = vld [vmem:[%s15927_s23 + $0x38] sm:$0xff]  ;;  %221 = vmatpush.bf16.msra.mxu0 %v13063_v3  ;;  %v13070_v7 = vld [vmem:[%s15927_s23 + $0x30] sm:$0xff]  ;;  %v13069_v12 = vld [vmem:[%s15927_s23 + $0x28] sm:$0xff] }
  0x1d   :  { %308 = vmatpush.bf16.msra.mxu1 %v13071_v4  ;;  %v108_v10 = vld [vmem:[%s15925_s27 + $0x18] sm:$0xff]  ;;  %v13060_v14 = vld [vmem:[%s15926_s30 + $0x20] sm:$0xff]  ;;  %v13058_v20 = vld [vmem:[%s15926_s30 + $0x10] sm:$0xff] }
  0x1e   :  { %v13068_v15 = vld [vmem:[%s15927_s23 + $0x20] sm:$0xff]  ;;  %397 = vmatpush.bf16.msra.mxu2 %v13077_v13  ;;  %v13059_v17 = vld [vmem:[%s15926_s30 + $0x18] sm:$0xff]  ;;  %v13066_v21 = vld [vmem:[%s15927_s23 + $0x10] sm:$0xff] }
  0x1f   :  { %v13067_v18 = vld [vmem:[%s15927_s23 + $0x18] sm:$0xff]  ;;  %v13057_v23 = vld [vmem:[%s15926_s30 + $0x8] sm:$0xff]  ;;  %v13056_v26 = vld [vmem:[%s15926_s30] sm:$0xff] }
  0x20   :  { %222 = vmatpush.bf16.msra.mxu0 %v13062_v6  ;;  %v13065_v24 = vld [vmem:[%s15927_s23 + $0x8] sm:$0xff]  ;;  %v13064_v27 = vld [vmem:[%s15927_s23] sm:$0xff]  ;;  %v13089_v29 = vld [vmem:[%s15926_s30 + $0x78] sm:$0xff] }
  0x21   :  { %309 = vmatpush.bf16.msra.mxu1 %v13070_v7  ;;  %v13097_v30 = vld [vmem:[%s15927_s23 + $0x78] sm:$0xff]  ;;  %v13088_v32 = vld [vmem:[%s15926_s30 + $0x70] sm:$0xff]  ;;  %v13087_v35 = vld [vmem:[%s15926_s30 + $0x68] sm:$0xff] }
  0x22   :  { %398 = vmatpush.bf16.msra.mxu2 %v13076_v16  ;;  %v13096_v33 = vld [vmem:[%s15927_s23 + $0x70] sm:$0xff]  ;;  %v13095_v36 = vld [vmem:[%s15927_s23 + $0x68] sm:$0xff]  ;;  %v13086_v38 = vld [vmem:[%s15926_s30 + $0x60] sm:$0xff] }
  0x23   :  { %117 = vperm.xlu0 %13793, %v106_v8   ;;  %127 = vperm.xlu1 %13794, %v108_v10   ;;  %v13094_v39 = vld [vmem:[%s15927_s23 + $0x60] sm:$0xff]  ;;  %v13085_v43 = vld [vmem:[%s15926_s30 + $0x58] sm:$0xff]  ;;  %v13084_v46 = vld [vmem:[%s15926_s30 + $0x50] sm:$0xff] }
  0x24   :  { %223 = vmatpush.bf16.msra.mxu0 %v13061_v11  ;;  %v13795_v41 = vld [vmem:[%s15928_s1] ss:$0 sm:$0xff]  ;;  %v13093_v44 = vld [vmem:[%s15927_s23 + $0x58] sm:$0xff]  ;;  %v13092_v47 = vld [vmem:[%s15927_s23 + $0x50] sm:$0xff]  ;;  %s15929_s1 = sld [smem:[#allocation13_spill]] }
  0x25   :  { %310 = vmatpush.bf16.msra.mxu1 %v13069_v12  ;;  %v13083_v52 = vld [vmem:[%s15926_s30 + $0x48] sm:$0xff]  ;;  %v145_v58 = vld [vmem:[%s15930_s16] sm:$0xff] }
  0x26   :  { %399 = vmatpush.bf16.msra.mxu2 %v13075_v19  ;;  %v13091_v53 = vld [vmem:[%s15927_s23 + $0x48] sm:$0xff]  ;;  %v13082_v61 = vld [vmem:[%s15926_s30 + $0x40] sm:$0xff] }
  0x27   :  { %v146_v59 = vld [vmem:[%s15930_s16 + $0x8] sm:$0xff]  ;;  %v13090_v62 = vld [vmem:[%s15927_s23 + $0x40] sm:$0xff] }
  0x28   :  { %224 = vmatpush.bf16.msra.mxu0 %v13060_v14  ;;  %v13798_v13 = vld [vmem:[%s15897_s7] ss:$0 sm:$0xff] }
  0x29   :  { %311 = vmatpush.bf16.msra.mxu1 %v13068_v15 }
  0x2a   :  { %400 = vmatpush.bf16.msra.mxu2 %v13074_v22  ;;  %v13796_v49 = vld [vmem:[%s15929_s1] ss:$0 sm:$0xff] }
  0x2c   :  { %225 = vmatpush.bf16.msra.mxu0 %v13059_v17 }
  0x2d   :  { %312 = vmatpush.bf16.msra.mxu1 %v13067_v18  ;;  %v13797_v18 = vld [vmem:[%s15931_s14] ss:$0 sm:$0xff] }
  0x2e   :  { %401 = vmatpush.bf16.msra.mxu2 %v13073_v25 }
  0x30   :  { %226 = vmatpush.bf16.msra.mxu0 %v13058_v20 }
  0x31   :  { %313 = vmatpush.bf16.msra.mxu1 %v13066_v21 }
  0x32   :  { %402 = vmatpush.bf16.msra.mxu2 %v13072_v28 }
  0x34   :  { %227 = vmatpush.bf16.msra.mxu0 %v13057_v23 }
  0x35   :  { %314 = vmatpush.bf16.msra.mxu1 %v13065_v24 }
  0x36   :  { %846 = vmatpush.bf16.msrb.mxu2 %v13105_v31 }
  0x38   :  { %228 = vmatpush.bf16.msra.mxu0 %v13056_v26 }
  0x39   :  { %315 = vmatpush.bf16.msra.mxu1 %v13064_v27 }
  0x3a   :  { %847 = vmatpush.bf16.msrb.mxu2 %v13104_v34 }
  0x3c   :  { %668 = vmatpush.bf16.msrb.mxu0 %v13089_v29 }
  0x3d   :  { %757 = vmatpush.bf16.msrb.mxu1 %v13097_v30 }
  0x3e   :  { %848 = vmatpush.bf16.msrb.mxu2 %v13103_v37 }
  0x40   :  { %669 = vmatpush.bf16.msrb.mxu0 %v13088_v32 }
  0x41   :  { %758 = vmatpush.bf16.msrb.mxu1 %v13096_v33  ;;  %v13799_v33 = vld [vmem:[%s15899_s9] ss:$0 sm:$0xff] }
  0x42   :  { %849 = vmatpush.bf16.msrb.mxu2 %v13102_v40 }
  0x44   :  { %670 = vmatpush.bf16.msrb.mxu0 %v13087_v35 }
  0x45   :  { %759 = vmatpush.bf16.msrb.mxu1 %v13095_v36 }
  0x46   :  { %850 = vmatpush.bf16.msrb.mxu2 %v13101_v45 }
  0x48   :  { %671 = vmatpush.bf16.msrb.mxu0 %v13086_v38 }
  0x49   :  { %760 = vmatpush.bf16.msrb.mxu1 %v13094_v39 }
  0x4a   :  { %851 = vmatpush.bf16.msrb.mxu2 %v13100_v48 }
  0x4c   :  { %672 = vmatpush.bf16.msrb.mxu0 %v13085_v43 }
  0x4d   :  { %761 = vmatpush.bf16.msrb.mxu1 %v13093_v44 }
  0x4e   :  { %852 = vmatpush.bf16.msrb.mxu2 %v13099_v55 }
  0x50   :  { %673 = vmatpush.bf16.msrb.mxu0 %v13084_v46 }
  0x51   :  { %762 = vmatpush.bf16.msrb.mxu1 %v13092_v47 }
  0x52   :  { %853 = vmatpush.bf16.msrb.mxu2 %v13098_v63 }
  0x54   :  { %674 = vmatpush.bf16.msrb.mxu0 %v13083_v52 }
  0x55   :  { %763 = vmatpush.bf16.msrb.mxu1 %v13091_v53 }
  0x58   :  { %675 = vmatpush.bf16.msrb.mxu0 %v13082_v61 }
  0x59   :  { %764 = vmatpush.bf16.msrb.mxu1 %v13090_v62 }
  0x8d   :  { %v113_v42 = vpop.permute.xlu0 %112  ;;  %v123_v51 = vpop.permute.xlu1 %122 }
  0x8e   :  { %v133_v50 = vmul.f32 %v13795_v41, %v113_v42  ;;  %v135_v4 = vmul.f32 %v13795_v41, %v123_v51 }
  0x90   :  { %v141_v56 = vadd.f32 %v13796_v49, %v133_v50  ;;  %v143_v6 = vadd.f32 %v13796_v49, %v135_v4 }
  0x92   :  { %v14374_v0 = vadd.f32 %v145_v58, %v141_v56  ;;  %v14385_v8 = vadd.f32 %v145_v58, %v143_v6 }
  0x95   :  { %v118_v54 = vpop.permute.xlu0 %117  ;;  %v128_v3 = vpop.permute.xlu1 %127 }
  0x96   :  { %v134_v57 = vmul.f32 %v13795_v41, %v118_v54  ;;  %v136_v5 = vmul.f32 %v13795_v41, %v128_v3 }
  0x98   :  { %v142_v60 = vadd.f32 %v13796_v49, %v134_v57  ;;  %v144_v7 = vadd.f32 %v13796_v49, %v136_v5 }
  0x9a   :  { %v14376_v1 = vadd.f32 %v146_v59, %v142_v60  ;;  %v14387_v9 = vadd.f32 %v146_v59, %v144_v7 }
  0x9c   :  { %v14380_v2 = vpack.c.bf16 %v14376_v1, %v14374_v0  ;;  %v14391_v10 = vpack.c.bf16 %v14387_v9, %v14385_v8 }
  0x9e   :  { %229 = vmatmul.bf16.vlgmr.msra.gmra.mxu0 %v14380_v2  ;;  %316 = vmatmul.bf16.vlgmr.msra.gmra.mxu1 %v14380_v2 }
  0x9f   :  { %403 = vmatmul.bf16.vlgmr.msra.gmra.mxu2 %v14380_v2 }
  0xae   :  { %234 = vmatmul.bf16.gmra.mxu0 %v14391_v10  ;;  %321 = vmatmul.bf16.gmra.mxu1 %v14391_v10 }
  0xaf   :  { %408 = vmatmul.bf16.gmra.mxu2 %v14391_v10 }
  0xbe   :  { %676 = vmatmul.bf16.vlgmr.msrb.gmra.mxu0 %v14380_v2  ;;  %765 = vmatmul.bf16.vlgmr.msrb.gmra.mxu1 %v14380_v2 }
  0xbf   :  { %854 = vmatmul.bf16.vlgmr.msrb.gmra.mxu2 %v14380_v2 }
  0xce   :  { %681 = vmatmul.bf16.gmra.mxu0 %v14391_v10  ;;  %770 = vmatmul.bf16.gmra.mxu1 %v14391_v10 }
  0xcf   :  { %859 = vmatmul.bf16.gmra.mxu2 %v14391_v10 }
 0x11b   :  { %v230_v11 = vpop.f32.mrf.mxu0  ;;  %v317_v12 = vpop.f32.mrf.mxu1 }
 0x11c   :  { %v318_v14 = vadd.f32 %v13798_v13, %v317_v12  ;;  %v231_v23 = vadd.f32 %v13797_v18, %v230_v11 }
 0x11e   :  { %v418_v19 = vpack.c.bf16 %v318_v14, %v318_v14  ;;  %v414_v31 = vpack.c.bf16 %v231_v23, %v231_v23 }
 0x120   :  { %v429_v24 = vunpack.c.l.b16 %v418_v19  ;;  %v424_v35 = vunpack.c.l.b16 %v414_v31 }
 0x122   :  { %v404_v15 = vpop.f32.mrf.mxu2 }
 0x123   :  { %v232_v16 = vpop.f32.mrf.mxu0  ;;  %v319_v17 = vpop.f32.mrf.mxu1  ;;  %v405_v38 = vadd.f32 %v13799_v33, %v404_v15 }
 0x124   :  { %v320_v20 = vadd.f32 %v13798_v13, %v319_v17  ;;  %v233_v21 = vadd.f32 %v13797_v18, %v232_v16 }
 0x125   :  { %v532_v46 = vpack.c.bf16 %v405_v38, %v405_v38 }
 0x126   :  { %v419_v22 = vpack.c.bf16 %v320_v20, %v320_v20  ;;  %v415_v26 = vpack.c.bf16 %v233_v21, %v233_v21 }
 0x127   :  { %v543_v54 = vunpack.c.l.b16 %v532_v46 }
 0x128   :  { %v430_v25 = vunpack.c.l.b16 %v419_v22  ;;  %v425_v34 = vunpack.c.l.b16 %v415_v26 }
 0x12a   :  { %v406_v27 = vpop.f32.mrf.mxu2  ;;  %v431_v28 = vpack.c.b16 %v430_v25, %v429_v24  ;;  %v426_v40 = vpack.c.b16 %v425_v34, %v424_v35 }
 0x12b   :  { %v235_v29 = vpop.f32.mrf.mxu0  ;;  %v322_v30 = vpop.f32.mrf.mxu1  ;;  %v407_v36 = vadd.f32 %v13799_v33, %v406_v27 }
 0x12c   :  { %v437_v32 = vsel %vm432_vm0, %v431_v28, 0  ;;  %v323_v37 = vadd.f32 %v13798_v13, %v322_v30  ;;  %v236_v50 = vadd.f32 %v13797_v18, %v235_v29 }
 0x12d   :  { %446 = vmatpush.bf16.xpose.msra.mxu3 %v437_v32  ;;  %v533_v43 = vpack.c.bf16 %v407_v36, %v407_v36 }
 0x12e   :  { %v420_v44 = vpack.c.bf16 %v323_v37, %v323_v37  ;;  %v416_v60 = vpack.c.bf16 %v236_v50, %v236_v50 }
 0x12f   :  { %v544_v49 = vunpack.c.l.b16 %v533_v43 }
 0x130   :  { %v460_v51 = vunpack.c.l.b16 %v420_v44  ;;  %v455_v5 = vunpack.c.l.b16 %v416_v60 }
 0x131   :  { %v545_v59 = vpack.c.b16 %v544_v49, %v543_v54 }
 0x132   :  { %v409_v39 = vpop.f32.mrf.mxu2 }
 0x133   :  { %v237_v41 = vpop.f32.mrf.mxu0  ;;  %v324_v42 = vpop.f32.mrf.mxu1  ;;  %v410_v53 = vadd.f32 %v13799_v33, %v409_v39 }
 0x134   :  { %v325_v45 = vadd.f32 %v13798_v13, %v324_v42  ;;  %9799 = vmatmul.msk.bf16.vlgmr.msra.gmra.mxu3 %vm432_vm0, %v426_v40  ;;  %v238_v47 = vadd.f32 %v13797_v18, %v237_v41  ;;  %v13802_v13 = vld [vmem:[%s15899_s9 + $0x1] ss:$0 sm:$0xff] }
 0x135   :  { %v534_v62 = vpack.c.bf16 %v410_v53, %v410_v53 }
 0x136   :  { %v421_v48 = vpack.c.bf16 %v325_v45, %v325_v45  ;;  %v417_v55 = vpack.c.bf16 %v238_v47, %v238_v47 }
 0x137   :  { %v571_v6 = vunpack.c.l.b16 %v534_v62  ;;  %v13801_v62 = vld [vmem:[%s15897_s7 + $0x1] ss:$0 sm:$0xff] }
 0x138   :  { %v461_v52 = vunpack.c.l.b16 %v421_v48  ;;  %v456_v3 = vunpack.c.l.b16 %v417_v55 }
 0x13a   :  { %v411_v56 = vpop.f32.mrf.mxu2  ;;  %v462_v57 = vpack.c.b16 %v461_v52, %v460_v51  ;;  %v457_v7 = vpack.c.b16 %v456_v3, %v455_v5 }
 0x13b   :  { %v412_v58 = vadd.f32 %v13799_v33, %v411_v56 }
 0x13c   :  { %v467_v61 = vsel %vm432_vm0, %v462_v57, 0 }
 0x13d   :  { %v535_v63 = vpack.c.bf16 %v412_v58, %v412_v58  ;;  %476 = vmatpush.bf16.xpose.msrb.mxu3 %v467_v61 }
 0x13f   :  { %v572_v4 = vunpack.c.l.b16 %v535_v63 }
 0x141   :  { %v573_v12 = vpack.c.b16 %v572_v4, %v571_v6 }
 0x142   :  { %v855_v11 = vpop.f32.mrf.mxu2 }
 0x143   :  { %v856_v14 = vadd.f32 %v13802_v13, %v855_v11 }
 0x144   :  { %9800 = vmatmul.msk.bf16.vlgmr.msrb.gmra.mxu3 %vm432_vm0, %v457_v7 }
 0x145   :  { %557 = vmatpush.bf16.msra.mxu3 %v545_v59  ;;  %v981_v16 = vpack.c.bf16 %v856_v14, %v856_v14  ;;  %v766_v59 = vpop.f32.mrf.mxu1 }
 0x146   :  { %v767_v5 = vadd.f32 %v13801_v62, %v766_v59 }
 0x147   :  { %v992_v19 = vunpack.c.l.b16 %v981_v16 }
 0x149   :  { %585 = vmatpush.bf16.msrb.mxu3 %v573_v12  ;;  %v869_v12 = vpack.c.bf16 %v767_v5, %v767_v5 }
 0x14a   :  { %v857_v15 = vpop.f32.mrf.mxu2 }
 0x14b   :  { %v858_v17 = vadd.f32 %v13802_v13, %v857_v15 }
 0x14d   :  { %v982_v18 = vpack.c.bf16 %v858_v17, %v858_v17  ;;  %v768_v61 = vpop.f32.mrf.mxu1 }
 0x14e   :  { %v769_v63 = vadd.f32 %v13801_v62, %v768_v61 }
 0x14f   :  { %v993_v20 = vunpack.c.l.b16 %v982_v18  ;;  %v880_v18 = vunpack.c.l.b16 %v869_v12 }
 0x150   :  { %v870_v7 = vpack.c.bf16 %v769_v63, %v769_v63  ;;  %v13081_v63 = vld [vmem:[%s15900_s10 + $0x8] sm:$0xff] }
 0x151   :  { %v994_v21 = vpack.c.b16 %v993_v20, %v992_v19 }
 0x152   :  { %v860_v22 = vpop.f32.mrf.mxu2  ;;  %v881_v14 = vunpack.c.l.b16 %v870_v7 }
 0x153   :  { %1006 = vmatpush.bf16.msra.mxu0 %v994_v21  ;;  %v861_v23 = vadd.f32 %v13802_v13, %v860_v22 }
 0x154   :  { %v882_v20 = vpack.c.b16 %v881_v14, %v880_v18 }
 0x155   :  { %v983_v25 = vpack.c.bf16 %v861_v23, %v861_v23  ;;  %v771_v6 = vpop.f32.mrf.mxu1 }
 0x157   :  { %v1020_v28 = vunpack.c.l.b16 %v983_v25 }
 0x15a   :  { %v862_v24 = vpop.f32.mrf.mxu2 }
 0x15b   :  { %v863_v26 = vadd.f32 %v13802_v13, %v862_v24 }
 0x15d   :  { %v984_v27 = vpack.c.bf16 %v863_v26, %v863_v26  ;;  %v773_v23 = vpop.f32.mrf.mxu1  ;;  %v887_v26 = vsel %vm432_vm0, %v882_v20, 0 }
 0x15e   :  { %v774_v25 = vadd.f32 %v13801_v62, %v773_v23 }
 0x15f   :  { %v1021_v29 = vunpack.c.l.b16 %v984_v27 }
 0x161   :  { %v1022_v30 = vpack.c.b16 %v1021_v29, %v1020_v28  ;;  %v677_v29 = vpop.f32.mrf.mxu0 }
 0x163   :  { %1034 = vmatpush.bf16.msra.mxu1 %v1022_v30  ;;  %v772_v30 = vadd.f32 %v13801_v62, %v771_v6 }
 0x1b7   :  { %v448_v31 = vpop.f32.mrf.mxu3 }
 0x1b8   :  { %v484_v32 = vsel %vm483_vm1, %v448_v31, -inf }
 0x1b9   :  { %485 = vmax.xlane.f32.xlu2 %v484_v32 }
 0x1bf   :  { %v450_v33 = vpop.f32.mrf.mxu3 }
 0x1c0   :  { %v487_v34 = vsel %vm483_vm1, %v450_v33, -inf }
 0x1c1   :  { %488 = vmax.xlane.f32.xlu2 %v487_v34 }
 0x1c7   :  { %v478_v35 = vpop.f32.mrf.mxu3 }
 0x1c8   :  { %v490_v36 = vsel %vm483_vm1, %v478_v35, -inf }
 0x1c9   :  { %491 = vmax.xlane.f32.xlu0 %v490_v36 }
 0x1cf   :  { %v480_v37 = vpop.f32.mrf.mxu3 }
 0x1d0   :  { %v493_v38 = vsel %vm483_vm1, %v480_v37, -inf }
 0x1d1   :  { %494 = vmax.xlane.f32.xlu1 %v493_v38 }
 0x22c   :  { %v486_v39 = vpop.xlane.xlu2 %485 }
 0x22d   :  { %v496_v40 = vsub.f32 %v448_v31, %v486_v39  ;;  %v872_v31 = vpack.c.bf16 %v774_v25, %v774_v25 }
 0x22f   :  { %v500_v41 = vmul.f32 1.442695, %v496_v40  ;;  %v679_v40 = vpop.f32.mrf.mxu0 }
 0x231   :  { %13834 = vpow2.f32 %v500_v41 }
 0x234   :  { %v489_v42 = vpop.xlane.xlu2 %488 }
 0x235   :  { %v497_v43 = vsub.f32 %v450_v33, %v489_v42  ;;  %v871_v33 = vpack.c.bf16 %v772_v30, %v772_v30 }
 0x237   :  { %v13835_v44 = vpop.eup %13834  ;;  %v502_v45 = vmul.f32 1.442695, %v497_v43  ;;  %v910_v38 = vunpack.c.l.b16 %v871_v33 }
 0x238   :  { %v508_v46 = vsel %vm483_vm1, %v13835_v44, 0.0 }
 0x239   :  { %13836 = vpow2.f32 %v502_v45  ;;  %509 = vadd.xlane.f32.xlu2 %v508_v46  ;;  %v13800_v45 = vld [vmem:[%s15931_s14 + $0x1] ss:$0 sm:$0xff] }
 0x23c   :  { %v492_v47 = vpop.xlane.xlu0 %491 }
 0x23d   :  { %v498_v48 = vsub.f32 %v478_v35, %v492_v47  ;;  %v911_v35 = vunpack.c.l.b16 %v872_v31  ;;  %v680_v47 = vadd.f32 %v13800_v45, %v679_v40 }
 0x23f   :  { %v13837_v49 = vpop.eup %13836  ;;  %v504_v50 = vmul.f32 1.442695, %v498_v48  ;;  %v912_v41 = vpack.c.b16 %v911_v35, %v910_v38  ;;  %v678_v48 = vadd.f32 %v13800_v45, %v677_v29 }
 0x240   :  { %v511_v51 = vsel %vm483_vm1, %v13837_v49, 0.0 }
 0x241   :  { %13838 = vpow2.f32 %v504_v50  ;;  %512 = vadd.xlane.f32.xlu2 %v511_v51  ;;  %v917_v46 = vsel %vm432_vm0, %v912_v41, 0  ;;  %v866_v50 = vpack.c.bf16 %v680_v47, %v680_v47  ;;  %v865_v51 = vpack.c.bf16 %v678_v48, %v678_v48  ;;  %v13115_v41 = vld [vmem:[%s15926_s30 + $0xb8] sm:$0xff]  ;;  %v13112_v47 = vld [vmem:[%s15926_s30 + $0xa0] sm:$0xff] }
 0x242   :  { %1192 = vmatpush.bf16.msrb.mxu0 %v13115_v41  ;;  %v13120_v48 = vld [vmem:[%s15927_s23 + $0xa0] sm:$0xff] }
 0x243   :  { %v13803_v41 = vld [vmem:[%s15931_s14 + $0x2] ss:$0 sm:$0xff] }
 0x244   :  { %v495_v52 = vpop.xlane.xlu1 %494 }
 0x245   :  { %v499_v53 = vsub.f32 %v480_v37, %v495_v52  ;;  %v876_v52 = vunpack.c.l.b16 %v866_v50  ;;  %v13119_v50 = vld [vmem:[%s15927_s23 + $0x98] sm:$0xff] }
 0x247   :  { %v13839_v54 = vpop.eup %13838  ;;  %v506_v55 = vmul.f32 1.442695, %v499_v53  ;;  %v875_v53 = vunpack.c.l.b16 %v865_v51  ;;  %v13110_v51 = vld [vmem:[%s15926_s30 + $0x90] sm:$0xff] }
 0x248   :  { %v514_v56 = vsel %vm483_vm1, %v13839_v54, 0.0 }
 0x249   :  { %13840 = vpow2.f32 %v506_v55  ;;  %515 = vadd.xlane.f32.xlu2 %v514_v56 }
 0x24f   :  { %v13841_v57 = vpop.eup %13840 }
 0x250   :  { %v517_v58 = vsel %vm483_vm1, %v13841_v57, 0.0 }
 0x251   :  { %518 = vadd.xlane.f32.xlu2 %v517_v58 }
 0x2ac   :  { %v510_v60 = vpop.xlane.xlu2 %509 }
 0x2ad   :  { %13842 = vrcp.f32 %v510_v60 }
 0x2b3   :  { %v13843_v4 = vpop.eup %13842 }
 0x2b4   :  { %v513_v3 = vpop.xlane.xlu2 %512  ;;  %v524_v11 = vmul.f32 %v13843_v4, %v13835_v44 }
 0x2b5   :  { %13844 = vrcp.f32 %v513_v3  ;;  %v13080_v3 = vld [vmem:[%s15900_s10] sm:$0xff] }
 0x2b6   :  { %v528_v15 = vpack.c.bf16 %v524_v11, %v524_v11 }
 0x2b8   :  { %v538_v21 = vunpack.c.l.b16 %v528_v15 }
 0x2bb   :  { %v13845_v13 = vpop.eup %13844 }
 0x2bc   :  { %v525_v16 = vmul.f32 %v13845_v13, %v13837_v49  ;;  %v516_v17 = vpop.xlane.xlu2 %515  ;;  %v682_v49 = vpop.f32.mrf.mxu0 }
 0x2bd   :  { %13846 = vrcp.f32 %v516_v17 }
 0x2be   :  { %v529_v19 = vpack.c.bf16 %v525_v16, %v525_v16 }
 0x2c0   :  { %v539_v22 = vunpack.c.l.b16 %v529_v19 }
 0x2c2   :  { %v540_v24 = vpack.c.b16 %v539_v22, %v538_v21 }
 0x2c3   :  { %v13847_v28 = vpop.eup %13846 }
 0x2c4   :  { %9801 = vmatmul.msk.bf16.vlgmr.msra.gmra.mxu3 %vm483_vm1, %v540_v24  ;;  %v519_v27 = vpop.xlane.xlu2 %518  ;;  %v526_v32 = vmul.f32 %v13847_v28, %v13839_v54  ;;  %v877_v54 = vpack.c.b16 %v876_v52, %v875_v53  ;;  %v684_v55 = vpop.f32.mrf.mxu0  ;;  %v13118_v52 = vld [vmem:[%s15927_s23 + $0x90] sm:$0xff]  ;;  %v13109_v53 = vld [vmem:[%s15926_s30 + $0x88] sm:$0xff] }
 0x2c5   :  { %896 = vmatpush.bf16.xpose.msra.mxu3 %v887_v26  ;;  %13848 = vrcp.f32 %v519_v27  ;;  %v685_v56 = vadd.f32 %v13800_v45, %v684_v55 }
 0x2c6   :  { %v530_v36 = vpack.c.bf16 %v526_v32, %v526_v32 }
 0x2c7   :  { %v868_v58 = vpack.c.bf16 %v685_v56, %v685_v56 }
 0x2c8   :  { %v566_v42 = vunpack.c.l.b16 %v530_v36 }
 0x2c9   :  { %v906_v60 = vunpack.c.l.b16 %v868_v58  ;;  %v13116_v58 = vld [vmem:[%s15927_s23 + $0x80] sm:$0xff] }
 0x2cb   :  { %v13849_v34 = vpop.eup %13848 }
 0x2cc   :  { %v527_v37 = vmul.f32 %v13849_v34, %v13841_v57  ;;  %v683_v57 = vadd.f32 %v13800_v45, %v682_v49  ;;  %v13113_v45 = vld [vmem:[%s15926_s30 + $0xa8] sm:$0xff]  ;;  %v13111_v49 = vld [vmem:[%s15926_s30 + $0x98] sm:$0xff] }
 0x2ce   :  { %v531_v39 = vpack.c.bf16 %v527_v37, %v527_v37  ;;  %v867_v59 = vpack.c.bf16 %v683_v57, %v683_v57  ;;  %v13108_v57 = vld [vmem:[%s15926_s30 + $0x80] sm:$0xff] }
 0x2d0   :  { %v567_v43 = vunpack.c.l.b16 %v531_v39  ;;  %v905_v61 = vunpack.c.l.b16 %v867_v59 }
 0x2d2   :  { %v568_v44 = vpack.c.b16 %v567_v43, %v566_v42  ;;  %v907_v62 = vpack.c.b16 %v906_v60, %v905_v61  ;;  %v13123_v42 = vld [vmem:[%s15927_s23 + $0xb8] sm:$0xff]  ;;  %v13114_v43 = vld [vmem:[%s15926_s30 + $0xb0] sm:$0xff] }
 0x2d3   :  { %1281 = vmatpush.bf16.msrb.mxu1 %v13123_v42  ;;  %1193 = vmatpush.bf16.msrb.mxu0 %v13114_v43 }
 0x2d4   :  { %9802 = vmatmul.msk.bf16.vlgmr.msrb.gmra.mxu3 %vm483_vm1, %v568_v44  ;;  %v13122_v44 = vld [vmem:[%s15927_s23 + $0xb0] sm:$0xff] }
 0x2d5   :  { %926 = vmatpush.bf16.xpose.msrb.mxu3 %v917_v46  ;;  %v13121_v46 = vld [vmem:[%s15927_s23 + $0xa8] sm:$0xff] }
 0x2d7   :  { %1282 = vmatpush.bf16.msrb.mxu1 %v13122_v44  ;;  %1194 = vmatpush.bf16.msrb.mxu0 %v13113_v45 }
 0x2db   :  { %1283 = vmatpush.bf16.msrb.mxu1 %v13121_v46  ;;  %1195 = vmatpush.bf16.msrb.mxu0 %v13112_v47 }
 0x2df   :  { %1284 = vmatpush.bf16.msrb.mxu1 %v13120_v48  ;;  %1196 = vmatpush.bf16.msrb.mxu0 %v13111_v49 }
 0x2e3   :  { %1285 = vmatpush.bf16.msrb.mxu1 %v13119_v50  ;;  %1197 = vmatpush.bf16.msrb.mxu0 %v13110_v51 }
 0x2e4   :  { %9950 = vmatmul.msk.bf16.vlgmr.msra.gmra.mxu3 %vm432_vm0, %v877_v54  ;;  %v13117_v54 = vld [vmem:[%s15927_s23 + $0x88] sm:$0xff] }
 0x2e5   :  { %1109 = vmatpush.bf16.msra.mxu3 %v13081_v63 }
 0x2e7   :  { %1286 = vmatpush.bf16.msrb.mxu1 %v13118_v52  ;;  %1198 = vmatpush.bf16.msrb.mxu0 %v13109_v53 }
 0x2e9   :  { %1110 = vmatpush.bf16.msra.mxu3 %v13080_v3 }
 0x2eb   :  { %1287 = vmatpush.bf16.msrb.mxu1 %v13117_v54  ;;  %1199 = vmatpush.bf16.msrb.mxu0 %v13108_v57 }
 0x2ef   :  { %1288 = vmatpush.bf16.msrb.mxu1 %v13116_v58 }
 0x2f4   :  { %9951 = vmatmul.msk.bf16.vlgmr.msrb.gmra.mxu3 %vm432_vm0, %v907_v62 }
 0x347   :  { %v559_v4 = vpop.f32.mrf.mxu3 }
 0x34f   :  { %v561_v5 = vpop.f32.mrf.mxu3 }
 0x350   :  { %v596_v6 = vpack.c.bf16 %v561_v5, %v559_v4 }
 0x352   :  { %9976 = vmatmul.msk.bf16.vlgmr.msra.gmra.mxu3 %vm432_vm0, %v596_v6 }
 0x357   :  { %v587_v7 = vpop.f32.mrf.mxu3 }
 0x35f   :  { %v589_v11 = vpop.f32.mrf.mxu3 }
 0x360   :  { %v597_v12 = vpack.c.bf16 %v589_v11, %v587_v7 }
 0x362   :  { %9977 = vmatmul.msk.bf16.gmra.mxu3 %vm432_vm0, %v597_v12 }
 0x367   :  { %v898_v13 = vpop.f32.mrf.mxu3 }
 0x368   :  { %v933_v14 = vsel %vm483_vm1, %v898_v13, -inf }
 0x369   :  { %934 = vmax.xlane.f32.xlu0 %v933_v14 }
 0x36f   :  { %v900_v15 = vpop.f32.mrf.mxu3 }
 0x370   :  { %v936_v16 = vsel %vm483_vm1, %v900_v15, -inf }
 0x371   :  { %937 = vmax.xlane.f32.xlu1 %v936_v16 }
 0x377   :  { %v928_v17 = vpop.f32.mrf.mxu3 }
 0x378   :  { %v939_v18 = vsel %vm483_vm1, %v928_v17, -inf }
 0x379   :  { %940 = vmax.xlane.f32.xlu2 %v939_v18 }
 0x37f   :  { %v930_v19 = vpop.f32.mrf.mxu3 }
 0x380   :  { %v942_v20 = vsel %vm483_vm1, %v930_v19, -inf }
 0x381   :  { %943 = vmax.xlane.f32.xlu2 %v942_v20 }
 0x3dc   :  { %v935_v21 = vpop.xlane.xlu0 %934 }
 0x3dd   :  { %v945_v22 = vsub.f32 %v898_v13, %v935_v21  ;;  %v13107_v21 = vld [vmem:[%s15900_s10 + $0x18] sm:$0xff] }
 0x3de   :  { %1072 = vmatpush.bf16.msra.mxu2 %v13107_v21  ;;  %v13139_v21 = vld [vmem:[%s15926_s30 + $0xe8] sm:$0xff] }
 0x3df   :  { %v949_v23 = vmul.f32 1.442695, %v945_v22  ;;  %v13106_v22 = vld [vmem:[%s15900_s10 + $0x10] sm:$0xff] }
 0x3e1   :  { %13850 = vpow2.f32 %v949_v23  ;;  %v13131_v23 = vld [vmem:[%s15898_s8 + $0xb8] sm:$0xff] }
 0x3e2   :  { %1073 = vmatpush.bf16.msra.mxu2 %v13106_v22  ;;  %v13138_v22 = vld [vmem:[%s15926_s30 + $0xe0] sm:$0xff] }
 0x3e4   :  { %v938_v26 = vpop.xlane.xlu1 %937 }
 0x3e5   :  { %v946_v29 = vsub.f32 %v900_v15, %v938_v26  ;;  %v13128_v26 = vld [vmem:[%s15898_s8 + $0xa0] sm:$0xff] }
 0x3e6   :  { %1370 = vmatpush.bf16.msrb.mxu2 %v13131_v23  ;;  %v13137_v23 = vld [vmem:[%s15926_s30 + $0xd8] sm:$0xff] }
 0x3e7   :  { %v14450_v24 = vpop.eup %13850  ;;  %v951_v31 = vmul.f32 1.442695, %v946_v29 }
 0x3e8   :  { %v957_v25 = vsel %vm483_vm1, %v14450_v24, 0.0 }
 0x3e9   :  { %958 = vadd.xlane.f32.xlu1 %v957_v25  ;;  %v13129_v25 = vld [vmem:[%s15898_s8 + $0xa8] sm:$0xff] }
 0x3ec   :  { %v941_v27 = vpop.xlane.xlu2 %940 }
 0x3ed   :  { %v947_v28 = vsub.f32 %v928_v17, %v941_v27  ;;  %v13127_v27 = vld [vmem:[%s15898_s8 + $0x98] sm:$0xff] }
 0x3ef   :  { %v953_v30 = vmul.f32 1.442695, %v947_v28  ;;  %v13126_v28 = vld [vmem:[%s15898_s8 + $0x90] sm:$0xff] }
 0x3f1   :  { %13852 = vpow2.f32 %v953_v30 }
 0x3f2   :  { %13854 = vpow2.f32 %v951_v31  ;;  %v13125_v31 = vld [vmem:[%s15898_s8 + $0x88] sm:$0xff] }
 0x3f4   :  { %v944_v32 = vpop.xlane.xlu2 %943 }
 0x3f5   :  { %v948_v33 = vsub.f32 %v930_v19, %v944_v32  ;;  %v13124_v32 = vld [vmem:[%s15898_s8 + $0x80] sm:$0xff] }
 0x3f7   :  { %v13853_v34 = vpop.eup %13852  ;;  %v955_v35 = vmul.f32 1.442695, %v948_v33 }
 0x3f8   :  { %v963_v36 = vsel %vm483_vm1, %v13853_v34, 0.0  ;;  %v13855_v37 = vpop.eup %13854 }
 0x3f9   :  { %13856 = vpow2.f32 %v955_v35  ;;  %964 = vadd.xlane.f32.xlu2 %v963_v36  ;;  %v960_v39 = vsel %vm483_vm1, %v13855_v37, 0.0 }
 0x3ff   :  { %v13857_v38 = vpop.eup %13856 }
 0x400   :  { %v966_v40 = vsel %vm483_vm1, %v13857_v38, 0.0 }
 0x401   :  { %961 = vadd.xlane.f32.xlu2 %v960_v39  ;;  %967 = vadd.xlane.f32.xlu0 %v966_v40 }
 0x45c   :  { %v959_v56 = vpop.xlane.xlu1 %958 }
 0x46c   :  { %v965_v55 = vpop.xlane.xlu2 %964 }
 0x46d   :  { %13858 = vrcp.f32 %v965_v55 }
 0x46e   :  { %13860 = vrcp.f32 %v959_v56 }
 0x473   :  { %v13859_v61 = vpop.eup %13858 }
 0x474   :  { %v968_v59 = vpop.xlane.xlu0 %967  ;;  %v962_v60 = vpop.xlane.xlu2 %961  ;;  %v975_v63 = vmul.f32 %v13859_v61, %v13853_v34 }
 0x475   :  { %13862 = vrcp.f32 %v968_v59  ;;  %v13861_v62 = vpop.eup %13860 }
 0x476   :  { %13864 = vrcp.f32 %v962_v60  ;;  %v973_v3 = vmul.f32 %v13861_v62, %v14450_v24  ;;  %v979_v6 = vpack.c.bf16 %v975_v63, %v975_v63  ;;  %v13130_v24 = vld [vmem:[%s15898_s8 + $0xb0] sm:$0xff] }
 0x477   :  { %1371 = vmatpush.bf16.msrb.mxu2 %v13130_v24  ;;  %v13136_v24 = vld [vmem:[%s15926_s30 + $0xd0] sm:$0xff] }
 0x478   :  { %v977_v11 = vpack.c.bf16 %v973_v3, %v973_v3  ;;  %v1015_v15 = vunpack.c.l.b16 %v979_v6 }
 0x47a   :  { %v987_v17 = vunpack.c.l.b16 %v977_v11 }
 0x47b   :  { %v13863_v4 = vpop.eup %13862  ;;  %1372 = vmatpush.bf16.msrb.mxu2 %v13129_v25  ;;  %v13135_v25 = vld [vmem:[%s15926_s30 + $0xc8] sm:$0xff] }
 0x47c   :  { %v13865_v5 = vpop.eup %13864  ;;  %v976_v7 = vmul.f32 %v13863_v4, %v13857_v38  ;;  %v13804_v38 = vld [vmem:[%s15897_s7 + $0x2] ss:$0 sm:$0xff] }
 0x47d   :  { %v974_v12 = vmul.f32 %v13865_v5, %v13855_v37 }
 0x47e   :  { %v980_v13 = vpack.c.bf16 %v976_v7, %v976_v7 }
 0x47f   :  { %v978_v14 = vpack.c.bf16 %v974_v12, %v974_v12  ;;  %1373 = vmatpush.bf16.msrb.mxu2 %v13128_v26  ;;  %v13134_v26 = vld [vmem:[%s15926_s30 + $0xc0] sm:$0xff] }
 0x480   :  { %v1016_v16 = vunpack.c.l.b16 %v980_v13 }
 0x481   :  { %v988_v18 = vunpack.c.l.b16 %v978_v14  ;;  %v13141_v14 = vld [vmem:[%s15926_s30 + $0xf8] sm:$0xff] }
 0x482   :  { %v1017_v19 = vpack.c.b16 %v1016_v16, %v1015_v15 }
 0x483   :  { %v989_v20 = vpack.c.b16 %v988_v18, %v987_v17  ;;  %1374 = vmatpush.bf16.msrb.mxu2 %v13127_v27  ;;  %v13140_v18 = vld [vmem:[%s15926_s30 + $0xf0] sm:$0xff]  ;;  %v14582_v27 = vpop.f32.mrf.mxu3 }
 0x484   :  { %9953 = vmatmul.msk.bf16.vlgmr.msra.gmra.mxu1 %vm483_vm1, %v1017_v19 }
 0x485   :  { %9952 = vmatmul.msk.bf16.vlgmr.msra.gmra.mxu0 %vm483_vm1, %v989_v20 }
 0x487   :  { %1375 = vmatpush.bf16.msrb.mxu2 %v13126_v28 }
 0x48b   :  { %1376 = vmatpush.bf16.msrb.mxu2 %v13125_v31 }
 0x48f   :  { %1377 = vmatpush.bf16.msrb.mxu2 %v13124_v32 }
 0x494   :  { %1289 = vmatmul.bf16.vlgmr.msrb.gmra.mxu1 %v14380_v2 }
 0x495   :  { %1200 = vmatmul.bf16.vlgmr.msrb.gmra.mxu0 %v14380_v2 }
 0x4a4   :  { %1294 = vmatmul.bf16.gmra.mxu1 %v14391_v10 }
 0x4a5   :  { %1205 = vmatmul.bf16.gmra.mxu0 %v14391_v10 }
 0x501   :  { %v1036_v29 = vpop.f32.mrf.mxu1 }
 0x502   :  { %v1008_v30 = vpop.f32.mrf.mxu0 }
 0x509   :  { %v1038_v33 = vpop.f32.mrf.mxu1 }
 0x50a   :  { %v1010_v34 = vpop.f32.mrf.mxu0  ;;  %v1047_v45 = vpack.c.bf16 %v1038_v33, %v1036_v29  ;;  %v14586_v29 = vpop.f32.mrf.mxu3 }
 0x50b   :  { %v1046_v35 = vpack.c.bf16 %v1010_v34, %v1008_v30 }
 0x50d   :  { %9966 = vmatmul.msk.bf16.vlgmr.msra.gmra.mxu2 %vm432_vm0, %v1046_v35 }
 0x511   :  { %v1290_v36 = vpop.f32.mrf.mxu1 }
 0x512   :  { %v1201_v37 = vpop.f32.mrf.mxu0  ;;  %v1291_v39 = vadd.f32 %v13804_v38, %v1290_v36  ;;  %v14590_v31 = vpop.f32.mrf.mxu3 }
 0x513   :  { %v1202_v48 = vadd.f32 %v13803_v41, %v1201_v37 }
 0x514   :  { %v1393_v42 = vpack.c.bf16 %v1291_v39, %v1291_v39 }
 0x515   :  { %v1389_v54 = vpack.c.bf16 %v1202_v48, %v1202_v48 }
 0x516   :  { %v1404_v49 = vunpack.c.l.b16 %v1393_v42 }
 0x517   :  { %v1399_v58 = vunpack.c.l.b16 %v1389_v54 }
 0x519   :  { %v1292_v40 = vpop.f32.mrf.mxu1 }
 0x51a   :  { %v1203_v43 = vpop.f32.mrf.mxu0  ;;  %v1293_v44 = vadd.f32 %v13804_v38, %v1292_v40  ;;  %v14594_v33 = vpop.f32.mrf.mxu3 }
 0x51b   :  { %v1204_v46 = vadd.f32 %v13803_v41, %v1203_v43 }
 0x51c   :  { %v1394_v47 = vpack.c.bf16 %v1293_v44, %v1293_v44 }
 0x51d   :  { %9967 = vmatmul.msk.bf16.gmra.mxu2 %vm432_vm0, %v1047_v45  ;;  %v1390_v51 = vpack.c.bf16 %v1204_v46, %v1204_v46 }
 0x51e   :  { %v1405_v50 = vunpack.c.l.b16 %v1394_v47 }
 0x51f   :  { %v1400_v57 = vunpack.c.l.b16 %v1390_v51 }
 0x520   :  { %v1406_v52 = vpack.c.b16 %v1405_v50, %v1404_v49 }
 0x521   :  { %v1295_v53 = vpop.f32.mrf.mxu1  ;;  %v1401_v60 = vpack.c.b16 %v1400_v57, %v1399_v58 }
 0x522   :  { %v1206_v55 = vpop.f32.mrf.mxu0  ;;  %v1411_v56 = vsel %vm432_vm0, %v1406_v52, 0  ;;  %v1296_v59 = vadd.f32 %v13804_v38, %v1295_v53 }
 0x523   :  { %1420 = vmatpush.bf16.xpose.msrb.mxu3 %v1411_v56  ;;  %v1207_v6 = vadd.f32 %v13803_v41, %v1206_v55 }
 0x524   :  { %v1395_v62 = vpack.c.bf16 %v1296_v59, %v1296_v59 }
 0x525   :  { %v1391_v15 = vpack.c.bf16 %v1207_v6, %v1207_v6 }
 0x526   :  { %v1434_v7 = vunpack.c.l.b16 %v1395_v62 }
 0x527   :  { %v1429_v19 = vunpack.c.l.b16 %v1391_v15 }
 0x529   :  { %v1297_v61 = vpop.f32.mrf.mxu1 }
 0x52a   :  { %v1208_v63 = vpop.f32.mrf.mxu0  ;;  %v1298_v3 = vadd.f32 %v13804_v38, %v1297_v61  ;;  %10125 = vmatmul.msk.bf16.vlgmr.msrb.gmra.mxu3 %vm432_vm0, %v1401_v60  ;;  %v13805_v38 = vld [vmem:[%s15899_s9 + $0x2] ss:$0 sm:$0xff] }
 0x52b   :  { %v1209_v4 = vadd.f32 %v13803_v41, %v1208_v63 }
 0x52c   :  { %v1396_v5 = vpack.c.bf16 %v1298_v3, %v1298_v3 }
 0x52d   :  { %1378 = vmatmul.bf16.vlgmr.msrb.gmra.mxu2 %v14380_v2  ;;  %v1392_v12 = vpack.c.bf16 %v1209_v4, %v1209_v4 }
 0x52e   :  { %v1435_v11 = vunpack.c.l.b16 %v1396_v5 }
 0x52f   :  { %v1430_v17 = vunpack.c.l.b16 %v1392_v12 }
 0x530   :  { %v1436_v13 = vpack.c.b16 %v1435_v11, %v1434_v7 }
 0x531   :  { %v1431_v20 = vpack.c.b16 %v1430_v17, %v1429_v19 }
 0x532   :  { %v1441_v16 = vsel %vm432_vm0, %v1436_v13, 0 }
 0x533   :  { %1450 = vmatpush.bf16.xpose.msra.mxu3 %v1441_v16 }
 0x53a   :  { %10126 = vmatmul.msk.bf16.vlgmr.msra.gmra.mxu3 %vm432_vm0, %v1431_v20 }
 0x53b   :  { %1683 = vmatpush.bf16.msrb.mxu3 %v13141_v14 }
 0x53d   :  { %1383 = vmatmul.bf16.gmra.mxu2 %v14391_v10 }
 0x53f   :  { %1684 = vmatpush.bf16.msrb.mxu3 %v13140_v18 }
 0x543   :  { %1685 = vmatpush.bf16.msrb.mxu3 %v13139_v21 }
 0x547   :  { %1686 = vmatpush.bf16.msrb.mxu3 %v13138_v22 }
 0x54b   :  { %1687 = vmatpush.bf16.msrb.mxu3 %v13137_v23 }
 0x54f   :  { %1688 = vmatpush.bf16.msrb.mxu3 %v13136_v24  ;;  %v13149_v24 = vld [vmem:[%s15927_s23 + $0xf8] sm:$0xff] }
 0x553   :  { %1689 = vmatpush.bf16.msrb.mxu3 %v13135_v25  ;;  %v13148_v25 = vld [vmem:[%s15927_s23 + $0xf0] sm:$0xff] }
 0x557   :  { %1690 = vmatpush.bf16.msrb.mxu3 %v13134_v26  ;;  %v13147_v26 = vld [vmem:[%s15927_s23 + $0xe8] sm:$0xff] }
 0x55a   :  { %1691 = vmatmul.bf16.vlgmr.msrb.gmra.mxu3 %v14380_v2 }
 0x56a   :  { %1696 = vmatmul.bf16.gmra.mxu3 %v14391_v10 }
 0x590   :  { %v14584_v28 = vpop.f32.mrf.mxu2 }
 0x598   :  { %v14588_v30 = vpop.f32.mrf.mxu2 }
 0x5a0   :  { %v14592_v32 = vpop.f32.mrf.mxu2 }
 0x5a8   :  { %v14596_v34 = vpop.f32.mrf.mxu2 }
 0x5ad   :  { %v1422_v35 = vpop.f32.mrf.mxu3 }
 0x5ae   :  { %v1457_v36 = vsel %vm483_vm1, %v1422_v35, -inf }
 0x5af   :  { %1458 = vmax.xlane.f32.xlu0 %v1457_v36  ;;  %v13145_v36 = vld [vmem:[%s15927_s23 + $0xd8] sm:$0xff] }
 0x5b0   :  { %v1379_v37 = vpop.f32.mrf.mxu2 }
 0x5b1   :  { %v1380_v39 = vadd.f32 %v13805_v38, %v1379_v37  ;;  %v13157_v37 = vld [vmem:[%s15898_s8 + $0xf8] sm:$0xff] }
 0x5b3   :  { %v1505_v43 = vpack.c.bf16 %v1380_v39, %v1380_v39  ;;  %v13156_v39 = vld [vmem:[%s15898_s8 + $0xf0] sm:$0xff] }
 0x5b5   :  { %v1424_v40 = vpop.f32.mrf.mxu3  ;;  %v1516_v46 = vunpack.c.l.b16 %v1505_v43  ;;  %v13142_v43 = vld [vmem:[%s15927_s23 + $0xc0] sm:$0xff] }
 0x5b6   :  { %v1460_v41 = vsel %vm483_vm1, %v1424_v40, -inf }
 0x5b7   :  { %1461 = vmax.xlane.f32.xlu1 %v1460_v41  ;;  %v13143_v41 = vld [vmem:[%s15927_s23 + $0xc8] sm:$0xff] }
 0x5b8   :  { %v1381_v42 = vpop.f32.mrf.mxu2 }
 0x5b9   :  { %v1382_v44 = vadd.f32 %v13805_v38, %v1381_v42  ;;  %v13155_v42 = vld [vmem:[%s15898_s8 + $0xe8] sm:$0xff] }
 0x5bb   :  { %v1506_v45 = vpack.c.bf16 %v1382_v44, %v1382_v44  ;;  %v13154_v44 = vld [vmem:[%s15898_s8 + $0xe0] sm:$0xff] }
 0x5bd   :  { %v1517_v47 = vunpack.c.l.b16 %v1506_v45  ;;  %v1452_v48 = vpop.f32.mrf.mxu3 }
 0x5be   :  { %v1463_v49 = vsel %vm483_vm1, %v1452_v48, -inf }
 0x5bf   :  { %v1518_v50 = vpack.c.b16 %v1517_v47, %v1516_v46  ;;  %1464 = vmax.xlane.f32.xlu2 %v1463_v49  ;;  %v13153_v46 = vld [vmem:[%s15898_s8 + $0xd8] sm:$0xff] }
 0x5c0   :  { %v1384_v51 = vpop.f32.mrf.mxu2 }
 0x5c1   :  { %1530 = vmatpush.bf16.msra.mxu0 %v1518_v50  ;;  %v1385_v52 = vadd.f32 %v13805_v38, %v1384_v51  ;;  %v13151_v50 = vld [vmem:[%s15898_s8 + $0xc8] sm:$0xff] }
 0x5c3   :  { %v1507_v56 = vpack.c.bf16 %v1385_v52, %v1385_v52 }
 0x5c5   :  { %v1454_v53 = vpop.f32.mrf.mxu3  ;;  %v1544_v59 = vunpack.c.l.b16 %v1507_v56  ;;  %1772 = vmatpush.bf16.msrb.mxu0 %v13149_v24  ;;  %v13150_v56 = vld [vmem:[%s15898_s8 + $0xc0] sm:$0xff] }
 0x5c6   :  { %v1466_v54 = vsel %vm483_vm1, %v1454_v53, -inf }
 0x5c7   :  { %1467 = vmax.xlane.f32.xlu0 %v1466_v54 }
 0x5c8   :  { %v1386_v55 = vpop.f32.mrf.mxu2 }
 0x5c9   :  { %v1387_v57 = vadd.f32 %v13805_v38, %v1386_v55  ;;  %1773 = vmatpush.bf16.msrb.mxu0 %v13148_v25  ;;  %v13144_v38 = vld [vmem:[%s15927_s23 + $0xd0] sm:$0xff] }
 0x5cb   :  { %v1508_v58 = vpack.c.bf16 %v1387_v57, %v1387_v57 }
 0x5cd   :  { %v1545_v60 = vunpack.c.l.b16 %v1508_v58  ;;  %1774 = vmatpush.bf16.msrb.mxu0 %v13147_v26  ;;  %v13806_v26 = vld [vmem:[%s15931_s14 + $0x3] ss:$0 sm:$0xff] }
 0x5cf   :  { %v1546_v61 = vpack.c.b16 %v1545_v60, %v1544_v59 }
 0x5d1   :  { %1558 = vmatpush.bf16.msra.mxu1 %v1546_v61 }
 0x5d5   :  { %1861 = vmatpush.bf16.msrb.mxu1 %v13157_v37 }
 0x5d9   :  { %1862 = vmatpush.bf16.msrb.mxu1 %v13156_v39 }
 0x5dd   :  { %1863 = vmatpush.bf16.msrb.mxu1 %v13155_v42 }
 0x5e1   :  { %1864 = vmatpush.bf16.msrb.mxu1 %v13154_v44 }
 0x5e5   :  { %1865 = vmatpush.bf16.msrb.mxu1 %v13153_v46 }
 0x622   :  { %v1459_v62 = vpop.xlane.xlu0 %1458 }
 0x623   :  { %v1469_v63 = vsub.f32 %v1422_v35, %v1459_v62  ;;  %v13146_v35 = vld [vmem:[%s15927_s23 + $0xe0] sm:$0xff] }
 0x624   :  { %1775 = vmatpush.bf16.msrb.mxu0 %v13146_v35 }
 0x625   :  { %v1473_v3 = vmul.f32 1.442695, %v1469_v63 }
 0x627   :  { %13866 = vpow2.f32 %v1473_v3 }
 0x628   :  { %1776 = vmatpush.bf16.msrb.mxu0 %v13145_v36 }
 0x62a   :  { %v1462_v4 = vpop.xlane.xlu1 %1461 }
 0x62b   :  { %v1470_v5 = vsub.f32 %v1424_v40, %v1462_v4 }
 0x62c   :  { %1777 = vmatpush.bf16.msrb.mxu0 %v13144_v38 }
 0x62d   :  { %v13867_v6 = vpop.eup %13866  ;;  %v1475_v7 = vmul.f32 1.442695, %v1470_v5 }
 0x62e   :  { %v1481_v11 = vsel %vm483_vm1, %v13867_v6, 0.0 }
 0x62f   :  { %13868 = vpow2.f32 %v1475_v7  ;;  %1482 = vadd.xlane.f32.xlu1 %v1481_v11 }
 0x630   :  { %1778 = vmatpush.bf16.msrb.mxu0 %v13143_v41 }
 0x632   :  { %v1465_v12 = vpop.xlane.xlu2 %1464 }
 0x633   :  { %v1471_v13 = vsub.f32 %v1452_v48, %v1465_v12  ;;  %v13152_v48 = vld [vmem:[%s15898_s8 + $0xd0] sm:$0xff]  ;;  %v13133_v12 = vld [vmem:[%s15900_s10 + $0x28] sm:$0xff] }
 0x634   :  { %1779 = vmatpush.bf16.msrb.mxu0 %v13142_v43  ;;  %1866 = vmatpush.bf16.msrb.mxu1 %v13152_v48 }
 0x635   :  { %v13869_v14 = vpop.eup %13868  ;;  %v1477_v15 = vmul.f32 1.442695, %v1471_v13  ;;  %1596 = vmatpush.bf16.msra.mxu2 %v13133_v12  ;;  %v13132_v13 = vld [vmem:[%s15900_s10 + $0x20] sm:$0xff] }
 0x636   :  { %v1484_v16 = vsel %vm483_vm1, %v13869_v14, 0.0 }
 0x637   :  { %13870 = vpow2.f32 %v1477_v15  ;;  %1485 = vadd.xlane.f32.xlu2 %v1484_v16 }
 0x638   :  { %1867 = vmatpush.bf16.msrb.mxu1 %v13151_v50 }
 0x639   :  { %1597 = vmatpush.bf16.msra.mxu2 %v13132_v13 }
 0x63a   :  { %v1468_v17 = vpop.xlane.xlu0 %1467 }
 0x63b   :  { %v1472_v18 = vsub.f32 %v1454_v53, %v1468_v17  ;;  %v1692_v17 = vpop.f32.mrf.mxu3 }
 0x63c   :  { %1868 = vmatpush.bf16.msrb.mxu1 %v13150_v56  ;;  %v1693_v39 = vadd.f32 %v13806_v26, %v1692_v17 }
 0x63d   :  { %v13871_v19 = vpop.eup %13870  ;;  %v1479_v20 = vmul.f32 1.442695, %v1472_v18 }
 0x63e   :  { %v1487_v21 = vsel %vm483_vm1, %v13871_v19, 0.0 }
 0x63f   :  { %13872 = vpow2.f32 %v1479_v20  ;;  %1488 = vadd.xlane.f32.xlu0 %v1487_v21 }
 0x645   :  { %v13873_v22 = vpop.eup %13872 }
 0x646   :  { %v1490_v23 = vsel %vm483_vm1, %v13873_v22, 0.0 }
 0x647   :  { %1491 = vadd.xlane.f32.xlu1 %v1490_v23 }
 0x6a2   :  { %v1483_v40 = vpop.xlane.xlu1 %1482 }
 0x6a3   :  { %13874 = vrcp.f32 %v1483_v40 }
 0x6a9   :  { %v13875_v47 = vpop.eup %13874 }
 0x6aa   :  { %v1486_v45 = vpop.xlane.xlu2 %1485  ;;  %v1497_v49 = vmul.f32 %v13875_v47, %v13867_v6  ;;  %v1880_v47 = vpack.c.bf16 %v1693_v39, %v1693_v39 }
 0x6ab   :  { %13876 = vrcp.f32 %v1486_v45  ;;  %v13808_v45 = vld [vmem:[%s15899_s9 + $0x3] ss:$0 sm:$0xff] }
 0x6ac   :  { %v1501_v52 = vpack.c.bf16 %v1497_v49, %v1497_v49 }
 0x6ae   :  { %v1511_v57 = vunpack.c.l.b16 %v1501_v52 }
 0x6b1   :  { %v13877_v51 = vpop.eup %13876 }
 0x6b2   :  { %v1498_v53 = vmul.f32 %v13877_v51, %v13869_v14  ;;  %v1489_v54 = vpop.xlane.xlu0 %1488  ;;  %v1890_v51 = vunpack.c.l.b16 %v1880_v47 }
 0x6b3   :  { %13878 = vrcp.f32 %v1489_v54 }
 0x6b4   :  { %v1502_v55 = vpack.c.bf16 %v1498_v53, %v1498_v53 }
 0x6b6   :  { %v1512_v58 = vunpack.c.l.b16 %v1502_v55 }
 0x6b8   :  { %v1513_v59 = vpack.c.b16 %v1512_v58, %v1511_v57 }
 0x6b9   :  { %v13879_v61 = vpop.eup %13878 }
 0x6ba   :  { %10127 = vmatmul.msk.bf16.vlgmr.msra.gmra.mxu0 %vm483_vm1, %v1513_v59  ;;  %v1492_v60 = vpop.xlane.xlu1 %1491  ;;  %v1499_v62 = vmul.f32 %v13879_v61, %v13871_v19  ;;  %v1694_v19 = vpop.f32.mrf.mxu3 }
 0x6bb   :  { %13880 = vrcp.f32 %v1492_v60  ;;  %v1695_v36 = vadd.f32 %v13806_v26, %v1694_v19 }
 0x6bc   :  { %v1503_v3 = vpack.c.bf16 %v1499_v62, %v1499_v62 }
 0x6bd   :  { %v1881_v42 = vpack.c.bf16 %v1695_v36, %v1695_v36 }
 0x6be   :  { %v1539_v6 = vunpack.c.l.b16 %v1503_v3 }
 0x6bf   :  { %v1891_v48 = vunpack.c.l.b16 %v1881_v42 }
 0x6c1   :  { %v13881_v63 = vpop.eup %13880  ;;  %v1892_v52 = vpack.c.b16 %v1891_v48, %v1890_v51 }
 0x6c2   :  { %v1500_v4 = vmul.f32 %v13881_v63, %v13873_v22  ;;  %v1697_v40 = vpop.f32.mrf.mxu3 }
 0x6c4   :  { %v1504_v5 = vpack.c.bf16 %v1500_v4, %v1500_v4 }
 0x6c6   :  { %v1540_v7 = vunpack.c.l.b16 %v1504_v5 }
 0x6c8   :  { %v1541_v11 = vpack.c.b16 %v1540_v7, %v1539_v6  ;;  %v1698_v6 = vadd.f32 %v13806_v26, %v1697_v40 }
 0x6ca   :  { %10128 = vmatmul.msk.bf16.vlgmr.msra.gmra.mxu1 %vm483_vm1, %v1541_v11  ;;  %1780 = vmatmul.bf16.vlgmr.msrb.gmra.mxu0 %v14380_v2  ;;  %v1699_v55 = vpop.f32.mrf.mxu3 }
 0x6cb   :  { %v1700_v62 = vadd.f32 %v13806_v26, %v1699_v55 }
 0x6cd   :  { %v1883_v13 = vpack.c.bf16 %v1700_v62, %v1700_v62 }
 0x6da   :  { %1785 = vmatmul.bf16.gmra.mxu0 %v14391_v10  ;;  %1869 = vmatmul.bf16.vlgmr.msrb.gmra.mxu1 %v14380_v2 }
 0x6ea   :  { %1874 = vmatmul.bf16.gmra.mxu1 %v14391_v10  ;;  %v13807_v10 = vld [vmem:[%s15897_s7 + $0x3] ss:$0 sm:$0xff] }
 0x737   :  { %v1532_v14 = vpop.f32.mrf.mxu0 }
 0x73f   :  { %v1534_v15 = vpop.f32.mrf.mxu0 }
 0x740   :  { %v1570_v16 = vpack.c.bf16 %v1534_v15, %v1532_v14  ;;  %v1882_v15 = vpack.c.bf16 %v1698_v6, %v1698_v6 }
 0x742   :  { %10141 = vmatmul.msk.bf16.vlgmr.msra.gmra.mxu2 %vm432_vm0, %v1570_v16  ;;  %v1921_v16 = vunpack.c.l.b16 %v1883_v13 }
 0x747   :  { %v1560_v18 = vpop.f32.mrf.mxu1  ;;  %v1781_v2 = vpop.f32.mrf.mxu0 }
 0x748   :  { %v1782_v20 = vadd.f32 %v13807_v10, %v1781_v2 }
 0x74a   :  { %v1884_v23 = vpack.c.bf16 %v1782_v20, %v1782_v20 }
 0x74c   :  { %v1895_v37 = vunpack.c.l.b16 %v1884_v23 }
 0x74f   :  { %v1562_v21 = vpop.f32.mrf.mxu1  ;;  %v1783_v22 = vpop.f32.mrf.mxu0 }
 0x750   :  { %v1571_v24 = vpack.c.bf16 %v1562_v21, %v1560_v18  ;;  %v1784_v25 = vadd.f32 %v13807_v10, %v1783_v22  ;;  %v1920_v18 = vunpack.c.l.b16 %v1882_v15 }
 0x752   :  { %v1885_v35 = vpack.c.bf16 %v1784_v25, %v1784_v25  ;;  %10142 = vmatmul.msk.bf16.gmra.mxu2 %vm432_vm0, %v1571_v24  ;;  %v1113_v25 = vadd.f32 %v14582_v27, %v14584_v28 }
 0x754   :  { %v1896_v38 = vunpack.c.l.b16 %v1885_v35 }
 0x756   :  { %v1897_v41 = vpack.c.b16 %v1896_v38, %v1895_v37  ;;  %v1118_v37 = vadd.f32 %v14590_v31, %v14592_v32 }
 0x757   :  { %v1786_v43 = vpop.f32.mrf.mxu0  ;;  %v1870_v44 = vpop.f32.mrf.mxu1 }
 0x758   :  { %v1902_v46 = vsel %vm432_vm0, %v1897_v41, 0  ;;  %v1787_v49 = vadd.f32 %v13807_v10, %v1786_v43  ;;  %v1871_v50 = vadd.f32 %v13808_v45, %v1870_v44 }
 0x759   :  { %1911 = vmatpush.bf16.xpose.msrb.mxu2 %v1902_v46 }
 0x75a   :  { %v1886_v56 = vpack.c.bf16 %v1787_v49, %v1787_v49  ;;  %v1996_v57 = vpack.c.bf16 %v1871_v50, %v1871_v50 }
 0x75c   :  { %v1925_v63 = vunpack.c.l.b16 %v1886_v56  ;;  %v2007_v3 = vunpack.c.l.b16 %v1996_v57 }
 0x75f   :  { %v1788_v53 = vpop.f32.mrf.mxu0  ;;  %v1872_v54 = vpop.f32.mrf.mxu1 }
 0x760   :  { %v1789_v58 = vadd.f32 %v13807_v10, %v1788_v53  ;;  %v1873_v59 = vadd.f32 %v13808_v45, %v1872_v54  ;;  %v1922_v10 = vpack.c.b16 %v1921_v16, %v1920_v18 }
 0x762   :  { %v1887_v60 = vpack.c.bf16 %v1789_v58, %v1789_v58  ;;  %v1997_v61 = vpack.c.bf16 %v1873_v59, %v1873_v59  ;;  %10290 = vmatmul.msk.bf16.vlgmr.msrb.gmra.mxu2 %vm432_vm0, %v1892_v52 }
 0x764   :  { %v1926_v4 = vunpack.c.l.b16 %v1887_v60  ;;  %v2008_v5 = vunpack.c.l.b16 %v1997_v61 }
 0x766   :  { %v1927_v7 = vpack.c.b16 %v1926_v4, %v1925_v63  ;;  %v2009_v11 = vpack.c.b16 %v2008_v5, %v2007_v3 }
 0x767   :  { %v1875_v12 = vpop.f32.mrf.mxu1 }
 0x768   :  { %2021 = vmatpush.bf16.msra.mxu3 %v2009_v11  ;;  %v1932_v14 = vsel %vm432_vm0, %v1927_v7, 0  ;;  %v1876_v17 = vadd.f32 %v13808_v45, %v1875_v12 }
 0x769   :  { %1941 = vmatpush.bf16.xpose.msra.mxu2 %v1932_v14 }
 0x76a   :  { %v1998_v19 = vpack.c.bf16 %v1876_v17, %v1876_v17 }
 0x76c   :  { %v2035_v22 = vunpack.c.l.b16 %v1998_v19 }
 0x76f   :  { %v1877_v2 = vpop.f32.mrf.mxu1 }
 0x770   :  { %v1878_v20 = vadd.f32 %v13808_v45, %v1877_v2 }
 0x772   :  { %v1999_v21 = vpack.c.bf16 %v1878_v20, %v1878_v20  ;;  %10291 = vmatmul.msk.bf16.vlgmr.msra.gmra.mxu2 %vm432_vm0, %v1922_v10 }
 0x774   :  { %v2036_v23 = vunpack.c.l.b16 %v1999_v21 }
 0x776   :  { %v2037_v24 = vpack.c.b16 %v2036_v23, %v2035_v22 }
 0x778   :  { %2049 = vmatpush.bf16.msra.mxu0 %v2037_v24 }
 0x7c5   :  { %v1599_v26 = vpop.f32.mrf.mxu2 }
 0x7c6   :  { %v14686_v35 = vadd.f32 %v1599_v26, %v1113_v25 }
 0x7cd   :  { %v14688_v36 = vpop.f32.mrf.mxu2 }
 0x7d5   :  { %v1604_v38 = vpop.f32.mrf.mxu2 }
 0x7d6   :  { %v14692_v39 = vadd.f32 %v1604_v38, %v1118_v37  ;;  %v13159_v37 = vld [vmem:[%s15900_s10 + $0x38] sm:$0xff]  ;;  %v13158_v38 = vld [vmem:[%s15900_s10 + $0x30] sm:$0xff] }
 0x7d7   :  { %2087 = vmatpush.bf16.msra.mxu1 %v13159_v37  ;;  %v10694_v37 = vld [vmem:[#allocation2 + $0x300] sm:$0xf] }
 0x7db   :  { %2088 = vmatpush.bf16.msra.mxu1 %v13158_v38  ;;  %v13264_v38 = vld [vmem:[#allocation2 + $0x33c] sm:$0xf0] }
 0x7dd   :  { %v14694_v40 = vpop.f32.mrf.mxu2 }
 0x7e5   :  { %v1913_v41 = vpop.f32.mrf.mxu2 }
 0x7e6   :  { %v1948_v42 = vsel %vm483_vm1, %v1913_v41, -inf }
 0x7e7   :  { %1949 = vmax.xlane.f32.xlu2 %v1948_v42 }
 0x7ed   :  { %v1915_v43 = vpop.f32.mrf.mxu2 }
 0x7ee   :  { %v1951_v27 = vsel %vm483_vm1, %v1915_v43, -inf }
 0x7ef   :  { %1952 = vmax.xlane.f32.xlu0 %v1951_v27 }
 0x7f5   :  { %v1943_v28 = vpop.f32.mrf.mxu2 }
 0x7f6   :  { %v1954_v44 = vsel %vm483_vm1, %v1943_v28, -inf }
 0x7f7   :  { %1955 = vmax.xlane.f32.xlu1 %v1954_v44 }
 0x7fd   :  { %v1945_v45 = vpop.f32.mrf.mxu2 }
 0x7fe   :  { %v1957_v31 = vsel %vm483_vm1, %v1945_v45, -inf }
 0x7ff   :  { %1958 = vmax.xlane.f32.xlu2 %v1957_v31 }
 0x85a   :  { %v1950_v32 = vpop.xlane.xlu2 %1949 }
 0x85b   :  { %v1960_v46 = vsub.f32 %v1913_v41, %v1950_v32 }
 0x85d   :  { %v1964_v47 = vmul.f32 1.442695, %v1960_v46 }
 0x85f   :  { %13882 = vpow2.f32 %v1964_v47  ;;  %v1115_v47 = vadd.f32 %v14586_v29, %v14588_v30 }
 0x862   :  { %v1953_v48 = vpop.xlane.xlu0 %1952 }
 0x863   :  { %v1961_v49 = vsub.f32 %v1915_v43, %v1953_v48 }
 0x865   :  { %v13883_v50 = vpop.eup %13882  ;;  %v1966_v51 = vmul.f32 1.442695, %v1961_v49  ;;  %v1610_v49 = vadd.f32 %v14688_v36, %v1115_v47  ;;  %v10630_v47 = vld [vmem:[#allocation2 + $0x280] sm:$0xf] }
 0x866   :  { %v1972_v52 = vsel %vm483_vm1, %v13883_v50, 0.0 }
 0x867   :  { %13884 = vpow2.f32 %v1966_v51  ;;  %1973 = vadd.xlane.f32.xlu0 %v1972_v52 }
 0x86a   :  { %v1956_v53 = vpop.xlane.xlu1 %1955 }
 0x86b   :  { %v1962_v54 = vsub.f32 %v1943_v28, %v1956_v53 }
 0x86d   :  { %v13885_v55 = vpop.eup %13884  ;;  %v1968_v56 = vmul.f32 1.442695, %v1962_v54 }
 0x86e   :  { %v1975_v57 = vsel %vm483_vm1, %v13885_v55, 0.0 }
 0x86f   :  { %13886 = vpow2.f32 %v1968_v56  ;;  %1976 = vadd.xlane.f32.xlu1 %v1975_v57 }
 0x872   :  { %v1959_v58 = vpop.xlane.xlu2 %1958 }
 0x873   :  { %v1963_v59 = vsub.f32 %v1945_v45, %v1959_v58  ;;  %v13809_v45 = vld [vmem:[%s15901_s11] ss:$0 sm:$0xff] }
 0x875   :  { %v13887_v60 = vpop.eup %13886  ;;  %v1970_v61 = vmul.f32 1.442695, %v1963_v59 }
 0x876   :  { %v1978_v62 = vsel %vm483_vm1, %v13887_v60, 0.0 }
 0x877   :  { %13888 = vpow2.f32 %v1970_v61  ;;  %1979 = vadd.xlane.f32.xlu2 %v1978_v62 }
 0x87d   :  { %v13889_v63 = vpop.eup %13888 }
 0x87e   :  { %v1981_v3 = vsel %vm483_vm1, %v13889_v63, 0.0 }
 0x87f   :  { %1982 = vadd.xlane.f32.xlu0 %v1981_v3 }
 0x8da   :  { %v1974_v4 = vpop.xlane.xlu0 %1973 }
 0x8db   :  { %13890 = vrcp.f32 %v1974_v4 }
 0x8e1   :  { %v13891_v6 = vpop.eup %13890 }
 0x8e2   :  { %v1977_v5 = vpop.xlane.xlu1 %1976  ;;  %v1988_v7 = vmul.f32 %v13891_v6, %v13883_v50 }
 0x8e3   :  { %13892 = vrcp.f32 %v1977_v5 }
 0x8e4   :  { %v1992_v12 = vpack.c.bf16 %v1988_v7, %v1988_v7 }
 0x8e6   :  { %v2002_v16 = vunpack.c.l.b16 %v1992_v12 }
 0x8e9   :  { %v13893_v11 = vpop.eup %13892 }
 0x8ea   :  { %v1989_v13 = vmul.f32 %v13893_v11, %v13885_v55  ;;  %v1980_v14 = vpop.xlane.xlu2 %1979 }
 0x8eb   :  { %13894 = vrcp.f32 %v1980_v14 }
 0x8ec   :  { %v1993_v15 = vpack.c.bf16 %v1989_v13, %v1989_v13 }
 0x8ee   :  { %v2003_v17 = vunpack.c.l.b16 %v1993_v15 }
 0x8f0   :  { %v2004_v18 = vpack.c.b16 %v2003_v17, %v2002_v16  ;;  %v10758_v17 = vld [vmem:[#allocation2 + $0x380] sm:$0xf] }
 0x8f1   :  { %v13895_v10 = vpop.eup %13894 }
 0x8f2   :  { %10292 = vmatmul.msk.bf16.vlgmr.msra.gmra.mxu3 %vm483_vm1, %v2004_v18  ;;  %v1983_v2 = vpop.xlane.xlu0 %1982  ;;  %v1990_v19 = vmul.f32 %v13895_v10, %v13887_v60  ;;  %v13280_v18 = vld [vmem:[#allocation2 + $0x3bc] sm:$0xf0] }
 0x8f3   :  { %13896 = vrcp.f32 %v1983_v2  ;;  %v13272_v2 = vld [vmem:[#allocation2 + $0x384] sm:$0xf]  ;;  %v10759_v10 = vor.u32 %v13280_v18, %v10758_v17  ;;  %v10438_v18 = vld [vmem:[#allocation2 + $0x100] sm:$0xf] }
 0x8f4   :  { %v1994_v21 = vpack.c.bf16 %v1990_v19, %v1990_v19  ;;  %v10760_v19 = vld [vmem:[#allocation2 + $0x3c0] sm:$0xf0] }
 0x8f5   :  { %3025 = vmatpush.bf16.msrb.mxu2 %v10759_v10  ;;  %v13192_v10 = vld [vmem:[#allocation2 + $0x104] sm:$0xf] }
 0x8f6   :  { %v2030_v24 = vunpack.c.l.b16 %v1994_v21  ;;  %v13281_v21 = vld [vmem:[#allocation2 + $0x3c4] sm:$0xf0] }
 0x8f9   :  { %v13897_v20 = vpop.eup %13896 }
 0x8fa   :  { %v1991_v22 = vmul.f32 %v13897_v20, %v13889_v63  ;;  %v10766_v20 = vld [vmem:[#allocation2 + $0x388] sm:$0xf] }
 0x8fc   :  { %v1995_v23 = vpack.c.bf16 %v1991_v22, %v1991_v22  ;;  %v10763_v22 = vor.u32 %v13272_v2, %v10760_v19  ;;  %v13200_v2 = vld [vmem:[#allocation2 + $0x13c] sm:$0xf0] }
 0x8fd   :  { %v10439_v19 = vor.u32 %v13200_v2, %v10438_v18  ;;  %v10712_v18 = vld [vmem:[#allocation2 + $0x350] sm:$0xf0]  ;;  %v10718_v2 = vld [vmem:[#allocation2 + $0x318] sm:$0xf] }
 0x8fe   :  { %v2031_v25 = vunpack.c.l.b16 %v1995_v23  ;;  %v10767_v23 = vor.u32 %v13281_v21, %v10766_v20  ;;  %3044 = vmatpush.bf16.msrb.mxu3 %v10763_v22  ;;  %v10440_v20 = vld [vmem:[#allocation2 + $0x140] sm:$0xf0]  ;;  %v10446_v21 = vld [vmem:[#allocation2 + $0x108] sm:$0xf] }
 0x8ff   :  { %v13201_v22 = vld [vmem:[#allocation2 + $0x144] sm:$0xf0] }
 0x900   :  { %v2032_v26 = vpack.c.b16 %v2031_v25, %v2030_v24  ;;  %v13273_v24 = vld [vmem:[#allocation2 + $0x38c] sm:$0xf]  ;;  %3063 = vmatpush.bf16.msrb.mxu0 %v10767_v23  ;;  %v10443_v23 = vor.u32 %v13192_v10, %v10440_v20  ;;  %v13267_v20 = vld [vmem:[#allocation2 + $0x354] sm:$0xf0] }
 0x901   :  { %v10768_v25 = vld [vmem:[#allocation2 + $0x3c8] sm:$0xf0] }
 0x902   :  { %10293 = vmatmul.msk.bf16.vlgmr.msra.gmra.mxu0 %vm483_vm1, %v2032_v26  ;;  %v10771_v26 = vor.u32 %v13273_v24, %v10768_v25  ;;  %v10447_v24 = vor.u32 %v13201_v22, %v10446_v21  ;;  %v13193_v25 = vld [vmem:[#allocation2 + $0x10c] sm:$0xf]  ;;  %v13259_v21 = vld [vmem:[#allocation2 + $0x31c] sm:$0xf] }
 0x903   :  { %v10720_v22 = vld [vmem:[#allocation2 + $0x358] sm:$0xf0] }
 0x904   :  { %3082 = vmatpush.bf16.msrb.mxu1 %v10771_v26  ;;  %v10448_v26 = vld [vmem:[#allocation2 + $0x148] sm:$0xf0] }
 0x975   :  { %v2023_v41 = vpop.f32.mrf.mxu3 }
 0x97d   :  { %v2025_v42 = vpop.f32.mrf.mxu3 }
 0x97e   :  { %v2061_v43 = vpack.c.bf16 %v2025_v42, %v2023_v41  ;;  %v13256_v41 = vld [vmem:[#allocation2 + $0x304] sm:$0xf]  ;;  %v10695_v42 = vor.u32 %v13264_v38, %v10694_v37  ;;  %v10451_v37 = vor.u32 %v13193_v25, %v10448_v26  ;;  %v10374_v38 = vld [vmem:[#allocation2 + $0x80] sm:$0xf]  ;;  %v10646_v26 = vld [vmem:[#allocation2 + $0x290] sm:$0xf] }
 0x97f   :  { %v2051_v27 = vpop.f32.mrf.mxu0 }
 0x980   :  { %10306 = vmatmul.msk.bf16.vlgmr.msra.gmra.mxu1 %vm432_vm0, %v2061_v43  ;;  %v10696_v43 = vld [vmem:[#allocation2 + $0x340] sm:$0xf0]  ;;  %3026 = vmatpush.bf16.msrb.mxu2 %v10695_v42 }
 0x981   :  { %v13176_v42 = vld [vmem:[#allocation2 + $0x84] sm:$0xf] }
 0x987   :  { %v2053_v28 = vpop.f32.mrf.mxu0 }
 0x988   :  { %v2062_v44 = vpack.c.bf16 %v2053_v28, %v2051_v27  ;;  %v10702_v27 = vld [vmem:[#allocation2 + $0x308] sm:$0xf] }
 0x989   :  { %v13265_v28 = vld [vmem:[#allocation2 + $0x344] sm:$0xf0] }
 0x990   :  { %10307 = vmatmul.msk.bf16.gmra.mxu1 %vm432_vm0, %v2062_v44  ;;  %v10699_v44 = vor.u32 %v13256_v41, %v10696_v43  ;;  %v13184_v41 = vld [vmem:[#allocation2 + $0xbc] sm:$0xf0] }
 0x991   :  { %v10375_v43 = vor.u32 %v13184_v41, %v10374_v38  ;;  %v13242_v38 = vld [vmem:[#allocation2 + $0x294] sm:$0xf] }
 0x992   :  { %3045 = vmatpush.bf16.msrb.mxu3 %v10699_v44  ;;  %v13185_v44 = vld [vmem:[#allocation2 + $0xc4] sm:$0xf0] }
 0x9fd   :  { %v2090_v31 = vpop.f32.mrf.mxu1 }
 0x9fe   :  { %v2100_v32 = vadd.f32 %v2090_v31, %v14686_v35  ;;  %v1120_v35 = vadd.f32 %v14594_v33, %v14596_v34  ;;  %v13257_v31 = vld [vmem:[#allocation2 + $0x30c] sm:$0xf] }
 0xa00   :  { %v2108_v46 = vadd.f32 %v13809_v45, %v2100_v32  ;;  %v10704_v32 = vld [vmem:[#allocation2 + $0x348] sm:$0xf0] }
 0xa02   :  { %v2112_v48 = vadd.f32 %v2108_v46, %v14374_v0  ;;  %v1612_v0 = vadd.f32 %v14694_v40, %v1120_v35  ;;  %v10707_v46 = vor.u32 %v13257_v31, %v10704_v32  ;;  %v10640_v35 = vld [vmem:[#allocation2 + $0x2c8] sm:$0xf0] }
 0xa04   :  { %2118 = vadd.xlane.f32.xlu1 %v2112_v48  ;;  %3083 = vmatpush.bf16.msrb.mxu1 %v10707_v46  ;;  %v13177_v46 = vld [vmem:[#allocation2 + $0x8c] sm:$0xf] }
 0xa05   :  { %v2092_v50 = vpop.f32.mrf.mxu1 }
 0xa06   :  { %v2101_v51 = vadd.f32 %v2092_v50, %v1610_v49  ;;  %v13240_v49 = vld [vmem:[#allocation2 + $0x284] sm:$0xf] }
 0xa08   :  { %v2109_v52 = vadd.f32 %v13809_v45, %v2101_v51  ;;  %v10632_v51 = vld [vmem:[#allocation2 + $0x2c0] sm:$0xf0] }
 0xa0a   :  { %v2113_v53 = vadd.f32 %v2109_v52, %v14376_v1  ;;  %v14082_v1 = vmov 128.0   ;;  %v10638_v52 = vld [vmem:[#allocation2 + $0x288] sm:$0xf] }
 0xa0b   :  { %13898 = vrcp.f32 %v14082_v1  ;;  %v10574_v1 = vld [vmem:[#allocation2 + $0x208] sm:$0xf] }
 0xa0c   :  { %2120 = vadd.xlane.f32.xlu2 %v2113_v53 }
 0xa0d   :  { %v2095_v54 = vpop.f32.mrf.mxu1 }
 0xa0e   :  { %v2102_v55 = vadd.f32 %v2095_v54, %v14692_v39  ;;  %v10635_v54 = vor.u32 %v13240_v49, %v10632_v51  ;;  %v13168_v51 = vld [vmem:[#allocation2 + $0x3c] sm:$0xf0] }
 0xa10   :  { %v2110_v56 = vadd.f32 %v13809_v45, %v2102_v55  ;;  %3046 = vmatpush.bf16.msrb.mxu3 %v10635_v54 }
 0xa11   :  { %v13899_v59 = vpop.eup %13898 }
 0xa12   :  { %v2114_v29 = vadd.f32 %v2110_v56, %v14385_v8  ;;  %v2127_v60 = vmul.f32 128.0, %v13899_v59  ;;  %vm2131_vm2 = vweird.f32 %v13899_v59  ;;  %v13241_v56 = vld [vmem:[#allocation2 + $0x28c] sm:$0xf] }
 0xa14   :  { %2122 = vadd.xlane.f32.xlu0 %v2114_v29  ;;  %v2128_v39 = vsub.f32 1.0, %v2127_v60 }
 0xa15   :  { %v2097_v30 = vpop.f32.mrf.mxu1 }
 0xa16   :  { %v2103_v36 = vadd.f32 %v2097_v30, %v1612_v0  ;;  %v2129_v61 = vmul.f32 %v13899_v59, %v2128_v39  ;;  %v10566_v0 = vld [vmem:[#allocation2 + $0x200] sm:$0xf] }
 0xa17   :  { %v13232_v30 = vld [vmem:[#allocation2 + $0x23c] sm:$0xf0] }
 0xa18   :  { %v2111_v57 = vadd.f32 %v13809_v45, %v2103_v36  ;;  %v2130_v62 = vadd.f32 %v13899_v59, %v2129_v61  ;;  %v10703_v45 = vor.u32 %v13265_v28, %v10702_v27  ;;  %v13224_v36 = vld [vmem:[#allocation2 + $0x204] sm:$0xf]  ;;  %v13225_v61 = vld [vmem:[#allocation2 + $0x20c] sm:$0xf]  ;;  %v10382_v28 = vld [vmem:[#allocation2 + $0x88] sm:$0xf] }
 0xa19   :  { %v10376_v27 = vld [vmem:[#allocation2 + $0xc0] sm:$0xf0]  ;;  %v10383_v32 = vor.u32 %v13185_v44, %v10382_v28 }
 0xa1a   :  { %v2115_v58 = vadd.f32 %v2111_v57, %v14387_v9  ;;  %v14729_v33 = vsel %vm2131_vm2, %v13899_v59, %v2130_v62  ;;  %3064 = vmatpush.bf16.msrb.mxu0 %v10703_v45  ;;  %v10567_v57 = vor.u32 %v13232_v30, %v10566_v0  ;;  %v13233_v59 = vld [vmem:[#allocation2 + $0x244] sm:$0xf0]  ;;  %v10576_v62 = vld [vmem:[#allocation2 + $0x248] sm:$0xf0]  ;;  %v10379_v31 = vor.u32 %v13176_v42, %v10376_v27  ;;  %v10648_v42 = vld [vmem:[#allocation2 + $0x2d0] sm:$0xf0] }
 0xa1b   :  { %v10575_v39 = vor.u32 %v13233_v59, %v10574_v1  ;;  %v13161_v0 = vld [vmem:[#allocation2 + $0xc] sm:$0xf]  ;;  %v13282_v1 = vld [vmem:[#allocation2 + $0x3cc] sm:$0xf0]  ;;  %v13274_v59 = vld [vmem:[#allocation2 + $0x394] sm:$0xf] }
 0xa1c   :  { %2124 = vadd.xlane.f32.xlu1 %v2115_v58  ;;  %v10320_v30 = vld [vmem:[#allocation2 + $0x48] sm:$0xf0]  ;;  %v13251_v27 = vld [vmem:[#allocation2 + $0x2d4] sm:$0xf0] }
 0xa77   :  { %v2119_v8 = vpop.xlane.xlu1 %2118 }
 0xa78   :  { %v2133_v34 = vmul.f32 %v14729_v33, %v2119_v8  ;;  %v10579_v8 = vor.u32 %v13225_v61, %v10576_v62  ;;  %v10782_v61 = vld [vmem:[#allocation2 + $0x398] sm:$0xf] }
 0xa79   :  { %v13283_v62 = vld [vmem:[#allocation2 + $0x3d4] sm:$0xf0] }
 0xa7a   :  { %v14732_v40 = vsub.f32 %v2112_v48, %v2133_v34  ;;  %v13248_v48 = vld [vmem:[#allocation2 + $0x2bc] sm:$0xf0] }
 0xa7b   :  { %v10631_v50 = vor.u32 %v13248_v48, %v10630_v47  ;;  %v10502_v34 = vld [vmem:[#allocation2 + $0x180] sm:$0xf]  ;;  %v10384_v47 = vld [vmem:[#allocation2 + $0xc8] sm:$0xf0] }
 0xa7c   :  { %v2141_v63 = vmul.f32 %v14732_v40, %v14732_v40  ;;  %v10387_v49 = vor.u32 %v13177_v46, %v10384_v47  ;;  %v10656_v46 = vld [vmem:[#allocation2 + $0x2d8] sm:$0xf0] }
 0xa7d   :  { %3027 = vmatpush.bf16.msrb.mxu2 %v10631_v50  ;;  %v10310_v50 = vld [vmem:[#allocation2] sm:$0xf] }
 0xa7e   :  { %2145 = vadd.xlane.f32.xlu2 %v2141_v63  ;;  %v13216_v63 = vld [vmem:[#allocation2 + $0x1bc] sm:$0xf0]  ;;  %v10311_v54 = vor.u32 %v13168_v51, %v10310_v50  ;;  %v10582_v50 = vld [vmem:[#allocation2 + $0x210] sm:$0xf] }
 0xa7f   :  { %v2121_v9 = vpop.xlane.xlu2 %2120  ;;  %v13234_v51 = vld [vmem:[#allocation2 + $0x24c] sm:$0xf0] }
 0xa80   :  { %v2134_v3 = vmul.f32 %v14729_v33, %v2121_v9  ;;  %v13208_v9 = vld [vmem:[#allocation2 + $0x184] sm:$0xf] }
 0xa81   :  { %3028 = vmatpush.bf16.msrb.mxu2 %v10567_v57  ;;  %v10323_v57 = vor.u32 %v13161_v0, %v10320_v30 }
 0xa82   :  { %v14737_v4 = vsub.f32 %v2113_v53, %v2134_v3  ;;  %v13249_v53 = vld [vmem:[#allocation2 + $0x2c4] sm:$0xf0]  ;;  %v10503_v3 = vor.u32 %v13216_v63, %v10502_v34  ;;  %v10783_v63 = vor.u32 %v13283_v62, %v10782_v61  ;;  %v10518_v61 = vld [vmem:[#allocation2 + $0x190] sm:$0xf] }
 0xa83   :  { %v10639_v55 = vor.u32 %v13249_v53, %v10638_v52  ;;  %v13160_v52 = vld [vmem:[#allocation2 + $0x4] sm:$0xf]  ;;  %v13218_v62 = vld [vmem:[#allocation2 + $0x1cc] sm:$0xf0] }
 0xa84   :  { %v2142_v5 = vmul.f32 %v14737_v4, %v14737_v4 }
 0xa85   :  { %3065 = vmatpush.bf16.msrb.mxu0 %v10639_v55  ;;  %3029 = vmatpush.bf16.msrb.mxu2 %v10503_v3  ;;  %v10312_v55 = vld [vmem:[#allocation2 + $0x40] sm:$0xf0]  ;;  %v10784_v3 = vld [vmem:[#allocation2 + $0x3d8] sm:$0xf0] }
 0xa86   :  { %2147 = vadd.xlane.f32.xlu0 %v2142_v5  ;;  %v10504_v5 = vld [vmem:[#allocation2 + $0x1c0] sm:$0xf0] }
 0xa87   :  { %v2123_v6 = vpop.xlane.xlu0 %2122 }
 0xa88   :  { %v2135_v7 = vmul.f32 %v14729_v33, %v2123_v6  ;;  %v10510_v6 = vld [vmem:[#allocation2 + $0x188] sm:$0xf] }
 0xa89   :  { %3066 = vmatpush.bf16.msrb.mxu0 %v10575_v39  ;;  %3030 = vmatpush.bf16.msrb.mxu2 %v10439_v19  ;;  %v10776_v39 = vld [vmem:[#allocation2 + $0x3d0] sm:$0xf0] }
 0xa8a   :  { %v14742_v11 = vsub.f32 %v2114_v29, %v2135_v7  ;;  %v10643_v29 = vor.u32 %v13241_v56, %v10640_v35  ;;  %v13217_v7 = vld [vmem:[#allocation2 + $0x1c4] sm:$0xf0]  ;;  %v10315_v35 = vor.u32 %v13160_v52, %v10312_v55  ;;  %v10779_v34 = vor.u32 %v13274_v59, %v10776_v39 }
 0xa8b   :  { %v10318_v56 = vld [vmem:[#allocation2 + $0x8] sm:$0xf]  ;;  %v10583_v55 = vor.u32 %v13234_v51, %v10582_v50 }
 0xa8c   :  { %v2143_v12 = vmul.f32 %v14742_v11, %v14742_v11  ;;  %3084 = vmatpush.bf16.msrb.mxu1 %v10643_v29  ;;  %v13169_v29 = vld [vmem:[#allocation2 + $0x44] sm:$0xf0] }
 0xa8d   :  { %3031 = vmatpush.bf16.msrb.mxu2 %v10375_v43  ;;  %v10654_v43 = vld [vmem:[#allocation2 + $0x298] sm:$0xf] }
 0xa8e   :  { %2149 = vadd.xlane.f32.xlu1 %v2143_v12  ;;  %v10507_v12 = vor.u32 %v13208_v9, %v10504_v5  ;;  %v13275_v9 = vld [vmem:[#allocation2 + $0x39c] sm:$0xf] }
 0xa8f   :  { %v2125_v13 = vpop.xlane.xlu1 %2124 }
 0xa90   :  { %v2136_v14 = vmul.f32 %v14729_v33, %v2125_v13  ;;  %3085 = vmatpush.bf16.msrb.mxu1 %v10579_v8  ;;  %v10511_v13 = vor.u32 %v13217_v7, %v10510_v6  ;;  %v10787_v6 = vor.u32 %v13275_v9, %v10784_v3  ;;  %v10710_v7 = vld [vmem:[#allocation2 + $0x310] sm:$0xf]  ;;  %v10526_v9 = vld [vmem:[#allocation2 + $0x198] sm:$0xf] }
 0xa91   :  { %3032 = vmatpush.bf16.msrb.mxu2 %v10311_v54  ;;  %v13219_v3 = vld [vmem:[#allocation2 + $0x1d4] sm:$0xf0] }
 0xa92   :  { %v14747_v15 = vsub.f32 %v2115_v58, %v2136_v14  ;;  %v10568_v58 = vld [vmem:[#allocation2 + $0x240] sm:$0xf0]  ;;  %v13209_v14 = vld [vmem:[#allocation2 + $0x18c] sm:$0xf]  ;;  %3067 = vmatpush.bf16.msrb.mxu0 %v10511_v13  ;;  %v13258_v13 = vld [vmem:[#allocation2 + $0x314] sm:$0xf] }
 0xa93   :  { %v10571_v60 = vor.u32 %v13224_v36, %v10568_v58  ;;  %v10319_v36 = vor.u32 %v13169_v29, %v10318_v56  ;;  %v10774_v58 = vld [vmem:[#allocation2 + $0x390] sm:$0xf]  ;;  %v10715_v19 = vor.u32 %v13258_v13, %v10712_v18  ;;  %v13226_v56 = vld [vmem:[#allocation2 + $0x214] sm:$0xf]  ;;  %v10527_v13 = vor.u32 %v13219_v3, %v10526_v9  ;;  %v10528_v18 = vld [vmem:[#allocation2 + $0x1d8] sm:$0xf0] }
 0xa94   :  { %v2144_v16 = vmul.f32 %v14747_v15, %v14747_v15 }
 0xa95   :  { %3047 = vmatpush.bf16.msrb.mxu3 %v10571_v60  ;;  %v10775_v60 = vor.u32 %v13282_v1, %v10774_v58  ;;  %v13227_v58 = vld [vmem:[#allocation2 + $0x21c] sm:$0xf] }
 0xa96   :  { %2151 = vadd.xlane.f32.xlu2 %v2144_v16  ;;  %v10512_v16 = vld [vmem:[#allocation2 + $0x1c8] sm:$0xf0]  ;;  %3068 = vmatpush.bf16.msrb.mxu0 %v10447_v24  ;;  %v10723_v24 = vor.u32 %v13259_v21, %v10720_v22  ;;  %v13202_v21 = vld [vmem:[#allocation2 + $0x14c] sm:$0xf0]  ;;  %v13194_v22 = vld [vmem:[#allocation2 + $0x114] sm:$0xf] }
 0xa97   :  { %v10515_v17 = vor.u32 %v13209_v14, %v10512_v16  ;;  %3101 = vmatpush.bf16.msra.mxu2 %v10775_v60  ;;  %v10592_v60 = vld [vmem:[#allocation2 + $0x258] sm:$0xf0] }
 0xa98   :  { %v10595_v39 = vor.u32 %v13227_v58, %v10592_v60  ;;  %v13170_v58 = vld [vmem:[#allocation2 + $0x4c] sm:$0xf0]  ;;  %v10328_v60 = vld [vmem:[#allocation2 + $0x50] sm:$0xf0] }
 0xa99   :  { %3048 = vmatpush.bf16.msrb.mxu3 %v10507_v12  ;;  %3086 = vmatpush.bf16.msrb.mxu1 %v10515_v17  ;;  %v13266_v12 = vld [vmem:[#allocation2 + $0x34c] sm:$0xf0] }
 0xa9a   :  { %3069 = vmatpush.bf16.msrb.mxu0 %v10383_v32  ;;  %v10711_v17 = vor.u32 %v13266_v12, %v10710_v7  ;;  %v13243_v32 = vld [vmem:[#allocation2 + $0x29c] sm:$0xf] }
 0xa9c   :  { %3102 = vmatpush.bf16.msra.mxu2 %v10711_v17  ;;  %v13211_v17 = vld [vmem:[#allocation2 + $0x19c] sm:$0xf] }
 0xa9d   :  { %3049 = vmatpush.bf16.msrb.mxu3 %v10443_v23  ;;  %3087 = vmatpush.bf16.msrb.mxu1 %v10451_v37  ;;  %v10719_v23 = vor.u32 %v13267_v20, %v10718_v2  ;;  %v13250_v37 = vld [vmem:[#allocation2 + $0x2cc] sm:$0xf0]  ;;  %v14788_v2 = vld [vmem:[%s15902_s12] ss:$0 sm:$0xff] }
 0xa9e   :  { %3070 = vmatpush.bf16.msrb.mxu0 %v10319_v36  ;;  %v10647_v41 = vor.u32 %v13250_v37, %v10646_v26  ;;  %v10590_v36 = vld [vmem:[#allocation2 + $0x218] sm:$0xf]  ;;  %v10454_v20 = vld [vmem:[#allocation2 + $0x110] sm:$0xf] }
 0xaa0   :  { %3103 = vmatpush.bf16.msra.mxu2 %v10647_v41 }
 0xaa1   :  { %3050 = vmatpush.bf16.msrb.mxu3 %v10379_v31  ;;  %3088 = vmatpush.bf16.msrb.mxu1 %v10387_v49  ;;  %v10655_v31 = vor.u32 %v13251_v27, %v10654_v43  ;;  %v13195_v43 = vld [vmem:[#allocation2 + $0x11c] sm:$0xf] }
 0xaa2   :  { %3139 = vmatpush.bf16.msra.mxu0 %v10783_v63  ;;  %v10520_v63 = vld [vmem:[#allocation2 + $0x1d0] sm:$0xf0] }
 0xaa4   :  { %3104 = vmatpush.bf16.msra.mxu2 %v10583_v55  ;;  %v10398_v55 = vld [vmem:[#allocation2 + $0x98] sm:$0xf] }
 0xaa5   :  { %3051 = vmatpush.bf16.msrb.mxu3 %v10315_v35  ;;  %3089 = vmatpush.bf16.msrb.mxu1 %v10323_v57  ;;  %v10584_v35 = vld [vmem:[#allocation2 + $0x250] sm:$0xf0]  ;;  %v13235_v57 = vld [vmem:[#allocation2 + $0x254] sm:$0xf0] }
 0xaa6   :  { %3140 = vmatpush.bf16.msra.mxu0 %v10719_v23  ;;  %v10587_v30 = vor.u32 %v13226_v56, %v10584_v35  ;;  %v10591_v59 = vor.u32 %v13235_v57, %v10590_v36  ;;  %v10455_v23 = vor.u32 %v13202_v21, %v10454_v20  ;;  %v13187_v56 = vld [vmem:[#allocation2 + $0xd4] sm:$0xf0]  ;;  %v13179_v35 = vld [vmem:[#allocation2 + $0x9c] sm:$0xf]  ;;  %v10326_v57 = vld [vmem:[#allocation2 + $0x10] sm:$0xf] }
 0xaa7   :  { %v10400_v36 = vld [vmem:[#allocation2 + $0xd8] sm:$0xf0]  ;;  %v13284_v20 = vld [vmem:[#allocation2 + $0x3dc] sm:$0xf0]  ;;  %v13276_v21 = vld [vmem:[#allocation2 + $0x3a4] sm:$0xf] }
 0xaa9   :  { %3120 = vmatpush.bf16.msra.mxu3 %v10779_v34  ;;  %3158 = vmatpush.bf16.msra.mxu1 %v10787_v6  ;;  %v10519_v34 = vor.u32 %v13218_v62, %v10518_v61  ;;  %v10334_v61 = vld [vmem:[#allocation2 + $0x18] sm:$0xf] }
 0xaaa   :  { %3141 = vmatpush.bf16.msra.mxu0 %v10655_v31  ;;  %v10390_v31 = vld [vmem:[#allocation2 + $0x90] sm:$0xf]  ;;  %v13171_v62 = vld [vmem:[#allocation2 + $0x54] sm:$0xf0] }
 0xaab   :  { %3105 = vmatpush.bf16.msra.mxu2 %v10519_v34  ;;  %v13163_v34 = vld [vmem:[#allocation2 + $0x1c] sm:$0xf] }
 0xaad   :  { %3121 = vmatpush.bf16.msra.mxu3 %v10715_v19  ;;  %3159 = vmatpush.bf16.msra.mxu1 %v10723_v24  ;;  %v10531_v19 = vor.u32 %v13211_v17, %v10528_v18  ;;  %v10456_v24 = vld [vmem:[#allocation2 + $0x150] sm:$0xf0]  ;;  %v10335_v17 = vor.u32 %v13171_v62, %v10334_v61 }
 0xaae   :  { %3142 = vmatpush.bf16.msra.mxu0 %v10591_v59  ;;  %v10459_v41 = vor.u32 %v13194_v22, %v10456_v24  ;;  %v10403_v59 = vor.u32 %v13179_v35, %v10400_v36  ;;  %v13285_v24 = vld [vmem:[#allocation2 + $0x3e4] sm:$0xf0]  ;;  %v13252_v35 = vld [vmem:[#allocation2 + $0x2dc] sm:$0xf0] }
 0xaaf   :  { %3106 = vmatpush.bf16.msra.mxu2 %v10455_v23  ;;  %v10798_v23 = vld [vmem:[#allocation2 + $0x3a8] sm:$0xf] }
 0xab0   :  { %v10670_v36 = vld [vmem:[#allocation2 + $0x2a8] sm:$0xf] }
 0xab2   :  { %3143 = vmatpush.bf16.msra.mxu0 %v10527_v13  ;;  %v13237_v13 = vld [vmem:[#allocation2 + $0x264] sm:$0xf0] }
 0xaf1   :  { %v2146_v45 = vpop.xlane.xlu2 %2145 }
 0xaf2   :  { %v2153_v48 = vmul.f32 %v2146_v45, %v14729_v33  ;;  %v10651_v45 = vor.u32 %v13242_v38, %v10648_v42  ;;  %v13203_v42 = vld [vmem:[#allocation2 + $0x154] sm:$0xf0] }
 0xaf4   :  { %v14752_v53 = vadd.f32 1e-05, %v2153_v48  ;;  %v10659_v48 = vor.u32 %v13243_v32, %v10656_v46  ;;  %3122 = vmatpush.bf16.msra.mxu3 %v10651_v45  ;;  %v10464_v45 = vld [vmem:[#allocation2 + $0x158] sm:$0xf0]  ;;  %v13186_v32 = vld [vmem:[#allocation2 + $0xcc] sm:$0xf0] }
 0xaf5   :  { %v10391_v46 = vor.u32 %v13186_v32, %v10390_v31  ;;  %v10478_v32 = vld [vmem:[#allocation2 + $0x128] sm:$0xf] }
 0xaf6   :  { %13900 = vrsqrt.f32 %v14752_v53  ;;  %3160 = vmatpush.bf16.msra.mxu1 %v10659_v48  ;;  %vm2167_vm4 = vweird.f32 %v14752_v53  ;;  %v10392_v48 = vld [vmem:[#allocation2 + $0xd0] sm:$0xf0] }
 0xaf7   :  { %3107 = vmatpush.bf16.msra.mxu2 %v10391_v46  ;;  %v10728_v46 = vld [vmem:[#allocation2 + $0x360] sm:$0xf0] }
 0xaf8   :  { %3123 = vmatpush.bf16.msra.mxu3 %v10587_v30  ;;  %v10399_v30 = vor.u32 %v13187_v56, %v10398_v55  ;;  %v10662_v56 = vld [vmem:[#allocation2 + $0x2a0] sm:$0xf] }
 0xaf9   :  { %v2148_v8 = vpop.xlane.xlu0 %2147 }
 0xafa   :  { %v2154_v5 = vmul.f32 %v2148_v8, %v14729_v33  ;;  %v13210_v8 = vld [vmem:[#allocation2 + $0x194] sm:$0xf]  ;;  %3161 = vmatpush.bf16.msra.mxu1 %v10595_v39  ;;  %v10327_v39 = vor.u32 %v13170_v58, %v10326_v57  ;;  %v13253_v57 = vld [vmem:[#allocation2 + $0x2e4] sm:$0xf0] }
 0xafb   :  { %v10523_v12 = vor.u32 %v13210_v8, %v10520_v63  ;;  %v10336_v63 = vld [vmem:[#allocation2 + $0x58] sm:$0xf0]  ;;  %v10671_v61 = vor.u32 %v13253_v57, %v10670_v36  ;;  %v10342_v36 = vld [vmem:[#allocation2 + $0x20] sm:$0xf] }
 0xafc   :  { %v14756_v14 = vpop.eup %13900  ;;  %v14758_v16 = vadd.f32 1e-05, %v2154_v5  ;;  %3108 = vmatpush.bf16.msra.mxu2 %v10327_v39  ;;  %v10339_v18 = vor.u32 %v13163_v34, %v10336_v63  ;;  %v10600_v34 = vld [vmem:[#allocation2 + $0x260] sm:$0xf0]  ;;  %v13172_v57 = vld [vmem:[#allocation2 + $0x5c] sm:$0xf0] }
 0xafd   :  { %v2162_v10 = vmul.f32 %v14756_v14, %v14752_v53  ;;  %vm2168_vm3 = vweird.f32 %v14756_v14  ;;  %3124 = vmatpush.bf16.msra.mxu3 %v10523_v12 }
 0xafe   :  { %13902 = vrsqrt.f32 %v14758_v16  ;;  %vm14776_vm5 = vmor %vm2167_vm4, %vm2168_vm3  ;;  %vm2177_vm7 = vweird.f32 %v14758_v16  ;;  %3162 = vmatpush.bf16.msra.mxu1 %v10531_v19  ;;  %v10790_v19 = vld [vmem:[#allocation2 + $0x3a0] sm:$0xf] }
 0xaff   :  { %v2163_v25 = vmul.f32 %v14756_v14, %v2162_v10  ;;  %v10791_v22 = vor.u32 %v13284_v20, %v10790_v19  ;;  %v10534_v20 = vld [vmem:[#allocation2 + $0x1a0] sm:$0xf] }
 0xb01   :  { %v2164_v28 = vmul.f32 0.5, %v2163_v25  ;;  %v2150_v44 = vpop.xlane.xlu1 %2149  ;;  %v10462_v25 = vld [vmem:[#allocation2 + $0x118] sm:$0xf]  ;;  %3125 = vmatpush.bf16.msra.mxu3 %v10459_v41  ;;  %v13277_v41 = vld [vmem:[#allocation2 + $0x3ac] sm:$0xf] }
 0xb02   :  { %v2155_v47 = vmul.f32 %v2150_v44, %v14729_v33  ;;  %v10463_v44 = vor.u32 %v13203_v42, %v10462_v25  ;;  %v10800_v42 = vld [vmem:[#allocation2 + $0x3e8] sm:$0xf0] }
 0xb03   :  { %v2165_v49 = vsub.f32 1.5, %v2164_v28 }
 0xb04   :  { %v14766_v52 = vpop.eup %13902  ;;  %v14768_v54 = vadd.f32 1e-05, %v2155_v47  ;;  %v13178_v47 = vld [vmem:[#allocation2 + $0x94] sm:$0xf]  ;;  %3144 = vmatpush.bf16.msra.mxu0 %v10463_v44  ;;  %v13268_v44 = vld [vmem:[#allocation2 + $0x35c] sm:$0xf0] }
 0xb05   :  { %v2166_v29 = vmul.f32 %v14756_v14, %v2165_v49  ;;  %v2172_v0 = vmul.f32 %v14766_v52, %v14758_v16  ;;  %vm2178_vm6 = vweird.f32 %v14766_v52  ;;  %v10467_v16 = vor.u32 %v13195_v43, %v10464_v45  ;;  %v13260_v45 = vld [vmem:[#allocation2 + $0x324] sm:$0xf] }
 0xb06   :  { %13904 = vrsqrt.f32 %v14768_v54  ;;  %vm2179_vm8 = vmor %vm2177_vm7, %vm2178_vm6  ;;  %v10395_v51 = vor.u32 %v13178_v47, %v10392_v48  ;;  %vm2187_vm10 = vweird.f32 %v14768_v54  ;;  %v13269_v47 = vld [vmem:[#allocation2 + $0x364] sm:$0xf0]  ;;  %v13261_v48 = vld [vmem:[#allocation2 + $0x32c] sm:$0xf] }
 0xb07   :  { %v2173_v53 = vmul.f32 %v14766_v52, %v2172_v0  ;;  %v2170_v5 = vsel %vm14776_vm5, %v14756_v14, %v2166_v29  ;;  %3163 = vmatpush.bf16.msra.mxu1 %v10467_v16 }
 0xb08   :  { %v2201_v37 = vmul.f32 %v2170_v5, %v14732_v40  ;;  %v14804_v40 = vld [vmem:[%s15903_s13] ss:$0 sm:$0xff]  ;;  %3126 = vmatpush.bf16.msra.mxu3 %v10395_v51  ;;  %3145 = vmatpush.bf16.msra.mxu0 %v10399_v30  ;;  %v10664_v30 = vld [vmem:[#allocation2 + $0x2e0] sm:$0xf0] }
 0xb09   :  { %v2174_v6 = vmul.f32 0.5, %v2173_v53  ;;  %v2152_v7 = vpop.xlane.xlu2 %2151 }
 0xb0a   :  { %v2156_v10 = vmul.f32 %v2152_v7, %v14729_v33  ;;  %v2208_v29 = vmul.f32 %v14788_v2, %v2201_v37  ;;  %v10799_v37 = vor.u32 %v13285_v24, %v10798_v23  ;;  %v10542_v23 = vld [vmem:[#allocation2 + $0x1a8] sm:$0xf] }
 0xb0b   :  { %v2175_v14 = vsub.f32 1.5, %v2174_v6  ;;  %3164 = vmatpush.bf16.msra.mxu1 %v10403_v59  ;;  %v13221_v24 = vld [vmem:[#allocation2 + $0x1e4] sm:$0xf0] }
 0xb0c   :  { %v14792_v26 = vpop.eup %13904  ;;  %v14795_v38 = vadd.f32 1e-05, %v2156_v10  ;;  %v14818_v3 = vadd.f32 %v14804_v40, %v2208_v29  ;;  %3146 = vmatpush.bf16.msra.mxu0 %v10335_v17  ;;  %v13244_v29 = vld [vmem:[#allocation2 + $0x2a4] sm:$0xf]  ;;  %v13229_v17 = vld [vmem:[#allocation2 + $0x22c] sm:$0xf] }
 0xb0d   :  { %v2176_v27 = vmul.f32 %v14766_v52, %v2175_v14  ;;  %v2182_v28 = vmul.f32 %v14792_v26, %v14768_v54  ;;  %vm2188_vm9 = vweird.f32 %v14792_v26  ;;  %v10792_v14 = vld [vmem:[#allocation2 + $0x3e0] sm:$0xf0]  ;;  %v10667_v59 = vor.u32 %v13244_v29, %v10664_v30  ;;  %v10416_v30 = vld [vmem:[#allocation2 + $0xe8] sm:$0xf0] }
 0xb0e   :  { %13906 = vrsqrt.f32 %v14795_v38  ;;  %vm14831_vm11 = vmor %vm2187_vm10, %vm2188_vm9  ;;  %vm2197_vm13 = vweird.f32 %v14795_v38 }
 0xb0f   :  { %v2180_v49 = vsel %vm2179_vm8, %v14766_v52, %v2176_v27  ;;  %v2183_v50 = vmul.f32 %v14792_v26, %v2182_v28  ;;  %v13162_v52 = vld [vmem:[#allocation2 + $0x14] sm:$0xf]  ;;  %3165 = vmatpush.bf16.msra.mxu1 %v10339_v18  ;;  %v10803_v27 = vor.u32 %v13277_v41, %v10800_v42  ;;  %v10726_v28 = vld [vmem:[#allocation2 + $0x320] sm:$0xf]  ;;  %v10608_v18 = vld [vmem:[#allocation2 + $0x268] sm:$0xf0]  ;;  %v10543_v42 = vor.u32 %v13221_v24, %v10542_v23 }
 0xb10   :  { %v2202_v0 = vmul.f32 %v2180_v49, %v14737_v4  ;;  %v10331_v4 = vor.u32 %v13162_v52, %v10328_v60  ;;  %v10727_v16 = vor.u32 %v13268_v44, %v10726_v28  ;;  %v10736_v49 = vld [vmem:[#allocation2 + $0x368] sm:$0xf0]  ;;  %v10611_v19 = vor.u32 %v13229_v17, %v10608_v18  ;;  %v10470_v41 = vld [vmem:[#allocation2 + $0x120] sm:$0xf]  ;;  %v13196_v28 = vld [vmem:[#allocation2 + $0x124] sm:$0xf] }
 0xb11   :  { %v2184_v1 = vmul.f32 0.5, %v2183_v50  ;;  %v10739_v55 = vor.u32 %v13261_v48, %v10736_v49  ;;  %v13245_v52 = vld [vmem:[#allocation2 + $0x2ac] sm:$0xf]  ;;  %v10472_v44 = vld [vmem:[#allocation2 + $0x160] sm:$0xf0] }
 0xb12   :  { %v2209_v53 = vmul.f32 %v14788_v2, %v2202_v0  ;;  %3127 = vmatpush.bf16.msra.mxu3 %v10331_v4  ;;  %v10672_v60 = vld [vmem:[#allocation2 + $0x2e8] sm:$0xf0]  ;;  %v13228_v4 = vld [vmem:[#allocation2 + $0x224] sm:$0xf]  ;;  %v10814_v17 = vld [vmem:[#allocation2 + $0x3b8] sm:$0xf] }
 0xb13   :  { %v2185_v8 = vsub.f32 1.5, %v2184_v1  ;;  %v10663_v1 = vor.u32 %v13252_v35, %v10662_v56  ;;  %v10675_v62 = vor.u32 %v13245_v52, %v10672_v60  ;;  %v13180_v48 = vld [vmem:[#allocation2 + $0xa4] sm:$0xf]  ;;  %v13189_v56 = vld [vmem:[#allocation2 + $0xe4] sm:$0xf0] }
 0xb14   :  { %v14815_v9 = vpop.eup %13906  ;;  %v14821_v5 = vadd.f32 %v14804_v40, %v2209_v53  ;;  %v10598_v53 = vld [vmem:[#allocation2 + $0x220] sm:$0xf]  ;;  %v10408_v49 = vld [vmem:[#allocation2 + $0xe0] sm:$0xf0]  ;;  %v10350_v60 = vld [vmem:[#allocation2 + $0x28] sm:$0xf] }
 0xb15   :  { %v2186_v6 = vmul.f32 %v14792_v26, %v2185_v8  ;;  %v2192_v7 = vmul.f32 %v14815_v9, %v14795_v38  ;;  %vm2198_vm12 = vweird.f32 %v14815_v9  ;;  %v10731_v38 = vor.u32 %v13260_v45, %v10728_v46  ;;  %v13236_v8 = vld [vmem:[#allocation2 + $0x25c] sm:$0xf0]  ;;  %v13197_v46 = vld [vmem:[#allocation2 + $0x12c] sm:$0xf]  ;;  %v13287_v18 = vld [vmem:[#allocation2 + $0x3f4] sm:$0xf0] }
 0xb16   :  { %v14829_v12 = vpack.c.bf16 %v14821_v5, %v14818_v3  ;;  %vm14848_vm14 = vmor %vm2197_vm13, %vm2198_vm12  ;;  %v10411_v29 = vor.u32 %v13180_v48, %v10408_v49  ;;  %v13262_v23 = vld [vmem:[#allocation2 + $0x334] sm:$0xf]  ;;  %v10614_v49 = vld [vmem:[#allocation2 + $0x230] sm:$0xf] }
 0xb17   :  { %v2190_v10 = vsel %vm14831_vm11, %v14792_v26, %v2186_v6  ;;  %v2193_v54 = vmul.f32 %v14815_v9, %v2192_v7  ;;  %v10795_v26 = vor.u32 %v13276_v21, %v10792_v14  ;;  %v10606_v6 = vld [vmem:[#allocation2 + $0x228] sm:$0xf]  ;;  %v10603_v7 = vor.u32 %v13228_v4, %v10600_v34  ;;  %v13220_v21 = vld [vmem:[#allocation2 + $0x1dc] sm:$0xf0]  ;;  %v10744_v24 = vld [vmem:[#allocation2 + $0x370] sm:$0xf0] }
 0xb18   :  { %3033 = vmatmul.bf16.vlgmr.msrb.gmra.mxu2 %v14829_v12  ;;  %3052 = vmatmul.bf16.vlgmr.msrb.gmra.mxu3 %v14829_v12  ;;  %v2203_v43 = vmul.f32 %v2190_v10, %v14742_v11  ;;  %v10734_v11 = vld [vmem:[#allocation2 + $0x328] sm:$0xf]  ;;  %v10535_v14 = vor.u32 %v13220_v21, %v10534_v20  ;;  %v13279_v20 = vld [vmem:[#allocation2 + $0x3bc] sm:$0xf] }
 0xb19   :  { %v2194_v25 = vmul.f32 0.5, %v2193_v54  ;;  %3071 = vmatmul.bf16.vlgmr.msrb.gmra.mxu0 %v14829_v12  ;;  %3090 = vmatmul.bf16.vlgmr.msrb.gmra.mxu1 %v14829_v12  ;;  %v10735_v51 = vor.u32 %v13269_v47, %v10734_v11  ;;  %v10480_v11 = vld [vmem:[#allocation2 + $0x168] sm:$0xf0]  ;;  %v13188_v47 = vld [vmem:[#allocation2 + $0xdc] sm:$0xf0] }
 0xb1a   :  { %3177 = vmatpush.bf16.msrb.mxu2 %v10791_v22  ;;  %3196 = vmatpush.bf16.msrb.mxu3 %v10795_v26  ;;  %v2210_v0 = vmul.f32 %v14788_v2, %v2203_v43  ;;  %v13212_v22 = vld [vmem:[#allocation2 + $0x1a4] sm:$0xf]  ;;  %v13213_v26 = vld [vmem:[#allocation2 + $0x1ac] sm:$0xf]  ;;  %v10816_v21 = vld [vmem:[#allocation2 + $0x3f8] sm:$0xf0] }
 0xb1b   :  { %v2195_v31 = vsub.f32 1.5, %v2194_v25  ;;  %3215 = vmatpush.bf16.msrb.mxu0 %v10799_v37  ;;  %3234 = vmatpush.bf16.msrb.mxu1 %v10803_v27  ;;  %v10544_v37 = vld [vmem:[#allocation2 + $0x1e8] sm:$0xf0]  ;;  %v13204_v27 = vld [vmem:[#allocation2 + $0x15c] sm:$0xf0] }
 0xb1c   :  { %v14860_v10 = vadd.f32 %v14804_v40, %v2210_v0  ;;  %v10547_v43 = vor.u32 %v13213_v26, %v10544_v37  ;;  %v10471_v45 = vor.u32 %v13204_v27, %v10470_v41  ;;  %v13181_v0 = vld [vmem:[#allocation2 + $0xac] sm:$0xf]  ;;  %v10747_v26 = vor.u32 %v13262_v23, %v10744_v24  ;;  %v10750_v37 = vld [vmem:[#allocation2 + $0x338] sm:$0xf]  ;;  %v10752_v27 = vld [vmem:[#allocation2 + $0x378] sm:$0xf0] }
 0xb1d   :  { %v2196_v50 = vmul.f32 %v14815_v9, %v2195_v31  ;;  %v10475_v31 = vor.u32 %v13196_v28, %v10472_v44  ;;  %v10419_v52 = vor.u32 %v13181_v0, %v10416_v30  ;;  %v13271_v41 = vld [vmem:[#allocation2 + $0x374] sm:$0xf0]  ;;  %v10678_v28 = vld [vmem:[#allocation2 + $0x2b0] sm:$0xf]  ;;  %v13182_v24 = vld [vmem:[#allocation2 + $0xb4] sm:$0xf] }
 0xb1e   :  { %3178 = vmatpush.bf16.msrb.mxu2 %v10727_v16  ;;  %3197 = vmatpush.bf16.msrb.mxu3 %v10731_v38  ;;  %v13205_v16 = vld [vmem:[#allocation2 + $0x164] sm:$0xf0]  ;;  %v10406_v38 = vld [vmem:[#allocation2 + $0xa0] sm:$0xf]  ;;  %v13254_v44 = vld [vmem:[#allocation2 + $0x2ec] sm:$0xf0] }
 0xb1f   :  { %v2200_v58 = vsel %vm14848_vm14, %v14815_v9, %v2196_v50  ;;  %3216 = vmatpush.bf16.msrb.mxu0 %v10735_v51  ;;  %3235 = vmatpush.bf16.msrb.mxu1 %v10739_v55  ;;  %v10599_v9 = vor.u32 %v13236_v8, %v10598_v53  ;;  %v10479_v50 = vor.u32 %v13205_v16, %v10478_v32  ;;  %v10414_v55 = vld [vmem:[#allocation2 + $0xa8] sm:$0xf]  ;;  %v10352_v8 = vld [vmem:[#allocation2 + $0x68] sm:$0xf0]  ;;  %v10680_v32 = vld [vmem:[#allocation2 + $0x2f0] sm:$0xf0] }
 0xb20   :  { %v2204_v39 = vmul.f32 %v2200_v58, %v14747_v15  ;;  %v10483_v51 = vor.u32 %v13197_v46, %v10480_v11  ;;  %v10407_v35 = vor.u32 %v13188_v47, %v10406_v38  ;;  %v13164_v58 = vld [vmem:[#allocation2 + $0x24] sm:$0xf]  ;;  %v10343_v53 = vor.u32 %v13172_v57, %v10342_v36  ;;  %v10686_v16 = vld [vmem:[#allocation2 + $0x2b8] sm:$0xf]  ;;  %v13247_v11 = vld [vmem:[#allocation2 + $0x2bc] sm:$0xf] }
 0xb21   :  { %v13255_v46 = vld [vmem:[#allocation2 + $0x2f4] sm:$0xf0]  ;;  %v10688_v38 = vld [vmem:[#allocation2 + $0x2f8] sm:$0xf0]  ;;  %v10679_v47 = vor.u32 %v13254_v44, %v10678_v28  ;;  %v13190_v23 = vld [vmem:[#allocation2 + $0xec] sm:$0xf0] }
 0xb22   :  { %v2211_v63 = vmul.f32 %v14788_v2, %v2204_v39  ;;  %3179 = vmatpush.bf16.msrb.mxu2 %v10663_v1  ;;  %3198 = vmatpush.bf16.msrb.mxu3 %v10667_v59  ;;  %v10607_v2 = vor.u32 %v13237_v13, %v10606_v6  ;;  %v10344_v1 = vld [vmem:[#allocation2 + $0x60] sm:$0xf0]  ;;  %v10415_v59 = vor.u32 %v13189_v56, %v10414_v55  ;;  %v13286_v6 = vld [vmem:[#allocation2 + $0x3ec] sm:$0xf0]  ;;  %v10808_v13 = vld [vmem:[#allocation2 + $0x3f0] sm:$0xf0] }
 0xb23   :  { %3217 = vmatpush.bf16.msrb.mxu0 %v10671_v61  ;;  %3236 = vmatpush.bf16.msrb.mxu1 %v10675_v62  ;;  %v10347_v39 = vor.u32 %v13164_v58, %v10344_v1  ;;  %v13173_v61 = vld [vmem:[#allocation2 + $0x64] sm:$0xf0]  ;;  %v13165_v62 = vld [vmem:[#allocation2 + $0x2c] sm:$0xf]  ;;  %v13238_v55 = vld [vmem:[#allocation2 + $0x26c] sm:$0xf0] }
 0xb24   :  { %v14863_v15 = vadd.f32 %v14804_v40, %v2211_v63  ;;  %v10536_v40 = vld [vmem:[#allocation2 + $0x1e0] sm:$0xf0]  ;;  %v10351_v4 = vor.u32 %v13173_v61, %v10350_v60  ;;  %v10355_v34 = vor.u32 %v13165_v62, %v10352_v8  ;;  %v10806_v63 = vld [vmem:[#allocation2 + $0x3b0] sm:$0xf]  ;;  %v13230_v56 = vld [vmem:[#allocation2 + $0x234] sm:$0xf]  ;;  %v10615_v0 = vor.u32 %v13238_v55, %v10614_v49 }
 0xb25   :  { %v10539_v25 = vor.u32 %v13212_v22, %v10536_v40  ;;  %v10742_v22 = vld [vmem:[#allocation2 + $0x330] sm:$0xf]  ;;  %v13239_v36 = vld [vmem:[#allocation2 + $0x274] sm:$0xf0]  ;;  %v13231_v57 = vld [vmem:[#allocation2 + $0x23c] sm:$0xf] }
 0xb26   :  { %v14867_v54 = vpack.c.bf16 %v14863_v15, %v14860_v10  ;;  %3180 = vmatpush.bf16.msrb.mxu2 %v10599_v9  ;;  %3199 = vmatpush.bf16.msrb.mxu3 %v10603_v7  ;;  %v13278_v9 = vld [vmem:[#allocation2 + $0x3b4] sm:$0xf]  ;;  %v10807_v7 = vor.u32 %v13286_v6, %v10806_v63  ;;  %v13270_v40 = vld [vmem:[#allocation2 + $0x36c] sm:$0xf0]  ;;  %v10624_v58 = vld [vmem:[#allocation2 + $0x278] sm:$0xf0] }
 0xb27   :  { %3218 = vmatpush.bf16.msrb.mxu0 %v10607_v2  ;;  %3237 = vmatpush.bf16.msrb.mxu1 %v10611_v19  ;;  %v10811_v2 = vor.u32 %v13278_v9, %v10808_v13  ;;  %v10815_v19 = vor.u32 %v13287_v18, %v10814_v17  ;;  %v13222_v60 = vld [vmem:[#allocation2 + $0x1ec] sm:$0xf0]  ;;  %v10552_v61 = vld [vmem:[#allocation2 + $0x1f0] sm:$0xf0]  ;;  %v10558_v62 = vld [vmem:[#allocation2 + $0x1b8] sm:$0xf] }
 0xb28   :  { %3038 = vmatmul.bf16.gmra.mxu2 %v14867_v54  ;;  %3057 = vmatmul.bf16.gmra.mxu3 %v14867_v54  ;;  %v13223_v8 = vld [vmem:[#allocation2 + $0x1f4] sm:$0xf0]  ;;  %v10560_v63 = vld [vmem:[#allocation2 + $0x1f8] sm:$0xf0]  ;;  %v10486_v6 = vld [vmem:[#allocation2 + $0x130] sm:$0xf] }
 0xb29   :  { %3076 = vmatmul.bf16.gmra.mxu0 %v14867_v54  ;;  %3095 = vmatmul.bf16.gmra.mxu1 %v14867_v54  ;;  %v10559_v9 = vor.u32 %v13223_v8, %v10558_v62  ;;  %v13206_v13 = vld [vmem:[#allocation2 + $0x16c] sm:$0xf0]  ;;  %v13198_v17 = vld [vmem:[#allocation2 + $0x134] sm:$0xf]  ;;  %v13183_v28 = vld [vmem:[#allocation2 + $0xbc] sm:$0xf] }
 0xb2a   :  { %3181 = vmatpush.bf16.msrb.mxu2 %v10535_v14  ;;  %3200 = vmatpush.bf16.msrb.mxu3 %v10539_v25  ;;  %v10819_v14 = vor.u32 %v13279_v20, %v10816_v21  ;;  %v10743_v25 = vor.u32 %v13270_v40, %v10742_v22  ;;  %v10488_v18 = vld [vmem:[#allocation2 + $0x170] sm:$0xf0]  ;;  %v10494_v20 = vld [vmem:[#allocation2 + $0x138] sm:$0xf]  ;;  %v13199_v22 = vld [vmem:[#allocation2 + $0x13c] sm:$0xf] }
 0xb2b   :  { %3219 = vmatpush.bf16.msrb.mxu0 %v10543_v42  ;;  %3238 = vmatpush.bf16.msrb.mxu1 %v10547_v43  ;;  %v13263_v42 = vld [vmem:[#allocation2 + $0x33c] sm:$0xf]  ;;  %v10751_v43 = vor.u32 %v13271_v41, %v10750_v37  ;;  %v13207_v21 = vld [vmem:[#allocation2 + $0x174] sm:$0xf0]  ;;  %v10422_v40 = vld [vmem:[#allocation2 + $0xb0] sm:$0xf] }
 0xb2c   :  { %v10430_v41 = vld [vmem:[#allocation2 + $0xb8] sm:$0xf]  ;;  %v10432_v44 = vld [vmem:[#allocation2 + $0xf8] sm:$0xf0] }
 0xb2d   :  { %v13175_v49 = vld [vmem:[#allocation2 + $0x74] sm:$0xf0] }
 0xb2e   :  { %3182 = vmatpush.bf16.msrb.mxu2 %v10471_v45  ;;  %3201 = vmatpush.bf16.msrb.mxu3 %v10475_v31  ;;  %v10755_v45 = vor.u32 %v13263_v42, %v10752_v27  ;;  %v13246_v31 = vld [vmem:[#allocation2 + $0x2b4] sm:$0xf]  ;;  %v13191_v42 = vld [vmem:[#allocation2 + $0xf4] sm:$0xf0] }
 0xb2f   :  { %3220 = vmatpush.bf16.msrb.mxu0 %v10479_v50  ;;  %3239 = vmatpush.bf16.msrb.mxu1 %v10483_v51  ;;  %v10683_v48 = vor.u32 %v13246_v31, %v10680_v32  ;;  %v10687_v50 = vor.u32 %v13255_v46, %v10686_v16  ;;  %v10691_v51 = vor.u32 %v13247_v11, %v10688_v38  ;;  %v13174_v31 = vld [vmem:[#allocation2 + $0x6c] sm:$0xf0]  ;;  %v13166_v32 = vld [vmem:[#allocation2 + $0x34] sm:$0xf]  ;;  %v10366_v38 = vld [vmem:[#allocation2 + $0x38] sm:$0xf] }
 0xb30   :  { %v10360_v16 = vld [vmem:[#allocation2 + $0x70] sm:$0xf0]  ;;  %v10431_v46 = vor.u32 %v13191_v42, %v10430_v41  ;;  %v10435_v11 = vor.u32 %v13183_v28, %v10432_v44  ;;  %v10367_v55 = vor.u32 %v13175_v49, %v10366_v38  ;;  %v13307_v62 = vld [vmem:[#allocation5 + $0x98] sm:$0xff]  ;;  %v13341_v41 = vld [vmem:[#allocation5 + $0x1a8] sm:$0xff] }
 0xb31   :  { %v13315_v8 = vld [vmem:[#allocation5 + $0xd8] sm:$0xff]  ;;  %v13349_v42 = vld [vmem:[#allocation5 + $0x1e8] sm:$0xff]  ;;  %v13340_v28 = vld [vmem:[#allocation5 + $0x1a0] sm:$0xff] }
 0xb32   :  { %3183 = vmatpush.bf16.msrb.mxu2 %v10407_v35  ;;  %3202 = vmatpush.bf16.msrb.mxu3 %v10411_v29  ;;  %v10616_v35 = vld [vmem:[#allocation2 + $0x270] sm:$0xf0]  ;;  %v10622_v29 = vld [vmem:[#allocation2 + $0x238] sm:$0xf]  ;;  %v13348_v44 = vld [vmem:[#allocation5 + $0x1e0] sm:$0xff] }
 0xb33   :  { %3221 = vmatpush.bf16.msrb.mxu0 %v10415_v59  ;;  %3240 = vmatpush.bf16.msrb.mxu1 %v10419_v52  ;;  %v10619_v30 = vor.u32 %v13230_v56, %v10616_v35  ;;  %v10623_v1 = vor.u32 %v13239_v36, %v10622_v29  ;;  %v10627_v59 = vor.u32 %v13231_v57, %v10624_v58  ;;  %v10550_v52 = vld [vmem:[#allocation2 + $0x1b0] sm:$0xf]  ;;  %v13311_v35 = vld [vmem:[#allocation5 + $0xb8] sm:$0xff]  ;;  %v13309_v58 = vld [vmem:[#allocation5 + $0xa8] sm:$0xff] }
 0xb34   :  { %v13319_v29 = vld [vmem:[#allocation5 + $0xf8] sm:$0xff]  ;;  %v13324_v38 = vld [vmem:[#allocation5 + $0x120] sm:$0xff]  ;;  %v13346_v49 = vld [vmem:[#allocation5 + $0x1d0] sm:$0xff] }
 0xb35   :  { %v13295_v36 = vld [vmem:[#allocation5 + $0x38] sm:$0xff] }
 0xb36   :  { %3184 = vmatpush.bf16.msrb.mxu2 %v10343_v53  ;;  %3203 = vmatpush.bf16.msrb.mxu3 %v10347_v39  ;;  %v13214_v53 = vld [vmem:[#allocation2 + $0x1b4] sm:$0xf]  ;;  %v10551_v39 = vor.u32 %v13222_v60, %v10550_v52  ;;  %v13303_v57 = vld [vmem:[#allocation5 + $0x78] sm:$0xff]  ;;  %v13308_v60 = vld [vmem:[#allocation5 + $0xa0] sm:$0xff] }
 0xb37   :  { %3222 = vmatpush.bf16.msrb.mxu0 %v10351_v4  ;;  %3241 = vmatpush.bf16.msrb.mxu1 %v10355_v34  ;;  %v10555_v4 = vor.u32 %v13214_v53, %v10552_v61  ;;  %v13215_v34 = vld [vmem:[#allocation2 + $0x1bc] sm:$0xf]  ;;  %v13302_v52 = vld [vmem:[#allocation5 + $0x70] sm:$0xff]  ;;  %v13316_v53 = vld [vmem:[#allocation5 + $0xe0] sm:$0xff] }
 0xb38   :  { %3109 = vmatmul.bf16.vlgmr.msra.gmra.mxu2 %v14829_v12  ;;  %3128 = vmatmul.bf16.vlgmr.msra.gmra.mxu3 %v14829_v12  ;;  %v13301_v61 = vld [vmem:[#allocation5 + $0x68] sm:$0xff] }
 0xb39   :  { %3147 = vmatmul.bf16.vlgmr.msra.gmra.mxu0 %v14829_v12  ;;  %3166 = vmatmul.bf16.vlgmr.msra.gmra.mxu1 %v14829_v12 }
 0xb3a   :  { %3253 = vmatpush.bf16.msra.mxu2 %v10807_v7  ;;  %3272 = vmatpush.bf16.msra.mxu3 %v10811_v2  ;;  %v10563_v7 = vor.u32 %v13215_v34, %v10560_v63  ;;  %v10487_v2 = vor.u32 %v13206_v13, %v10486_v6  ;;  %v13300_v34 = vld [vmem:[#allocation5 + $0x60] sm:$0xff]  ;;  %v13306_v63 = vld [vmem:[#allocation5 + $0x90] sm:$0xff]  ;;  %v13305_v13 = vld [vmem:[#allocation5 + $0x88] sm:$0xff] }
 0xb3b   :  { %3291 = vmatpush.bf16.msra.mxu0 %v10815_v19  ;;  %3310 = vmatpush.bf16.msra.mxu1 %v10819_v14  ;;  %v10491_v19 = vor.u32 %v13198_v17, %v10488_v18  ;;  %v10496_v14 = vld [vmem:[#allocation2 + $0x178] sm:$0xf0]  ;;  %v13314_v6 = vld [vmem:[#allocation5 + $0xd0] sm:$0xff]  ;;  %v13313_v17 = vld [vmem:[#allocation5 + $0xc8] sm:$0xff] }
 0xb3c   :  { %v10499_v37 = vor.u32 %v13199_v22, %v10496_v14  ;;  %v13290_v18 = vld [vmem:[#allocation5 + $0x10] sm:$0xff]  ;;  %v13343_v22 = vld [vmem:[#allocation5 + $0x1b8] sm:$0xff] }
 0xb3d   :  { %v13351_v14 = vld [vmem:[#allocation5 + $0x1f8] sm:$0xff] }
 0xb3e   :  { %3254 = vmatpush.bf16.msra.mxu2 %v10743_v25  ;;  %3273 = vmatpush.bf16.msra.mxu3 %v10747_v26  ;;  %v10424_v25 = vld [vmem:[#allocation2 + $0xf0] sm:$0xf0]  ;;  %v10495_v26 = vor.u32 %v13207_v21, %v10494_v20  ;;  %v13312_v20 = vld [vmem:[#allocation5 + $0xc0] sm:$0xff]  ;;  %v13289_v21 = vld [vmem:[#allocation5 + $0x8] sm:$0xff] }
 0xb3f   :  { %3292 = vmatpush.bf16.msra.mxu0 %v10751_v43  ;;  %3311 = vmatpush.bf16.msra.mxu1 %v10755_v45  ;;  %v10423_v43 = vor.u32 %v13190_v23, %v10422_v40  ;;  %v10427_v27 = vor.u32 %v13182_v24, %v10424_v25  ;;  %v10358_v45 = vld [vmem:[#allocation2 + $0x30] sm:$0xf]  ;;  %v13288_v40 = vld [vmem:[#allocation5] sm:$0xff] }
 0xb40   :  { %v13296_v23 = vld [vmem:[#allocation5 + $0x40] sm:$0xff]  ;;  %v13342_v24 = vld [vmem:[#allocation5 + $0x1b0] sm:$0xff] }
 0xb41   :  { %v13350_v25 = vld [vmem:[#allocation5 + $0x1f0] sm:$0xff] }
 0xb42   :  { %3255 = vmatpush.bf16.msra.mxu2 %v10679_v47  ;;  %3274 = vmatpush.bf16.msra.mxu3 %v10683_v48  ;;  %v10359_v47 = vor.u32 %v13174_v31, %v10358_v45  ;;  %v10363_v48 = vor.u32 %v13166_v32, %v10360_v16  ;;  %v13325_v45 = vld [vmem:[#allocation5 + $0x128] sm:$0xff]  ;;  %v13339_v31 = vld [vmem:[#allocation5 + $0x198] sm:$0xff]  ;;  %v14900_v16 = vld [vmem:[%s15905_s15] sm:$0xff] }
 0xb43   :  { %3293 = vmatpush.bf16.msra.mxu0 %v10687_v50  ;;  %3312 = vmatpush.bf16.msra.mxu1 %v10691_v51  ;;  %v13167_v50 = vld [vmem:[#allocation2 + $0x3c] sm:$0xf] }
 0xb44   :  { %v10368_v51 = vld [vmem:[#allocation2 + $0x78] sm:$0xf0] }
 0xb45   :  { %v10371_v56 = vor.u32 %v13167_v50, %v10368_v51  ;;  %v13347_v32 = vld [vmem:[#allocation5 + $0x1d8] sm:$0xff]  ;;  %v14903_v50 = vperm.slane %v14900_v16, 2  ;;  %v14906_v51 = vperm.slane %v14900_v16, 3 }
 0xb46   :  { %3256 = vmatpush.bf16.msra.mxu2 %v10615_v0  ;;  %3275 = vmatpush.bf16.msra.mxu3 %v10619_v30  ;;  %v13310_v0 = vld [vmem:[#allocation5 + $0xb0] sm:$0xff] }
 0xb47   :  { %3294 = vmatpush.bf16.msra.mxu0 %v10623_v1  ;;  %3313 = vmatpush.bf16.msra.mxu1 %v10627_v59  ;;  %v13318_v30 = vld [vmem:[#allocation5 + $0xf0] sm:$0xff]  ;;  %v13317_v1 = vld [vmem:[#allocation5 + $0xe8] sm:$0xff] }
 0xb48   :  { %3114 = vmatmul.bf16.gmra.mxu2 %v14867_v54  ;;  %3133 = vmatmul.bf16.gmra.mxu3 %v14867_v54  ;;  %v13294_v59 = vld [vmem:[#allocation5 + $0x30] sm:$0xff] }
 0xb49   :  { %3152 = vmatmul.bf16.gmra.mxu0 %v14867_v54  ;;  %3171 = vmatmul.bf16.gmra.mxu1 %v14867_v54 }
 0xb4a   :  { %3257 = vmatpush.bf16.msra.mxu2 %v10551_v39  ;;  %3276 = vmatpush.bf16.msra.mxu3 %v10555_v4  ;;  %v13293_v39 = vld [vmem:[#allocation5 + $0x28] sm:$0xff]  ;;  %v13292_v4 = vld [vmem:[#allocation5 + $0x20] sm:$0xff] }
 0xb4b   :  { %3295 = vmatpush.bf16.msra.mxu0 %v10559_v9  ;;  %3314 = vmatpush.bf16.msra.mxu1 %v10563_v7  ;;  %v13291_v9 = vld [vmem:[#allocation5 + $0x18] sm:$0xff] }
 0xb4c   :  { %v13299_v7 = vld [vmem:[#allocation5 + $0x58] sm:$0xff] }
 0xb4e   :  { %3258 = vmatpush.bf16.msra.mxu2 %v10487_v2  ;;  %3277 = vmatpush.bf16.msra.mxu3 %v10491_v19  ;;  %v13298_v2 = vld [vmem:[#allocation5 + $0x50] sm:$0xff]  ;;  %v13304_v19 = vld [vmem:[#allocation5 + $0x80] sm:$0xff] }
 0xb4f   :  { %3296 = vmatpush.bf16.msra.mxu0 %v10495_v26  ;;  %3315 = vmatpush.bf16.msra.mxu1 %v10499_v37  ;;  %v13327_v26 = vld [vmem:[#allocation5 + $0x138] sm:$0xff] }
 0xb50   :  { %v13335_v37 = vld [vmem:[#allocation5 + $0x178] sm:$0xff] }
 0xb52   :  { %3259 = vmatpush.bf16.msra.mxu2 %v10423_v43  ;;  %3278 = vmatpush.bf16.msra.mxu3 %v10427_v27  ;;  %v13326_v43 = vld [vmem:[#allocation5 + $0x130] sm:$0xff] }
 0xb53   :  { %3297 = vmatpush.bf16.msra.mxu0 %v10431_v46  ;;  %3316 = vmatpush.bf16.msra.mxu1 %v10435_v11  ;;  %v13334_v27 = vld [vmem:[#allocation5 + $0x170] sm:$0xff] }
 0xb56   :  { %3260 = vmatpush.bf16.msra.mxu2 %v10359_v47  ;;  %3279 = vmatpush.bf16.msra.mxu3 %v10363_v48  ;;  %v13332_v47 = vld [vmem:[#allocation5 + $0x160] sm:$0xff]  ;;  %v13338_v48 = vld [vmem:[#allocation5 + $0x190] sm:$0xff] }
 0xb57   :  { %3298 = vmatpush.bf16.msra.mxu0 %v10367_v55  ;;  %3317 = vmatpush.bf16.msra.mxu1 %v10371_v56  ;;  %v13323_v55 = vld [vmem:[#allocation5 + $0x118] sm:$0xff] }
 0xb58   :  { %3185 = vmatmul.bf16.vlgmr.msrb.gmra.mxu2 %v14829_v12  ;;  %3204 = vmatmul.bf16.vlgmr.msrb.gmra.mxu3 %v14829_v12  ;;  %v13331_v56 = vld [vmem:[#allocation5 + $0x158] sm:$0xff] }
 0xb59   :  { %3223 = vmatmul.bf16.vlgmr.msrb.gmra.mxu0 %v14829_v12  ;;  %3242 = vmatmul.bf16.vlgmr.msrb.gmra.mxu1 %v14829_v12 }
 0xb5a   :  { %4453 = vmatpush.bf16.msrb.mxu2 %v13295_v36  ;;  %4472 = vmatpush.bf16.msrb.mxu3 %v13303_v57 }
 0xb5b   :  { %4491 = vmatpush.bf16.msrb.mxu0 %v13311_v35  ;;  %4510 = vmatpush.bf16.msrb.mxu1 %v13319_v29 }
 0xb5e   :  { %4454 = vmatpush.bf16.msrb.mxu2 %v13294_v59  ;;  %4473 = vmatpush.bf16.msrb.mxu3 %v13302_v52 }
 0xb5f   :  { %4492 = vmatpush.bf16.msrb.mxu0 %v13310_v0  ;;  %4511 = vmatpush.bf16.msrb.mxu1 %v13318_v30  ;;  %v13337_v0 = vld [vmem:[#allocation5 + $0x188] sm:$0xff] }
 0xb60   :  { %v13345_v30 = vld [vmem:[#allocation5 + $0x1c8] sm:$0xff] }
 0xb62   :  { %4455 = vmatpush.bf16.msrb.mxu2 %v13293_v39  ;;  %4474 = vmatpush.bf16.msrb.mxu3 %v13301_v61 }
 0xb63   :  { %4493 = vmatpush.bf16.msrb.mxu0 %v13309_v58  ;;  %4512 = vmatpush.bf16.msrb.mxu1 %v13317_v1  ;;  %v14911_v58 = vperm.slane %v14900_v16, 0  ;;  %v14914_v1 = vperm.slane %v14900_v16, 1 }
 0xb66   :  { %4456 = vmatpush.bf16.msrb.mxu2 %v13292_v4  ;;  %4475 = vmatpush.bf16.msrb.mxu3 %v13300_v34 }
 0xb67   :  { %4494 = vmatpush.bf16.msrb.mxu0 %v13308_v60  ;;  %4513 = vmatpush.bf16.msrb.mxu1 %v13316_v53  ;;  %v13322_v60 = vld [vmem:[#allocation5 + $0x110] sm:$0xff] }
 0xb68   :  { %3190 = vmatmul.bf16.gmra.mxu2 %v14867_v54  ;;  %3209 = vmatmul.bf16.gmra.mxu3 %v14867_v54  ;;  %v13330_v53 = vld [vmem:[#allocation5 + $0x150] sm:$0xff] }
 0xb69   :  { %3228 = vmatmul.bf16.gmra.mxu0 %v14867_v54  ;;  %3247 = vmatmul.bf16.gmra.mxu1 %v14867_v54 }
 0xb6a   :  { %4457 = vmatpush.bf16.msrb.mxu2 %v13291_v9  ;;  %4476 = vmatpush.bf16.msrb.mxu3 %v13299_v7 }
 0xb6b   :  { %4495 = vmatpush.bf16.msrb.mxu0 %v13307_v62  ;;  %4514 = vmatpush.bf16.msrb.mxu1 %v13315_v8  ;;  %v13336_v62 = vld [vmem:[#allocation5 + $0x180] sm:$0xff] }
 0xb6c   :  { %v13344_v8 = vld [vmem:[#allocation5 + $0x1c0] sm:$0xff] }
 0xb6e   :  { %4458 = vmatpush.bf16.msrb.mxu2 %v13290_v18  ;;  %4477 = vmatpush.bf16.msrb.mxu3 %v13298_v2 }
 0xb6f   :  { %4496 = vmatpush.bf16.msrb.mxu0 %v13306_v63  ;;  %4515 = vmatpush.bf16.msrb.mxu1 %v13314_v6 }
 0xb72   :  { %4459 = vmatpush.bf16.msrb.mxu2 %v13289_v21 }
 0xb73   :  { %4497 = vmatpush.bf16.msrb.mxu0 %v13305_v13  ;;  %4516 = vmatpush.bf16.msrb.mxu1 %v13313_v17  ;;  %v13321_v13 = vld [vmem:[#allocation5 + $0x108] sm:$0xff] }
 0xb74   :  { %v13329_v17 = vld [vmem:[#allocation5 + $0x148] sm:$0xff] }
 0xb76   :  { %4460 = vmatpush.bf16.msrb.mxu2 %v13288_v40 }
 0xb77   :  { %4498 = vmatpush.bf16.msrb.mxu0 %v13304_v19  ;;  %4517 = vmatpush.bf16.msrb.mxu1 %v13312_v20 }
 0xb78   :  { %3261 = vmatmul.bf16.vlgmr.msra.gmra.mxu2 %v14829_v12  ;;  %3280 = vmatmul.bf16.vlgmr.msra.gmra.mxu3 %v14829_v12 }
 0xb79   :  { %3299 = vmatmul.bf16.vlgmr.msra.gmra.mxu0 %v14829_v12  ;;  %3318 = vmatmul.bf16.vlgmr.msra.gmra.mxu1 %v14829_v12  ;;  %v13297_v12 = vld [vmem:[#allocation5 + $0x48] sm:$0xff] }
 0xb7a   :  { %4478 = vmatpush.bf16.msrb.mxu3 %v13297_v12  ;;  %4529 = vmatpush.bf16.msra.mxu2 %v13327_v26 }
 0xb7b   :  { %4567 = vmatpush.bf16.msra.mxu0 %v13343_v22  ;;  %4586 = vmatpush.bf16.msra.mxu1 %v13351_v14  ;;  %v13375_v22 = vld [vmem:[#allocation5 + $0x2b8] sm:$0xff] }
 0xb7c   :  { %v13383_v14 = vld [vmem:[#allocation5 + $0x2f8] sm:$0xff] }
 0xb7e   :  { %4479 = vmatpush.bf16.msrb.mxu3 %v13296_v23  ;;  %4530 = vmatpush.bf16.msra.mxu2 %v13326_v43 }
 0xb7f   :  { %4568 = vmatpush.bf16.msra.mxu0 %v13342_v24  ;;  %4587 = vmatpush.bf16.msra.mxu1 %v13350_v25 }
 0xb82   :  { %4548 = vmatpush.bf16.msra.mxu3 %v13335_v37  ;;  %4531 = vmatpush.bf16.msra.mxu2 %v13325_v45  ;;  %v13359_v45 = vld [vmem:[#allocation5 + $0x238] sm:$0xff] }
 0xb83   :  { %4569 = vmatpush.bf16.msra.mxu0 %v13341_v41  ;;  %4588 = vmatpush.bf16.msra.mxu1 %v13349_v42  ;;  %v13320_v41 = vld [vmem:[#allocation5 + $0x100] sm:$0xff] }
 0xb84   :  { %v13328_v42 = vld [vmem:[#allocation5 + $0x140] sm:$0xff] }
 0xb86   :  { %4549 = vmatpush.bf16.msra.mxu3 %v13334_v27  ;;  %4532 = vmatpush.bf16.msra.mxu2 %v13324_v38 }
 0xb87   :  { %4570 = vmatpush.bf16.msra.mxu0 %v13340_v28  ;;  %4589 = vmatpush.bf16.msra.mxu1 %v13348_v44  ;;  %v13374_v28 = vld [vmem:[#allocation5 + $0x2b0] sm:$0xff] }
 0xb88   :  { %3266 = vmatmul.bf16.gmra.mxu2 %v14867_v54  ;;  %3285 = vmatmul.bf16.gmra.mxu3 %v14867_v54  ;;  %v13382_v44 = vld [vmem:[#allocation5 + $0x2f0] sm:$0xff] }
 0xb89   :  { %3304 = vmatmul.bf16.gmra.mxu0 %v14867_v54  ;;  %3323 = vmatmul.bf16.gmra.mxu1 %v14867_v54  ;;  %v13333_v54 = vld [vmem:[#allocation5 + $0x168] sm:$0xff] }
 0xb8a   :  { %4550 = vmatpush.bf16.msra.mxu3 %v13333_v54  ;;  %4533 = vmatpush.bf16.msra.mxu2 %v13323_v55  ;;  %v13367_v54 = vld [vmem:[#allocation5 + $0x278] sm:$0xff]  ;;  %v13358_v55 = vld [vmem:[#allocation5 + $0x230] sm:$0xff] }
 0xb8b   :  { %4571 = vmatpush.bf16.msra.mxu0 %v13339_v31  ;;  %4590 = vmatpush.bf16.msra.mxu1 %v13347_v32 }
 0xb8e   :  { %4551 = vmatpush.bf16.msra.mxu3 %v13332_v47  ;;  %4534 = vmatpush.bf16.msra.mxu2 %v13322_v60 }
 0xb8f   :  { %4572 = vmatpush.bf16.msra.mxu0 %v13338_v48  ;;  %4591 = vmatpush.bf16.msra.mxu1 %v13346_v49 }
 0xb92   :  { %4552 = vmatpush.bf16.msra.mxu3 %v13331_v56  ;;  %4535 = vmatpush.bf16.msra.mxu2 %v13321_v13  ;;  %v13366_v56 = vld [vmem:[#allocation5 + $0x270] sm:$0xff] }
 0xb93   :  { %4573 = vmatpush.bf16.msra.mxu0 %v13337_v0  ;;  %4592 = vmatpush.bf16.msra.mxu1 %v13345_v30  ;;  %v13372_v0 = vld [vmem:[#allocation5 + $0x2a0] sm:$0xff] }
 0xb94   :  { %v13380_v30 = vld [vmem:[#allocation5 + $0x2e0] sm:$0xff] }
 0xb96   :  { %v3072_v46 = vpop.f32.mrf.mxu0  ;;  %v3091_v11 = vpop.f32.mrf.mxu1  ;;  %4553 = vmatpush.bf16.msra.mxu3 %v13330_v53  ;;  %4536 = vmatpush.bf16.msra.mxu2 %v13320_v41 }
 0xb97   :  { %v3073_v36 = vadd.f32 %v3072_v46, %v14903_v50  ;;  %v3092_v57 = vadd.f32 %v3091_v11, %v14906_v51  ;;  %4574 = vmatpush.bf16.msra.mxu0 %v13336_v62  ;;  %4593 = vmatpush.bf16.msra.mxu1 %v13344_v8  ;;  %v13373_v46 = vld [vmem:[#allocation5 + $0x2a8] sm:$0xff] }
 0xb98   :  { %v13381_v11 = vld [vmem:[#allocation5 + $0x2e8] sm:$0xff] }
 0xb99   :  { %v3331_v4 = vmax.f32 %v3073_v36, 0.0  ;;  %v3332_v34 = vmax.f32 %v3092_v57, 0.0 }
 0xb9a   :  { %4554 = vmatpush.bf16.msra.mxu3 %v13329_v17 }
 0xb9b   :  { %v3034_v35 = vpop.f32.mrf.mxu2  ;;  %v3053_v29 = vpop.f32.mrf.mxu3 }
 0xb9c   :  { %v3035_v9 = vadd.f32 %v3034_v35, %v14911_v58  ;;  %v3054_v7 = vadd.f32 %v3053_v29, %v14914_v1 }
 0xb9e   :  { %v3074_v59 = vpop.f32.mrf.mxu0  ;;  %v3093_v52 = vpop.f32.mrf.mxu1  ;;  %v3329_v40 = vmax.f32 %v3035_v9, 0.0  ;;  %v3330_v23 = vmax.f32 %v3054_v7, 0.0  ;;  %4555 = vmatpush.bf16.msra.mxu3 %v13328_v42 }
 0xb9f   :  { %v3075_v39 = vadd.f32 %v3074_v59, %v14903_v50  ;;  %v3094_v61 = vadd.f32 %v3093_v52, %v14906_v51 }
 0xba1   :  { %v3347_v63 = vmax.f32 %v3075_v39, 0.0  ;;  %v3348_v6 = vmax.f32 %v3094_v61, 0.0  ;;  %v13357_v39 = vld [vmem:[#allocation5 + $0x228] sm:$0xff] }
 0xba2   :  { %v13365_v61 = vld [vmem:[#allocation5 + $0x268] sm:$0xff] }
 0xba3   :  { %v3651_v18 = vpack.c.bf16 %v3347_v63, %v3331_v4  ;;  %v3652_v2 = vpack.c.bf16 %v3348_v6, %v3332_v34  ;;  %v3036_v19 = vpop.f32.mrf.mxu2  ;;  %v3055_v20 = vpop.f32.mrf.mxu3  ;;  %v13371_v63 = vld [vmem:[#allocation5 + $0x298] sm:$0xff] }
 0xba4   :  { %v3037_v21 = vadd.f32 %v3036_v19, %v14911_v58  ;;  %v3056_v12 = vadd.f32 %v3055_v20, %v14914_v1  ;;  %v13379_v6 = vld [vmem:[#allocation5 + $0x2d8] sm:$0xff]  ;;  %v13356_v19 = vld [vmem:[#allocation5 + $0x220] sm:$0xff] }
 0xba5   :  { %4499 = vmatmul.bf16.vlgmr.msrb.gmra.mxu0 %v3651_v18  ;;  %4518 = vmatmul.bf16.vlgmr.msrb.gmra.mxu1 %v3652_v2  ;;  %v13364_v20 = vld [vmem:[#allocation5 + $0x260] sm:$0xff] }
 0xba6   :  { %v3345_v24 = vmax.f32 %v3037_v21, 0.0  ;;  %v3346_v25 = vmax.f32 %v3056_v12, 0.0  ;;  %v3077_v26 = vpop.f32.mrf.mxu0  ;;  %v3096_v37 = vpop.f32.mrf.mxu1  ;;  %4643 = vmatpush.bf16.msrb.mxu0 %v13375_v22  ;;  %4662 = vmatpush.bf16.msrb.mxu1 %v13383_v14  ;;  %v13378_v12 = vld [vmem:[#allocation5 + $0x2d0] sm:$0xff]  ;;  %v14931_v22 = vperm.slane %v14900_v16, 6  ;;  %v14934_v14 = vperm.slane %v14900_v16, 7 }
 0xba7   :  { %v3078_v38 = vadd.f32 %v3077_v26, %v14903_v50  ;;  %v3097_v47 = vadd.f32 %v3096_v37, %v14906_v51  ;;  %v13369_v26 = vld [vmem:[#allocation5 + $0x288] sm:$0xff] }
 0xba8   :  { %v3649_v43 = vpack.c.bf16 %v3345_v24, %v3329_v40  ;;  %v3650_v27 = vpack.c.bf16 %v3346_v25, %v3330_v23  ;;  %v13355_v40 = vld [vmem:[#allocation5 + $0x218] sm:$0xff]  ;;  %v13377_v37 = vld [vmem:[#allocation5 + $0x2c8] sm:$0xff] }
 0xba9   :  { %v3363_v36 = vmax.f32 %v3078_v38, 0.0  ;;  %v3364_v57 = vmax.f32 %v3097_v47, 0.0  ;;  %v13363_v23 = vld [vmem:[#allocation5 + $0x258] sm:$0xff] }
 0xbaa   :  { %4461 = vmatmul.bf16.vlgmr.msrb.gmra.mxu2 %v3649_v43  ;;  %4480 = vmatmul.bf16.vlgmr.msrb.gmra.mxu3 %v3650_v27  ;;  %v14939_v43 = vperm.slane %v14900_v16, 4  ;;  %v14942_v27 = vperm.slane %v14900_v16, 5 }
 0xbab   :  { %v3039_v31 = vpop.f32.mrf.mxu2  ;;  %v3058_v32 = vpop.f32.mrf.mxu3  ;;  %4644 = vmatpush.bf16.msrb.mxu0 %v13374_v28  ;;  %4663 = vmatpush.bf16.msrb.mxu1 %v13382_v44 }
 0xbac   :  { %4605 = vmatpush.bf16.msrb.mxu2 %v13359_v45  ;;  %4624 = vmatpush.bf16.msrb.mxu3 %v13367_v54  ;;  %v3040_v60 = vadd.f32 %v3039_v31, %v14911_v58  ;;  %v3059_v53 = vadd.f32 %v3058_v32, %v14914_v1  ;;  %v13354_v45 = vld [vmem:[#allocation5 + $0x210] sm:$0xff] }
 0xbad   :  { %v13362_v54 = vld [vmem:[#allocation5 + $0x250] sm:$0xff] }
 0xbae   :  { %v3079_v48 = vpop.f32.mrf.mxu0  ;;  %v3098_v49 = vpop.f32.mrf.mxu1  ;;  %v3361_v9 = vmax.f32 %v3040_v60, 0.0  ;;  %v3362_v7 = vmax.f32 %v3059_v53, 0.0  ;;  %v13415_v60 = vld [vmem:[#allocation5 + $0x3f8] sm:$0xff] }
 0xbaf   :  { %v3080_v35 = vadd.f32 %v3079_v48, %v14903_v50  ;;  %v3099_v29 = vadd.f32 %v3098_v49, %v14906_v51  ;;  %4645 = vmatpush.bf16.msrb.mxu0 %v13373_v46  ;;  %4664 = vmatpush.bf16.msrb.mxu1 %v13381_v11  ;;  %v13368_v46 = vld [vmem:[#allocation5 + $0x280] sm:$0xff] }
 0xbb0   :  { %4606 = vmatpush.bf16.msrb.mxu2 %v13358_v55  ;;  %4625 = vmatpush.bf16.msrb.mxu3 %v13366_v56  ;;  %v13376_v11 = vld [vmem:[#allocation5 + $0x2c0] sm:$0xff]  ;;  %v13353_v56 = vld [vmem:[#allocation5 + $0x208] sm:$0xff] }
 0xbb1   :  { %v3379_v59 = vmax.f32 %v3080_v35, 0.0  ;;  %v3380_v52 = vmax.f32 %v3099_v29, 0.0  ;;  %v13361_v35 = vld [vmem:[#allocation5 + $0x248] sm:$0xff] }
 0xbb3   :  { %v3041_v62 = vpop.f32.mrf.mxu2  ;;  %v3060_v50 = vpop.f32.mrf.mxu3  ;;  %v3667_v8 = vpack.c.bf16 %v3379_v59, %v3363_v36  ;;  %v3668_v51 = vpack.c.bf16 %v3380_v52, %v3364_v57  ;;  %4646 = vmatpush.bf16.msrb.mxu0 %v13372_v0  ;;  %4665 = vmatpush.bf16.msrb.mxu1 %v13380_v30  ;;  %v13407_v52 = vld [vmem:[#allocation5 + $0x3b8] sm:$0xff] }
 0xbb4   :  { %v3042_v4 = vadd.f32 %v3041_v62, %v14911_v58  ;;  %v3061_v34 = vadd.f32 %v3060_v50, %v14914_v1  ;;  %4607 = vmatpush.bf16.msrb.mxu2 %v13357_v39  ;;  %4626 = vmatpush.bf16.msrb.mxu3 %v13365_v61  ;;  %v13370_v1 = vld [vmem:[#allocation5 + $0x290] sm:$0xff] }
 0xbb5   :  { %4504 = vmatmul.bf16.gmra.mxu0 %v3667_v8  ;;  %4523 = vmatmul.bf16.gmra.mxu1 %v3668_v51  ;;  %v13352_v51 = vld [vmem:[#allocation5 + $0x200] sm:$0xff] }
 0xbb6   :  { %v3377_v13 = vmax.f32 %v3042_v4, 0.0  ;;  %v3378_v17 = vmax.f32 %v3061_v34, 0.0  ;;  %v3148_v18 = vpop.f32.mrf.mxu0  ;;  %v3167_v2 = vpop.f32.mrf.mxu1  ;;  %v13360_v4 = vld [vmem:[#allocation5 + $0x240] sm:$0xff] }
 0xbb7   :  { %4647 = vmatpush.bf16.msrb.mxu0 %v13371_v63  ;;  %4666 = vmatpush.bf16.msrb.mxu1 %v13379_v6  ;;  %v3149_v41 = vadd.f32 %v3148_v18, %v14931_v22  ;;  %v3168_v42 = vadd.f32 %v3167_v2, %v14934_v14  ;;  %v13406_v6 = vld [vmem:[#allocation5 + $0x3b0] sm:$0xff]  ;;  %v13405_v2 = vld [vmem:[#allocation5 + $0x3a8] sm:$0xff] }
 0xbb8   :  { %v3665_v21 = vpack.c.bf16 %v3377_v13, %v3361_v9  ;;  %v3666_v58 = vpack.c.bf16 %v3378_v17, %v3362_v7  ;;  %4608 = vmatpush.bf16.msrb.mxu2 %v13356_v19  ;;  %4627 = vmatpush.bf16.msrb.mxu3 %v13364_v20  ;;  %v13414_v9 = vld [vmem:[#allocation5 + $0x3f0] sm:$0xff]  ;;  %v13391_v7 = vld [vmem:[#allocation5 + $0x338] sm:$0xff]  ;;  %v13413_v19 = vld [vmem:[#allocation5 + $0x3e8] sm:$0xff] }
 0xbb9   :  { %v3335_v38 = vmax.f32 %v3149_v41, 0.0  ;;  %v3336_v47 = vmax.f32 %v3168_v42, 0.0  ;;  %v13399_v13 = vld [vmem:[#allocation5 + $0x378] sm:$0xff] }
 0xbba   :  { %4466 = vmatmul.bf16.gmra.mxu2 %v3665_v21  ;;  %4485 = vmatmul.bf16.gmra.mxu3 %v3666_v58 }
 0xbbb   :  { %v3110_v24 = vpop.f32.mrf.mxu2  ;;  %v3129_v25 = vpop.f32.mrf.mxu3  ;;  %4648 = vmatpush.bf16.msrb.mxu0 %v13370_v1  ;;  %4667 = vmatpush.bf16.msrb.mxu1 %v13378_v12  ;;  %v13390_v12 = vld [vmem:[#allocation5 + $0x330] sm:$0xff] }
 0xbbc   :  { %4609 = vmatpush.bf16.msrb.mxu2 %v13355_v40  ;;  %4628 = vmatpush.bf16.msrb.mxu3 %v13363_v23  ;;  %v3111_v16 = vadd.f32 %v3110_v24, %v14939_v43  ;;  %v3130_v55 = vadd.f32 %v3129_v25, %v14942_v27  ;;  %v13398_v40 = vld [vmem:[#allocation5 + $0x370] sm:$0xff]  ;;  %v13404_v25 = vld [vmem:[#allocation5 + $0x3a0] sm:$0xff] }
 0xbbe   :  { %v3150_v28 = vpop.f32.mrf.mxu0  ;;  %v3169_v44 = vpop.f32.mrf.mxu1  ;;  %v3333_v53 = vmax.f32 %v3111_v16, 0.0  ;;  %v3334_v39 = vmax.f32 %v3130_v55, 0.0 }
 0xbbf   :  { %v3151_v31 = vadd.f32 %v3150_v28, %v14931_v22  ;;  %v3170_v32 = vadd.f32 %v3169_v44, %v14934_v14  ;;  %4649 = vmatpush.bf16.msrb.mxu0 %v13369_v26  ;;  %4668 = vmatpush.bf16.msrb.mxu1 %v13377_v37  ;;  %v13412_v26 = vld [vmem:[#allocation5 + $0x3e0] sm:$0xff] }
 0xbc0   :  { %4610 = vmatpush.bf16.msrb.mxu2 %v13354_v45  ;;  %4629 = vmatpush.bf16.msrb.mxu3 %v13362_v54  ;;  %v13389_v54 = vld [vmem:[#allocation5 + $0x328] sm:$0xff] }
 0xbc1   :  { %v3351_v48 = vmax.f32 %v3151_v31, 0.0  ;;  %v3352_v49 = vmax.f32 %v3170_v32, 0.0  ;;  %v13397_v31 = vld [vmem:[#allocation5 + $0x368] sm:$0xff] }
 0xbc3   :  { %v3655_v29 = vpack.c.bf16 %v3351_v48, %v3335_v38  ;;  %v3656_v0 = vpack.c.bf16 %v3352_v49, %v3336_v47  ;;  %v3112_v30 = vpop.f32.mrf.mxu2  ;;  %v3131_v36 = vpop.f32.mrf.mxu3  ;;  %4650 = vmatpush.bf16.msrb.mxu0 %v13368_v46  ;;  %4669 = vmatpush.bf16.msrb.mxu1 %v13376_v11  ;;  %v13403_v47 = vld [vmem:[#allocation5 + $0x398] sm:$0xff]  ;;  %v14961_v49 = vld [vmem:[%s15905_s15 + $0x8] sm:$0xff] }
 0xbc4   :  { %v3113_v57 = vadd.f32 %v3112_v30, %v14939_v43  ;;  %v3132_v59 = vadd.f32 %v3131_v36, %v14942_v27  ;;  %4611 = vmatpush.bf16.msrb.mxu2 %v13353_v56  ;;  %4630 = vmatpush.bf16.msrb.mxu3 %v13361_v35  ;;  %v13411_v48 = vld [vmem:[#allocation5 + $0x3d8] sm:$0xff]  ;;  %v13396_v30 = vld [vmem:[#allocation5 + $0x360] sm:$0xff] }
 0xbc5   :  { %4575 = vmatmul.bf16.vlgmr.msra.gmra.mxu0 %v3655_v29  ;;  %4594 = vmatmul.bf16.vlgmr.msra.gmra.mxu1 %v3656_v0 }
 0xbc6   :  { %v3349_v61 = vmax.f32 %v3113_v57, 0.0  ;;  %v3350_v62 = vmax.f32 %v3132_v59, 0.0  ;;  %v3153_v50 = vpop.f32.mrf.mxu0  ;;  %v3172_v8 = vpop.f32.mrf.mxu1  ;;  %v13402_v57 = vld [vmem:[#allocation5 + $0x390] sm:$0xff] }
 0xbc7   :  { %4719 = vmatpush.bf16.msra.mxu0 %v13407_v52  ;;  %4738 = vmatpush.bf16.msra.mxu1 %v13415_v60  ;;  %v3154_v20 = vadd.f32 %v3153_v50, %v14931_v22  ;;  %v3173_v21 = vadd.f32 %v3172_v8, %v14934_v14  ;;  %v13410_v59 = vld [vmem:[#allocation5 + $0x3d0] sm:$0xff]  ;;  %v14964_v52 = vperm.slane %v14961_v49, 2  ;;  %v14967_v60 = vperm.slane %v14961_v49, 3  ;;  %v13401_v50 = vld [vmem:[#allocation5 + $0x388] sm:$0xff] }
 0xbc8   :  { %v3653_v34 = vpack.c.bf16 %v3349_v61, %v3333_v53  ;;  %v3654_v63 = vpack.c.bf16 %v3350_v62, %v3334_v39  ;;  %4612 = vmatpush.bf16.msrb.mxu2 %v13352_v51  ;;  %4631 = vmatpush.bf16.msrb.mxu3 %v13360_v4  ;;  %v13387_v53 = vld [vmem:[#allocation5 + $0x318] sm:$0xff]  ;;  %v13409_v8 = vld [vmem:[#allocation5 + $0x3c8] sm:$0xff] }
 0xbc9   :  { %v3367_v37 = vmax.f32 %v3154_v20, 0.0  ;;  %v3368_v41 = vmax.f32 %v3173_v21, 0.0  ;;  %v13395_v39 = vld [vmem:[#allocation5 + $0x358] sm:$0xff] }
 0xbca   :  { %4537 = vmatmul.bf16.vlgmr.msra.gmra.mxu2 %v3653_v34  ;;  %4556 = vmatmul.bf16.vlgmr.msra.gmra.mxu3 %v3654_v63  ;;  %v14972_v34 = vperm.slane %v14961_v49, 0  ;;  %v14975_v63 = vperm.slane %v14961_v49, 1 }
 0xbcb   :  { %v3115_v17 = vpop.f32.mrf.mxu2  ;;  %v3134_v18 = vpop.f32.mrf.mxu3  ;;  %4720 = vmatpush.bf16.msra.mxu0 %v13406_v6  ;;  %4739 = vmatpush.bf16.msra.mxu1 %v13414_v9 }
 0xbcc   :  { %4681 = vmatpush.bf16.msra.mxu2 %v13391_v7  ;;  %4700 = vmatpush.bf16.msra.mxu3 %v13399_v13  ;;  %v3116_v44 = vadd.f32 %v3115_v17, %v14939_v43  ;;  %v3135_v45 = vadd.f32 %v3134_v18, %v14942_v27  ;;  %v13386_v7 = vld [vmem:[#allocation5 + $0x310] sm:$0xff] }
 0xbcd   :  { %v13394_v13 = vld [vmem:[#allocation5 + $0x350] sm:$0xff] }
 0xbce   :  { %v3155_v58 = vpop.f32.mrf.mxu0  ;;  %v3174_v1 = vpop.f32.mrf.mxu1  ;;  %v3365_v16 = vmax.f32 %v3116_v44, 0.0  ;;  %v3366_v55 = vmax.f32 %v3135_v45, 0.0 }
 0xbcf   :  { %v3156_v23 = vadd.f32 %v3155_v58, %v14931_v22  ;;  %v3175_v24 = vadd.f32 %v3174_v1, %v14934_v14  ;;  %4721 = vmatpush.bf16.msra.mxu0 %v13405_v2  ;;  %4740 = vmatpush.bf16.msra.mxu1 %v13413_v19  ;;  %v13400_v2 = vld [vmem:[#allocation5 + $0x380] sm:$0xff] }
 0xbd0   :  { %4682 = vmatpush.bf16.msra.mxu2 %v13390_v12  ;;  %4701 = vmatpush.bf16.msra.mxu3 %v13398_v40  ;;  %v13408_v19 = vld [vmem:[#allocation5 + $0x3c0] sm:$0xff] }
 0xbd1   :  { %v3383_v42 = vmax.f32 %v3156_v23, 0.0  ;;  %v3384_v28 = vmax.f32 %v3175_v24, 0.0  ;;  %v13385_v23 = vld [vmem:[#allocation5 + $0x308] sm:$0xff] }
 0xbd2   :  { %v13393_v24 = vld [vmem:[#allocation5 + $0x348] sm:$0xff] }
 0xbd3   :  { %v3117_v32 = vpop.f32.mrf.mxu2  ;;  %v3136_v22 = vpop.f32.mrf.mxu3  ;;  %v3671_v46 = vpack.c.bf16 %v3383_v42, %v3367_v37  ;;  %v3672_v14 = vpack.c.bf16 %v3384_v28, %v3368_v41  ;;  %4722 = vmatpush.bf16.msra.mxu0 %v13404_v25  ;;  %4741 = vmatpush.bf16.msra.mxu1 %v13412_v26 }
 0xbd4   :  { %v3118_v11 = vadd.f32 %v3117_v32, %v14939_v43  ;;  %v3137_v38 = vadd.f32 %v3136_v22, %v14942_v27  ;;  %4683 = vmatpush.bf16.msra.mxu2 %v13389_v54  ;;  %4702 = vmatpush.bf16.msra.mxu3 %v13397_v31  ;;  %v13388_v43 = vld [vmem:[#allocation5 + $0x320] sm:$0xff] }
 0xbd5   :  { %4580 = vmatmul.bf16.gmra.mxu0 %v3671_v46  ;;  %4599 = vmatmul.bf16.gmra.mxu1 %v3672_v14  ;;  %v13384_v46 = vld [vmem:[#allocation5 + $0x300] sm:$0xff] }
 0xbd6   :  { %v3381_v56 = vmax.f32 %v3118_v11, 0.0  ;;  %v3382_v35 = vmax.f32 %v3137_v38, 0.0  ;;  %v3224_v29 = vpop.f32.mrf.mxu0  ;;  %v3243_v0 = vpop.f32.mrf.mxu1  ;;  %v13392_v14 = vld [vmem:[#allocation5 + $0x340] sm:$0xff] }
 0xbd7   :  { %4723 = vmatpush.bf16.msra.mxu0 %v13403_v47  ;;  %4742 = vmatpush.bf16.msra.mxu1 %v13411_v48  ;;  %v3225_v51 = vadd.f32 %v3224_v29, %v14964_v52  ;;  %v3244_v4 = vadd.f32 %v3243_v0, %v14967_v60 }
 0xbd8   :  { %v3669_v27 = vpack.c.bf16 %v3381_v56, %v3365_v16  ;;  %v3670_v36 = vpack.c.bf16 %v3382_v35, %v3366_v55  ;;  %4684 = vmatpush.bf16.msra.mxu2 %v13388_v43  ;;  %4703 = vmatpush.bf16.msra.mxu3 %v13396_v30 }
 0xbd9   :  { %v3339_v20 = vmax.f32 %v3225_v51, 0.0  ;;  %v3340_v21 = vmax.f32 %v3244_v4, 0.0 }
 0xbda   :  { %4542 = vmatmul.bf16.gmra.mxu2 %v3669_v27  ;;  %4561 = vmatmul.bf16.gmra.mxu3 %v3670_v36 }
 0xbdb   :  { %v3186_v61 = vpop.f32.mrf.mxu2  ;;  %v3205_v62 = vpop.f32.mrf.mxu3  ;;  %4724 = vmatpush.bf16.msra.mxu0 %v13402_v57  ;;  %4743 = vmatpush.bf16.msra.mxu1 %v13410_v59 }
 0xbdc   :  { %4685 = vmatpush.bf16.msra.mxu2 %v13387_v53  ;;  %4704 = vmatpush.bf16.msra.mxu3 %v13395_v39  ;;  %v3187_v12 = vadd.f32 %v3186_v61, %v14972_v34  ;;  %v3206_v40 = vadd.f32 %v3205_v62, %v14975_v63 }
 0xbde   :  { %v3226_v6 = vpop.f32.mrf.mxu0  ;;  %v3245_v9 = vpop.f32.mrf.mxu1  ;;  %v3337_v44 = vmax.f32 %v3187_v12, 0.0  ;;  %v3338_v45 = vmax.f32 %v3206_v40, 0.0 }
 0xbdf   :  { %v3227_v17 = vadd.f32 %v3226_v6, %v14964_v52  ;;  %v3246_v18 = vadd.f32 %v3245_v9, %v14967_v60  ;;  %4725 = vmatpush.bf16.msra.mxu0 %v13401_v50  ;;  %4744 = vmatpush.bf16.msra.mxu1 %v13409_v8 }
 0xbe0   :  { %4686 = vmatpush.bf16.msra.mxu2 %v13386_v7  ;;  %4705 = vmatpush.bf16.msra.mxu3 %v13394_v13 }
 0xbe1   :  { %v3355_v58 = vmax.f32 %v3227_v17, 0.0  ;;  %v3356_v1 = vmax.f32 %v3246_v18, 0.0  ;;  %v2367_v17 = vperm.slane %v14961_v49, 6  ;;  %v2368_v18 = vperm.slane %v14961_v49, 7 }
 0xbe3   :  { %v3659_v25 = vpack.c.bf16 %v3355_v58, %v3339_v20  ;;  %v3660_v26 = vpack.c.bf16 %v3356_v1, %v3340_v21  ;;  %v3188_v37 = vpop.f32.mrf.mxu2  ;;  %v3207_v41 = vpop.f32.mrf.mxu3  ;;  %4726 = vmatpush.bf16.msra.mxu0 %v13400_v2  ;;  %4745 = vmatpush.bf16.msra.mxu1 %v13408_v19  ;;  %v2365_v20 = vperm.slane %v14961_v49, 4  ;;  %v2366_v21 = vperm.slane %v14961_v49, 5 }
 0xbe4   :  { %v3189_v42 = vadd.f32 %v3188_v37, %v14972_v34  ;;  %v3208_v28 = vadd.f32 %v3207_v41, %v14975_v63  ;;  %4687 = vmatpush.bf16.msra.mxu2 %v13385_v23  ;;  %4706 = vmatpush.bf16.msra.mxu3 %v13393_v24 }
 0xbe5   :  { %4651 = vmatmul.bf16.vlgmr.msrb.gmra.mxu0 %v3659_v25  ;;  %4670 = vmatmul.bf16.vlgmr.msrb.gmra.mxu1 %v3660_v26 }
 0xbe6   :  { %v3353_v54 = vmax.f32 %v3189_v42, 0.0  ;;  %v3354_v31 = vmax.f32 %v3208_v28, 0.0  ;;  %v3229_v32 = vpop.f32.mrf.mxu0  ;;  %v3248_v22 = vpop.f32.mrf.mxu1 }
 0xbe7   :  { %v3230_v16 = vadd.f32 %v3229_v32, %v14964_v52  ;;  %v3249_v55 = vadd.f32 %v3248_v22, %v14967_v60 }
 0xbe8   :  { %v3657_v11 = vpack.c.bf16 %v3353_v54, %v3337_v44  ;;  %v3658_v38 = vpack.c.bf16 %v3354_v31, %v3338_v45  ;;  %4688 = vmatpush.bf16.msra.mxu2 %v13384_v46  ;;  %4707 = vmatpush.bf16.msra.mxu3 %v13392_v14 }
 0xbe9   :  { %v3371_v43 = vmax.f32 %v3230_v16, 0.0  ;;  %v3372_v30 = vmax.f32 %v3249_v55, 0.0 }
 0xbea   :  { %4613 = vmatmul.bf16.vlgmr.msrb.gmra.mxu2 %v3657_v11  ;;  %4632 = vmatmul.bf16.vlgmr.msrb.gmra.mxu3 %v3658_v38 }
 0xbeb   :  { %v3191_v47 = vpop.f32.mrf.mxu2  ;;  %v3210_v48 = vpop.f32.mrf.mxu3 }
 0xbec   :  { %v3192_v57 = vadd.f32 %v3191_v47, %v14972_v34  ;;  %v3211_v59 = vadd.f32 %v3210_v48, %v14975_v63 }
 0xbee   :  { %v3231_v56 = vpop.f32.mrf.mxu0  ;;  %v3250_v35 = vpop.f32.mrf.mxu1 }
 0xbef   :  { %v3232_v29 = vadd.f32 %v3231_v56, %v14964_v52  ;;  %v3251_v0 = vadd.f32 %v3250_v35, %v14967_v60  ;;  %v3369_v52 = vmax.f32 %v3192_v57, 0.0  ;;  %v3370_v60 = vmax.f32 %v3211_v59, 0.0 }
 0xbf1   :  { %v3387_v27 = vmax.f32 %v3232_v29, 0.0  ;;  %v3388_v36 = vmax.f32 %v3251_v0, 0.0 }
 0xbf3   :  { %v3193_v53 = vpop.f32.mrf.mxu2  ;;  %v3212_v39 = vpop.f32.mrf.mxu3  ;;  %v3675_v61 = vpack.c.bf16 %v3387_v27, %v3371_v43  ;;  %v3676_v62 = vpack.c.bf16 %v3388_v36, %v3372_v30 }
 0xbf4   :  { %v3194_v50 = vadd.f32 %v3193_v53, %v14972_v34  ;;  %v3213_v8 = vadd.f32 %v3212_v39, %v14975_v63 }
 0xbf5   :  { %4656 = vmatmul.bf16.gmra.mxu0 %v3675_v61  ;;  %4675 = vmatmul.bf16.gmra.mxu1 %v3676_v62 }
 0xbf6   :  { %v3385_v51 = vmax.f32 %v3194_v50, 0.0  ;;  %v3386_v4 = vmax.f32 %v3213_v8, 0.0  ;;  %v3300_v6 = vpop.f32.mrf.mxu0  ;;  %v3319_v9 = vpop.f32.mrf.mxu1 }
 0xbf7   :  { %v3301_v19 = vadd.f32 %v3300_v6, %v2367_v17  ;;  %v3320_v63 = vadd.f32 %v3319_v9, %v2368_v18 }
 0xbf8   :  { %v3673_v7 = vpack.c.bf16 %v3385_v51, %v3369_v52  ;;  %v3674_v13 = vpack.c.bf16 %v3386_v4, %v3370_v60 }
 0xbf9   :  { %v3343_v23 = vmax.f32 %v3301_v19, 0.0  ;;  %v3344_v24 = vmax.f32 %v3320_v63, 0.0 }
 0xbfa   :  { %4618 = vmatmul.bf16.gmra.mxu2 %v3673_v7  ;;  %4637 = vmatmul.bf16.gmra.mxu3 %v3674_v13 }
 0xbfb   :  { %v3262_v2 = vpop.f32.mrf.mxu2  ;;  %v3281_v34 = vpop.f32.mrf.mxu3 }
 0xbfc   :  { %v3263_v37 = vadd.f32 %v3262_v2, %v2365_v20  ;;  %v3282_v41 = vadd.f32 %v3281_v34, %v2366_v21  ;;  %v13812_v34 = vld [vmem:[%s15907_s17] ss:$0 sm:$0xff] }
 0xbfe   :  { %v3302_v58 = vpop.f32.mrf.mxu0  ;;  %v3321_v1 = vpop.f32.mrf.mxu1  ;;  %v3341_v32 = vmax.f32 %v3263_v37, 0.0  ;;  %v3342_v49 = vmax.f32 %v3282_v41, 0.0 }
 0xbff   :  { %v3303_v12 = vadd.f32 %v3302_v58, %v2367_v17  ;;  %v3322_v40 = vadd.f32 %v3321_v1, %v2368_v18 }
 0xc01   :  { %v3359_v25 = vmax.f32 %v3303_v12, 0.0  ;;  %v3360_v26 = vmax.f32 %v3322_v40, 0.0 }
 0xc03   :  { %v3663_v42 = vpack.c.bf16 %v3359_v25, %v3343_v23  ;;  %v3664_v28 = vpack.c.bf16 %v3360_v26, %v3344_v24  ;;  %v3264_v44 = vpop.f32.mrf.mxu2  ;;  %v3283_v45 = vpop.f32.mrf.mxu3 }
 0xc04   :  { %v3265_v54 = vadd.f32 %v3264_v44, %v2365_v20  ;;  %v3284_v31 = vadd.f32 %v3283_v45, %v2366_v21 }
 0xc05   :  { %4727 = vmatmul.bf16.vlgmr.msra.gmra.mxu0 %v3663_v42  ;;  %4746 = vmatmul.bf16.vlgmr.msra.gmra.mxu1 %v3664_v28 }
 0xc06   :  { %v3357_v22 = vmax.f32 %v3265_v54, 0.0  ;;  %v3358_v46 = vmax.f32 %v3284_v31, 0.0  ;;  %v3305_v14 = vpop.f32.mrf.mxu0  ;;  %v3324_v11 = vpop.f32.mrf.mxu1 }
 0xc07   :  { %v3306_v55 = vadd.f32 %v3305_v14, %v2367_v17  ;;  %v3325_v56 = vadd.f32 %v3324_v11, %v2368_v18 }
 0xc08   :  { %v3661_v38 = vpack.c.bf16 %v3357_v22, %v3341_v32  ;;  %v3662_v47 = vpack.c.bf16 %v3358_v46, %v3342_v49 }
 0xc09   :  { %v3375_v30 = vmax.f32 %v3306_v55, 0.0  ;;  %v3376_v27 = vmax.f32 %v3325_v56, 0.0 }
 0xc0a   :  { %4689 = vmatmul.bf16.vlgmr.msra.gmra.mxu2 %v3661_v38  ;;  %4708 = vmatmul.bf16.vlgmr.msra.gmra.mxu3 %v3662_v47 }
 0xc0b   :  { %v3267_v48 = vpop.f32.mrf.mxu2  ;;  %v3286_v16 = vpop.f32.mrf.mxu3 }
 0xc0c   :  { %v3268_v59 = vadd.f32 %v3267_v48, %v2365_v20  ;;  %v3287_v53 = vadd.f32 %v3286_v16, %v2366_v21 }
 0xc0e   :  { %v3307_v35 = vpop.f32.mrf.mxu0  ;;  %v3326_v29 = vpop.f32.mrf.mxu1  ;;  %v3373_v60 = vmax.f32 %v3268_v59, 0.0  ;;  %v3374_v51 = vmax.f32 %v3287_v53, 0.0 }
 0xc0f   :  { %v3308_v0 = vadd.f32 %v3307_v35, %v2367_v17  ;;  %v3327_v43 = vadd.f32 %v3326_v29, %v2368_v18 }
 0xc11   :  { %v3391_v36 = vmax.f32 %v3308_v0, 0.0  ;;  %v3392_v57 = vmax.f32 %v3327_v43, 0.0 }
 0xc13   :  { %v3269_v39 = vpop.f32.mrf.mxu2  ;;  %v3288_v61 = vpop.f32.mrf.mxu3  ;;  %v3679_v62 = vpack.c.bf16 %v3391_v36, %v3375_v30  ;;  %v3680_v50 = vpack.c.bf16 %v3392_v57, %v3376_v27 }
 0xc14   :  { %v3270_v8 = vadd.f32 %v3269_v39, %v2365_v20  ;;  %v3289_v52 = vadd.f32 %v3288_v61, %v2366_v21 }
 0xc15   :  { %4732 = vmatmul.bf16.gmra.mxu0 %v3679_v62  ;;  %4751 = vmatmul.bf16.gmra.mxu1 %v3680_v50 }
 0xc16   :  { %v3389_v4 = vmax.f32 %v3270_v8, 0.0  ;;  %v3390_v6 = vmax.f32 %v3289_v52, 0.0 }
 0xc18   :  { %v3677_v9 = vpack.c.bf16 %v3389_v4, %v3373_v60  ;;  %v3678_v7 = vpack.c.bf16 %v3390_v6, %v3374_v51 }
 0xc1a   :  { %4694 = vmatmul.bf16.gmra.mxu2 %v3677_v9  ;;  %4713 = vmatmul.bf16.gmra.mxu3 %v3678_v7 }
 0xc22   :  { %v4500_v13 = vpop.f32.mrf.mxu0  ;;  %v4519_v17 = vpop.f32.mrf.mxu1 }
 0xc2a   :  { %v4502_v18 = vpop.f32.mrf.mxu0  ;;  %v4521_v2 = vpop.f32.mrf.mxu1 }
 0xc2d   :  { %v4462_v19 = vpop.f32.mrf.mxu2  ;;  %v4481_v63 = vpop.f32.mrf.mxu3 }
 0xc2e   :  { %v4463_v20 = vadd.f32 %v13812_v34, %v4462_v19 }
 0xc30   :  { %v4482_v21 = vadd.f32 %v4481_v63, %v4463_v20 }
 0xc32   :  { %v4501_v58 = vadd.f32 %v4500_v13, %v4482_v21  ;;  %v4505_v1 = vpop.f32.mrf.mxu0  ;;  %v4524_v12 = vpop.f32.mrf.mxu1 }
 0xc34   :  { %v4520_v40 = vadd.f32 %v4519_v17, %v4501_v58 }
 0xc35   :  { %v4464_v23 = vpop.f32.mrf.mxu2  ;;  %v4483_v24 = vpop.f32.mrf.mxu3 }
 0xc36   :  { %v4465_v36 = vadd.f32 %v13812_v34, %v4464_v23 }
 0xc38   :  { %v4484_v61 = vadd.f32 %v4483_v24, %v4465_v36 }
 0xc3a   :  { %v4507_v25 = vpop.f32.mrf.mxu0  ;;  %v4526_v26 = vpop.f32.mrf.mxu1  ;;  %v4503_v50 = vadd.f32 %v4502_v18, %v4484_v61 }
 0xc3c   :  { %v4522_v4 = vadd.f32 %v4521_v2, %v4503_v50 }
 0xc3d   :  { %v4467_v37 = vpop.f32.mrf.mxu2  ;;  %v4486_v41 = vpop.f32.mrf.mxu3 }
 0xc3e   :  { %v4468_v42 = vadd.f32 %v13812_v34, %v4467_v37 }
 0xc40   :  { %v4487_v28 = vadd.f32 %v4486_v41, %v4468_v42 }
 0xc42   :  { %v4506_v44 = vadd.f32 %v4505_v1, %v4487_v28  ;;  %v4576_v45 = vpop.f32.mrf.mxu0  ;;  %v4595_v54 = vpop.f32.mrf.mxu1 }
 0xc44   :  { %v4525_v31 = vadd.f32 %v4524_v12, %v4506_v44 }
 0xc45   :  { %v4469_v32 = vpop.f32.mrf.mxu2  ;;  %v4488_v49 = vpop.f32.mrf.mxu3 }
 0xc46   :  { %v4470_v13 = vadd.f32 %v13812_v34, %v4469_v32 }
 0xc48   :  { %v4489_v21 = vadd.f32 %v4488_v49, %v4470_v13 }
 0xc4a   :  { %v4578_v22 = vpop.f32.mrf.mxu0  ;;  %v4597_v46 = vpop.f32.mrf.mxu1  ;;  %v4508_v18 = vadd.f32 %v4507_v25, %v4489_v21 }
 0xc4c   :  { %v4527_v28 = vadd.f32 %v4526_v26, %v4508_v18 }
 0xc4d   :  { %v4538_v14 = vpop.f32.mrf.mxu2  ;;  %v4557_v11 = vpop.f32.mrf.mxu3 }
 0xc4e   :  { %v4539_v62 = vadd.f32 %v4538_v14, %v4520_v40 }
 0xc50   :  { %v4558_v60 = vadd.f32 %v4557_v11, %v4539_v62 }
 0xc52   :  { %v4581_v38 = vpop.f32.mrf.mxu0  ;;  %v4600_v47 = vpop.f32.mrf.mxu1  ;;  %v4577_v9 = vadd.f32 %v4576_v45, %v4558_v60 }
 0xc54   :  { %v4596_v20 = vadd.f32 %v4595_v54, %v4577_v9 }
 0xc55   :  { %v4540_v48 = vpop.f32.mrf.mxu2  ;;  %v4559_v16 = vpop.f32.mrf.mxu3 }
 0xc56   :  { %v4541_v7 = vadd.f32 %v4540_v48, %v4522_v4 }
 0xc58   :  { %v4560_v63 = vadd.f32 %v4559_v16, %v4541_v7 }
 0xc5a   :  { %v4583_v55 = vpop.f32.mrf.mxu0  ;;  %v14998_v56 = vpop.f32.mrf.mxu1  ;;  %v4579_v12 = vadd.f32 %v4578_v22, %v4560_v63 }
 0xc5c   :  { %v4598_v2 = vadd.f32 %v4597_v46, %v4579_v12 }
 0xc5d   :  { %v4543_v35 = vpop.f32.mrf.mxu2  ;;  %v4562_v29 = vpop.f32.mrf.mxu3 }
 0xc5e   :  { %v4544_v23 = vadd.f32 %v4543_v35, %v4525_v31 }
 0xc60   :  { %v4563_v42 = vadd.f32 %v4562_v29, %v4544_v23 }
 0xc62   :  { %v4652_v0 = vpop.f32.mrf.mxu0  ;;  %v4671_v43 = vpop.f32.mrf.mxu1  ;;  %v4582_v34 = vadd.f32 %v4581_v38, %v4563_v42 }
 0xc64   :  { %v4601_v31 = vadd.f32 %v4600_v47, %v4582_v34 }
 0xc65   :  { %v4545_v30 = vpop.f32.mrf.mxu2  ;;  %v4564_v27 = vpop.f32.mrf.mxu3 }
 0xc66   :  { %v4546_v32 = vadd.f32 %v4545_v30, %v4527_v28 }
 0xc68   :  { %v4565_v22 = vadd.f32 %v4564_v27, %v4546_v32 }
 0xc6a   :  { %v4654_v57 = vpop.f32.mrf.mxu0  ;;  %v4673_v39 = vpop.f32.mrf.mxu1 }
 0xc6d   :  { %v4614_v59 = vpop.f32.mrf.mxu2  ;;  %v4633_v53 = vpop.f32.mrf.mxu3 }
 0xc6e   :  { %v4615_v58 = vadd.f32 %v4614_v59, %v4596_v20 }
 0xc70   :  { %v4634_v24 = vadd.f32 %v4633_v53, %v4615_v58  ;;  %v4584_v53 = vadd.f32 %v4583_v55, %v4565_v22  ;;  %v13431_v22 = vld [vmem:[%s15927_s23 + $0x138] sm:$0xff] }
 0xc71   :  { %5018 = vmatpush.bf16.msrb.mxu3 %v13431_v22 }
 0xc72   :  { %v4657_v51 = vpop.f32.mrf.mxu0  ;;  %v4676_v6 = vpop.f32.mrf.mxu1  ;;  %v4653_v44 = vadd.f32 %v4652_v0, %v4634_v24  ;;  %v4603_v62 = vadd.f32 %v14998_v56, %v4584_v53  ;;  %v13429_v53 = vld [vmem:[%s15927_s23 + $0x128] sm:$0xff] }
 0xc74   :  { %v4672_v49 = vadd.f32 %v4671_v43, %v4653_v44 }
 0xc75   :  { %v4616_v8 = vpop.f32.mrf.mxu2  ;;  %v4635_v52 = vpop.f32.mrf.mxu3 }
 0xc76   :  { %v4617_v45 = vadd.f32 %v4616_v8, %v4598_v2 }
 0xc78   :  { %v4636_v11 = vadd.f32 %v4635_v52, %v4617_v45 }
 0xc7a   :  { %v4659_v1 = vpop.f32.mrf.mxu0  ;;  %v4678_v40 = vpop.f32.mrf.mxu1  ;;  %v4655_v25 = vadd.f32 %v4654_v57, %v4636_v11 }
 0xc7c   :  { %v4674_v0 = vadd.f32 %v4673_v39, %v4655_v25  ;;  %v13430_v25 = vld [vmem:[%s15927_s23 + $0x130] sm:$0xff] }
 0xc7d   :  { %v4619_v17 = vpop.f32.mrf.mxu2  ;;  %v4638_v19 = vpop.f32.mrf.mxu3  ;;  %5019 = vmatpush.bf16.msrb.mxu3 %v13430_v25 }
 0xc7e   :  { %v4620_v36 = vadd.f32 %v4619_v17, %v4601_v31  ;;  %v13439_v31 = vld [vmem:[%s15898_s8 + $0x138] sm:$0xff] }
 0xc7f   :  { %5107 = vmatpush.bf16.msrb.mxu0 %v13439_v31 }
 0xc80   :  { %v4639_v46 = vadd.f32 %v4638_v19, %v4620_v36  ;;  %v13438_v36 = vld [vmem:[%s15898_s8 + $0x130] sm:$0xff] }
 0xc81   :  { %5020 = vmatpush.bf16.msrb.mxu3 %v13429_v53  ;;  %v13442_v53 = vld [vmem:[%s15926_s30 + $0x140] sm:$0xff] }
 0xc82   :  { %v4728_v14 = vpop.f32.mrf.mxu0  ;;  %v4747_v54 = vpop.f32.mrf.mxu1  ;;  %v4658_v27 = vadd.f32 %v4657_v51, %v4639_v46  ;;  %v13420_v46 = vld [vmem:[%s15926_s30 + $0x120] sm:$0xff] }
 0xc83   :  { %5108 = vmatpush.bf16.msrb.mxu0 %v13438_v36 }
 0xc84   :  { %v4677_v55 = vadd.f32 %v4676_v6, %v4658_v27  ;;  %v13425_v27 = vld [vmem:[%s15927_s23 + $0x108] sm:$0xff] }
 0xc85   :  { %v4621_v37 = vpop.f32.mrf.mxu2  ;;  %v4640_v41 = vpop.f32.mrf.mxu3 }
 0xc86   :  { %v4622_v47 = vadd.f32 %v4621_v37, %v4603_v62  ;;  %v13418_v62 = vld [vmem:[%s15926_s30 + $0x110] sm:$0xff] }
 0xc88   :  { %v4641_v60 = vadd.f32 %v4640_v41, %v4622_v47  ;;  %v13433_v47 = vld [vmem:[%s15898_s8 + $0x108] sm:$0xff] }
 0xc8a   :  { %v4730_v26 = vpop.f32.mrf.mxu0  ;;  %v4749_v8 = vpop.f32.mrf.mxu1  ;;  %v4660_v19 = vadd.f32 %v4659_v1, %v4641_v60 }
 0xc8c   :  { %v4679_v20 = vadd.f32 %v4678_v40, %v4660_v19 }
 0xc8d   :  { %v4690_v48 = vpop.f32.mrf.mxu2  ;;  %v4709_v16 = vpop.f32.mrf.mxu3 }
 0xc8e   :  { %v4691_v35 = vadd.f32 %v4690_v48, %v4672_v49 }
 0xc90   :  { %v4710_v59 = vadd.f32 %v4709_v16, %v4691_v35  ;;  %v13423_v16 = vld [vmem:[%s15926_s30 + $0x138] sm:$0xff]  ;;  %v13422_v35 = vld [vmem:[%s15926_s30 + $0x130] sm:$0xff] }
 0xc91   :  { %4929 = vmatpush.bf16.msrb.mxu2 %v13423_v16  ;;  %v13443_v16 = vld [vmem:[%s15926_s30 + $0x148] sm:$0xff] }
 0xc92   :  { %v4729_v29 = vadd.f32 %v4728_v14, %v4710_v59  ;;  %v4733_v17 = vpop.f32.mrf.mxu0  ;;  %v4752_v63 = vpop.f32.mrf.mxu1  ;;  %v13421_v59 = vld [vmem:[%s15926_s30 + $0x128] sm:$0xff] }
 0xc94   :  { %v4748_v61 = vadd.f32 %v4747_v54, %v4729_v29  ;;  %v13437_v29 = vld [vmem:[%s15898_s8 + $0x128] sm:$0xff] }
 0xc95   :  { %v4692_v38 = vpop.f32.mrf.mxu2  ;;  %v4711_v30 = vpop.f32.mrf.mxu3  ;;  %4930 = vmatpush.bf16.msrb.mxu2 %v13422_v35  ;;  %5109 = vmatpush.bf16.msrb.mxu0 %v13437_v29  ;;  %v13814_v35 = vld [vmem:[%s15909_s19] ss:$0 sm:$0xff] }
 0xc96   :  { %v4693_v50 = vadd.f32 %v4692_v38, %v4674_v0  ;;  %v4757_v43 = vadd.f32 %v4748_v61, %v14818_v3  ;;  %v13436_v0 = vld [vmem:[%s15898_s8 + $0x120] sm:$0xff]  ;;  %v13419_v61 = vld [vmem:[%s15926_s30 + $0x118] sm:$0xff] }
 0xc97   :  { %v13427_v38 = vld [vmem:[%s15927_s23 + $0x118] sm:$0xff] }
 0xc98   :  { %v4712_v52 = vadd.f32 %v4711_v30, %v4693_v50  ;;  %4763 = vadd.xlane.f32.xlu0 %v4757_v43  ;;  %v13435_v30 = vld [vmem:[%s15898_s8 + $0x118] sm:$0xff]  ;;  %v13426_v50 = vld [vmem:[%s15927_s23 + $0x110] sm:$0xff] }
 0xc99   :  { %4931 = vmatpush.bf16.msrb.mxu2 %v13421_v59  ;;  %5110 = vmatpush.bf16.msrb.mxu0 %v13436_v0 }
 0xc9a   :  { %v4731_v57 = vadd.f32 %v4730_v26, %v4712_v52  ;;  %v4735_v18 = vpop.f32.mrf.mxu0  ;;  %v4754_v37 = vpop.f32.mrf.mxu1  ;;  %v13428_v26 = vld [vmem:[%s15927_s23 + $0x120] sm:$0xff] }
 0xc9b   :  { %5021 = vmatpush.bf16.msrb.mxu3 %v13428_v26 }
 0xc9c   :  { %v4750_v4 = vadd.f32 %v4749_v8, %v4731_v57  ;;  %v13417_v8 = vld [vmem:[%s15926_s30 + $0x108] sm:$0xff] }
 0xc9d   :  { %v4695_v9 = vpop.f32.mrf.mxu2  ;;  %v4714_v7 = vpop.f32.mrf.mxu3  ;;  %4932 = vmatpush.bf16.msrb.mxu2 %v13420_v46  ;;  %5111 = vmatpush.bf16.msrb.mxu0 %v13435_v30 }
 0xc9e   :  { %v4696_v39 = vadd.f32 %v4695_v9, %v4677_v55  ;;  %v4758_v13 = vadd.f32 %v4750_v4, %v14821_v5  ;;  %v13416_v55 = vld [vmem:[%s15926_s30 + $0x100] sm:$0xff] }
 0xc9f   :  { %5022 = vmatpush.bf16.msrb.mxu3 %v13427_v38  ;;  %v13424_v4 = vld [vmem:[%s15927_s23 + $0x100] sm:$0xff] }
 0xca0   :  { %v4715_v56 = vadd.f32 %v4714_v7, %v4696_v39  ;;  %4765 = vadd.xlane.f32.xlu1 %v4758_v13  ;;  %v13432_v9 = vld [vmem:[%s15898_s8 + $0x100] sm:$0xff]  ;;  %v13449_v7 = vld [vmem:[%s15926_s30 + $0x178] sm:$0xff] }
 0xca1   :  { %4933 = vmatpush.bf16.msrb.mxu2 %v13419_v61 }
 0xca2   :  { %v4734_v3 = vadd.f32 %v4733_v17, %v4715_v56  ;;  %v13448_v56 = vld [vmem:[%s15926_s30 + $0x170] sm:$0xff] }
 0xca3   :  { %5023 = vmatpush.bf16.msrb.mxu3 %v13426_v50 }
 0xca4   :  { %v4753_v51 = vadd.f32 %v4752_v63, %v4734_v3 }
 0xca5   :  { %v4697_v21 = vpop.f32.mrf.mxu2  ;;  %v4716_v23 = vpop.f32.mrf.mxu3  ;;  %4934 = vmatpush.bf16.msrb.mxu2 %v13418_v62 }
 0xca6   :  { %v4698_v58 = vadd.f32 %v4697_v21, %v4679_v20  ;;  %v4759_v12 = vadd.f32 %v4753_v51, %v14860_v10  ;;  %v13447_v20 = vld [vmem:[%s15926_s30 + $0x168] sm:$0xff] }
 0xca7   :  { %5024 = vmatpush.bf16.msrb.mxu3 %v13425_v27 }
 0xca8   :  { %v4717_v6 = vadd.f32 %v4716_v23, %v4698_v58  ;;  %4767 = vadd.xlane.f32.xlu2 %v4759_v12 }
 0xca9   :  { %4935 = vmatpush.bf16.msrb.mxu2 %v13417_v8 }
 0xcaa   :  { %v4736_v24 = vadd.f32 %v4735_v18, %v4717_v6  ;;  %v13446_v18 = vld [vmem:[%s15926_s30 + $0x160] sm:$0xff] }
 0xcab   :  { %5025 = vmatpush.bf16.msrb.mxu3 %v13424_v4 }
 0xcac   :  { %v4755_v41 = vadd.f32 %v4754_v37, %v4736_v24 }
 0xcad   :  { %4936 = vmatpush.bf16.msrb.mxu2 %v13416_v55 }
 0xcae   :  { %v4760_v5 = vadd.f32 %v4755_v41, %v14863_v15 }
 0xcb0   :  { %4769 = vadd.xlane.f32.xlu0 %v4760_v5 }
 0xd0b   :  { %v4764_v1 = vpop.xlane.xlu0 %4763 }
 0xd0c   :  { %v4771_v42 = vmul.f32 %v4764_v1, %v14729_v33 }
 0xd0e   :  { %v15006_v2 = vsub.f32 %v4757_v43, %v4771_v42  ;;  %v13434_v43 = vld [vmem:[%s15898_s8 + $0x110] sm:$0xff] }
 0xd0f   :  { %5112 = vmatpush.bf16.msrb.mxu0 %v13434_v43 }
 0xd10   :  { %v4779_v40 = vmul.f32 %v15006_v2, %v15006_v2 }
 0xd12   :  { %4783 = vadd.xlane.f32.xlu1 %v4779_v40 }
 0xd13   :  { %v4766_v10 = vpop.xlane.xlu1 %4765  ;;  %5113 = vmatpush.bf16.msrb.mxu0 %v13433_v47 }
 0xd14   :  { %v4772_v28 = vmul.f32 %v4766_v10, %v14729_v33 }
 0xd16   :  { %v15011_v44 = vsub.f32 %v4758_v13, %v4772_v28  ;;  %v13444_v28 = vld [vmem:[%s15926_s30 + $0x150] sm:$0xff] }
 0xd17   :  { %5114 = vmatpush.bf16.msrb.mxu0 %v13432_v9 }
 0xd18   :  { %v4780_v45 = vmul.f32 %v15011_v44, %v15011_v44 }
 0xd1a   :  { %4785 = vadd.xlane.f32.xlu2 %v4780_v45 }
 0xd1b   :  { %v4768_v15 = vpop.xlane.xlu2 %4767  ;;  %5379 = vmatpush.bf16.msra.mxu0 %v13449_v7 }
 0xd1c   :  { %v4773_v34 = vmul.f32 %v4768_v15, %v14729_v33 }
 0xd1e   :  { %v15016_v32 = vsub.f32 %v4759_v12, %v4773_v34  ;;  %v13813_v34 = vld [vmem:[%s15908_s18] ss:$0 sm:$0xff] }
 0xd1f   :  { %5380 = vmatpush.bf16.msra.mxu0 %v13448_v56 }
 0xd20   :  { %v4781_v14 = vmul.f32 %v15016_v32, %v15016_v32 }
 0xd22   :  { %4787 = vadd.xlane.f32.xlu0 %v4781_v14 }
 0xd23   :  { %v4770_v11 = vpop.xlane.xlu0 %4769  ;;  %5381 = vmatpush.bf16.msra.mxu0 %v13447_v20 }
 0xd24   :  { %v4774_v54 = vmul.f32 %v4770_v11, %v14729_v33 }
 0xd26   :  { %v15021_v49 = vsub.f32 %v4760_v5, %v4774_v54  ;;  %v13445_v5 = vld [vmem:[%s15926_s30 + $0x158] sm:$0xff] }
 0xd27   :  { %5382 = vmatpush.bf16.msra.mxu0 %v13446_v18 }
 0xd28   :  { %v4782_v48 = vmul.f32 %v15021_v49, %v15021_v49 }
 0xd2a   :  { %4789 = vadd.xlane.f32.xlu1 %v4782_v48 }
 0xd2b   :  { %5383 = vmatpush.bf16.msra.mxu0 %v13445_v5 }
 0xd2f   :  { %5384 = vmatpush.bf16.msra.mxu0 %v13444_v28 }
 0xd33   :  { %5385 = vmatpush.bf16.msra.mxu0 %v13443_v16 }
 0xd37   :  { %5386 = vmatpush.bf16.msra.mxu0 %v13442_v53 }
 0xd85   :  { %v4784_v52 = vpop.xlane.xlu1 %4783 }
 0xd86   :  { %v4791_v57 = vmul.f32 %v4784_v52, %v14729_v33 }
 0xd88   :  { %v4795_v60 = vadd.f32 1e-05, %v4791_v57 }
 0xd8a   :  { %13908 = vrsqrt.f32 %v4795_v60  ;;  %vm4805_vm2 = vweird.f32 %v4795_v60 }
 0xd8d   :  { %v4786_v39 = vpop.xlane.xlu2 %4785 }
 0xd8e   :  { %v4792_v13 = vmul.f32 %v4786_v39, %v14729_v33 }
 0xd90   :  { %v13909_v17 = vpop.eup %13908  ;;  %v4796_v19 = vadd.f32 1e-05, %v4792_v13 }
 0xd91   :  { %v4800_v63 = vmul.f32 %v13909_v17, %v4795_v60  ;;  %vm4806_vm15 = vweird.f32 %v13909_v17 }
 0xd92   :  { %13910 = vrsqrt.f32 %v4796_v19  ;;  %vm4807_vm3 = vmor %vm4805_vm2, %vm4806_vm15  ;;  %vm4815_vm5 = vweird.f32 %v4796_v19 }
 0xd93   :  { %v4801_v3 = vmul.f32 %v13909_v17, %v4800_v63 }
 0xd95   :  { %v4802_v51 = vmul.f32 0.5, %v4801_v3  ;;  %v4788_v21 = vpop.xlane.xlu0 %4787 }
 0xd96   :  { %v4793_v58 = vmul.f32 %v4788_v21, %v14729_v33 }
 0xd97   :  { %v4803_v12 = vsub.f32 1.5, %v4802_v51 }
 0xd98   :  { %v13911_v23 = vpop.eup %13910  ;;  %v4797_v6 = vadd.f32 1e-05, %v4793_v58 }
 0xd99   :  { %v4804_v24 = vmul.f32 %v13909_v17, %v4803_v12  ;;  %v4810_v37 = vmul.f32 %v13911_v23, %v4796_v19  ;;  %vm4816_vm4 = vweird.f32 %v13911_v23 }
 0xd9a   :  { %13912 = vrsqrt.f32 %v4797_v6  ;;  %vm4817_vm6 = vmor %vm4815_vm5, %vm4816_vm4  ;;  %vm4825_vm8 = vweird.f32 %v4797_v6 }
 0xd9b   :  { %v4811_v41 = vmul.f32 %v13911_v23, %v4810_v37  ;;  %v4808_v1 = vsel %vm4807_vm3, %v13909_v17, %v4804_v24  ;;  %v13817_v17 = vld [vmem:[%s15897_s7 + $0x4] ss:$0 sm:$0xff] }
 0xd9c   :  { %v4839_v14 = vmul.f32 %v4808_v1, %v15006_v2 }
 0xd9d   :  { %v4812_v42 = vmul.f32 0.5, %v4811_v41  ;;  %v4790_v40 = vpop.xlane.xlu1 %4789 }
 0xd9e   :  { %v4794_v10 = vmul.f32 %v4790_v40, %v14729_v33  ;;  %v4846_v25 = vmul.f32 %v13813_v34, %v4839_v14 }
 0xd9f   :  { %v4813_v45 = vsub.f32 1.5, %v4812_v42 }
 0xda0   :  { %v13913_v15 = vpop.eup %13912  ;;  %v4798_v11 = vadd.f32 1e-05, %v4794_v10  ;;  %v15133_v26 = vadd.f32 %v13814_v35, %v4846_v25 }
 0xda1   :  { %v4814_v54 = vmul.f32 %v13911_v23, %v4813_v45  ;;  %v4820_v48 = vmul.f32 %v13913_v15, %v4797_v6  ;;  %vm4826_vm7 = vweird.f32 %v13913_v15 }
 0xda2   :  { %13914 = vrsqrt.f32 %v4798_v11  ;;  %vm4827_vm9 = vmor %vm4825_vm8, %vm4826_vm7  ;;  %vm4835_vm11 = vweird.f32 %v4798_v11 }
 0xda3   :  { %v4818_v22 = vsel %vm4817_vm6, %v13911_v23, %v4814_v54  ;;  %v4821_v31 = vmul.f32 %v13913_v15, %v4820_v48  ;;  %v13816_v23 = vld [vmem:[%s15931_s14 + $0x4] ss:$0 sm:$0xff] }
 0xda4   :  { %v4840_v2 = vmul.f32 %v4818_v22, %v15011_v44 }
 0xda5   :  { %v4822_v36 = vmul.f32 0.5, %v4821_v31 }
 0xda6   :  { %v4847_v59 = vmul.f32 %v13813_v34, %v4840_v2 }
 0xda7   :  { %v4823_v29 = vsub.f32 1.5, %v4822_v36 }
 0xda8   :  { %v13915_v46 = vpop.eup %13914  ;;  %v15135_v0 = vadd.f32 %v13814_v35, %v4847_v59 }
 0xda9   :  { %v4824_v61 = vmul.f32 %v13913_v15, %v4823_v29  ;;  %v4830_v38 = vmul.f32 %v13915_v46, %v4798_v11  ;;  %vm4836_vm10 = vweird.f32 %v13915_v46 }
 0xdaa   :  { %v15139_v30 = vpack.c.bf16 %v15135_v0, %v15133_v26  ;;  %vm4837_vm12 = vmor %vm4835_vm11, %vm4836_vm10 }
 0xdab   :  { %v4831_v44 = vmul.f32 %v13915_v46, %v4830_v38  ;;  %v4828_v62 = vsel %vm4827_vm9, %v13913_v15, %v4824_v61 }
 0xdac   :  { %4937 = vmatmul.bf16.vlgmr.msrb.gmra.mxu2 %v15139_v30  ;;  %5026 = vmatmul.bf16.vlgmr.msrb.gmra.mxu3 %v15139_v30  ;;  %v4841_v8 = vmul.f32 %v4828_v62, %v15016_v32 }
 0xdad   :  { %v4832_v50 = vmul.f32 0.5, %v4831_v44  ;;  %5115 = vmatmul.bf16.vlgmr.msrb.gmra.mxu0 %v15139_v30 }
 0xdae   :  { %v4848_v52 = vmul.f32 %v13813_v34, %v4841_v8 }
 0xdaf   :  { %v4833_v43 = vsub.f32 1.5, %v4832_v50 }
 0xdb0   :  { %v15146_v55 = vadd.f32 %v13814_v35, %v4848_v52  ;;  %v13457_v52 = vld [vmem:[%s15927_s23 + $0x178] sm:$0xff] }
 0xdb1   :  { %v4834_v27 = vmul.f32 %v13915_v46, %v4833_v43 }
 0xdb3   :  { %v4838_v47 = vsel %vm4837_vm12, %v13915_v46, %v4834_v27 }
 0xdb4   :  { %v4842_v57 = vmul.f32 %v4838_v47, %v15021_v49  ;;  %v13815_v49 = vld [vmem:[%s15899_s9 + $0x4] ss:$0 sm:$0xff] }
 0xdb6   :  { %v4849_v60 = vmul.f32 %v13813_v34, %v4842_v57 }
 0xdb8   :  { %v15148_v4 = vadd.f32 %v13814_v35, %v4849_v60 }
 0xdba   :  { %v15152_v9 = vpack.c.bf16 %v15148_v4, %v15146_v55 }
 0xdbc   :  { %4942 = vmatmul.bf16.gmra.mxu2 %v15152_v9  ;;  %5031 = vmatmul.bf16.gmra.mxu3 %v15152_v9 }
 0xdbd   :  { %5120 = vmatmul.bf16.gmra.mxu0 %v15152_v9 }
 0xdcd   :  { %5387 = vmatmul.bf16.vlgmr.msra.gmra.mxu0 %v15139_v30 }
 0xddd   :  { %5392 = vmatmul.bf16.gmra.mxu0 %v15152_v9 }
 0xe2a   :  { %v5116_v32 = vpop.f32.mrf.mxu0 }
 0xe2b   :  { %v5117_v7 = vadd.f32 %v13815_v49, %v5116_v32 }
 0xe2d   :  { %v5242_v56 = vpack.c.bf16 %v5117_v7, %v5117_v7 }
 0xe2f   :  { %v4938_v39 = vpop.f32.mrf.mxu2  ;;  %v5027_v13 = vpop.f32.mrf.mxu3  ;;  %v5253_v51 = vunpack.c.l.b16 %v5242_v56  ;;  %v13452_v56 = vld [vmem:[%s15927_s23 + $0x150] sm:$0xff] }
 0xe30   :  { %v5028_v3 = vadd.f32 %v13817_v17, %v5027_v13  ;;  %v4939_v1 = vadd.f32 %v13816_v23, %v4938_v39  ;;  %v13455_v13 = vld [vmem:[%s15927_s23 + $0x168] sm:$0xff] }
 0xe32   :  { %v5118_v19 = vpop.f32.mrf.mxu0  ;;  %v5130_v6 = vpack.c.bf16 %v5028_v3, %v5028_v3  ;;  %v5126_v14 = vpack.c.bf16 %v4939_v1, %v4939_v1  ;;  %v13450_v3 = vld [vmem:[%s15927_s23 + $0x140] sm:$0xff] }
 0xe33   :  { %v5119_v63 = vadd.f32 %v13815_v49, %v5118_v19  ;;  %v13453_v19 = vld [vmem:[%s15927_s23 + $0x158] sm:$0xff] }
 0xe34   :  { %v5141_v42 = vunpack.c.l.b16 %v5130_v6  ;;  %v5136_v31 = vunpack.c.l.b16 %v5126_v14 }
 0xe35   :  { %v5243_v20 = vpack.c.bf16 %v5119_v63, %v5119_v63  ;;  %v13451_v63 = vld [vmem:[%s15927_s23 + $0x148] sm:$0xff] }
 0xe37   :  { %v5254_v21 = vunpack.c.l.b16 %v5243_v20  ;;  %v4940_v58 = vpop.f32.mrf.mxu2  ;;  %v5029_v12 = vpop.f32.mrf.mxu3 }
 0xe38   :  { %v5030_v18 = vadd.f32 %v13817_v17, %v5029_v12  ;;  %v4941_v37 = vadd.f32 %v13816_v23, %v4940_v58 }
 0xe39   :  { %v5255_v24 = vpack.c.b16 %v5254_v21, %v5253_v51 }
 0xe3a   :  { %v5131_v41 = vpack.c.bf16 %v5030_v18, %v5030_v18  ;;  %v5121_v5 = vpop.f32.mrf.mxu0  ;;  %v5127_v10 = vpack.c.bf16 %v4941_v37, %v4941_v37 }
 0xe3b   :  { %5267 = vmatpush.bf16.msra.mxu2 %v5255_v24  ;;  %v5122_v45 = vadd.f32 %v13815_v49, %v5121_v5  ;;  %v13819_v24 = vld [vmem:[%s15897_s7 + $0x5] ss:$0 sm:$0xff] }
 0xe3c   :  { %v5142_v40 = vunpack.c.l.b16 %v5131_v41  ;;  %v5137_v54 = vunpack.c.l.b16 %v5127_v10 }
 0xe3d   :  { %v5244_v16 = vpack.c.bf16 %v5122_v45, %v5122_v45 }
 0xe3e   :  { %v5143_v28 = vpack.c.b16 %v5142_v40, %v5141_v42  ;;  %v5138_v2 = vpack.c.b16 %v5137_v54, %v5136_v31 }
 0xe3f   :  { %v4943_v15 = vpop.f32.mrf.mxu2  ;;  %v5032_v34 = vpop.f32.mrf.mxu3  ;;  %v5281_v36 = vunpack.c.l.b16 %v5244_v16 }
 0xe40   :  { %v5148_v11 = vsel %vm432_vm0, %v5143_v28, 0  ;;  %v5033_v35 = vadd.f32 %v13817_v17, %v5032_v34  ;;  %v4944_v50 = vadd.f32 %v13816_v23, %v4943_v15 }
 0xe41   :  { %5157 = vmatpush.bf16.xpose.msrb.mxu1 %v5148_v11 }
 0xe42   :  { %v5123_v48 = vpop.f32.mrf.mxu0  ;;  %v5132_v46 = vpack.c.bf16 %v5033_v35, %v5033_v35  ;;  %v5128_v57 = vpack.c.bf16 %v4944_v50, %v4944_v50 }
 0xe43   :  { %v5124_v22 = vadd.f32 %v13815_v49, %v5123_v48  ;;  %v13456_v49 = vld [vmem:[%s15927_s23 + $0x170] sm:$0xff] }
 0xe44   :  { %v5171_v43 = vunpack.c.l.b16 %v5132_v46  ;;  %v5166_v7 = vunpack.c.l.b16 %v5128_v57 }
 0xe45   :  { %v5245_v25 = vpack.c.bf16 %v5124_v22, %v5124_v22 }
 0xe47   :  { %v5282_v59 = vunpack.c.l.b16 %v5245_v25  ;;  %v4945_v53 = vpop.f32.mrf.mxu2  ;;  %v5034_v29 = vpop.f32.mrf.mxu3 }
 0xe48   :  { %v5035_v61 = vadd.f32 %v13817_v17, %v5034_v29  ;;  %11479 = vmatmul.msk.bf16.vlgmr.msrb.gmra.mxu1 %vm432_vm0, %v5138_v2  ;;  %v4946_v44 = vadd.f32 %v13816_v23, %v4945_v53  ;;  %v13454_v17 = vld [vmem:[%s15927_s23 + $0x160] sm:$0xff] }
 0xe49   :  { %v5283_v38 = vpack.c.b16 %v5282_v59, %v5281_v36 }
 0xe4a   :  { %v5133_v62 = vpack.c.bf16 %v5035_v61, %v5035_v61  ;;  %v5129_v27 = vpack.c.bf16 %v4946_v44, %v4946_v44 }
 0xe4b   :  { %5295 = vmatpush.bf16.msra.mxu3 %v5283_v38 }
 0xe4c   :  { %v5172_v8 = vunpack.c.l.b16 %v5133_v62  ;;  %v5167_v32 = vunpack.c.l.b16 %v5129_v27 }
 0xe4e   :  { %v5173_v47 = vpack.c.b16 %v5172_v8, %v5171_v43  ;;  %v5168_v39 = vpack.c.b16 %v5167_v32, %v5166_v7  ;;  %v5388_v8 = vpop.f32.mrf.mxu0 }
 0xe50   :  { %v5178_v60 = vsel %vm432_vm0, %v5173_v47, 0 }
 0xe51   :  { %5187 = vmatpush.bf16.xpose.msra.mxu1 %v5178_v60 }
 0xe58   :  { %11480 = vmatmul.msk.bf16.vlgmr.msra.gmra.mxu1 %vm432_vm0, %v5168_v39 }
 0xe59   :  { %5468 = vmatpush.bf16.msrb.mxu1 %v13457_v52 }
 0xe5d   :  { %5469 = vmatpush.bf16.msrb.mxu1 %v13456_v49 }
 0xe61   :  { %5470 = vmatpush.bf16.msrb.mxu1 %v13455_v13 }
 0xe65   :  { %5471 = vmatpush.bf16.msrb.mxu1 %v13454_v17 }
 0xe69   :  { %5472 = vmatpush.bf16.msrb.mxu1 %v13453_v19 }
 0xe6d   :  { %5473 = vmatpush.bf16.msrb.mxu1 %v13452_v56 }
 0xe71   :  { %5474 = vmatpush.bf16.msrb.mxu1 %v13451_v63  ;;  %v5390_v63 = vpop.f32.mrf.mxu0 }
 0xe75   :  { %5475 = vmatpush.bf16.msrb.mxu1 %v13450_v3 }
 0xe78   :  { %5476 = vmatmul.bf16.vlgmr.msrb.gmra.mxu1 %v15139_v30 }
 0xe88   :  { %5481 = vmatmul.bf16.gmra.mxu1 %v15152_v9 }
 0xec5   :  { %v5159_v20 = vpop.f32.mrf.mxu1 }
 0xec6   :  { %v5194_v6 = vsel %vm483_vm1, %v5159_v20, -inf }
 0xecd   :  { %v5161_v51 = vpop.f32.mrf.mxu1 }
 0xece   :  { %v5197_v36 = vsel %vm483_vm1, %v5161_v51, -inf }
 0xed5   :  { %v5189_v21 = vpop.f32.mrf.mxu1 }
 0xed6   :  { %v5200_v58 = vsel %vm483_vm1, %v5189_v21, -inf }
 0xed7   :  { %5201 = vmax.xlane.f32.xlu2 %v5200_v58 }
 0xedd   :  { %v5191_v12 = vpop.f32.mrf.mxu1 }
 0xede   :  { %v5203_v23 = vsel %vm483_vm1, %v5191_v12, -inf }
 0xedf   :  { %5204 = vmax.xlane.f32.xlu0 %v5203_v23 }
 0xee7   :  { %5195 = vmax.xlane.f32.xlu0 %v5194_v6 }
 0xef5   :  { %v5477_v18 = vpop.f32.mrf.mxu1 }
 0xef6   :  { %v5478_v37 = vadd.f32 %v13819_v24, %v5477_v18 }
 0xef8   :  { %v5580_v5 = vpack.c.bf16 %v5478_v37, %v5478_v37 }
 0xefa   :  { %v5591_v40 = vunpack.c.l.b16 %v5580_v5 }
 0xefd   :  { %v5479_v41 = vpop.f32.mrf.mxu1 }
 0xefe   :  { %v5480_v1 = vadd.f32 %v13819_v24, %v5479_v41 }
 0xf00   :  { %v5581_v42 = vpack.c.bf16 %v5480_v1, %v5480_v1 }
 0xf02   :  { %v5592_v10 = vunpack.c.l.b16 %v5581_v42 }
 0xf04   :  { %v5593_v28 = vpack.c.b16 %v5592_v10, %v5591_v40 }
 0xf05   :  { %v5482_v46 = vpop.f32.mrf.mxu1 }
 0xf06   :  { %v5598_v45 = vsel %vm432_vm0, %v5593_v28, 0  ;;  %v5483_v47 = vadd.f32 %v13819_v24, %v5482_v46 }
 0xf07   :  { %5607 = vmatpush.bf16.xpose.msrb.mxu3 %v5598_v45 }
 0xf08   :  { %v5582_v32 = vpack.c.bf16 %v5483_v47, %v5483_v47  ;;  %v13474_v47 = vld [vmem:[%s15926_s30 + $0x1b0] sm:$0xff] }
 0xf0a   :  { %v5621_v17 = vunpack.c.l.b16 %v5582_v32  ;;  %v13471_v32 = vld [vmem:[%s15926_s30 + $0x198] sm:$0xff] }
 0xf0d   :  { %v5484_v38 = vpop.f32.mrf.mxu1 }
 0xf0e   :  { %v5485_v44 = vadd.f32 %v13819_v24, %v5484_v38  ;;  %v5393_v24 = vpop.f32.mrf.mxu0 }
 0xf10   :  { %v5583_v57 = vpack.c.bf16 %v5485_v44, %v5485_v44 }
 0xf12   :  { %v5622_v7 = vunpack.c.l.b16 %v5583_v57  ;;  %v13472_v57 = vld [vmem:[%s15926_s30 + $0x1a0] sm:$0xff] }
 0xf14   :  { %v5623_v3 = vpack.c.b16 %v5622_v7, %v5621_v17 }
 0xf16   :  { %v5628_v23 = vsel %vm432_vm0, %v5623_v3, 0  ;;  %v5395_v40 = vpop.f32.mrf.mxu0 }
 0xf4a   :  { %v5202_v15 = vpop.xlane.xlu2 %5201 }
 0xf4b   :  { %v5208_v34 = vsub.f32 %v5189_v21, %v5202_v15 }
 0xf4d   :  { %v5214_v14 = vmul.f32 1.442695, %v5208_v34 }
 0xf4f   :  { %13916 = vpow2.f32 %v5214_v14 }
 0xf52   :  { %v5205_v11 = vpop.xlane.xlu0 %5204 }
 0xf53   :  { %v5209_v54 = vsub.f32 %v5191_v12, %v5205_v11  ;;  %v13818_v12 = vld [vmem:[%s15931_s14 + $0x5] ss:$0 sm:$0xff] }
 0xf54   :  { %v5391_v6 = vadd.f32 %v13818_v12, %v5390_v63  ;;  %v5389_v18 = vadd.f32 %v13818_v12, %v5388_v8  ;;  %v5396_v10 = vadd.f32 %v13818_v12, %v5395_v40  ;;  %v5394_v28 = vadd.f32 %v13818_v12, %v5393_v24  ;;  %v13475_v8 = vld [vmem:[%s15926_s30 + $0x1b8] sm:$0xff] }
 0xf55   :  { %v13917_v48 = vpop.eup %13916  ;;  %v5216_v16 = vmul.f32 1.442695, %v5209_v54  ;;  %v13465_v54 = vld [vmem:[%s15898_s8 + $0x178] sm:$0xff] }
 0xf56   :  { %v5224_v22 = vsel %vm483_vm1, %v13917_v48, 0.0  ;;  %v5577_v37 = vpack.c.bf16 %v5391_v6, %v5391_v6  ;;  %v5576_v41 = vpack.c.bf16 %v5389_v18, %v5389_v18  ;;  %v5579_v45 = vpack.c.bf16 %v5396_v10, %v5396_v10  ;;  %5557 = vmatpush.bf16.msrb.mxu2 %v13465_v54  ;;  %v13820_v18 = vld [vmem:[%s15899_s9 + $0x5] ss:$0 sm:$0xff] }
 0xf57   :  { %13918 = vpow2.f32 %v5216_v16  ;;  %5225 = vadd.xlane.f32.xlu1 %v5224_v22  ;;  %v5578_v15 = vpack.c.bf16 %v5394_v28, %v5394_v28  ;;  %v13463_v16 = vld [vmem:[%s15898_s8 + $0x168] sm:$0xff]  ;;  %v13462_v22 = vld [vmem:[%s15898_s8 + $0x160] sm:$0xff] }
 0xf58   :  { %v5587_v5 = vunpack.c.l.b16 %v5577_v37  ;;  %v5586_v1 = vunpack.c.l.b16 %v5576_v41  ;;  %v5617_v34 = vunpack.c.l.b16 %v5579_v45 }
 0xf59   :  { %v5616_v14 = vunpack.c.l.b16 %v5578_v15 }
 0xf5a   :  { %v5196_v31 = vpop.xlane.xlu0 %5195  ;;  %v5588_v42 = vpack.c.b16 %v5587_v5, %v5586_v1 }
 0xf5b   :  { %v5206_v35 = vsub.f32 %v5159_v20, %v5196_v31  ;;  %v5618_v11 = vpack.c.b16 %v5617_v34, %v5616_v14  ;;  %v13461_v31 = vld [vmem:[%s15898_s8 + $0x158] sm:$0xff] }
 0xf5d   :  { %v13919_v25 = vpop.eup %13918  ;;  %v5210_v2 = vmul.f32 1.442695, %v5206_v35  ;;  %v13460_v35 = vld [vmem:[%s15898_s8 + $0x150] sm:$0xff] }
 0xf5e   :  { %v5227_v59 = vsel %vm483_vm1, %v13919_v25, 0.0 }
 0xf5f   :  { %13920 = vpow2.f32 %v5210_v2  ;;  %5198 = vmax.xlane.f32.xlu1 %v5197_v36  ;;  %5228 = vadd.xlane.f32.xlu2 %v5227_v59  ;;  %v13458_v36 = vld [vmem:[%s15898_s8 + $0x140] sm:$0xff] }
 0xf65   :  { %v15208_v53 = vpop.eup %13920 }
 0xf66   :  { %v5218_v29 = vsel %vm483_vm1, %v15208_v53, 0.0 }
 0xf67   :  { %5219 = vadd.xlane.f32.xlu2 %v5218_v29 }
 0xfca   :  { %v5226_v61 = vpop.xlane.xlu1 %5225 }
 0xfcb   :  { %13922 = vrcp.f32 %v5226_v61 }
 0xfd1   :  { %v13923_v43 = vpop.eup %13922 }
 0xfd2   :  { %v5199_v62 = vpop.xlane.xlu1 %5198  ;;  %v5229_v50 = vpop.xlane.xlu2 %5228  ;;  %v5236_v60 = vmul.f32 %v13923_v43, %v13917_v48  ;;  %v13464_v48 = vld [vmem:[%s15898_s8 + $0x170] sm:$0xff] }
 0xfd3   :  { %v5207_v27 = vsub.f32 %v5161_v51, %v5199_v62  ;;  %13924 = vrcp.f32 %v5229_v50  ;;  %5558 = vmatpush.bf16.msrb.mxu2 %v13464_v48 }
 0xfd4   :  { %v5240_v39 = vpack.c.bf16 %v5236_v60, %v5236_v60 }
 0xfd5   :  { %v5212_v52 = vmul.f32 1.442695, %v5207_v27 }
 0xfd6   :  { %v5276_v20 = vunpack.c.l.b16 %v5240_v39  ;;  %v13469_v39 = vld [vmem:[%s15926_s30 + $0x188] sm:$0xff] }
 0xfd7   :  { %13926 = vpow2.f32 %v5212_v52  ;;  %5559 = vmatpush.bf16.msrb.mxu2 %v13463_v16 }
 0xfd9   :  { %v13925_v49 = vpop.eup %13924 }
 0xfda   :  { %v5237_v13 = vmul.f32 %v13925_v49, %v13919_v25  ;;  %v13459_v25 = vld [vmem:[%s15898_s8 + $0x148] sm:$0xff]  ;;  %v5220_v2 = vpop.xlane.xlu2 %5219  ;;  %v13470_v49 = vld [vmem:[%s15926_s30 + $0x190] sm:$0xff] }
 0xfdb   :  { %5560 = vmatpush.bf16.msrb.mxu2 %v13462_v22  ;;  %13928 = vrcp.f32 %v5220_v2 }
 0xfdc   :  { %v5241_v19 = vpack.c.bf16 %v5237_v13, %v5237_v13  ;;  %v13468_v13 = vld [vmem:[%s15926_s30 + $0x180] sm:$0xff] }
 0xfdd   :  { %v13927_v56 = vpop.eup %13926 }
 0xfde   :  { %v5277_v21 = vunpack.c.l.b16 %v5241_v19  ;;  %v5221_v51 = vsel %vm483_vm1, %v13927_v56, 0.0 }
 0xfdf   :  { %5222 = vadd.xlane.f32.xlu0 %v5221_v51  ;;  %5561 = vmatpush.bf16.msrb.mxu2 %v13461_v31  ;;  %v13440_v51 = vld [vmem:[%s15900_s10 + $0x40] sm:$0xff] }
 0xfe0   :  { %v5278_v58 = vpack.c.b16 %v5277_v21, %v5276_v20  ;;  %v13441_v21 = vld [vmem:[%s15900_s10 + $0x48] sm:$0xff] }
 0xfe1   :  { %v13929_v29 = vpop.eup %13928  ;;  %5820 = vmatpush.bf16.msra.mxu1 %v13441_v21 }
 0xfe2   :  { %11482 = vmatmul.msk.bf16.vlgmr.msra.gmra.mxu3 %vm483_vm1, %v5278_v58  ;;  %v5234_v46 = vmul.f32 %v13929_v29, %v15208_v53  ;;  %v13473_v53 = vld [vmem:[%s15926_s30 + $0x1a8] sm:$0xff] }
 0xfe3   :  { %5637 = vmatpush.bf16.xpose.msra.mxu3 %v5628_v23  ;;  %5562 = vmatpush.bf16.msrb.mxu2 %v13460_v35 }
 0xfe4   :  { %v5238_v38 = vpack.c.bf16 %v5234_v46, %v5234_v46 }
 0xfe5   :  { %5821 = vmatpush.bf16.msra.mxu1 %v13440_v51 }
 0xfe6   :  { %v5248_v50 = vunpack.c.l.b16 %v5238_v38 }
 0xfe7   :  { %5563 = vmatpush.bf16.msrb.mxu2 %v13459_v25 }
 0xfeb   :  { %5564 = vmatpush.bf16.msrb.mxu2 %v13458_v36 }
 0xff2   :  { %11634 = vmatmul.msk.bf16.vlgmr.msrb.gmra.mxu3 %vm432_vm0, %v5588_v42 }
0x1002   :  { %11635 = vmatmul.msk.bf16.vlgmr.msra.gmra.mxu3 %vm432_vm0, %v5618_v11 }
0x1052   :  { %v5223_v59 = vpop.xlane.xlu0 %5222 }
0x1053   :  { %13930 = vrcp.f32 %v5223_v59 }
0x1059   :  { %v13931_v61 = vpop.eup %13930 }
0x105a   :  { %v5235_v44 = vmul.f32 %v13931_v61, %v13927_v56 }
0x105c   :  { %v5239_v62 = vpack.c.bf16 %v5235_v44, %v5235_v44 }
0x105e   :  { %v5249_v43 = vunpack.c.l.b16 %v5239_v62 }
0x1060   :  { %v5250_v27 = vpack.c.b16 %v5249_v43, %v5248_v50 }
0x1062   :  { %11481 = vmatmul.msk.bf16.vlgmr.msra.gmra.mxu2 %vm483_vm1, %v5250_v27 }
0x1063   :  { %5903 = vmatpush.bf16.msra.mxu2 %v13475_v8 }
0x1065   :  { %v5297_v52 = vpop.f32.mrf.mxu3 }
0x1067   :  { %5904 = vmatpush.bf16.msra.mxu2 %v13474_v47  ;;  %v13483_v47 = vld [vmem:[%s15927_s23 + $0x1b8] sm:$0xff] }
0x106b   :  { %5905 = vmatpush.bf16.msra.mxu2 %v13473_v53  ;;  %v13481_v53 = vld [vmem:[%s15927_s23 + $0x1a8] sm:$0xff] }
0x106d   :  { %v5299_v60 = vpop.f32.mrf.mxu3 }
0x106e   :  { %v5308_v42 = vpack.c.bf16 %v5299_v60, %v5297_v52  ;;  %v13482_v52 = vld [vmem:[%s15927_s23 + $0x1b0] sm:$0xff]  ;;  %v13479_v60 = vld [vmem:[%s15927_s23 + $0x198] sm:$0xff] }
0x106f   :  { %5906 = vmatpush.bf16.msra.mxu2 %v13472_v57  ;;  %v13480_v57 = vld [vmem:[%s15927_s23 + $0x1a0] sm:$0xff] }
0x1072   :  { %5565 = vmatmul.bf16.vlgmr.msrb.gmra.mxu2 %v15139_v30 }
0x1073   :  { %5907 = vmatpush.bf16.msra.mxu2 %v13471_v32  ;;  %v13478_v32 = vld [vmem:[%s15927_s23 + $0x190] sm:$0xff] }
0x1075   :  { %v5609_v7 = vpop.f32.mrf.mxu3 }
0x1076   :  { %v5644_v20 = vsel %vm483_vm1, %v5609_v7, -inf }
0x1077   :  { %5908 = vmatpush.bf16.msra.mxu2 %v13470_v49  ;;  %v13477_v49 = vld [vmem:[%s15927_s23 + $0x188] sm:$0xff] }
0x107b   :  { %5909 = vmatpush.bf16.msra.mxu2 %v13469_v39  ;;  %v13476_v39 = vld [vmem:[%s15927_s23 + $0x180] sm:$0xff] }
0x107d   :  { %v15271_v17 = vpop.f32.mrf.mxu3 }
0x107e   :  { %v5647_v61 = vsel %vm483_vm1, %v15271_v17, -inf }
0x107f   :  { %5910 = vmatpush.bf16.msra.mxu2 %v13468_v13 }
0x1082   :  { %5570 = vmatmul.bf16.gmra.mxu2 %v15152_v9 }
0x1085   :  { %v5639_v19 = vpop.f32.mrf.mxu3 }
0x1086   :  { %v5650_v56 = vsel %vm483_vm1, %v5639_v19, -inf }
0x1087   :  { %5651 = vmax.xlane.f32.xlu1 %v5650_v56 }
0x108d   :  { %v5641_v63 = vpop.f32.mrf.mxu3 }
0x108e   :  { %v5653_v3 = vsel %vm483_vm1, %v5641_v63, -inf }
0x108f   :  { %5654 = vmax.xlane.f32.xlu2 %v5653_v3 }
0x1092   :  { %5911 = vmatmul.bf16.vlgmr.msra.gmra.mxu2 %v15139_v30 }
0x1097   :  { %5645 = vmax.xlane.f32.xlu2 %v5644_v20 }
0x10a2   :  { %5916 = vmatmul.bf16.gmra.mxu2 %v15152_v9 }
0x10e5   :  { %v5269_v58 = vpop.f32.mrf.mxu2 }
0x10ed   :  { %v5271_v12 = vpop.f32.mrf.mxu2 }
0x10ee   :  { %v5307_v23 = vpack.c.bf16 %v5271_v12, %v5269_v58 }
0x10f0   :  { %11660 = vmatmul.msk.bf16.vlgmr.msra.gmra.mxu1 %vm432_vm0, %v5307_v23 }
0x10f5   :  { %v5566_v6 = vpop.f32.mrf.mxu2 }
0x10f6   :  { %v5567_v24 = vadd.f32 %v13820_v18, %v5566_v6 }
0x10f8   :  { %v5692_v40 = vpack.c.bf16 %v5567_v24, %v5567_v24 }
0x10fa   :  { %v5652_v37 = vpop.xlane.xlu1 %5651  ;;  %v5703_v45 = vunpack.c.l.b16 %v5692_v40 }
0x10fb   :  { %v5658_v41 = vsub.f32 %v5639_v19, %v5652_v37 }
0x10fd   :  { %v5664_v5 = vmul.f32 1.442695, %v5658_v41  ;;  %v5568_v1 = vpop.f32.mrf.mxu2 }
0x10fe   :  { %v5569_v10 = vadd.f32 %v13820_v18, %v5568_v1 }
0x10ff   :  { %13932 = vpow2.f32 %v5664_v5 }
0x1100   :  { %v5693_v28 = vpack.c.bf16 %v5569_v10, %v5569_v10  ;;  %11661 = vmatmul.msk.bf16.gmra.mxu1 %vm432_vm0, %v5308_v42 }
0x1102   :  { %v5704_v15 = vunpack.c.l.b16 %v5693_v28  ;;  %v5655_v34 = vpop.xlane.xlu2 %5654 }
0x1103   :  { %v5659_v14 = vsub.f32 %v5641_v63, %v5655_v34 }
0x1104   :  { %v5705_v11 = vpack.c.b16 %v5704_v15, %v5703_v45 }
0x1105   :  { %v13933_v54 = vpop.eup %13932  ;;  %v5666_v48 = vmul.f32 1.442695, %v5659_v14  ;;  %v5571_v16 = vpop.f32.mrf.mxu2 }
0x1106   :  { %5717 = vmatpush.bf16.msrb.mxu0 %v5705_v11  ;;  %v5674_v22 = vsel %vm483_vm1, %v13933_v54, 0.0  ;;  %v5572_v31 = vadd.f32 %v13820_v18, %v5571_v16  ;;  %v13822_v16 = vld [vmem:[%s15897_s7 + $0x6] ss:$0 sm:$0xff] }
0x1107   :  { %13934 = vpow2.f32 %v5666_v48  ;;  %5675 = vadd.xlane.f32.xlu0 %v5674_v22 }
0x1108   :  { %v5694_v29 = vpack.c.bf16 %v5572_v31, %v5572_v31 }
0x110a   :  { %v5646_v35 = vpop.xlane.xlu2 %5645  ;;  %v5731_v62 = vunpack.c.l.b16 %v5694_v29 }
0x110b   :  { %v5656_v25 = vsub.f32 %v5609_v7, %v5646_v35 }
0x110d   :  { %v13935_v2 = vpop.eup %13934  ;;  %v5660_v36 = vmul.f32 1.442695, %v5656_v25  ;;  %v5573_v59 = vpop.f32.mrf.mxu2  ;;  %v13821_v25 = vld [vmem:[%s15931_s14 + $0x6] ss:$0 sm:$0xff] }
0x110e   :  { %v5574_v46 = vadd.f32 %v13820_v18, %v5573_v59  ;;  %v5677_v38 = vsel %vm483_vm1, %v13935_v2, 0.0 }
0x110f   :  { %13936 = vpow2.f32 %v5660_v36  ;;  %5648 = vmax.xlane.f32.xlu0 %v5647_v61  ;;  %5678 = vadd.xlane.f32.xlu1 %v5677_v38 }
0x1110   :  { %v5695_v44 = vpack.c.bf16 %v5574_v46, %v5574_v46 }
0x1112   :  { %v5732_v50 = vunpack.c.l.b16 %v5695_v44 }
0x1114   :  { %v5733_v43 = vpack.c.b16 %v5732_v50, %v5731_v62 }
0x1115   :  { %v13937_v8 = vpop.eup %13936 }
0x1116   :  { %5745 = vmatpush.bf16.msrb.mxu3 %v5733_v43  ;;  %v5668_v27 = vsel %vm483_vm1, %v13937_v8, 0.0 }
0x1117   :  { %5669 = vadd.xlane.f32.xlu1 %v5668_v27 }
0x111a   :  { %5992 = vmatpush.bf16.msra.mxu3 %v13483_v47 }
0x111e   :  { %5993 = vmatpush.bf16.msra.mxu3 %v13482_v52 }
0x1122   :  { %5994 = vmatpush.bf16.msra.mxu3 %v13481_v53 }
0x1126   :  { %5995 = vmatpush.bf16.msra.mxu3 %v13480_v57 }
0x112a   :  { %5996 = vmatpush.bf16.msra.mxu3 %v13479_v60 }
0x112e   :  { %5997 = vmatpush.bf16.msra.mxu3 %v13478_v32 }
0x1132   :  { %5998 = vmatpush.bf16.msra.mxu3 %v13477_v49 }
0x1136   :  { %5999 = vmatpush.bf16.msra.mxu3 %v13476_v39 }
0x117a   :  { %v5676_v7 = vpop.xlane.xlu0 %5675 }
0x117b   :  { %13938 = vrcp.f32 %v5676_v7 }
0x1181   :  { %v13939_v56 = vpop.eup %13938 }
0x1182   :  { %v5679_v13 = vpop.xlane.xlu1 %5678  ;;  %v5649_v19 = vpop.xlane.xlu0 %5648  ;;  %v5686_v20 = vmul.f32 %v13939_v56, %v13933_v54 }
0x1183   :  { %13940 = vrcp.f32 %v5679_v13  ;;  %v5657_v63 = vsub.f32 %v15271_v17, %v5649_v19  ;;  %v5912_v54 = vpop.f32.mrf.mxu2 }
0x1184   :  { %v5690_v51 = vpack.c.bf16 %v5686_v20, %v5686_v20  ;;  %v5913_v46 = vadd.f32 %v13821_v25, %v5912_v54  ;;  %v13500_v54 = vld [vmem:[%s15926_s30 + $0x1f0] sm:$0xff] }
0x1185   :  { %v5662_v3 = vmul.f32 1.442695, %v5657_v63 }
0x1186   :  { %v5726_v6 = vunpack.c.l.b16 %v5690_v51 }
0x1187   :  { %13942 = vpow2.f32 %v5662_v3 }
0x1189   :  { %v13941_v21 = vpop.eup %13940 }
0x118a   :  { %v5687_v58 = vmul.f32 %v13941_v21, %v13935_v2  ;;  %v5670_v17 = vpop.xlane.xlu1 %5669 }
0x118b   :  { %13944 = vrcp.f32 %v5670_v17  ;;  %v5914_v22 = vpop.f32.mrf.mxu2  ;;  %v13489_v17 = vld [vmem:[%s15898_s8 + $0x1a8] sm:$0xff] }
0x118c   :  { %v5691_v12 = vpack.c.bf16 %v5687_v58, %v5687_v58  ;;  %v5915_v59 = vadd.f32 %v13821_v25, %v5914_v22  ;;  %v13498_v22 = vld [vmem:[%s15926_s30 + $0x1e0] sm:$0xff] }
0x118d   :  { %v13943_v23 = vpop.eup %13942 }
0x118e   :  { %v5727_v18 = vunpack.c.l.b16 %v5691_v12  ;;  %v5671_v24 = vsel %vm483_vm1, %v13943_v23, 0.0  ;;  %v6101_v62 = vpack.c.bf16 %v5915_v59, %v5915_v59 }
0x118f   :  { %5672 = vadd.xlane.f32.xlu2 %v5671_v24  ;;  %v13491_v24 = vld [vmem:[%s15898_s8 + $0x1b8] sm:$0xff] }
0x1190   :  { %v5728_v37 = vpack.c.b16 %v5727_v18, %v5726_v6  ;;  %v6111_v47 = vunpack.c.l.b16 %v6101_v62  ;;  %v13467_v6 = vld [vmem:[%s15900_s10 + $0x58] sm:$0xff]  ;;  %v13466_v18 = vld [vmem:[%s15900_s10 + $0x50] sm:$0xff] }
0x1191   :  { %v13945_v5 = vpop.eup %13944  ;;  %5783 = vmatpush.bf16.msra.mxu0 %v13467_v6 }
0x1192   :  { %11637 = vmatmul.msk.bf16.vlgmr.msrb.gmra.mxu3 %vm483_vm1, %v5728_v37  ;;  %v5684_v1 = vmul.f32 %v13945_v5, %v13937_v8  ;;  %v6100_v8 = vpack.c.bf16 %v5913_v46, %v5913_v46  ;;  %v13490_v37 = vld [vmem:[%s15898_s8 + $0x1b0] sm:$0xff]  ;;  %v13487_v5 = vld [vmem:[%s15898_s8 + $0x198] sm:$0xff] }
0x1193   :  { %v5917_v44 = vpop.f32.mrf.mxu2 }
0x1194   :  { %v5688_v40 = vpack.c.bf16 %v5684_v1, %v5684_v1  ;;  %v6110_v52 = vunpack.c.l.b16 %v6100_v8  ;;  %v5918_v19 = vadd.f32 %v13821_v25, %v5917_v44  ;;  %v13486_v1 = vld [vmem:[%s15898_s8 + $0x190] sm:$0xff] }
0x1195   :  { %5784 = vmatpush.bf16.msra.mxu0 %v13466_v18 }
0x1196   :  { %v5698_v45 = vunpack.c.l.b16 %v5688_v40  ;;  %v6112_v57 = vpack.c.b16 %v6111_v47, %v6110_v52  ;;  %v6102_v21 = vpack.c.bf16 %v5918_v19, %v5918_v19  ;;  %v13485_v40 = vld [vmem:[%s15898_s8 + $0x188] sm:$0xff] }
0x1198   :  { %v6140_v12 = vunpack.c.l.b16 %v6102_v21 }
0x119b   :  { %v5919_v60 = vpop.f32.mrf.mxu2 }
0x119c   :  { %v5920_v39 = vadd.f32 %v13821_v25, %v5919_v60  ;;  %v13497_v25 = vld [vmem:[%s15926_s30 + $0x1d8] sm:$0xff] }
0x119e   :  { %v6103_v3 = vpack.c.bf16 %v5920_v39, %v5920_v39 }
0x11a0   :  { %v6141_v58 = vunpack.c.l.b16 %v6103_v3 }
0x11a2   :  { %6000 = vmatmul.bf16.vlgmr.msra.gmra.mxu3 %v15139_v30 }
0x11b2   :  { %6005 = vmatmul.bf16.gmra.mxu3 %v15152_v9 }
0x1202   :  { %v5673_v41 = vpop.xlane.xlu2 %5672 }
0x1203   :  { %13946 = vrcp.f32 %v5673_v41  ;;  %v13488_v41 = vld [vmem:[%s15898_s8 + $0x1a0] sm:$0xff] }
0x1209   :  { %v13947_v42 = vpop.eup %13946 }
0x120a   :  { %v5685_v10 = vmul.f32 %v13947_v42, %v13943_v23  ;;  %v6142_v23 = vpack.c.b16 %v6141_v58, %v6140_v12 }
0x120c   :  { %v5689_v28 = vpack.c.bf16 %v5685_v10, %v5685_v10  ;;  %v13484_v10 = vld [vmem:[%s15898_s8 + $0x180] sm:$0xff] }
0x120e   :  { %v5699_v15 = vunpack.c.l.b16 %v5689_v28  ;;  %v15369_v28 = vpop.f32.mrf.mxu1 }
0x1210   :  { %v5700_v34 = vpack.c.b16 %v5699_v15, %v5698_v45 }
0x1212   :  { %11636 = vmatmul.msk.bf16.vlgmr.msrb.gmra.mxu0 %vm483_vm1, %v5700_v34  ;;  %v13501_v34 = vld [vmem:[%s15926_s30 + $0x1f8] sm:$0xff] }
0x1213   :  { %6081 = vmatpush.bf16.msrb.mxu0 %v13491_v24 }
0x1215   :  { %v15325_v14 = vpop.f32.mrf.mxu3 }
0x1217   :  { %6082 = vmatpush.bf16.msrb.mxu0 %v13490_v37 }
0x121b   :  { %6083 = vmatpush.bf16.msrb.mxu0 %v13489_v17 }
0x121d   :  { %v15327_v11 = vpop.f32.mrf.mxu3 }
0x121f   :  { %6084 = vmatpush.bf16.msrb.mxu0 %v13488_v41 }
0x1223   :  { %6085 = vmatpush.bf16.msrb.mxu0 %v13487_v5 }
0x1225   :  { %v6001_v48 = vpop.f32.mrf.mxu3 }
0x1226   :  { %v6002_v31 = vadd.f32 %v13822_v16, %v6001_v48  ;;  %v15378_v48 = vpop.f32.mrf.mxu1 }
0x1227   :  { %6086 = vmatpush.bf16.msrb.mxu0 %v13486_v1 }
0x1228   :  { %v6104_v2 = vpack.c.bf16 %v6002_v31, %v6002_v31  ;;  %v5758_v31 = vpack.c.bf16 %v15327_v11, %v15325_v14  ;;  %v13494_v11 = vld [vmem:[%s15926_s30 + $0x1c0] sm:$0xff] }
0x122a   :  { %v6115_v61 = vunpack.c.l.b16 %v6104_v2  ;;  %v13496_v2 = vld [vmem:[%s15926_s30 + $0x1d0] sm:$0xff] }
0x122b   :  { %6087 = vmatpush.bf16.msrb.mxu0 %v13485_v40 }
0x122d   :  { %v6003_v35 = vpop.f32.mrf.mxu3 }
0x122e   :  { %v6004_v36 = vadd.f32 %v13822_v16, %v6003_v35  ;;  %v15388_v35 = vpop.f32.mrf.mxu1 }
0x122f   :  { %6088 = vmatpush.bf16.msrb.mxu0 %v13484_v10 }
0x1230   :  { %v6105_v29 = vpack.c.bf16 %v6004_v36, %v6004_v36  ;;  %v13495_v36 = vld [vmem:[%s15926_s30 + $0x1c8] sm:$0xff] }
0x1232   :  { %v6116_v38 = vunpack.c.l.b16 %v6105_v29 }
0x1234   :  { %v6117_v50 = vpack.c.b16 %v6116_v38, %v6115_v61 }
0x1235   :  { %v6006_v43 = vpop.f32.mrf.mxu3 }
0x1236   :  { %v6122_v27 = vsel %vm432_vm0, %v6117_v50, 0  ;;  %v6007_v53 = vadd.f32 %v13822_v16, %v6006_v43  ;;  %v15400_v14 = vpop.f32.mrf.mxu1 }
0x1237   :  { %6131 = vmatpush.bf16.xpose.msrb.mxu1 %v6122_v27 }
0x1238   :  { %v6106_v49 = vpack.c.bf16 %v6007_v53, %v6007_v53 }
0x123a   :  { %v6145_v56 = vunpack.c.l.b16 %v6106_v49 }
0x123d   :  { %v6008_v32 = vpop.f32.mrf.mxu3 }
0x123e   :  { %v6009_v7 = vadd.f32 %v13822_v16, %v6008_v32  ;;  %11809 = vmatmul.msk.bf16.vlgmr.msrb.gmra.mxu1 %vm432_vm0, %v6112_v57  ;;  %v13499_v16 = vld [vmem:[%s15926_s30 + $0x1e8] sm:$0xff]  ;;  %v13823_v32 = vld [vmem:[%s15899_s9 + $0x6] ss:$0 sm:$0xff] }
0x1240   :  { %v6107_v13 = vpack.c.bf16 %v6009_v7, %v6009_v7 }
0x1242   :  { %v6146_v63 = vunpack.c.l.b16 %v6107_v13 }
0x1244   :  { %v6147_v20 = vpack.c.b16 %v6146_v63, %v6145_v56 }
0x1246   :  { %v6152_v51 = vsel %vm432_vm0, %v6147_v20, 0 }
0x1247   :  { %6161 = vmatpush.bf16.xpose.msrb.mxu2 %v6152_v51 }
0x124e   :  { %11810 = vmatmul.msk.bf16.vlgmr.msrb.gmra.mxu2 %vm432_vm0, %v6142_v23 }
0x128f   :  { %v5719_v42 = vpop.f32.mrf.mxu0 }
0x1297   :  { %v5721_v45 = vpop.f32.mrf.mxu0 }
0x1298   :  { %v5757_v15 = vpack.c.bf16 %v5721_v45, %v5719_v42 }
0x129a   :  { %11650 = vmatmul.msk.bf16.vlgmr.msra.gmra.mxu0 %vm432_vm0, %v5757_v15 }
0x129b   :  { %6394 = vmatpush.bf16.msra.mxu0 %v13501_v34 }
0x129f   :  { %6395 = vmatpush.bf16.msra.mxu0 %v13500_v54 }
0x12a3   :  { %6396 = vmatpush.bf16.msra.mxu0 %v13499_v16 }
0x12a7   :  { %6397 = vmatpush.bf16.msra.mxu0 %v13498_v22 }
0x12aa   :  { %11651 = vmatmul.msk.bf16.gmra.mxu0 %vm432_vm0, %v5758_v31 }
0x12ab   :  { %6398 = vmatpush.bf16.msra.mxu0 %v13497_v25 }
0x12af   :  { %6399 = vmatpush.bf16.msra.mxu0 %v13496_v2 }
0x12b3   :  { %6400 = vmatpush.bf16.msra.mxu0 %v13495_v36  ;;  %v13509_v36 = vld [vmem:[%s15927_s23 + $0x1f8] sm:$0xff] }
0x12b7   :  { %6401 = vmatpush.bf16.msra.mxu0 %v13494_v11  ;;  %v13508_v11 = vld [vmem:[%s15927_s23 + $0x1f0] sm:$0xff] }
0x12ba   :  { %6089 = vmatmul.bf16.vlgmr.msrb.gmra.mxu0 %v15139_v30 }
0x12bb   :  { %v6133_v59 = vpop.f32.mrf.mxu1 }
0x12bc   :  { %v6168_v29 = vsel %vm483_vm1, %v6133_v59, -inf }
0x12bd   :  { %6169 = vmax.xlane.f32.xlu0 %v6168_v29  ;;  %v13506_v29 = vld [vmem:[%s15927_s23 + $0x1e0] sm:$0xff] }
0x12c3   :  { %v6135_v46 = vpop.f32.mrf.mxu1 }
0x12c4   :  { %v6171_v61 = vsel %vm483_vm1, %v6135_v46, -inf }
0x12c5   :  { %6172 = vmax.xlane.f32.xlu1 %v6171_v61  ;;  %v13504_v61 = vld [vmem:[%s15927_s23 + $0x1d0] sm:$0xff] }
0x12ca   :  { %6094 = vmatmul.bf16.gmra.mxu0 %v15152_v9 }
0x12d1   :  { %v6163_v38 = vpop.f32.mrf.mxu2 }
0x12d2   :  { %v6174_v44 = vsel %vm483_vm1, %v6163_v38, -inf }
0x12d3   :  { %6175 = vmax.xlane.f32.xlu2 %v6174_v44 }
0x12d9   :  { %v6165_v62 = vpop.f32.mrf.mxu2 }
0x12da   :  { %6402 = vmatmul.bf16.vlgmr.msra.gmra.mxu0 %v15139_v30  ;;  %v6177_v50 = vsel %vm483_vm1, %v6165_v62, -inf }
0x12db   :  { %6178 = vmax.xlane.f32.xlu0 %v6177_v50  ;;  %v13516_v50 = vld [vmem:[%s15898_s8 + $0x1f0] sm:$0xff] }
0x12ea   :  { %6407 = vmatmul.bf16.gmra.mxu0 %v15152_v9 }
0x1317   :  { %v15413_v43 = vpop.f32.mrf.mxu0 }
0x131f   :  { %v15415_v8 = vpop.f32.mrf.mxu0 }
0x1327   :  { %v15417_v27 = vpop.f32.mrf.mxu0 }
0x132f   :  { %v15419_v47 = vpop.f32.mrf.mxu0 }
0x1330   :  { %v6170_v52 = vpop.xlane.xlu0 %6169 }
0x1331   :  { %v6180_v53 = vsub.f32 %v6133_v59, %v6170_v52  ;;  %v13507_v59 = vld [vmem:[%s15927_s23 + $0x1e8] sm:$0xff]  ;;  %v13502_v52 = vld [vmem:[%s15927_s23 + $0x1c0] sm:$0xff] }
0x1333   :  { %v6184_v57 = vmul.f32 1.442695, %v6180_v53  ;;  %v13515_v53 = vld [vmem:[%s15898_s8 + $0x1e8] sm:$0xff] }
0x1335   :  { %13948 = vpow2.f32 %v6184_v57 }
0x1337   :  { %v6090_v60 = vpop.f32.mrf.mxu0 }
0x1338   :  { %v6173_v49 = vpop.xlane.xlu1 %6172  ;;  %v6091_v19 = vadd.f32 %v13823_v32, %v6090_v60 }
0x1339   :  { %v6181_v7 = vsub.f32 %v6135_v46, %v6173_v49  ;;  %v13505_v46 = vld [vmem:[%s15927_s23 + $0x1d8] sm:$0xff] }
0x133a   :  { %v6216_v3 = vpack.c.bf16 %v6091_v19, %v6091_v19 }
0x133b   :  { %v15424_v39 = vpop.eup %13948  ;;  %v6186_v13 = vmul.f32 1.442695, %v6181_v7  ;;  %v13513_v7 = vld [vmem:[%s15898_s8 + $0x1d8] sm:$0xff] }
0x133c   :  { %v6192_v56 = vsel %vm483_vm1, %v15424_v39, 0.0  ;;  %v6227_v58 = vunpack.c.l.b16 %v6216_v3 }
0x133d   :  { %13950 = vpow2.f32 %v6186_v13  ;;  %6193 = vadd.xlane.f32.xlu1 %v6192_v56 }
0x133f   :  { %v6092_v63 = vpop.f32.mrf.mxu0 }
0x1340   :  { %v6093_v20 = vadd.f32 %v13823_v32, %v6092_v63  ;;  %v13512_v63 = vld [vmem:[%s15898_s8 + $0x1d0] sm:$0xff] }
0x1342   :  { %v6217_v21 = vpack.c.bf16 %v6093_v20, %v6093_v20 }
0x1343   :  { %v15428_v51 = vpop.eup %13950 }
0x1344   :  { %v6228_v12 = vunpack.c.l.b16 %v6217_v21  ;;  %v6195_v23 = vsel %vm483_vm1, %v15428_v51, 0.0 }
0x1345   :  { %6196 = vadd.xlane.f32.xlu2 %v6195_v23 }
0x1346   :  { %v6229_v6 = vpack.c.b16 %v6228_v12, %v6227_v58  ;;  %v6176_v18 = vpop.xlane.xlu2 %6175 }
0x1347   :  { %v6182_v24 = vsub.f32 %v6163_v38, %v6176_v18  ;;  %v6095_v37 = vpop.f32.mrf.mxu0  ;;  %v13517_v38 = vld [vmem:[%s15898_s8 + $0x1f8] sm:$0xff] }
0x1348   :  { %6241 = vmatpush.bf16.msra.mxu1 %v6229_v6  ;;  %v6096_v41 = vadd.f32 %v13823_v32, %v6095_v37 }
0x1349   :  { %v6188_v17 = vmul.f32 1.442695, %v6182_v24 }
0x134a   :  { %v6218_v40 = vpack.c.bf16 %v6096_v41, %v6096_v41 }
0x134b   :  { %13952 = vpow2.f32 %v6188_v17 }
0x134c   :  { %v6255_v16 = vunpack.c.l.b16 %v6218_v40  ;;  %6483 = vmatpush.bf16.msrb.mxu1 %v13509_v36  ;;  %v13493_v40 = vld [vmem:[%s15900_s10 + $0x68] sm:$0xff] }
0x134d   :  { %6307 = vmatpush.bf16.msrb.mxu3 %v13493_v40 }
0x134e   :  { %v6179_v5 = vpop.xlane.xlu0 %6178 }
0x134f   :  { %v6183_v1 = vsub.f32 %v6165_v62, %v6179_v5  ;;  %v6097_v42 = vpop.f32.mrf.mxu0  ;;  %v13503_v62 = vld [vmem:[%s15927_s23 + $0x1c8] sm:$0xff] }
0x1350   :  { %v6098_v10 = vadd.f32 %v13823_v32, %v6097_v42  ;;  %6484 = vmatpush.bf16.msrb.mxu1 %v13508_v11  ;;  %v13514_v32 = vld [vmem:[%s15898_s8 + $0x1e0] sm:$0xff] }
0x1351   :  { %v15432_v45 = vpop.eup %13952  ;;  %v6190_v15 = vmul.f32 1.442695, %v6183_v1 }
0x1352   :  { %v6219_v34 = vpack.c.bf16 %v6098_v10, %v6098_v10  ;;  %v6198_v54 = vsel %vm483_vm1, %v15432_v45, 0.0  ;;  %v13492_v10 = vld [vmem:[%s15900_s10 + $0x60] sm:$0xff] }
0x1353   :  { %13954 = vpow2.f32 %v6190_v15  ;;  %6199 = vadd.xlane.f32.xlu0 %v6198_v54  ;;  %6308 = vmatpush.bf16.msrb.mxu3 %v13492_v10 }
0x1354   :  { %v6256_v22 = vunpack.c.l.b16 %v6219_v34  ;;  %6485 = vmatpush.bf16.msrb.mxu1 %v13507_v59 }
0x1356   :  { %v6257_v31 = vpack.c.b16 %v6256_v22, %v6255_v16 }
0x1357   :  { %v6403_v54 = vpop.f32.mrf.mxu0 }
0x1358   :  { %6269 = vmatpush.bf16.msra.mxu2 %v6257_v31  ;;  %6486 = vmatpush.bf16.msrb.mxu1 %v13506_v29 }
0x1359   :  { %v13955_v25 = vpop.eup %13954 }
0x135a   :  { %v6201_v2 = vsel %vm483_vm1, %v13955_v25, 0.0 }
0x135b   :  { %6202 = vadd.xlane.f32.xlu1 %v6201_v2 }
0x135c   :  { %6487 = vmatpush.bf16.msrb.mxu1 %v13505_v46  ;;  %6572 = vmatpush.bf16.msrb.mxu2 %v13517_v38 }
0x1360   :  { %6488 = vmatpush.bf16.msrb.mxu1 %v13504_v61  ;;  %6573 = vmatpush.bf16.msrb.mxu2 %v13516_v50 }
0x1364   :  { %6489 = vmatpush.bf16.msrb.mxu1 %v13503_v62  ;;  %6574 = vmatpush.bf16.msrb.mxu2 %v13515_v53  ;;  %v13824_v53 = vld [vmem:[%s15931_s14 + $0x7] ss:$0 sm:$0xff] }
0x1368   :  { %6490 = vmatpush.bf16.msrb.mxu1 %v13502_v52  ;;  %6575 = vmatpush.bf16.msrb.mxu2 %v13514_v32 }
0x136c   :  { %6576 = vmatpush.bf16.msrb.mxu2 %v13513_v7 }
0x1370   :  { %6577 = vmatpush.bf16.msrb.mxu2 %v13512_v63 }
0x13b0   :  { %v6194_v44 = vpop.xlane.xlu1 %6193 }
0x13b1   :  { %13956 = vrcp.f32 %v6194_v44 }
0x13b7   :  { %v13957_v60 = vpop.eup %13956 }
0x13b8   :  { %v6197_v57 = vpop.xlane.xlu2 %6196  ;;  %v6208_v49 = vmul.f32 %v13957_v60, %v15424_v39  ;;  %v13511_v39 = vld [vmem:[%s15898_s8 + $0x1c8] sm:$0xff] }
0x13b9   :  { %13958 = vrcp.f32 %v6197_v57  ;;  %6578 = vmatpush.bf16.msrb.mxu2 %v13511_v39 }
0x13ba   :  { %v6212_v19 = vpack.c.bf16 %v6208_v49, %v6208_v49 }
0x13bc   :  { %v6222_v20 = vunpack.c.l.b16 %v6212_v19 }
0x13bf   :  { %v13959_v13 = vpop.eup %13958 }
0x13c0   :  { %v6209_v56 = vmul.f32 %v13959_v13, %v15428_v51  ;;  %v13510_v51 = vld [vmem:[%s15898_s8 + $0x1c0] sm:$0xff]  ;;  %v6404_v13 = vadd.f32 %v13824_v53, %v6403_v54 }
0x13c1   :  { %6579 = vmatpush.bf16.msrb.mxu2 %v13510_v51 }
0x13c2   :  { %v6213_v3 = vpack.c.bf16 %v6209_v56, %v6209_v56 }
0x13c4   :  { %v6223_v21 = vunpack.c.l.b16 %v6213_v3 }
0x13c6   :  { %v6224_v58 = vpack.c.b16 %v6223_v21, %v6222_v20  ;;  %v6200_v12 = vpop.xlane.xlu0 %6199 }
0x13c7   :  { %13960 = vrcp.f32 %v6200_v12  ;;  %v6591_v12 = vpack.c.bf16 %v6404_v13, %v6404_v13 }
0x13c8   :  { %11811 = vmatmul.msk.bf16.vlgmr.msra.gmra.mxu1 %vm483_vm1, %v6224_v58  ;;  %v13826_v58 = vld [vmem:[%s15899_s9 + $0x7] ss:$0 sm:$0xff] }
0x13cd   :  { %v13961_v6 = vpop.eup %13960 }
0x13ce   :  { %v6203_v23 = vpop.xlane.xlu1 %6202  ;;  %v6210_v18 = vmul.f32 %v13961_v6, %v15432_v45 }
0x13cf   :  { %13962 = vrcp.f32 %v6203_v23 }
0x13d0   :  { %v6214_v37 = vpack.c.bf16 %v6210_v18, %v6210_v18 }
0x13d2   :  { %v6250_v5 = vunpack.c.l.b16 %v6214_v37 }
0x13d5   :  { %v13963_v24 = vpop.eup %13962 }
0x13d6   :  { %v6211_v17 = vmul.f32 %v13963_v24, %v13955_v25 }
0x13d8   :  { %v6215_v41 = vpack.c.bf16 %v6211_v17, %v6211_v17  ;;  %6491 = vmatmul.bf16.vlgmr.msrb.gmra.mxu1 %v15139_v30  ;;  %v6601_v17 = vunpack.c.l.b16 %v6591_v12 }
0x13da   :  { %v6251_v1 = vunpack.c.l.b16 %v6215_v41 }
0x13dc   :  { %v6252_v42 = vpack.c.b16 %v6251_v1, %v6250_v5 }
0x13de   :  { %11812 = vmatmul.msk.bf16.vlgmr.msra.gmra.mxu2 %vm483_vm1, %v6252_v42 }
0x13e8   :  { %6496 = vmatmul.bf16.gmra.mxu1 %v15152_v9 }
0x13ee   :  { %6580 = vmatmul.bf16.vlgmr.msrb.gmra.mxu2 %v15139_v30  ;;  %v13825_v30 = vld [vmem:[%s15897_s7 + $0x7] ss:$0 sm:$0xff] }
0x13fe   :  { %6585 = vmatmul.bf16.gmra.mxu2 %v15152_v9  ;;  %v6405_v9 = vpop.f32.mrf.mxu0 }
0x13ff   :  { %v6406_v32 = vadd.f32 %v13824_v53, %v6405_v9 }
0x1401   :  { %v6592_v3 = vpack.c.bf16 %v6406_v32, %v6406_v32 }
0x1403   :  { %v6602_v6 = vunpack.c.l.b16 %v6592_v3 }
0x1405   :  { %v6603_v1 = vpack.c.b16 %v6602_v6, %v6601_v17 }
0x1406   :  { %v6408_v46 = vpop.f32.mrf.mxu0 }
0x1407   :  { %v6409_v20 = vadd.f32 %v13824_v53, %v6408_v46 }
0x1409   :  { %v6593_v18 = vpack.c.bf16 %v6409_v20, %v6409_v20 }
0x140b   :  { %v6631_v42 = vunpack.c.l.b16 %v6593_v18 }
0x140e   :  { %v6410_v57 = vpop.f32.mrf.mxu0 }
0x140f   :  { %v6411_v19 = vadd.f32 %v13824_v53, %v6410_v57 }
0x1411   :  { %v6594_v51 = vpack.c.bf16 %v6411_v19, %v6411_v19 }
0x1413   :  { %v6632_v41 = vunpack.c.l.b16 %v6594_v51 }
0x1445   :  { %v6243_v45 = vpop.f32.mrf.mxu1 }
0x144d   :  { %v6245_v15 = vpop.f32.mrf.mxu1 }
0x144e   :  { %v6281_v34 = vpack.c.bf16 %v6245_v15, %v6243_v45  ;;  %v6633_v45 = vpack.c.b16 %v6632_v41, %v6631_v42 }
0x1450   :  { %11825 = vmatmul.msk.bf16.vlgmr.msrb.gmra.mxu3 %vm432_vm0, %v6281_v34 }
0x1455   :  { %v6492_v16 = vpop.f32.mrf.mxu1 }
0x1456   :  { %v6493_v22 = vadd.f32 %v13825_v30, %v6492_v16 }
0x1458   :  { %v6595_v25 = vpack.c.bf16 %v6493_v22, %v6493_v22 }
0x145a   :  { %v6606_v59 = vunpack.c.l.b16 %v6595_v25 }
0x145d   :  { %v6494_v31 = vpop.f32.mrf.mxu1 }
0x145e   :  { %v6495_v2 = vadd.f32 %v13825_v30, %v6494_v31 }
0x1460   :  { %v6596_v36 = vpack.c.bf16 %v6495_v2, %v6495_v2 }
0x1461   :  { %v6271_v11 = vpop.f32.mrf.mxu2 }
0x1462   :  { %v6607_v29 = vunpack.c.l.b16 %v6596_v36 }
0x1464   :  { %v6608_v61 = vpack.c.b16 %v6607_v29, %v6606_v59  ;;  %v5824_v29 = vadd.f32 %v15369_v28, %v15413_v43 }
0x1465   :  { %v6497_v38 = vpop.f32.mrf.mxu1 }
0x1466   :  { %v6613_v44 = vsel %vm432_vm0, %v6608_v61, 0  ;;  %v6498_v50 = vadd.f32 %v13825_v30, %v6497_v38 }
0x1467   :  { %6622 = vmatpush.bf16.xpose.msra.mxu3 %v6613_v44  ;;  %v5829_v44 = vadd.f32 %v15388_v35, %v15417_v27 }
0x1468   :  { %v6597_v49 = vpack.c.bf16 %v6498_v50, %v6498_v50 }
0x1469   :  { %v6273_v62 = vpop.f32.mrf.mxu2 }
0x146a   :  { %v6282_v52 = vpack.c.bf16 %v6273_v62, %v6271_v11  ;;  %v6636_v21 = vunpack.c.l.b16 %v6597_v49 }
0x146c   :  { %11826 = vmatmul.msk.bf16.gmra.mxu3 %vm432_vm0, %v6282_v52 }
0x146d   :  { %v6499_v60 = vpop.f32.mrf.mxu1 }
0x146e   :  { %v6500_v7 = vadd.f32 %v13825_v30, %v6499_v60 }
0x1470   :  { %v6598_v56 = vpack.c.bf16 %v6500_v7, %v6500_v7 }
0x1471   :  { %v6581_v63 = vpop.f32.mrf.mxu2 }
0x1472   :  { %v6637_v39 = vunpack.c.l.b16 %v6598_v56  ;;  %v6582_v24 = vadd.f32 %v13826_v58, %v6581_v63 }
0x1474   :  { %v6638_v23 = vpack.c.b16 %v6637_v39, %v6636_v21  ;;  %v6707_v40 = vpack.c.bf16 %v6582_v24, %v6582_v24 }
0x1476   :  { %v6643_v37 = vsel %vm432_vm0, %v6638_v23, 0  ;;  %v6718_v34 = vunpack.c.l.b16 %v6707_v40 }
0x1477   :  { %6652 = vmatpush.bf16.xpose.msrb.mxu0 %v6643_v37 }
0x1479   :  { %v6583_v5 = vpop.f32.mrf.mxu2 }
0x147a   :  { %v6584_v10 = vadd.f32 %v13826_v58, %v6583_v5 }
0x147c   :  { %v6708_v15 = vpack.c.bf16 %v6584_v10, %v6584_v10  ;;  %11974 = vmatmul.msk.bf16.vlgmr.msra.gmra.mxu3 %vm432_vm0, %v6603_v1 }
0x147e   :  { %v6719_v54 = vunpack.c.l.b16 %v6708_v15  ;;  %11975 = vmatmul.msk.bf16.vlgmr.msrb.gmra.mxu0 %vm432_vm0, %v6633_v45 }
0x1480   :  { %v6720_v16 = vpack.c.b16 %v6719_v54, %v6718_v34 }
0x1481   :  { %v6586_v30 = vpop.f32.mrf.mxu2 }
0x1482   :  { %6732 = vmatpush.bf16.msrb.mxu3 %v6720_v16  ;;  %v6587_v9 = vadd.f32 %v13826_v58, %v6586_v30 }
0x1484   :  { %v6709_v31 = vpack.c.bf16 %v6587_v9, %v6587_v9 }
0x1486   :  { %v6746_v36 = vunpack.c.l.b16 %v6709_v31 }
0x1489   :  { %v6588_v22 = vpop.f32.mrf.mxu2 }
0x148a   :  { %v6589_v25 = vadd.f32 %v13826_v58, %v6588_v22 }
0x148c   :  { %v6710_v2 = vpack.c.bf16 %v6589_v25, %v6589_v25 }
0x148e   :  { %v6747_v11 = vunpack.c.l.b16 %v6710_v2 }
0x1490   :  { %v6748_v59 = vpack.c.b16 %v6747_v11, %v6746_v36 }
0x1492   :  { %6760 = vmatpush.bf16.msra.mxu0 %v6748_v59 }
0x14d3   :  { %v6310_v46 = vpop.f32.mrf.mxu3 }
0x14d4   :  { %v15517_v61 = vadd.f32 %v6310_v46, %v5824_v29 }
0x14db   :  { %v15519_v38 = vpop.f32.mrf.mxu3 }
0x14ef   :  { %v6315_v62 = vpop.f32.mrf.mxu3 }
0x14f0   :  { %v15523_v50 = vadd.f32 %v6315_v62, %v5829_v44  ;;  %v13519_v62 = vld [vmem:[%s15900_s10 + $0x78] sm:$0xff] }
0x14f1   :  { %6798 = vmatpush.bf16.msra.mxu1 %v13519_v62  ;;  %v13625_v62 = vld [vmem:[#allocation2 + $0x744] sm:$0xf0] }
0x14f7   :  { %v15525_v52 = vpop.f32.mrf.mxu3 }
0x14fb   :  { %v6654_v53 = vpop.f32.mrf.mxu0 }
0x14fc   :  { %v6665_v57 = vsel %vm483_vm1, %v6654_v53, -inf }
0x14fd   :  { %6666 = vmax.xlane.f32.xlu1 %v6665_v57 }
0x14ff   :  { %v6624_v60 = vpop.f32.mrf.mxu3 }
0x1500   :  { %v6659_v28 = vsel %vm483_vm1, %v6624_v60, -inf }
0x1501   :  { %6660 = vmax.xlane.f32.xlu2 %v6659_v28 }
0x1503   :  { %v6656_v43 = vpop.f32.mrf.mxu0 }
0x1504   :  { %v6668_v49 = vsel %vm483_vm1, %v6656_v43, -inf }
0x1507   :  { %v6626_v32 = vpop.f32.mrf.mxu3 }
0x1508   :  { %v6662_v7 = vsel %vm483_vm1, %v6626_v32, -inf }
0x1509   :  { %6669 = vmax.xlane.f32.xlu2 %v6668_v49  ;;  %6663 = vmax.xlane.f32.xlu0 %v6662_v7  ;;  %v13827_v7 = vld [vmem:[%s15901_s11 + $0x1] ss:$0 sm:$0xff] }
0x1570   :  { %v6667_v35 = vpop.xlane.xlu1 %6666 }
0x1571   :  { %v6673_v27 = vsub.f32 %v6654_v53, %v6667_v35  ;;  %v13518_v53 = vld [vmem:[%s15900_s10 + $0x70] sm:$0xff] }
0x1572   :  { %6799 = vmatpush.bf16.msra.mxu1 %v13518_v53 }
0x1573   :  { %v6679_v13 = vmul.f32 1.442695, %v6673_v27 }
0x1574   :  { %v6661_v19 = vpop.xlane.xlu2 %6660 }
0x1575   :  { %13964 = vpow2.f32 %v6679_v13  ;;  %v6671_v56 = vsub.f32 %v6624_v60, %v6661_v19  ;;  %v5826_v19 = vadd.f32 %v15378_v48, %v15415_v8 }
0x1577   :  { %v6675_v63 = vmul.f32 1.442695, %v6671_v56 }
0x1579   :  { %13966 = vpow2.f32 %v6675_v63  ;;  %v6321_v63 = vadd.f32 %v15519_v38, %v5826_v19  ;;  %v13609_v19 = vld [vmem:[#allocation2 + $0x6c4] sm:$0xf0] }
0x157b   :  { %v13965_v3 = vpop.eup %13964 }
0x157c   :  { %v6670_v20 = vpop.xlane.xlu2 %6669  ;;  %v6664_v21 = vpop.xlane.xlu0 %6663  ;;  %v6689_v39 = vsel %vm483_vm1, %v13965_v3, 0.0 }
0x157d   :  { %v6674_v58 = vsub.f32 %v6656_v43, %v6670_v20  ;;  %v6672_v12 = vsub.f32 %v6626_v32, %v6664_v21  ;;  %6690 = vadd.xlane.f32.xlu2 %v6689_v39 }
0x157f   :  { %v13967_v51 = vpop.eup %13966  ;;  %v6681_v23 = vmul.f32 1.442695, %v6674_v58  ;;  %v6677_v6 = vmul.f32 1.442695, %v6672_v12 }
0x1580   :  { %v6683_v18 = vsel %vm483_vm1, %v13967_v51, 0.0 }
0x1581   :  { %13968 = vpow2.f32 %v6681_v23  ;;  %6684 = vadd.xlane.f32.xlu0 %v6683_v18 }
0x1582   :  { %13970 = vpow2.f32 %v6677_v6 }
0x1587   :  { %v13969_v24 = vpop.eup %13968 }
0x1588   :  { %v13971_v37 = vpop.eup %13970  ;;  %v6692_v17 = vsel %vm483_vm1, %v13969_v24, 0.0 }
0x1589   :  { %6693 = vadd.xlane.f32.xlu0 %v6692_v17  ;;  %v6686_v41 = vsel %vm483_vm1, %v13971_v37, 0.0 }
0x158a   :  { %6687 = vadd.xlane.f32.xlu1 %v6686_v41 }
0x15f0   :  { %v6691_v5 = vpop.xlane.xlu2 %6690 }
0x15f1   :  { %13972 = vrcp.f32 %v6691_v5 }
0x15f4   :  { %v6685_v1 = vpop.xlane.xlu0 %6684 }
0x15f5   :  { %13974 = vrcp.f32 %v6685_v1 }
0x15f7   :  { %v13973_v40 = vpop.eup %13972 }
0x15f8   :  { %v6701_v15 = vmul.f32 %v13973_v40, %v13965_v3 }
0x15fa   :  { %v6705_v30 = vpack.c.bf16 %v6701_v15, %v6701_v15  ;;  %v13632_v15 = vld [vmem:[#allocation2 + $0x784] sm:$0xf] }
0x15fb   :  { %v13975_v45 = vpop.eup %13974 }
0x15fc   :  { %v6694_v42 = vpop.xlane.xlu0 %6693  ;;  %v6699_v34 = vmul.f32 %v13975_v45, %v13967_v51  ;;  %v6741_v36 = vunpack.c.l.b16 %v6705_v30  ;;  %v13640_v45 = vld [vmem:[#allocation2 + $0x7bc] sm:$0xf0]  ;;  %v13641_v30 = vld [vmem:[#allocation2 + $0x7c4] sm:$0xf0] }
0x15fd   :  { %v6688_v10 = vpop.xlane.xlu1 %6687  ;;  %13976 = vrcp.f32 %v6694_v42 }
0x15fe   :  { %13978 = vrcp.f32 %v6688_v10  ;;  %v6703_v22 = vpack.c.bf16 %v6699_v34, %v6699_v34  ;;  %v12447_v10 = vld [vmem:[#allocation2 + $0x780] sm:$0xf] }
0x15ff   :  { %v12448_v34 = vor.u32 %v13640_v45, %v12447_v10  ;;  %v12127_v45 = vld [vmem:[#allocation2 + $0x500] sm:$0xf] }
0x1600   :  { %v6713_v59 = vunpack.c.l.b16 %v6703_v22 }
0x1601   :  { %7734 = vmatpush.bf16.msra.mxu2 %v12448_v34  ;;  %v13552_v34 = vld [vmem:[#allocation2 + $0x504] sm:$0xf] }
0x1603   :  { %v13977_v54 = vpop.eup %13976 }
0x1604   :  { %v13979_v16 = vpop.eup %13978  ;;  %v6702_v9 = vmul.f32 %v13977_v54, %v13969_v24  ;;  %v12449_v54 = vld [vmem:[#allocation2 + $0x7c0] sm:$0xf0] }
0x1605   :  { %v6700_v31 = vmul.f32 %v13979_v16, %v13971_v37  ;;  %v12455_v16 = vld [vmem:[#allocation2 + $0x788] sm:$0xf] }
0x1606   :  { %v6706_v25 = vpack.c.bf16 %v6702_v9, %v6702_v9  ;;  %v12452_v9 = vor.u32 %v13632_v15, %v12449_v54  ;;  %v12456_v22 = vor.u32 %v13641_v30, %v12455_v16  ;;  %v13560_v15 = vld [vmem:[#allocation2 + $0x53c] sm:$0xf0]  ;;  %v12129_v16 = vld [vmem:[#allocation2 + $0x540] sm:$0xf0]  ;;  %v12135_v30 = vld [vmem:[#allocation2 + $0x508] sm:$0xf] }
0x1607   :  { %v6704_v2 = vpack.c.bf16 %v6700_v31, %v6700_v31  ;;  %v13633_v31 = vld [vmem:[#allocation2 + $0x78c] sm:$0xf]  ;;  %v12128_v54 = vor.u32 %v13560_v15, %v12127_v45  ;;  %v12401_v45 = vld [vmem:[#allocation2 + $0x750] sm:$0xf0]  ;;  %v12407_v15 = vld [vmem:[#allocation2 + $0x718] sm:$0xf] }
0x1608   :  { %v6742_v11 = vunpack.c.l.b16 %v6706_v25  ;;  %v12457_v25 = vld [vmem:[#allocation2 + $0x7c8] sm:$0xf0]  ;;  %7753 = vmatpush.bf16.msra.mxu3 %v12452_v9  ;;  %7772 = vmatpush.bf16.msrb.mxu0 %v12456_v22  ;;  %v13561_v9 = vld [vmem:[#allocation2 + $0x544] sm:$0xf0]  ;;  %v12132_v22 = vor.u32 %v13552_v34, %v12129_v16  ;;  %v13627_v16 = vld [vmem:[#allocation2 + $0x754] sm:$0xf0] }
0x1609   :  { %v6714_v29 = vunpack.c.l.b16 %v6704_v2  ;;  %v12460_v2 = vor.u32 %v13633_v31, %v12457_v25  ;;  %v12136_v31 = vor.u32 %v13561_v9, %v12135_v30  ;;  %v13553_v25 = vld [vmem:[#allocation2 + $0x50c] sm:$0xf]  ;;  %v13619_v30 = vld [vmem:[#allocation2 + $0x71c] sm:$0xf] }
0x160a   :  { %v6743_v46 = vpack.c.b16 %v6742_v11, %v6741_v36  ;;  %v12383_v36 = vld [vmem:[#allocation2 + $0x700] sm:$0xf]  ;;  %v12409_v9 = vld [vmem:[#allocation2 + $0x758] sm:$0xf0] }
0x160b   :  { %v6715_v44 = vpack.c.b16 %v6714_v29, %v6713_v59  ;;  %v13624_v11 = vld [vmem:[#allocation2 + $0x73c] sm:$0xf0]  ;;  %v13616_v59 = vld [vmem:[#allocation2 + $0x704] sm:$0xf]  ;;  %7791 = vmatpush.bf16.msrb.mxu1 %v12460_v2  ;;  %v12137_v2 = vld [vmem:[#allocation2 + $0x548] sm:$0xf0] }
0x160c   :  { %11977 = vmatmul.msk.bf16.vlgmr.msra.gmra.mxu0 %vm483_vm1, %v6743_v46  ;;  %v12384_v29 = vor.u32 %v13624_v11, %v12383_v36  ;;  %v12385_v46 = vld [vmem:[#allocation2 + $0x740] sm:$0xf0]  ;;  %v12140_v36 = vor.u32 %v13553_v25, %v12137_v2  ;;  %v12063_v11 = vld [vmem:[#allocation2 + $0x480] sm:$0xf]  ;;  %v12335_v2 = vld [vmem:[#allocation2 + $0x690] sm:$0xf] }
0x160d   :  { %11976 = vmatmul.msk.bf16.vlgmr.msrb.gmra.mxu3 %vm483_vm1, %v6715_v44  ;;  %v12391_v44 = vld [vmem:[#allocation2 + $0x708] sm:$0xf]  ;;  %v12388_v53 = vor.u32 %v13616_v59, %v12385_v46  ;;  %v13544_v59 = vld [vmem:[#allocation2 + $0x4bc] sm:$0xf0] }
0x160e   :  { %7735 = vmatpush.bf16.msra.mxu2 %v12384_v29  ;;  %v13536_v29 = vld [vmem:[#allocation2 + $0x484] sm:$0xf]  ;;  %v12064_v46 = vor.u32 %v13544_v59, %v12063_v11  ;;  %v13602_v11 = vld [vmem:[#allocation2 + $0x694] sm:$0xf] }
0x160f   :  { %7754 = vmatpush.bf16.msra.mxu3 %v12388_v53  ;;  %v13545_v53 = vld [vmem:[#allocation2 + $0x4c4] sm:$0xf0] }
0x1689   :  { %v6762_v43 = vpop.f32.mrf.mxu0 }
0x1690   :  { %v6734_v57 = vpop.f32.mrf.mxu3 }
0x1691   :  { %v6764_v32 = vpop.f32.mrf.mxu0 }
0x1692   :  { %v6773_v49 = vpack.c.bf16 %v6764_v32, %v6762_v43  ;;  %v12319_v32 = vld [vmem:[#allocation2 + $0x680] sm:$0xf] }
0x1698   :  { %v6736_v60 = vpop.f32.mrf.mxu3 }
0x1699   :  { %v6772_v28 = vpack.c.bf16 %v6736_v60, %v6734_v57  ;;  %v12392_v57 = vor.u32 %v13625_v62, %v12391_v44  ;;  %v13617_v60 = vld [vmem:[#allocation2 + $0x70c] sm:$0xf]  ;;  %v12065_v44 = vld [vmem:[#allocation2 + $0x4c0] sm:$0xf0]  ;;  %v12071_v62 = vld [vmem:[#allocation2 + $0x488] sm:$0xf] }
0x169b   :  { %11990 = vmatmul.msk.bf16.vlgmr.msra.gmra.mxu1 %vm432_vm0, %v6772_v28  ;;  %v12393_v28 = vld [vmem:[#allocation2 + $0x748] sm:$0xf0]  ;;  %7773 = vmatpush.bf16.msrb.mxu0 %v12392_v57  ;;  %v12068_v57 = vor.u32 %v13536_v29, %v12065_v44  ;;  %v12337_v29 = vld [vmem:[#allocation2 + $0x6d0] sm:$0xf0]  ;;  %v13611_v44 = vld [vmem:[#allocation2 + $0x6d4] sm:$0xf0] }
0x169c   :  { %v12396_v43 = vor.u32 %v13617_v60, %v12393_v28  ;;  %v12072_v60 = vor.u32 %v13545_v53, %v12071_v62  ;;  %v13537_v28 = vld [vmem:[#allocation2 + $0x48c] sm:$0xf] }
0x169e   :  { %7792 = vmatpush.bf16.msrb.mxu1 %v12396_v43  ;;  %v12073_v43 = vld [vmem:[#allocation2 + $0x4c8] sm:$0xf0] }
0x16ab   :  { %11991 = vmatmul.msk.bf16.gmra.mxu1 %vm432_vm0, %v6773_v49  ;;  %v13608_v49 = vld [vmem:[#allocation2 + $0x6bc] sm:$0xf0] }
0x1718   :  { %v6801_v35 = vpop.f32.mrf.mxu1 }
0x1719   :  { %v6811_v27 = vadd.f32 %v6801_v35, %v15517_v61  ;;  %v5831_v61 = vadd.f32 %v15400_v14, %v15419_v47  ;;  %v12320_v35 = vor.u32 %v13608_v49, %v12319_v32  ;;  %v12076_v49 = vor.u32 %v13537_v28, %v12073_v43  ;;  %v13603_v28 = vld [vmem:[#allocation2 + $0x69c] sm:$0xf] }
0x171a   :  { %v12345_v43 = vld [vmem:[#allocation2 + $0x6d8] sm:$0xf0] }
0x171b   :  { %v6820_v13 = vadd.f32 %v13827_v7, %v6811_v27  ;;  %v12321_v27 = vld [vmem:[#allocation2 + $0x6c0] sm:$0xf0]  ;;  %7736 = vmatpush.bf16.msra.mxu2 %v12320_v35  ;;  %v11999_v35 = vld [vmem:[#allocation2 + $0x400] sm:$0xf] }
0x171d   :  { %v6824_v56 = vadd.f32 %v6820_v13, %v15133_v26  ;;  %v6323_v26 = vadd.f32 %v15525_v52, %v5831_v61  ;;  %v12327_v13 = vld [vmem:[#allocation2 + $0x688] sm:$0xf]  ;;  %v12257_v61 = vld [vmem:[#allocation2 + $0x640] sm:$0xf0] }
0x171f   :  { %6832 = vadd.xlane.f32.xlu1 %v6824_v56 }
0x1720   :  { %v6803_v3 = vpop.f32.mrf.mxu1 }
0x1721   :  { %v6812_v20 = vadd.f32 %v6803_v3, %v6321_v63  ;;  %v12328_v63 = vor.u32 %v13609_v19, %v12327_v13  ;;  %v13601_v3 = vld [vmem:[#allocation2 + $0x68c] sm:$0xf]  ;;  %v13520_v13 = vld [vmem:[#allocation2 + $0x404] sm:$0xf] }
0x1723   :  { %v6821_v21 = vadd.f32 %v13827_v7, %v6812_v20  ;;  %v12329_v20 = vld [vmem:[#allocation2 + $0x6c8] sm:$0xf0]  ;;  %7774 = vmatpush.bf16.msrb.mxu0 %v12328_v63  ;;  %v12007_v63 = vld [vmem:[#allocation2 + $0x408] sm:$0xf] }
0x1725   :  { %v6825_v39 = vadd.f32 %v6821_v21, %v15135_v0  ;;  %v12332_v21 = vor.u32 %v13601_v3, %v12329_v20  ;;  %v13529_v3 = vld [vmem:[#allocation2 + $0x444] sm:$0xf0] }
0x1727   :  { %6834 = vadd.xlane.f32.xlu2 %v6825_v39  ;;  %7793 = vmatpush.bf16.msrb.mxu1 %v12332_v21 }
0x1728   :  { %v6806_v58 = vpop.f32.mrf.mxu1 }
0x1729   :  { %v6813_v12 = vadd.f32 %v6806_v58, %v15523_v50  ;;  %v13592_v58 = vld [vmem:[#allocation2 + $0x63c] sm:$0xf0] }
0x172b   :  { %v6822_v51 = vadd.f32 %v13827_v7, %v6813_v12  ;;  %v13584_v12 = vld [vmem:[#allocation2 + $0x604] sm:$0xf] }
0x172d   :  { %v6826_v48 = vadd.f32 %v6822_v51, %v15146_v55 }
0x172f   :  { %6836 = vadd.xlane.f32.xlu0 %v6826_v48 }
0x1730   :  { %v6808_v8 = vpop.f32.mrf.mxu1 }
0x1731   :  { %v6814_v38 = vadd.f32 %v6808_v8, %v6323_v26  ;;  %v13593_v26 = vld [vmem:[#allocation2 + $0x644] sm:$0xf0]  ;;  %v12260_v8 = vor.u32 %v13584_v12, %v12257_v61  ;;  %v12009_v12 = vld [vmem:[#allocation2 + $0x448] sm:$0xf0]  ;;  %v12463_v61 = vld [vmem:[#allocation2 + $0x790] sm:$0xf] }
0x1733   :  { %v6823_v23 = vadd.f32 %v13827_v7, %v6814_v38  ;;  %v13600_v7 = vld [vmem:[#allocation2 + $0x684] sm:$0xf] }
0x1735   :  { %v6827_v6 = vadd.f32 %v6823_v23, %v15148_v4  ;;  %v13585_v23 = vld [vmem:[#allocation2 + $0x60c] sm:$0xf] }
0x1737   :  { %6838 = vadd.xlane.f32.xlu1 %v6827_v6 }
0x1792   :  { %v6833_v0 = vpop.xlane.xlu1 %6832 }
0x1793   :  { %v6840_v18 = vmul.f32 %v6833_v0, %v14729_v33 }
0x1795   :  { %v15561_v24 = vsub.f32 %v6824_v56, %v6840_v18  ;;  %v12324_v56 = vor.u32 %v13600_v7, %v12321_v27  ;;  %v12191_v18 = vld [vmem:[#allocation2 + $0x580] sm:$0xf] }
0x1796   :  { %v13528_v27 = vld [vmem:[#allocation2 + $0x43c] sm:$0xf0] }
0x1797   :  { %v6848_v50 = vmul.f32 %v15561_v24, %v15561_v24  ;;  %7755 = vmatpush.bf16.msra.mxu3 %v12324_v56  ;;  %v12000_v19 = vor.u32 %v13528_v27, %v11999_v35  ;;  %v12001_v56 = vld [vmem:[#allocation2 + $0x440] sm:$0xf0]  ;;  %v12271_v35 = vld [vmem:[#allocation2 + $0x610] sm:$0xf] }
0x1798   :  { %v12004_v21 = vor.u32 %v13520_v13, %v12001_v56  ;;  %v13594_v27 = vld [vmem:[#allocation2 + $0x64c] sm:$0xf0] }
0x1799   :  { %6852 = vadd.xlane.f32.xlu2 %v6848_v50  ;;  %v13576_v50 = vld [vmem:[#allocation2 + $0x5bc] sm:$0xf0]  ;;  %v12272_v56 = vor.u32 %v13594_v27, %v12271_v35 }
0x179a   :  { %v6835_v14 = vpop.xlane.xlu2 %6834 }
0x179b   :  { %v6841_v55 = vmul.f32 %v6835_v14, %v14729_v33  ;;  %7756 = vmatpush.bf16.msra.mxu3 %v12260_v8  ;;  %v13568_v14 = vld [vmem:[#allocation2 + $0x584] sm:$0xf] }
0x179d   :  { %v15566_v47 = vsub.f32 %v6825_v39, %v6841_v55  ;;  %v12255_v39 = vld [vmem:[#allocation2 + $0x600] sm:$0xf]  ;;  %v12192_v55 = vor.u32 %v13576_v50, %v12191_v18 }
0x179e   :  { %v12256_v51 = vor.u32 %v13592_v58, %v12255_v39  ;;  %v12008_v39 = vor.u32 %v13529_v3, %v12007_v63  ;;  %v13521_v58 = vld [vmem:[#allocation2 + $0x40c] sm:$0xf]  ;;  %v13586_v63 = vld [vmem:[#allocation2 + $0x614] sm:$0xf] }
0x179f   :  { %v6849_v52 = vmul.f32 %v15566_v47, %v15566_v47  ;;  %v12273_v3 = vld [vmem:[#allocation2 + $0x650] sm:$0xf0] }
0x17a0   :  { %7737 = vmatpush.bf16.msra.mxu2 %v12256_v51  ;;  %v12012_v51 = vor.u32 %v13521_v58, %v12009_v12  ;;  %v12276_v58 = vor.u32 %v13586_v63, %v12273_v3  ;;  %v12279_v12 = vld [vmem:[#allocation2 + $0x618] sm:$0xf]  ;;  %v13539_v3 = vld [vmem:[#allocation2 + $0x49c] sm:$0xf] }
0x17a1   :  { %6854 = vadd.xlane.f32.xlu0 %v6849_v52  ;;  %v12193_v52 = vld [vmem:[#allocation2 + $0x5c0] sm:$0xf0]  ;;  %v13547_v63 = vld [vmem:[#allocation2 + $0x4d4] sm:$0xf0] }
0x17a2   :  { %v6837_v4 = vpop.xlane.xlu0 %6836 }
0x17a3   :  { %v6842_v37 = vmul.f32 %v6837_v4, %v14729_v33  ;;  %v12199_v4 = vld [vmem:[#allocation2 + $0x588] sm:$0xf] }
0x17a4   :  { %7738 = vmatpush.bf16.msra.mxu2 %v12192_v55  ;;  %v12473_v55 = vld [vmem:[#allocation2 + $0x7d8] sm:$0xf0] }
0x17a5   :  { %v15571_v17 = vsub.f32 %v6826_v48, %v6842_v37  ;;  %v12263_v48 = vld [vmem:[#allocation2 + $0x608] sm:$0xf] }
0x17a6   :  { %v12264_v38 = vor.u32 %v13593_v26, %v12263_v48  ;;  %v13577_v37 = vld [vmem:[#allocation2 + $0x5c4] sm:$0xf0]  ;;  %v13642_v48 = vld [vmem:[#allocation2 + $0x7cc] sm:$0xf0]  ;;  %v13634_v26 = vld [vmem:[#allocation2 + $0x794] sm:$0xf] }
0x17a7   :  { %v6850_v41 = vmul.f32 %v15571_v17, %v15571_v17  ;;  %v12464_v8 = vor.u32 %v13642_v48, %v12463_v61  ;;  %v13587_v61 = vld [vmem:[#allocation2 + $0x61c] sm:$0xf] }
0x17a8   :  { %7775 = vmatpush.bf16.msrb.mxu0 %v12264_v38  ;;  %7739 = vmatpush.bf16.msra.mxu2 %v12128_v54  ;;  %v12465_v38 = vld [vmem:[#allocation2 + $0x7d0] sm:$0xf0] }
0x17a9   :  { %6856 = vadd.xlane.f32.xlu1 %v6850_v41  ;;  %v12196_v41 = vor.u32 %v13568_v14, %v12193_v52  ;;  %v12468_v18 = vor.u32 %v13634_v26, %v12465_v38  ;;  %v13635_v14 = vld [vmem:[#allocation2 + $0x79c] sm:$0xf] }
0x17aa   :  { %v6839_v5 = vpop.xlane.xlu1 %6838 }
0x17ab   :  { %v6843_v1 = vmul.f32 %v6839_v5, %v14729_v33  ;;  %v12200_v5 = vor.u32 %v13577_v37, %v12199_v4  ;;  %7757 = vmatpush.bf16.msra.mxu3 %v12196_v41  ;;  %v12476_v4 = vor.u32 %v13635_v14, %v12473_v55  ;;  %v12399_v37 = vld [vmem:[#allocation2 + $0x710] sm:$0xf]  ;;  %v12215_v14 = vld [vmem:[#allocation2 + $0x598] sm:$0xf] }
0x17ac   :  { %7740 = vmatpush.bf16.msra.mxu2 %v12064_v46  ;;  %v13626_v41 = vld [vmem:[#allocation2 + $0x74c] sm:$0xf0]  ;;  %v12343_v46 = vld [vmem:[#allocation2 + $0x698] sm:$0xf] }
0x17ad   :  { %v15576_v42 = vsub.f32 %v6827_v6, %v6843_v1  ;;  %v12265_v6 = vld [vmem:[#allocation2 + $0x648] sm:$0xf0]  ;;  %7776 = vmatpush.bf16.msrb.mxu0 %v12200_v5  ;;  %v13618_v5 = vld [vmem:[#allocation2 + $0x714] sm:$0xf]  ;;  %v13579_v55 = vld [vmem:[#allocation2 + $0x5d4] sm:$0xf0] }
0x17ae   :  { %v12268_v0 = vor.u32 %v13585_v23, %v12265_v6  ;;  %v13569_v1 = vld [vmem:[#allocation2 + $0x58c] sm:$0xf]  ;;  %v12471_v23 = vld [vmem:[#allocation2 + $0x798] sm:$0xf]  ;;  %v12404_v54 = vor.u32 %v13618_v5, %v12401_v45  ;;  %v12216_v5 = vor.u32 %v13579_v55, %v12215_v14  ;;  %v12217_v45 = vld [vmem:[#allocation2 + $0x5d8] sm:$0xf0] }
0x17af   :  { %v6851_v40 = vmul.f32 %v15576_v42, %v15576_v42  ;;  %7758 = vmatpush.bf16.msra.mxu3 %v12132_v22  ;;  %v13643_v6 = vld [vmem:[#allocation2 + $0x7d4] sm:$0xf0]  ;;  %v12408_v22 = vor.u32 %v13627_v16, %v12407_v15  ;;  %v15617_v15 = vld [vmem:[%s15902_s12 + $0x1] ss:$0 sm:$0xff]  ;;  %v12143_v16 = vld [vmem:[#allocation2 + $0x510] sm:$0xf] }
0x17b0   :  { %7794 = vmatpush.bf16.msrb.mxu1 %v12268_v0  ;;  %7741 = vmatpush.bf16.msra.mxu2 %v12000_v19  ;;  %v12472_v50 = vor.u32 %v13643_v6, %v12471_v23  ;;  %v12207_v23 = vld [vmem:[#allocation2 + $0x590] sm:$0xf] }
0x17b1   :  { %6858 = vadd.xlane.f32.xlu2 %v6851_v40  ;;  %v12201_v40 = vld [vmem:[#allocation2 + $0x5c8] sm:$0xf0]  ;;  %7777 = vmatpush.bf16.msrb.mxu0 %v12136_v31  ;;  %v12412_v31 = vor.u32 %v13619_v30, %v12409_v9  ;;  %v13578_v6 = vld [vmem:[#allocation2 + $0x5cc] sm:$0xf0]  ;;  %v13554_v9 = vld [vmem:[#allocation2 + $0x514] sm:$0xf] }
0x17b2   :  { %v12204_v10 = vor.u32 %v13569_v1, %v12201_v40  ;;  %v13562_v30 = vld [vmem:[#allocation2 + $0x54c] sm:$0xf0] }
0x17b3   :  { %7759 = vmatpush.bf16.msra.mxu3 %v12068_v57  ;;  %v12340_v57 = vor.u32 %v13602_v11, %v12337_v29  ;;  %v13563_v29 = vld [vmem:[#allocation2 + $0x554] sm:$0xf0] }
0x17b4   :  { %7795 = vmatpush.bf16.msrb.mxu1 %v12204_v10  ;;  %7810 = vmatpush.bf16.msrb.mxu2 %v12464_v8  ;;  %v12400_v10 = vor.u32 %v13626_v41, %v12399_v37  ;;  %v12281_v8 = vld [vmem:[#allocation2 + $0x658] sm:$0xf0] }
0x17b5   :  { %7778 = vmatpush.bf16.msrb.mxu0 %v12072_v60  ;;  %v12344_v60 = vor.u32 %v13611_v44, %v12343_v46  ;;  %v12284_v38 = vor.u32 %v13587_v61, %v12281_v8  ;;  %v13555_v46 = vld [vmem:[#allocation2 + $0x51c] sm:$0xf]  ;;  %v13530_v61 = vld [vmem:[#allocation2 + $0x44c] sm:$0xf0]  ;;  %v12017_v8 = vld [vmem:[#allocation2 + $0x450] sm:$0xf0] }
0x17b7   :  { %7760 = vmatpush.bf16.msra.mxu3 %v12004_v21 }
0x17b8   :  { %7796 = vmatpush.bf16.msrb.mxu1 %v12140_v36  ;;  %7811 = vmatpush.bf16.msrb.mxu2 %v12400_v10  ;;  %v13610_v36 = vld [vmem:[#allocation2 + $0x6cc] sm:$0xf0]  ;;  %v13571_v10 = vld [vmem:[#allocation2 + $0x59c] sm:$0xf] }
0x17b9   :  { %7779 = vmatpush.bf16.msrb.mxu0 %v12008_v39  ;;  %v12336_v59 = vor.u32 %v13610_v36, %v12335_v2 }
0x17bb   :  { %7829 = vmatpush.bf16.msrb.mxu3 %v12468_v18  ;;  %v12208_v18 = vor.u32 %v13578_v6, %v12207_v23  ;;  %v12023_v23 = vld [vmem:[#allocation2 + $0x418] sm:$0xf] }
0x17bc   :  { %7797 = vmatpush.bf16.msrb.mxu1 %v12076_v49  ;;  %7812 = vmatpush.bf16.msrb.mxu2 %v12336_v59  ;;  %v12348_v49 = vor.u32 %v13603_v28, %v12345_v43  ;;  %v13546_v28 = vld [vmem:[#allocation2 + $0x4cc] sm:$0xf0]  ;;  %v13531_v6 = vld [vmem:[#allocation2 + $0x454] sm:$0xf0] }
0x17bd   :  { %7848 = vmatpush.bf16.msra.mxu0 %v12472_v50  ;;  %v12209_v50 = vld [vmem:[#allocation2 + $0x5d0] sm:$0xf0] }
0x17bf   :  { %7830 = vmatpush.bf16.msrb.mxu3 %v12404_v54  ;;  %v12220_v54 = vor.u32 %v13571_v10, %v12217_v45  ;;  %v12024_v10 = vor.u32 %v13531_v6, %v12023_v23 }
0x17c0   :  { %7798 = vmatpush.bf16.msrb.mxu1 %v12012_v51  ;;  %v13595_v51 = vld [vmem:[#allocation2 + $0x654] sm:$0xf0]  ;;  %7813 = vmatpush.bf16.msrb.mxu2 %v12272_v56 }
0x17c1   :  { %7849 = vmatpush.bf16.msra.mxu0 %v12408_v22  ;;  %v12280_v26 = vor.u32 %v13595_v51, %v12279_v12  ;;  %v12144_v22 = vor.u32 %v13562_v30, %v12143_v16  ;;  %v12087_v56 = vld [vmem:[#allocation2 + $0x498] sm:$0xf]  ;;  %v12089_v12 = vld [vmem:[#allocation2 + $0x4d8] sm:$0xf0]  ;;  %v12015_v51 = vld [vmem:[#allocation2 + $0x410] sm:$0xf] }
0x17c2   :  { %v13644_v16 = vld [vmem:[#allocation2 + $0x7dc] sm:$0xf0]  ;;  %v13636_v30 = vld [vmem:[#allocation2 + $0x7a4] sm:$0xf] }
0x17c3   :  { %7831 = vmatpush.bf16.msrb.mxu3 %v12340_v57  ;;  %v12153_v57 = vld [vmem:[#allocation2 + $0x558] sm:$0xf0] }
0x17c4   :  { %7867 = vmatpush.bf16.msra.mxu1 %v12476_v4  ;;  %7814 = vmatpush.bf16.msrb.mxu2 %v12208_v18  ;;  %v13523_v18 = vld [vmem:[#allocation2 + $0x41c] sm:$0xf] }
0x17c5   :  { %7850 = vmatpush.bf16.msra.mxu0 %v12344_v60  ;;  %v12079_v60 = vld [vmem:[#allocation2 + $0x490] sm:$0xf] }
0x17c6   :  { %v12080_v43 = vor.u32 %v13546_v28, %v12079_v60  ;;  %v12167_v28 = vld [vmem:[#allocation2 + $0x528] sm:$0xf] }
0x17c7   :  { %7832 = vmatpush.bf16.msrb.mxu3 %v12276_v58  ;;  %v12088_v58 = vor.u32 %v13547_v63, %v12087_v56  ;;  %v12351_v63 = vld [vmem:[#allocation2 + $0x6a0] sm:$0xf] }
0x17c8   :  { %7868 = vmatpush.bf16.msra.mxu1 %v12412_v31  ;;  %v12145_v31 = vld [vmem:[#allocation2 + $0x550] sm:$0xf0]  ;;  %7815 = vmatpush.bf16.msrb.mxu2 %v12144_v22  ;;  %v12487_v22 = vld [vmem:[#allocation2 + $0x7a8] sm:$0xf] }
0x17c9   :  { %7851 = vmatpush.bf16.msra.mxu0 %v12280_v26  ;;  %v12148_v59 = vor.u32 %v13554_v9, %v12145_v31  ;;  %v12092_v26 = vor.u32 %v13539_v3, %v12089_v12  ;;  %v13645_v31 = vld [vmem:[#allocation2 + $0x7e4] sm:$0xf0]  ;;  %v13612_v3 = vld [vmem:[#allocation2 + $0x6dc] sm:$0xf0] }
0x17ca   :  { %v12359_v12 = vld [vmem:[#allocation2 + $0x6a8] sm:$0xf] }
0x17cc   :  { %7869 = vmatpush.bf16.msra.mxu1 %v12348_v49  ;;  %v12081_v49 = vld [vmem:[#allocation2 + $0x4d0] sm:$0xf0]  ;;  %7816 = vmatpush.bf16.msrb.mxu2 %v12080_v43  ;;  %v12417_v43 = vld [vmem:[#allocation2 + $0x760] sm:$0xf0] }
0x17cd   :  { %7852 = vmatpush.bf16.msra.mxu0 %v12216_v5  ;;  %v13597_v5 = vld [vmem:[#allocation2 + $0x664] sm:$0xf0] }
0x17d0   :  { %7870 = vmatpush.bf16.msra.mxu1 %v12284_v38  ;;  %v12016_v38 = vor.u32 %v13530_v61, %v12015_v51  ;;  %v13613_v51 = vld [vmem:[#allocation2 + $0x6e4] sm:$0xf0] }
0x17d1   :  { %v12360_v23 = vor.u32 %v13613_v51, %v12359_v12  ;;  %v12031_v12 = vld [vmem:[#allocation2 + $0x420] sm:$0xf] }
0x17d2   :  { %7817 = vmatpush.bf16.msrb.mxu2 %v12016_v38  ;;  %v13532_v51 = vld [vmem:[#allocation2 + $0x45c] sm:$0xf0] }
0x17d4   :  { %7871 = vmatpush.bf16.msra.mxu1 %v12220_v54  ;;  %v12479_v54 = vld [vmem:[#allocation2 + $0x7a0] sm:$0xf] }
0x17d5   :  { %v12480_v9 = vor.u32 %v13644_v16, %v12479_v54  ;;  %v12223_v16 = vld [vmem:[#allocation2 + $0x5a0] sm:$0xf] }
0x180c   :  { %v6853_v32 = vpop.xlane.xlu2 %6852 }
0x180d   :  { %v6860_v7 = vmul.f32 %v6853_v32, %v14729_v33 }
0x180f   :  { %v15581_v20 = vadd.f32 1e-05, %v6860_v7 }
0x1811   :  { %13980 = vrsqrt.f32 %v15581_v20  ;;  %vm6874_vm1 = vweird.f32 %v15581_v20 }
0x1814   :  { %v6855_v0 = vpop.xlane.xlu0 %6854 }
0x1815   :  { %v6861_v52 = vmul.f32 %v6855_v0, %v14729_v33  ;;  %v13570_v0 = vld [vmem:[#allocation2 + $0x594] sm:$0xf] }
0x1816   :  { %v12212_v41 = vor.u32 %v13570_v0, %v12209_v50  ;;  %v12025_v50 = vld [vmem:[#allocation2 + $0x458] sm:$0xf0] }
0x1817   :  { %v15585_v1 = vpop.eup %13980  ;;  %v15587_v40 = vadd.f32 1e-05, %v6861_v52  ;;  %v12028_v45 = vor.u32 %v13523_v18, %v12025_v50  ;;  %v12289_v18 = vld [vmem:[#allocation2 + $0x660] sm:$0xf0] }
0x1818   :  { %v6869_v34 = vmul.f32 %v15585_v1, %v15581_v20  ;;  %vm6875_vm0 = vweird.f32 %v15585_v1  ;;  %7833 = vmatpush.bf16.msrb.mxu3 %v12212_v41 }
0x1819   :  { %13982 = vrsqrt.f32 %v15587_v40  ;;  %vm15605_vm13 = vmor %vm6874_vm1, %vm6875_vm0  ;;  %vm6884_vm15 = vweird.f32 %v15587_v40 }
0x181a   :  { %v6870_v25 = vmul.f32 %v15585_v1, %v6869_v34 }
0x181c   :  { %v6871_v62 = vmul.f32 0.5, %v6870_v25  ;;  %v6857_v53 = vpop.xlane.xlu1 %6856  ;;  %v12151_v25 = vld [vmem:[#allocation2 + $0x518] sm:$0xf]  ;;  %7834 = vmatpush.bf16.msrb.mxu3 %v12148_v59  ;;  %v13637_v59 = vld [vmem:[#allocation2 + $0x7ac] sm:$0xf] }
0x181d   :  { %v6862_v32 = vmul.f32 %v6857_v53, %v14729_v33  ;;  %v12152_v53 = vor.u32 %v13563_v29, %v12151_v25  ;;  %v12489_v29 = vld [vmem:[#allocation2 + $0x7e8] sm:$0xf0] }
0x181e   :  { %v6872_v7 = vsub.f32 1.5, %v6871_v62 }
0x181f   :  { %v15595_v13 = vpop.eup %13982  ;;  %v15597_v19 = vadd.f32 1e-05, %v6862_v32  ;;  %v13538_v32 = vld [vmem:[#allocation2 + $0x494] sm:$0xf]  ;;  %7853 = vmatpush.bf16.msra.mxu0 %v12152_v53  ;;  %v13628_v53 = vld [vmem:[#allocation2 + $0x75c] sm:$0xf0] }
0x1820   :  { %v6873_v21 = vmul.f32 %v15585_v1, %v6872_v7  ;;  %v6879_v39 = vmul.f32 %v15595_v13, %v15587_v40  ;;  %vm6885_vm14 = vweird.f32 %v15595_v13  ;;  %v12156_v40 = vor.u32 %v13555_v46, %v12153_v57  ;;  %v13620_v57 = vld [vmem:[#allocation2 + $0x724] sm:$0xf] }
0x1821   :  { %13984 = vrsqrt.f32 %v15597_v19  ;;  %vm6886_vm2 = vmor %vm6884_vm15, %vm6885_vm14  ;;  %v12084_v27 = vor.u32 %v13538_v32, %v12081_v49  ;;  %vm6894_vm4 = vweird.f32 %v15597_v19  ;;  %v13629_v32 = vld [vmem:[#allocation2 + $0x764] sm:$0xf0]  ;;  %v13621_v49 = vld [vmem:[#allocation2 + $0x72c] sm:$0xf] }
0x1822   :  { %v6880_v20 = vmul.f32 %v15595_v13, %v6879_v39  ;;  %v6877_v52 = vsel %vm15605_vm13, %v15585_v1, %v6873_v21  ;;  %7872 = vmatpush.bf16.msra.mxu1 %v12156_v40 }
0x1823   :  { %v6908_v36 = vmul.f32 %v6877_v52, %v15561_v24  ;;  %v15633_v24 = vld [vmem:[%s15903_s13 + $0x1] ss:$0 sm:$0xff]  ;;  %7835 = vmatpush.bf16.msrb.mxu3 %v12084_v27  ;;  %7854 = vmatpush.bf16.msra.mxu0 %v12088_v58  ;;  %v12353_v58 = vld [vmem:[#allocation2 + $0x6e0] sm:$0xf0]  ;;  %s9690_s13 = sshll.u32 %s14084_s24, 4  ;;  %s9691_s13 = int_to_ptr.vmem [resolvable:$true] %s9690_s13 }
0x1824   :  { %v6881_v4 = vmul.f32 0.5, %v6880_v20  ;;  %v6859_v37 = vpop.xlane.xlu2 %6858 }
0x1825   :  { %v6863_v34 = vmul.f32 %v6859_v37, %v14729_v33  ;;  %v6915_v21 = vmul.f32 %v15617_v15, %v6908_v36  ;;  %v12488_v36 = vor.u32 %v13645_v31, %v12487_v22  ;;  %v12231_v22 = vld [vmem:[#allocation2 + $0x5a8] sm:$0xf] }
0x1826   :  { %v6882_v1 = vsub.f32 1.5, %v6881_v4  ;;  %7873 = vmatpush.bf16.msra.mxu1 %v12092_v26  ;;  %v13581_v31 = vld [vmem:[#allocation2 + $0x5e4] sm:$0xf0] }
0x1827   :  { %v15621_v2 = vpop.eup %13984  ;;  %v15624_v11 = vadd.f32 1e-05, %v6863_v34  ;;  %v15647_v55 = vadd.f32 %v15633_v24, %v6915_v21  ;;  %7855 = vmatpush.bf16.msra.mxu0 %v12024_v10  ;;  %v13604_v21 = vld [vmem:[#allocation2 + $0x6a4] sm:$0xf]  ;;  %v13589_v10 = vld [vmem:[#allocation2 + $0x62c] sm:$0xf] }
0x1828   :  { %v6883_v44 = vmul.f32 %v15595_v13, %v6882_v1  ;;  %v6889_v62 = vmul.f32 %v15621_v2, %v15597_v19  ;;  %vm6895_vm3 = vweird.f32 %v15621_v2  ;;  %v12481_v1 = vld [vmem:[#allocation2 + $0x7e0] sm:$0xf0]  ;;  %v12356_v26 = vor.u32 %v13604_v21, %v12353_v58  ;;  %v12105_v58 = vld [vmem:[#allocation2 + $0x4e8] sm:$0xf0] }
0x1829   :  { %13986 = vrsqrt.f32 %v15624_v11  ;;  %vm15660_vm5 = vmor %vm6894_vm4, %vm6895_vm3  ;;  %vm6904_vm7 = vweird.f32 %v15624_v11 }
0x182a   :  { %v6887_v7 = vsel %vm6886_vm2, %v15595_v13, %v6883_v44  ;;  %v6890_v35 = vmul.f32 %v15621_v2, %v6889_v62  ;;  %v13522_v13 = vld [vmem:[#allocation2 + $0x414] sm:$0xf]  ;;  %7874 = vmatpush.bf16.msra.mxu1 %v12028_v45  ;;  %v12492_v44 = vor.u32 %v13637_v59, %v12489_v29  ;;  %v12415_v62 = vld [vmem:[#allocation2 + $0x720] sm:$0xf]  ;;  %v12297_v45 = vld [vmem:[#allocation2 + $0x668] sm:$0xf0]  ;;  %v12232_v29 = vor.u32 %v13581_v31, %v12231_v22 }
0x182b   :  { %v6909_v39 = vmul.f32 %v6887_v7, %v15566_v47  ;;  %v12020_v47 = vor.u32 %v13522_v13, %v12017_v8  ;;  %v12416_v40 = vor.u32 %v13628_v53, %v12415_v62  ;;  %v12425_v7 = vld [vmem:[#allocation2 + $0x768] sm:$0xf0]  ;;  %v12300_v54 = vor.u32 %v13589_v10, %v12297_v45  ;;  %v12159_v59 = vld [vmem:[#allocation2 + $0x520] sm:$0xf]  ;;  %v13556_v62 = vld [vmem:[#allocation2 + $0x524] sm:$0xf] }
0x182c   :  { %v6891_v48 = vmul.f32 0.5, %v6890_v35  ;;  %v12428_v56 = vor.u32 %v13621_v49, %v12425_v7  ;;  %v13605_v13 = vld [vmem:[#allocation2 + $0x6ac] sm:$0xf]  ;;  %v12161_v53 = vld [vmem:[#allocation2 + $0x560] sm:$0xf0] }
0x182d   :  { %v6916_v20 = vmul.f32 %v15617_v15, %v6909_v39  ;;  %7836 = vmatpush.bf16.msrb.mxu3 %v12020_v47  ;;  %v12361_v8 = vld [vmem:[#allocation2 + $0x6e8] sm:$0xf0]  ;;  %v13588_v47 = vld [vmem:[#allocation2 + $0x624] sm:$0xf]  ;;  %v12503_v10 = vld [vmem:[#allocation2 + $0x7b8] sm:$0xf] }
0x182e   :  { %v6892_v0 = vsub.f32 1.5, %v6891_v48  ;;  %v12352_v48 = vor.u32 %v13612_v3, %v12351_v63  ;;  %v12364_v6 = vor.u32 %v13605_v13, %v12361_v8  ;;  %v13540_v49 = vld [vmem:[#allocation2 + $0x4a4] sm:$0xf]  ;;  %v13549_v63 = vld [vmem:[#allocation2 + $0x4e4] sm:$0xf0] }
0x182f   :  { %v15644_v14 = vpop.eup %13986  ;;  %v15650_v52 = vadd.f32 %v15633_v24, %v6916_v20  ;;  %v12287_v20 = vld [vmem:[#allocation2 + $0x620] sm:$0xf]  ;;  %v12097_v7 = vld [vmem:[#allocation2 + $0x4e0] sm:$0xf0]  ;;  %v12039_v8 = vld [vmem:[#allocation2 + $0x428] sm:$0xf] }
0x1830   :  { %v6893_v4 = vmul.f32 %v15621_v2, %v6892_v0  ;;  %v6899_v37 = vmul.f32 %v15644_v14, %v15624_v11  ;;  %vm6905_vm6 = vweird.f32 %v15644_v14  ;;  %v12420_v11 = vor.u32 %v13620_v57, %v12417_v43  ;;  %v13596_v0 = vld [vmem:[#allocation2 + $0x65c] sm:$0xf0]  ;;  %v13557_v43 = vld [vmem:[#allocation2 + $0x52c] sm:$0xf]  ;;  %v13647_v45 = vld [vmem:[#allocation2 + $0x7f4] sm:$0xf0] }
0x1831   :  { %v15658_v41 = vpack.c.bf16 %v15650_v52, %v15647_v55  ;;  %vm15677_vm8 = vmor %vm6904_vm7, %vm6905_vm6  ;;  %v12100_v21 = vor.u32 %v13540_v49, %v12097_v7  ;;  %v13622_v22 = vld [vmem:[#allocation2 + $0x734] sm:$0xf]  ;;  %v12303_v7 = vld [vmem:[#allocation2 + $0x630] sm:$0xf]  ;;  %vm9619_vm6 = vcmask 1041409  }
0x1832   :  { %v6897_v34 = vsel %vm15660_vm5, %v15621_v2, %v6893_v4  ;;  %v6900_v19 = vmul.f32 %v15644_v14, %v6899_v37  ;;  %v12484_v2 = vor.u32 %v13636_v30, %v12481_v1  ;;  %v12295_v4 = vld [vmem:[#allocation2 + $0x628] sm:$0xf]  ;;  %v12292_v37 = vor.u32 %v13588_v47, %v12289_v18  ;;  %v13580_v30 = vld [vmem:[#allocation2 + $0x5dc] sm:$0xf0]  ;;  %v12433_v31 = vld [vmem:[#allocation2 + $0x770] sm:$0xf0] }
0x1833   :  { %7742 = vmatmul.bf16.vlgmr.msra.gmra.mxu2 %v15658_v41  ;;  %7761 = vmatmul.bf16.vlgmr.msra.gmra.mxu3 %v15658_v41  ;;  %v6910_v46 = vmul.f32 %v6897_v34, %v15571_v17  ;;  %v12423_v17 = vld [vmem:[#allocation2 + $0x728] sm:$0xf]  ;;  %v12224_v1 = vor.u32 %v13580_v30, %v12223_v16  ;;  %v13639_v16 = vld [vmem:[#allocation2 + $0x7bc] sm:$0xf] }
0x1834   :  { %v6901_v25 = vmul.f32 0.5, %v6900_v19  ;;  %7780 = vmatmul.bf16.vlgmr.msrb.gmra.mxu0 %v15658_v41  ;;  %7799 = vmatmul.bf16.vlgmr.msrb.gmra.mxu1 %v15658_v41  ;;  %v12424_v27 = vor.u32 %v13629_v32, %v12423_v17  ;;  %v12169_v17 = vld [vmem:[#allocation2 + $0x568] sm:$0xf0]  ;;  %v13548_v32 = vld [vmem:[#allocation2 + $0x4dc] sm:$0xf0] }
0x1835   :  { %7886 = vmatpush.bf16.msra.mxu2 %v12480_v9  ;;  %7905 = vmatpush.bf16.msra.mxu3 %v12484_v2  ;;  %v6917_v39 = vmul.f32 %v15617_v15, %v6910_v46  ;;  %v13572_v9 = vld [vmem:[#allocation2 + $0x5a4] sm:$0xf]  ;;  %v13573_v2 = vld [vmem:[#allocation2 + $0x5ac] sm:$0xf]  ;;  %v12505_v30 = vld [vmem:[#allocation2 + $0x7f8] sm:$0xf0] }
0x1836   :  { %v6902_v60 = vsub.f32 1.5, %v6901_v25  ;;  %7924 = vmatpush.bf16.msrb.mxu0 %v12488_v36  ;;  %7943 = vmatpush.bf16.msrb.mxu1 %v12492_v44  ;;  %v12233_v36 = vld [vmem:[#allocation2 + $0x5e8] sm:$0xf0]  ;;  %v13564_v44 = vld [vmem:[#allocation2 + $0x55c] sm:$0xf0] }
0x1837   :  { %v15689_v34 = vadd.f32 %v15633_v24, %v6917_v39  ;;  %v12236_v46 = vor.u32 %v13573_v2, %v12233_v36  ;;  %v12160_v57 = vor.u32 %v13564_v44, %v12159_v59  ;;  %v13541_v39 = vld [vmem:[#allocation2 + $0x4ac] sm:$0xf]  ;;  %v12436_v2 = vor.u32 %v13622_v22, %v12433_v31  ;;  %v12439_v36 = vld [vmem:[#allocation2 + $0x738] sm:$0xf]  ;;  %v12441_v44 = vld [vmem:[#allocation2 + $0x778] sm:$0xf0] }
0x1838   :  { %v6903_v35 = vmul.f32 %v15644_v14, %v6902_v60  ;;  %v12164_v60 = vor.u32 %v13556_v62, %v12161_v53  ;;  %v12108_v13 = vor.u32 %v13541_v39, %v12105_v58  ;;  %v13631_v59 = vld [vmem:[#allocation2 + $0x774] sm:$0xf0]  ;;  %v12367_v62 = vld [vmem:[#allocation2 + $0x6b0] sm:$0xf]  ;;  %v13542_v31 = vld [vmem:[#allocation2 + $0x4b4] sm:$0xf] }
0x1839   :  { %7887 = vmatpush.bf16.msra.mxu2 %v12416_v40  ;;  %7906 = vmatpush.bf16.msra.mxu3 %v12420_v11  ;;  %v13565_v40 = vld [vmem:[#allocation2 + $0x564] sm:$0xf0]  ;;  %v12095_v11 = vld [vmem:[#allocation2 + $0x4a0] sm:$0xf]  ;;  %v13614_v53 = vld [vmem:[#allocation2 + $0x6ec] sm:$0xf0] }
0x183a   :  { %v6907_v61 = vsel %vm15677_vm8, %v15644_v14, %v6903_v35  ;;  %7925 = vmatpush.bf16.msrb.mxu0 %v12424_v27  ;;  %7944 = vmatpush.bf16.msrb.mxu1 %v12428_v56  ;;  %v12288_v14 = vor.u32 %v13596_v0, %v12287_v20  ;;  %v12168_v35 = vor.u32 %v13565_v40, %v12167_v28  ;;  %v12103_v56 = vld [vmem:[#allocation2 + $0x4a8] sm:$0xf]  ;;  %v12041_v0 = vld [vmem:[#allocation2 + $0x468] sm:$0xf0]  ;;  %v12369_v28 = vld [vmem:[#allocation2 + $0x6f0] sm:$0xf0] }
0x183b   :  { %v6911_v38 = vmul.f32 %v6907_v61, %v15576_v42  ;;  %v12172_v27 = vor.u32 %v13557_v43, %v12169_v17  ;;  %v12096_v3 = vor.u32 %v13548_v32, %v12095_v11  ;;  %v13524_v61 = vld [vmem:[#allocation2 + $0x424] sm:$0xf]  ;;  %v12032_v20 = vor.u32 %v13532_v51, %v12031_v12  ;;  %v12375_v40 = vld [vmem:[#allocation2 + $0x6b8] sm:$0xf]  ;;  %v13607_v17 = vld [vmem:[#allocation2 + $0x6bc] sm:$0xf] }
0x183c   :  { %v13615_v43 = vld [vmem:[#allocation2 + $0x6f4] sm:$0xf0]  ;;  %v12377_v11 = vld [vmem:[#allocation2 + $0x6f8] sm:$0xf0]  ;;  %v12368_v32 = vor.u32 %v13614_v53, %v12367_v62  ;;  %v13550_v22 = vld [vmem:[#allocation2 + $0x4ec] sm:$0xf0] }
0x183d   :  { %v6918_v50 = vmul.f32 %v15617_v15, %v6911_v38  ;;  %7888 = vmatpush.bf16.msra.mxu2 %v12352_v48  ;;  %7907 = vmatpush.bf16.msra.mxu3 %v12356_v26  ;;  %v12296_v15 = vor.u32 %v13597_v5, %v12295_v4  ;;  %v12033_v48 = vld [vmem:[#allocation2 + $0x460] sm:$0xf0]  ;;  %v12104_v26 = vor.u32 %v13549_v63, %v12103_v56  ;;  %v13646_v4 = vld [vmem:[#allocation2 + $0x7ec] sm:$0xf0]  ;;  %v12497_v5 = vld [vmem:[#allocation2 + $0x7f0] sm:$0xf0] }
0x183e   :  { %7926 = vmatpush.bf16.msrb.mxu0 %v12360_v23  ;;  %7945 = vmatpush.bf16.msrb.mxu1 %v12364_v6  ;;  %v12036_v38 = vor.u32 %v13524_v61, %v12033_v48  ;;  %v13533_v23 = vld [vmem:[#allocation2 + $0x464] sm:$0xf0]  ;;  %v13525_v6 = vld [vmem:[#allocation2 + $0x42c] sm:$0xf]  ;;  %v13598_v56 = vld [vmem:[#allocation2 + $0x66c] sm:$0xf0] }
0x183f   :  { %v15692_v42 = vadd.f32 %v15633_v24, %v6918_v50  ;;  %v12225_v24 = vld [vmem:[#allocation2 + $0x5e0] sm:$0xf0]  ;;  %v12040_v47 = vor.u32 %v13533_v23, %v12039_v8  ;;  %v12044_v18 = vor.u32 %v13525_v6, %v12041_v0  ;;  %v12495_v50 = vld [vmem:[#allocation2 + $0x7b0] sm:$0xf]  ;;  %v13590_v63 = vld [vmem:[#allocation2 + $0x634] sm:$0xf]  ;;  %v12304_v39 = vor.u32 %v13598_v56, %v12303_v7 }
0x1840   :  { %v12228_v25 = vor.u32 %v13572_v9, %v12225_v24  ;;  %v12431_v9 = vld [vmem:[#allocation2 + $0x730] sm:$0xf]  ;;  %v13599_v12 = vld [vmem:[#allocation2 + $0x674] sm:$0xf0]  ;;  %v13591_v51 = vld [vmem:[#allocation2 + $0x63c] sm:$0xf] }
0x1841   :  { %v15696_v19 = vpack.c.bf16 %v15692_v42, %v15689_v34  ;;  %7889 = vmatpush.bf16.msra.mxu2 %v12288_v14  ;;  %7908 = vmatpush.bf16.msra.mxu3 %v12292_v37  ;;  %v13638_v14 = vld [vmem:[#allocation2 + $0x7b4] sm:$0xf]  ;;  %v12496_v37 = vor.u32 %v13646_v4, %v12495_v50  ;;  %v13630_v24 = vld [vmem:[#allocation2 + $0x76c] sm:$0xf0]  ;;  %v12313_v61 = vld [vmem:[#allocation2 + $0x678] sm:$0xf0] }
0x1842   :  { %7927 = vmatpush.bf16.msrb.mxu0 %v12296_v15  ;;  %7946 = vmatpush.bf16.msrb.mxu1 %v12300_v54  ;;  %v12500_v15 = vor.u32 %v13638_v14, %v12497_v5  ;;  %v12504_v54 = vor.u32 %v13647_v45, %v12503_v10  ;;  %v13582_v8 = vld [vmem:[#allocation2 + $0x5ec] sm:$0xf0]  ;;  %v12241_v23 = vld [vmem:[#allocation2 + $0x5f0] sm:$0xf0]  ;;  %v12247_v6 = vld [vmem:[#allocation2 + $0x5b8] sm:$0xf] }
0x1843   :  { %7747 = vmatmul.bf16.gmra.mxu2 %v15696_v19  ;;  %7766 = vmatmul.bf16.gmra.mxu3 %v15696_v19  ;;  %v13583_v0 = vld [vmem:[#allocation2 + $0x5f4] sm:$0xf0]  ;;  %v12249_v50 = vld [vmem:[#allocation2 + $0x5f8] sm:$0xf0]  ;;  %v12175_v4 = vld [vmem:[#allocation2 + $0x530] sm:$0xf] }
0x1844   :  { %7785 = vmatmul.bf16.gmra.mxu0 %v15696_v19  ;;  %7804 = vmatmul.bf16.gmra.mxu1 %v15696_v19  ;;  %v12248_v14 = vor.u32 %v13583_v0, %v12247_v6  ;;  %v13566_v5 = vld [vmem:[#allocation2 + $0x56c] sm:$0xf0]  ;;  %v13558_v10 = vld [vmem:[#allocation2 + $0x534] sm:$0xf]  ;;  %v13543_v62 = vld [vmem:[#allocation2 + $0x4bc] sm:$0xf] }
0x1845   :  { %7890 = vmatpush.bf16.msra.mxu2 %v12224_v1  ;;  %7909 = vmatpush.bf16.msra.mxu3 %v12228_v25  ;;  %v12508_v1 = vor.u32 %v13639_v16, %v12505_v30  ;;  %v12432_v25 = vor.u32 %v13630_v24, %v12431_v9  ;;  %v12177_v45 = vld [vmem:[#allocation2 + $0x570] sm:$0xf0]  ;;  %v12183_v16 = vld [vmem:[#allocation2 + $0x538] sm:$0xf]  ;;  %v13559_v9 = vld [vmem:[#allocation2 + $0x53c] sm:$0xf] }
0x1846   :  { %7928 = vmatpush.bf16.msrb.mxu0 %v12232_v29  ;;  %7947 = vmatpush.bf16.msrb.mxu1 %v12236_v46  ;;  %v13623_v29 = vld [vmem:[#allocation2 + $0x73c] sm:$0xf]  ;;  %v12440_v46 = vor.u32 %v13631_v59, %v12439_v36  ;;  %v13567_v30 = vld [vmem:[#allocation2 + $0x574] sm:$0xf0]  ;;  %v12111_v24 = vld [vmem:[#allocation2 + $0x4b0] sm:$0xf] }
0x1847   :  { %v12119_v59 = vld [vmem:[#allocation2 + $0x4b8] sm:$0xf]  ;;  %v12121_v53 = vld [vmem:[#allocation2 + $0x4f8] sm:$0xf0] }
0x1848   :  { %v13535_v7 = vld [vmem:[#allocation2 + $0x474] sm:$0xf0] }
0x1849   :  { %7891 = vmatpush.bf16.msra.mxu2 %v12160_v57  ;;  %7910 = vmatpush.bf16.msra.mxu3 %v12164_v60  ;;  %v12444_v57 = vor.u32 %v13623_v29, %v12441_v44  ;;  %v13606_v60 = vld [vmem:[#allocation2 + $0x6b4] sm:$0xf]  ;;  %v13551_v29 = vld [vmem:[#allocation2 + $0x4f4] sm:$0xf0] }
0x184a   :  { %7929 = vmatpush.bf16.msrb.mxu0 %v12168_v35  ;;  %7948 = vmatpush.bf16.msrb.mxu1 %v12172_v27  ;;  %v12372_v49 = vor.u32 %v13606_v60, %v12369_v28  ;;  %v12376_v35 = vor.u32 %v13615_v43, %v12375_v40  ;;  %v12380_v27 = vor.u32 %v13607_v17, %v12377_v11  ;;  %v13534_v60 = vld [vmem:[#allocation2 + $0x46c] sm:$0xf0]  ;;  %v13526_v28 = vld [vmem:[#allocation2 + $0x434] sm:$0xf]  ;;  %v12055_v11 = vld [vmem:[#allocation2 + $0x438] sm:$0xf] }
0x184b   :  { %v12049_v40 = vld [vmem:[#allocation2 + $0x470] sm:$0xf0]  ;;  %v12120_v43 = vor.u32 %v13551_v29, %v12119_v59  ;;  %v12124_v17 = vor.u32 %v13543_v62, %v12121_v53  ;;  %v12056_v56 = vor.u32 %v13535_v7, %v12055_v11  ;;  %v13667_v6 = vld [vmem:[#allocation5 + $0x498] sm:$0xff]  ;;  %v13701_v59 = vld [vmem:[#allocation5 + $0x5a8] sm:$0xff] }
0x184c   :  { %v13675_v0 = vld [vmem:[#allocation5 + $0x4d8] sm:$0xff]  ;;  %v13709_v29 = vld [vmem:[#allocation5 + $0x5e8] sm:$0xff]  ;;  %v13700_v62 = vld [vmem:[#allocation5 + $0x5a0] sm:$0xff] }
0x184d   :  { %7892 = vmatpush.bf16.msra.mxu2 %v12096_v3  ;;  %7911 = vmatpush.bf16.msra.mxu3 %v12100_v21  ;;  %v12305_v3 = vld [vmem:[#allocation2 + $0x670] sm:$0xf0]  ;;  %v12311_v21 = vld [vmem:[#allocation2 + $0x638] sm:$0xf]  ;;  %v13708_v53 = vld [vmem:[#allocation5 + $0x5e0] sm:$0xff] }
0x184e   :  { %7930 = vmatpush.bf16.msrb.mxu0 %v12104_v26  ;;  %7949 = vmatpush.bf16.msrb.mxu1 %v12108_v13  ;;  %v12308_v58 = vor.u32 %v13590_v63, %v12305_v3  ;;  %v12312_v48 = vor.u32 %v13599_v12, %v12311_v21  ;;  %v12316_v26 = vor.u32 %v13591_v51, %v12313_v61  ;;  %v12239_v13 = vld [vmem:[#allocation2 + $0x5b0] sm:$0xf]  ;;  %v13671_v3 = vld [vmem:[#allocation5 + $0x4b8] sm:$0xff]  ;;  %v13669_v61 = vld [vmem:[#allocation5 + $0x4a8] sm:$0xff] }
0x184f   :  { %v13679_v21 = vld [vmem:[#allocation5 + $0x4f8] sm:$0xff]  ;;  %v13684_v11 = vld [vmem:[#allocation5 + $0x520] sm:$0xff]  ;;  %v13706_v7 = vld [vmem:[#allocation5 + $0x5d0] sm:$0xff] }
0x1850   :  { %v13655_v12 = vld [vmem:[#allocation5 + $0x438] sm:$0xff] }
0x1851   :  { %7893 = vmatpush.bf16.msra.mxu2 %v12032_v20  ;;  %7912 = vmatpush.bf16.msra.mxu3 %v12036_v38  ;;  %v13574_v20 = vld [vmem:[#allocation2 + $0x5b4] sm:$0xf]  ;;  %v12240_v38 = vor.u32 %v13582_v8, %v12239_v13  ;;  %v13663_v51 = vld [vmem:[#allocation5 + $0x478] sm:$0xff]  ;;  %v13668_v8 = vld [vmem:[#allocation5 + $0x4a0] sm:$0xff] }
0x1852   :  { %7931 = vmatpush.bf16.msrb.mxu0 %v12040_v47  ;;  %7950 = vmatpush.bf16.msrb.mxu1 %v12044_v18  ;;  %v12244_v47 = vor.u32 %v13574_v20, %v12241_v23  ;;  %v13575_v18 = vld [vmem:[#allocation2 + $0x5bc] sm:$0xf]  ;;  %v13662_v13 = vld [vmem:[#allocation5 + $0x470] sm:$0xff]  ;;  %v13676_v20 = vld [vmem:[#allocation5 + $0x4e0] sm:$0xff] }
0x1853   :  { %7818 = vmatmul.bf16.vlgmr.msrb.gmra.mxu2 %v15658_v41  ;;  %7837 = vmatmul.bf16.vlgmr.msrb.gmra.mxu3 %v15658_v41  ;;  %v13661_v23 = vld [vmem:[#allocation5 + $0x468] sm:$0xff] }
0x1854   :  { %7856 = vmatmul.bf16.vlgmr.msra.gmra.mxu0 %v15658_v41  ;;  %7875 = vmatmul.bf16.vlgmr.msra.gmra.mxu1 %v15658_v41 }
0x1855   :  { %7962 = vmatpush.bf16.msrb.mxu2 %v12496_v37  ;;  %7981 = vmatpush.bf16.msrb.mxu3 %v12500_v15  ;;  %v12252_v37 = vor.u32 %v13575_v18, %v12249_v50  ;;  %v12176_v15 = vor.u32 %v13566_v5, %v12175_v4  ;;  %v13660_v18 = vld [vmem:[#allocation5 + $0x460] sm:$0xff]  ;;  %v13666_v50 = vld [vmem:[#allocation5 + $0x490] sm:$0xff]  ;;  %v13665_v5 = vld [vmem:[#allocation5 + $0x488] sm:$0xff] }
0x1856   :  { %8000 = vmatpush.bf16.msra.mxu0 %v12504_v54  ;;  %8019 = vmatpush.bf16.msra.mxu1 %v12508_v1  ;;  %v12180_v54 = vor.u32 %v13558_v10, %v12177_v45  ;;  %v12185_v1 = vld [vmem:[#allocation2 + $0x578] sm:$0xf0]  ;;  %v13674_v4 = vld [vmem:[#allocation5 + $0x4d0] sm:$0xff]  ;;  %v13673_v10 = vld [vmem:[#allocation5 + $0x4c8] sm:$0xff] }
0x1857   :  { %v12188_v36 = vor.u32 %v13559_v9, %v12185_v1  ;;  %v13650_v45 = vld [vmem:[#allocation5 + $0x410] sm:$0xff]  ;;  %v13703_v9 = vld [vmem:[#allocation5 + $0x5b8] sm:$0xff] }
0x1858   :  { %v13711_v1 = vld [vmem:[#allocation5 + $0x5f8] sm:$0xff] }
0x1859   :  { %7963 = vmatpush.bf16.msrb.mxu2 %v12432_v25  ;;  %7982 = vmatpush.bf16.msrb.mxu3 %v12436_v2  ;;  %v12113_v25 = vld [vmem:[#allocation2 + $0x4f0] sm:$0xf0]  ;;  %v12184_v2 = vor.u32 %v13567_v30, %v12183_v16  ;;  %v13672_v16 = vld [vmem:[#allocation5 + $0x4c0] sm:$0xff]  ;;  %v13649_v30 = vld [vmem:[#allocation5 + $0x408] sm:$0xff] }
0x185a   :  { %8001 = vmatpush.bf16.msra.mxu0 %v12440_v46  ;;  %8020 = vmatpush.bf16.msra.mxu1 %v12444_v57  ;;  %v12112_v46 = vor.u32 %v13550_v22, %v12111_v24  ;;  %v12116_v44 = vor.u32 %v13542_v31, %v12113_v25  ;;  %v12047_v57 = vld [vmem:[#allocation2 + $0x430] sm:$0xf]  ;;  %v13648_v24 = vld [vmem:[#allocation5 + $0x400] sm:$0xff] }
0x185b   :  { %v13656_v22 = vld [vmem:[#allocation5 + $0x440] sm:$0xff]  ;;  %v13702_v31 = vld [vmem:[#allocation5 + $0x5b0] sm:$0xff] }
0x185c   :  { %v13710_v25 = vld [vmem:[#allocation5 + $0x5f0] sm:$0xff] }
0x185d   :  { %7964 = vmatpush.bf16.msrb.mxu2 %v12368_v32  ;;  %7983 = vmatpush.bf16.msrb.mxu3 %v12372_v49  ;;  %v12048_v32 = vor.u32 %v13534_v60, %v12047_v57  ;;  %v12052_v49 = vor.u32 %v13526_v28, %v12049_v40  ;;  %v13685_v57 = vld [vmem:[#allocation5 + $0x528] sm:$0xff]  ;;  %v13699_v60 = vld [vmem:[#allocation5 + $0x598] sm:$0xff]  ;;  %v15729_v40 = vld [vmem:[%s15905_s15 + $0x10] sm:$0xff] }
0x185e   :  { %8002 = vmatpush.bf16.msra.mxu0 %v12376_v35  ;;  %8021 = vmatpush.bf16.msra.mxu1 %v12380_v27  ;;  %v13527_v35 = vld [vmem:[#allocation2 + $0x43c] sm:$0xf] }
0x185f   :  { %v12057_v27 = vld [vmem:[#allocation2 + $0x478] sm:$0xf0] }
0x1860   :  { %v12060_v63 = vor.u32 %v13527_v35, %v12057_v27  ;;  %v13707_v28 = vld [vmem:[#allocation5 + $0x5d8] sm:$0xff]  ;;  %v15732_v35 = vperm.slane %v15729_v40, 2  ;;  %v15735_v27 = vperm.slane %v15729_v40, 3 }
0x1861   :  { %7965 = vmatpush.bf16.msrb.mxu2 %v12304_v39  ;;  %7984 = vmatpush.bf16.msrb.mxu3 %v12308_v58  ;;  %v13670_v39 = vld [vmem:[#allocation5 + $0x4b0] sm:$0xff] }
0x1862   :  { %8003 = vmatpush.bf16.msra.mxu0 %v12312_v48  ;;  %8022 = vmatpush.bf16.msra.mxu1 %v12316_v26  ;;  %v13678_v58 = vld [vmem:[#allocation5 + $0x4f0] sm:$0xff]  ;;  %v13677_v48 = vld [vmem:[#allocation5 + $0x4e8] sm:$0xff] }
0x1863   :  { %7823 = vmatmul.bf16.gmra.mxu2 %v15696_v19  ;;  %7842 = vmatmul.bf16.gmra.mxu3 %v15696_v19  ;;  %v13654_v26 = vld [vmem:[#allocation5 + $0x430] sm:$0xff] }
0x1864   :  { %7861 = vmatmul.bf16.gmra.mxu0 %v15696_v19  ;;  %7880 = vmatmul.bf16.gmra.mxu1 %v15696_v19 }
0x1865   :  { %7966 = vmatpush.bf16.msrb.mxu2 %v12240_v38  ;;  %7985 = vmatpush.bf16.msrb.mxu3 %v12244_v47  ;;  %v13653_v38 = vld [vmem:[#allocation5 + $0x428] sm:$0xff]  ;;  %v13652_v47 = vld [vmem:[#allocation5 + $0x420] sm:$0xff] }
0x1866   :  { %8004 = vmatpush.bf16.msra.mxu0 %v12248_v14  ;;  %8023 = vmatpush.bf16.msra.mxu1 %v12252_v37  ;;  %v13651_v14 = vld [vmem:[#allocation5 + $0x418] sm:$0xff] }
0x1867   :  { %v13659_v37 = vld [vmem:[#allocation5 + $0x458] sm:$0xff] }
0x1869   :  { %7967 = vmatpush.bf16.msrb.mxu2 %v12176_v15  ;;  %7986 = vmatpush.bf16.msrb.mxu3 %v12180_v54  ;;  %v13658_v15 = vld [vmem:[#allocation5 + $0x450] sm:$0xff]  ;;  %v13664_v54 = vld [vmem:[#allocation5 + $0x480] sm:$0xff] }
0x186a   :  { %8005 = vmatpush.bf16.msra.mxu0 %v12184_v2  ;;  %8024 = vmatpush.bf16.msra.mxu1 %v12188_v36  ;;  %v13687_v2 = vld [vmem:[#allocation5 + $0x538] sm:$0xff] }
0x186b   :  { %v13695_v36 = vld [vmem:[#allocation5 + $0x578] sm:$0xff] }
0x186d   :  { %7968 = vmatpush.bf16.msrb.mxu2 %v12112_v46  ;;  %7987 = vmatpush.bf16.msrb.mxu3 %v12116_v44  ;;  %v13686_v46 = vld [vmem:[#allocation5 + $0x530] sm:$0xff] }
0x186e   :  { %8006 = vmatpush.bf16.msra.mxu0 %v12120_v43  ;;  %8025 = vmatpush.bf16.msra.mxu1 %v12124_v17  ;;  %v13694_v44 = vld [vmem:[#allocation5 + $0x570] sm:$0xff] }
0x1871   :  { %7969 = vmatpush.bf16.msrb.mxu2 %v12048_v32  ;;  %7988 = vmatpush.bf16.msrb.mxu3 %v12052_v49  ;;  %v13692_v32 = vld [vmem:[#allocation5 + $0x560] sm:$0xff]  ;;  %v13698_v49 = vld [vmem:[#allocation5 + $0x590] sm:$0xff] }
0x1872   :  { %8007 = vmatpush.bf16.msra.mxu0 %v12056_v56  ;;  %8026 = vmatpush.bf16.msra.mxu1 %v12060_v63  ;;  %v13683_v56 = vld [vmem:[#allocation5 + $0x518] sm:$0xff] }
0x1873   :  { %7894 = vmatmul.bf16.vlgmr.msra.gmra.mxu2 %v15658_v41  ;;  %7913 = vmatmul.bf16.vlgmr.msra.gmra.mxu3 %v15658_v41  ;;  %v13691_v63 = vld [vmem:[#allocation5 + $0x558] sm:$0xff] }
0x1874   :  { %7932 = vmatmul.bf16.vlgmr.msrb.gmra.mxu0 %v15658_v41  ;;  %7951 = vmatmul.bf16.vlgmr.msrb.gmra.mxu1 %v15658_v41 }
0x1875   :  { %9164 = vmatpush.bf16.msra.mxu2 %v13655_v12  ;;  %9183 = vmatpush.bf16.msra.mxu3 %v13663_v51 }
0x1876   :  { %9202 = vmatpush.bf16.msrb.mxu0 %v13671_v3  ;;  %9221 = vmatpush.bf16.msrb.mxu1 %v13679_v21 }
0x1879   :  { %9165 = vmatpush.bf16.msra.mxu2 %v13654_v26  ;;  %9184 = vmatpush.bf16.msra.mxu3 %v13662_v13 }
0x187a   :  { %9203 = vmatpush.bf16.msrb.mxu0 %v13670_v39  ;;  %9222 = vmatpush.bf16.msrb.mxu1 %v13678_v58  ;;  %v13697_v39 = vld [vmem:[#allocation5 + $0x588] sm:$0xff] }
0x187b   :  { %v13705_v58 = vld [vmem:[#allocation5 + $0x5c8] sm:$0xff] }
0x187d   :  { %9166 = vmatpush.bf16.msra.mxu2 %v13653_v38  ;;  %9185 = vmatpush.bf16.msra.mxu3 %v13661_v23 }
0x187e   :  { %9204 = vmatpush.bf16.msrb.mxu0 %v13669_v61  ;;  %9223 = vmatpush.bf16.msrb.mxu1 %v13677_v48  ;;  %v15740_v61 = vperm.slane %v15729_v40, 0  ;;  %v15743_v48 = vperm.slane %v15729_v40, 1 }
0x1881   :  { %9167 = vmatpush.bf16.msra.mxu2 %v13652_v47  ;;  %9186 = vmatpush.bf16.msra.mxu3 %v13660_v18 }
0x1882   :  { %9205 = vmatpush.bf16.msrb.mxu0 %v13668_v8  ;;  %9224 = vmatpush.bf16.msrb.mxu1 %v13676_v20  ;;  %v13682_v8 = vld [vmem:[#allocation5 + $0x510] sm:$0xff] }
0x1883   :  { %7899 = vmatmul.bf16.gmra.mxu2 %v15696_v19  ;;  %7918 = vmatmul.bf16.gmra.mxu3 %v15696_v19  ;;  %v13690_v20 = vld [vmem:[#allocation5 + $0x550] sm:$0xff] }
0x1884   :  { %7937 = vmatmul.bf16.gmra.mxu0 %v15696_v19  ;;  %7956 = vmatmul.bf16.gmra.mxu1 %v15696_v19 }
0x1885   :  { %9168 = vmatpush.bf16.msra.mxu2 %v13651_v14  ;;  %9187 = vmatpush.bf16.msra.mxu3 %v13659_v37 }
0x1886   :  { %9206 = vmatpush.bf16.msrb.mxu0 %v13667_v6  ;;  %9225 = vmatpush.bf16.msrb.mxu1 %v13675_v0  ;;  %v13696_v6 = vld [vmem:[#allocation5 + $0x580] sm:$0xff] }
0x1887   :  { %v13704_v0 = vld [vmem:[#allocation5 + $0x5c0] sm:$0xff] }
0x1889   :  { %9169 = vmatpush.bf16.msra.mxu2 %v13650_v45  ;;  %9188 = vmatpush.bf16.msra.mxu3 %v13658_v15 }
0x188a   :  { %9207 = vmatpush.bf16.msrb.mxu0 %v13666_v50  ;;  %9226 = vmatpush.bf16.msrb.mxu1 %v13674_v4 }
0x188d   :  { %9170 = vmatpush.bf16.msra.mxu2 %v13649_v30 }
0x188e   :  { %9208 = vmatpush.bf16.msrb.mxu0 %v13665_v5  ;;  %9227 = vmatpush.bf16.msrb.mxu1 %v13673_v10  ;;  %v13681_v5 = vld [vmem:[#allocation5 + $0x508] sm:$0xff] }
0x188f   :  { %v13689_v10 = vld [vmem:[#allocation5 + $0x548] sm:$0xff] }
0x1891   :  { %9171 = vmatpush.bf16.msra.mxu2 %v13648_v24 }
0x1892   :  { %9209 = vmatpush.bf16.msrb.mxu0 %v13664_v54  ;;  %9228 = vmatpush.bf16.msrb.mxu1 %v13672_v16 }
0x1893   :  { %7970 = vmatmul.bf16.vlgmr.msrb.gmra.mxu2 %v15658_v41  ;;  %7989 = vmatmul.bf16.vlgmr.msrb.gmra.mxu3 %v15658_v41 }
0x1894   :  { %8008 = vmatmul.bf16.vlgmr.msra.gmra.mxu0 %v15658_v41  ;;  %8027 = vmatmul.bf16.vlgmr.msra.gmra.mxu1 %v15658_v41  ;;  %v13657_v41 = vld [vmem:[#allocation5 + $0x448] sm:$0xff] }
0x1895   :  { %9189 = vmatpush.bf16.msra.mxu3 %v13657_v41  ;;  %9240 = vmatpush.bf16.msrb.mxu2 %v13687_v2 }
0x1896   :  { %9278 = vmatpush.bf16.msra.mxu0 %v13703_v9  ;;  %9297 = vmatpush.bf16.msra.mxu1 %v13711_v1  ;;  %v13735_v9 = vld [vmem:[#allocation5 + $0x6b8] sm:$0xff] }
0x1897   :  { %v13743_v1 = vld [vmem:[#allocation5 + $0x6f8] sm:$0xff] }
0x1899   :  { %9190 = vmatpush.bf16.msra.mxu3 %v13656_v22  ;;  %9241 = vmatpush.bf16.msrb.mxu2 %v13686_v46 }
0x189a   :  { %9279 = vmatpush.bf16.msra.mxu0 %v13702_v31  ;;  %9298 = vmatpush.bf16.msra.mxu1 %v13710_v25 }
0x189d   :  { %9259 = vmatpush.bf16.msrb.mxu3 %v13695_v36  ;;  %9242 = vmatpush.bf16.msrb.mxu2 %v13685_v57  ;;  %v13719_v57 = vld [vmem:[#allocation5 + $0x638] sm:$0xff] }
0x189e   :  { %9280 = vmatpush.bf16.msra.mxu0 %v13701_v59  ;;  %9299 = vmatpush.bf16.msra.mxu1 %v13709_v29  ;;  %v13680_v59 = vld [vmem:[#allocation5 + $0x500] sm:$0xff] }
0x189f   :  { %v13688_v29 = vld [vmem:[#allocation5 + $0x540] sm:$0xff] }
0x18a1   :  { %9260 = vmatpush.bf16.msrb.mxu3 %v13694_v44  ;;  %9243 = vmatpush.bf16.msrb.mxu2 %v13684_v11 }
0x18a2   :  { %9281 = vmatpush.bf16.msra.mxu0 %v13700_v62  ;;  %9300 = vmatpush.bf16.msra.mxu1 %v13708_v53  ;;  %v13734_v62 = vld [vmem:[#allocation5 + $0x6b0] sm:$0xff] }
0x18a3   :  { %7975 = vmatmul.bf16.gmra.mxu2 %v15696_v19  ;;  %7994 = vmatmul.bf16.gmra.mxu3 %v15696_v19  ;;  %v13742_v53 = vld [vmem:[#allocation5 + $0x6f0] sm:$0xff] }
0x18a4   :  { %8013 = vmatmul.bf16.gmra.mxu0 %v15696_v19  ;;  %8032 = vmatmul.bf16.gmra.mxu1 %v15696_v19  ;;  %v13693_v19 = vld [vmem:[#allocation5 + $0x568] sm:$0xff] }
0x18a5   :  { %9261 = vmatpush.bf16.msrb.mxu3 %v13693_v19  ;;  %9244 = vmatpush.bf16.msrb.mxu2 %v13683_v56  ;;  %v13727_v19 = vld [vmem:[#allocation5 + $0x678] sm:$0xff]  ;;  %v13718_v56 = vld [vmem:[#allocation5 + $0x630] sm:$0xff] }
0x18a6   :  { %9282 = vmatpush.bf16.msra.mxu0 %v13699_v60  ;;  %9301 = vmatpush.bf16.msra.mxu1 %v13707_v28 }
0x18a9   :  { %9262 = vmatpush.bf16.msrb.mxu3 %v13692_v32  ;;  %9245 = vmatpush.bf16.msrb.mxu2 %v13682_v8 }
0x18aa   :  { %9283 = vmatpush.bf16.msra.mxu0 %v13698_v49  ;;  %9302 = vmatpush.bf16.msra.mxu1 %v13706_v7 }
0x18ad   :  { %9263 = vmatpush.bf16.msrb.mxu3 %v13691_v63  ;;  %9246 = vmatpush.bf16.msrb.mxu2 %v13681_v5  ;;  %v13726_v63 = vld [vmem:[#allocation5 + $0x670] sm:$0xff] }
0x18ae   :  { %9284 = vmatpush.bf16.msra.mxu0 %v13697_v39  ;;  %9303 = vmatpush.bf16.msra.mxu1 %v13705_v58  ;;  %v13732_v39 = vld [vmem:[#allocation5 + $0x6a0] sm:$0xff] }
0x18af   :  { %v13740_v58 = vld [vmem:[#allocation5 + $0x6e0] sm:$0xff] }
0x18b1   :  { %v7781_v43 = vpop.f32.mrf.mxu0  ;;  %v7800_v17 = vpop.f32.mrf.mxu1  ;;  %9264 = vmatpush.bf16.msrb.mxu3 %v13690_v20  ;;  %9247 = vmatpush.bf16.msrb.mxu2 %v13680_v59 }
0x18b2   :  { %v7782_v12 = vadd.f32 %v7781_v43, %v15732_v35  ;;  %v7801_v51 = vadd.f32 %v7800_v17, %v15735_v27  ;;  %9285 = vmatpush.bf16.msra.mxu0 %v13696_v6  ;;  %9304 = vmatpush.bf16.msra.mxu1 %v13704_v0  ;;  %v13733_v43 = vld [vmem:[#allocation5 + $0x6a8] sm:$0xff] }
0x18b3   :  { %v13741_v17 = vld [vmem:[#allocation5 + $0x6e8] sm:$0xff] }
0x18b4   :  { %v8040_v47 = vmax.f32 %v7782_v12, 0.0  ;;  %v8041_v18 = vmax.f32 %v7801_v51, 0.0 }
0x18b5   :  { %9265 = vmatpush.bf16.msrb.mxu3 %v13689_v10 }
0x18b6   :  { %v7743_v3 = vpop.f32.mrf.mxu2  ;;  %v7762_v21 = vpop.f32.mrf.mxu3 }
0x18b7   :  { %v7744_v14 = vadd.f32 %v7743_v3, %v15740_v61  ;;  %v7763_v37 = vadd.f32 %v7762_v21, %v15743_v48 }
0x18b9   :  { %v7783_v26 = vpop.f32.mrf.mxu0  ;;  %v7802_v13 = vpop.f32.mrf.mxu1  ;;  %v8038_v24 = vmax.f32 %v7744_v14, 0.0  ;;  %v8039_v22 = vmax.f32 %v7763_v37, 0.0  ;;  %9266 = vmatpush.bf16.msrb.mxu3 %v13688_v29 }
0x18ba   :  { %v7784_v38 = vadd.f32 %v7783_v26, %v15732_v35  ;;  %v7803_v23 = vadd.f32 %v7802_v13, %v15735_v27 }
0x18bc   :  { %v8056_v50 = vmax.f32 %v7784_v38, 0.0  ;;  %v8057_v4 = vmax.f32 %v7803_v23, 0.0  ;;  %v13717_v38 = vld [vmem:[#allocation5 + $0x628] sm:$0xff] }
0x18bd   :  { %v13725_v23 = vld [vmem:[#allocation5 + $0x668] sm:$0xff] }
0x18be   :  { %v8361_v45 = vpack.c.bf16 %v8056_v50, %v8040_v47  ;;  %v8362_v15 = vpack.c.bf16 %v8057_v4, %v8041_v18  ;;  %v7745_v54 = vpop.f32.mrf.mxu2  ;;  %v7764_v16 = vpop.f32.mrf.mxu3  ;;  %v13731_v50 = vld [vmem:[#allocation5 + $0x698] sm:$0xff] }
0x18bf   :  { %v7746_v30 = vadd.f32 %v7745_v54, %v15740_v61  ;;  %v7765_v41 = vadd.f32 %v7764_v16, %v15743_v48  ;;  %v13739_v4 = vld [vmem:[#allocation5 + $0x6d8] sm:$0xff]  ;;  %v13716_v54 = vld [vmem:[#allocation5 + $0x620] sm:$0xff] }
0x18c0   :  { %9210 = vmatmul.bf16.vlgmr.msrb.gmra.mxu0 %v8361_v45  ;;  %9229 = vmatmul.bf16.vlgmr.msrb.gmra.mxu1 %v8362_v15  ;;  %v13724_v16 = vld [vmem:[#allocation5 + $0x660] sm:$0xff] }
0x18c1   :  { %v8054_v31 = vmax.f32 %v7746_v30, 0.0  ;;  %v8055_v25 = vmax.f32 %v7765_v41, 0.0  ;;  %v7786_v2 = vpop.f32.mrf.mxu0  ;;  %v7805_v36 = vpop.f32.mrf.mxu1  ;;  %9354 = vmatpush.bf16.msrb.mxu0 %v13735_v9  ;;  %9373 = vmatpush.bf16.msrb.mxu1 %v13743_v1  ;;  %v13738_v41 = vld [vmem:[#allocation5 + $0x6d0] sm:$0xff]  ;;  %v15760_v9 = vperm.slane %v15729_v40, 6  ;;  %v15763_v1 = vperm.slane %v15729_v40, 7 }
0x18c2   :  { %v7787_v11 = vadd.f32 %v7786_v2, %v15732_v35  ;;  %v7806_v32 = vadd.f32 %v7805_v36, %v15735_v27  ;;  %v13729_v2 = vld [vmem:[#allocation5 + $0x688] sm:$0xff] }
0x18c3   :  { %v8359_v46 = vpack.c.bf16 %v8054_v31, %v8038_v24  ;;  %v8360_v44 = vpack.c.bf16 %v8055_v25, %v8039_v22  ;;  %v13715_v24 = vld [vmem:[#allocation5 + $0x618] sm:$0xff]  ;;  %v13737_v36 = vld [vmem:[#allocation5 + $0x6c8] sm:$0xff] }
0x18c4   :  { %v8072_v12 = vmax.f32 %v7787_v11, 0.0  ;;  %v8073_v51 = vmax.f32 %v7806_v32, 0.0  ;;  %v13723_v22 = vld [vmem:[#allocation5 + $0x658] sm:$0xff] }
0x18c5   :  { %9172 = vmatmul.bf16.vlgmr.msra.gmra.mxu2 %v8359_v46  ;;  %9191 = vmatmul.bf16.vlgmr.msra.gmra.mxu3 %v8360_v44  ;;  %v15768_v46 = vperm.slane %v15729_v40, 4  ;;  %v15771_v44 = vperm.slane %v15729_v40, 5 }
0x18c6   :  { %v7748_v60 = vpop.f32.mrf.mxu2  ;;  %v7767_v28 = vpop.f32.mrf.mxu3  ;;  %9355 = vmatpush.bf16.msrb.mxu0 %v13734_v62  ;;  %9374 = vmatpush.bf16.msrb.mxu1 %v13742_v53 }
0x18c7   :  { %9316 = vmatpush.bf16.msra.mxu2 %v13719_v57  ;;  %9335 = vmatpush.bf16.msra.mxu3 %v13727_v19  ;;  %v7749_v8 = vadd.f32 %v7748_v60, %v15740_v61  ;;  %v7768_v20 = vadd.f32 %v7767_v28, %v15743_v48  ;;  %v13714_v57 = vld [vmem:[#allocation5 + $0x610] sm:$0xff] }
0x18c8   :  { %v13722_v19 = vld [vmem:[#allocation5 + $0x650] sm:$0xff] }
0x18c9   :  { %v7788_v49 = vpop.f32.mrf.mxu0  ;;  %v7807_v7 = vpop.f32.mrf.mxu1  ;;  %v8070_v14 = vmax.f32 %v7749_v8, 0.0  ;;  %v8071_v37 = vmax.f32 %v7768_v20, 0.0  ;;  %v13775_v8 = vld [vmem:[#allocation5 + $0x7f8] sm:$0xff] }
0x18ca   :  { %v7789_v3 = vadd.f32 %v7788_v49, %v15732_v35  ;;  %v7808_v21 = vadd.f32 %v7807_v7, %v15735_v27  ;;  %9356 = vmatpush.bf16.msrb.mxu0 %v13733_v43  ;;  %9375 = vmatpush.bf16.msrb.mxu1 %v13741_v17  ;;  %v13728_v43 = vld [vmem:[#allocation5 + $0x680] sm:$0xff] }
0x18cb   :  { %9317 = vmatpush.bf16.msra.mxu2 %v13718_v56  ;;  %9336 = vmatpush.bf16.msra.mxu3 %v13726_v63  ;;  %v13736_v17 = vld [vmem:[#allocation5 + $0x6c0] sm:$0xff]  ;;  %v13713_v63 = vld [vmem:[#allocation5 + $0x608] sm:$0xff] }
0x18cc   :  { %v8088_v26 = vmax.f32 %v7789_v3, 0.0  ;;  %v8089_v13 = vmax.f32 %v7808_v21, 0.0  ;;  %v13721_v3 = vld [vmem:[#allocation5 + $0x648] sm:$0xff] }
0x18ce   :  { %v7750_v6 = vpop.f32.mrf.mxu2  ;;  %v7769_v35 = vpop.f32.mrf.mxu3  ;;  %v8377_v0 = vpack.c.bf16 %v8088_v26, %v8072_v12  ;;  %v8378_v27 = vpack.c.bf16 %v8089_v13, %v8073_v51  ;;  %9357 = vmatpush.bf16.msrb.mxu0 %v13732_v39  ;;  %9376 = vmatpush.bf16.msrb.mxu1 %v13740_v58  ;;  %v13767_v13 = vld [vmem:[#allocation5 + $0x7b8] sm:$0xff] }
0x18cf   :  { %v7751_v47 = vadd.f32 %v7750_v6, %v15740_v61  ;;  %v7770_v18 = vadd.f32 %v7769_v35, %v15743_v48  ;;  %9318 = vmatpush.bf16.msra.mxu2 %v13717_v38  ;;  %9337 = vmatpush.bf16.msra.mxu3 %v13725_v23  ;;  %v13730_v48 = vld [vmem:[#allocation5 + $0x690] sm:$0xff] }
0x18d0   :  { %9215 = vmatmul.bf16.gmra.mxu0 %v8377_v0  ;;  %9234 = vmatmul.bf16.gmra.mxu1 %v8378_v27  ;;  %v13712_v27 = vld [vmem:[#allocation5 + $0x600] sm:$0xff] }
0x18d1   :  { %v8086_v5 = vmax.f32 %v7751_v47, 0.0  ;;  %v8087_v10 = vmax.f32 %v7770_v18, 0.0  ;;  %v7857_v45 = vpop.f32.mrf.mxu0  ;;  %v7876_v15 = vpop.f32.mrf.mxu1  ;;  %v13720_v47 = vld [vmem:[#allocation5 + $0x640] sm:$0xff] }
0x18d2   :  { %9358 = vmatpush.bf16.msrb.mxu0 %v13731_v50  ;;  %9377 = vmatpush.bf16.msrb.mxu1 %v13739_v4  ;;  %v7858_v59 = vadd.f32 %v7857_v45, %v15760_v9  ;;  %v7877_v29 = vadd.f32 %v7876_v15, %v15763_v1  ;;  %v13766_v4 = vld [vmem:[#allocation5 + $0x7b0] sm:$0xff]  ;;  %v13765_v15 = vld [vmem:[#allocation5 + $0x7a8] sm:$0xff] }
0x18d3   :  { %v8375_v30 = vpack.c.bf16 %v8086_v5, %v8070_v14  ;;  %v8376_v61 = vpack.c.bf16 %v8087_v10, %v8071_v37  ;;  %9319 = vmatpush.bf16.msra.mxu2 %v13716_v54  ;;  %9338 = vmatpush.bf16.msra.mxu3 %v13724_v16  ;;  %v13774_v14 = vld [vmem:[#allocation5 + $0x7f0] sm:$0xff]  ;;  %v13751_v37 = vld [vmem:[#allocation5 + $0x738] sm:$0xff]  ;;  %v13773_v54 = vld [vmem:[#allocation5 + $0x7e8] sm:$0xff] }
0x18d4   :  { %v8044_v11 = vmax.f32 %v7858_v59, 0.0  ;;  %v8045_v32 = vmax.f32 %v7877_v29, 0.0  ;;  %v13759_v5 = vld [vmem:[#allocation5 + $0x778] sm:$0xff] }
0x18d5   :  { %9177 = vmatmul.bf16.gmra.mxu2 %v8375_v30  ;;  %9196 = vmatmul.bf16.gmra.mxu3 %v8376_v61 }
0x18d6   :  { %v7819_v31 = vpop.f32.mrf.mxu2  ;;  %v7838_v25 = vpop.f32.mrf.mxu3  ;;  %9359 = vmatpush.bf16.msrb.mxu0 %v13730_v48  ;;  %9378 = vmatpush.bf16.msrb.mxu1 %v13738_v41  ;;  %v13750_v41 = vld [vmem:[#allocation5 + $0x730] sm:$0xff] }
0x18d7   :  { %9320 = vmatpush.bf16.msra.mxu2 %v13715_v24  ;;  %9339 = vmatpush.bf16.msra.mxu3 %v13723_v22  ;;  %v7820_v40 = vadd.f32 %v7819_v31, %v15768_v46  ;;  %v7839_v56 = vadd.f32 %v7838_v25, %v15771_v44  ;;  %v13758_v24 = vld [vmem:[#allocation5 + $0x770] sm:$0xff]  ;;  %v13764_v25 = vld [vmem:[#allocation5 + $0x7a0] sm:$0xff] }
0x18d9   :  { %v7859_v62 = vpop.f32.mrf.mxu0  ;;  %v7878_v53 = vpop.f32.mrf.mxu1  ;;  %v8042_v20 = vmax.f32 %v7820_v40, 0.0  ;;  %v8043_v38 = vmax.f32 %v7839_v56, 0.0 }
0x18da   :  { %v7860_v60 = vadd.f32 %v7859_v62, %v15760_v9  ;;  %v7879_v28 = vadd.f32 %v7878_v53, %v15763_v1  ;;  %9360 = vmatpush.bf16.msrb.mxu0 %v13729_v2  ;;  %9379 = vmatpush.bf16.msrb.mxu1 %v13737_v36  ;;  %v13772_v2 = vld [vmem:[#allocation5 + $0x7e0] sm:$0xff] }
0x18db   :  { %9321 = vmatpush.bf16.msra.mxu2 %v13714_v57  ;;  %9340 = vmatpush.bf16.msra.mxu3 %v13722_v19  ;;  %v13749_v19 = vld [vmem:[#allocation5 + $0x728] sm:$0xff] }
0x18dc   :  { %v8060_v49 = vmax.f32 %v7860_v60, 0.0  ;;  %v8061_v7 = vmax.f32 %v7879_v28, 0.0  ;;  %v13757_v60 = vld [vmem:[#allocation5 + $0x768] sm:$0xff] }
0x18de   :  { %v8365_v21 = vpack.c.bf16 %v8060_v49, %v8044_v11  ;;  %v8366_v39 = vpack.c.bf16 %v8061_v7, %v8045_v32  ;;  %v7821_v58 = vpop.f32.mrf.mxu2  ;;  %v7840_v12 = vpop.f32.mrf.mxu3  ;;  %9361 = vmatpush.bf16.msrb.mxu0 %v13728_v43  ;;  %9380 = vmatpush.bf16.msrb.mxu1 %v13736_v17  ;;  %v13763_v32 = vld [vmem:[#allocation5 + $0x798] sm:$0xff] }
0x18df   :  { %v7822_v51 = vadd.f32 %v7821_v58, %v15768_v46  ;;  %v7841_v26 = vadd.f32 %v7840_v12, %v15771_v44  ;;  %9322 = vmatpush.bf16.msra.mxu2 %v13713_v63  ;;  %9341 = vmatpush.bf16.msra.mxu3 %v13721_v3  ;;  %v13771_v49 = vld [vmem:[#allocation5 + $0x7d8] sm:$0xff]  ;;  %v13756_v58 = vld [vmem:[#allocation5 + $0x760] sm:$0xff] }
0x18e0   :  { %9286 = vmatmul.bf16.vlgmr.msra.gmra.mxu0 %v8365_v21  ;;  %9305 = vmatmul.bf16.vlgmr.msra.gmra.mxu1 %v8366_v39  ;;  %v15790_v7 = vld [vmem:[%s15905_s15 + $0x18] sm:$0xff] }
0x18e1   :  { %v8058_v23 = vmax.f32 %v7822_v51, 0.0  ;;  %v8059_v6 = vmax.f32 %v7841_v26, 0.0  ;;  %v7862_v35 = vpop.f32.mrf.mxu0  ;;  %v7881_v0 = vpop.f32.mrf.mxu1  ;;  %v13762_v51 = vld [vmem:[#allocation5 + $0x790] sm:$0xff] }
0x18e2   :  { %9430 = vmatpush.bf16.msra.mxu0 %v13767_v13  ;;  %9449 = vmatpush.bf16.msra.mxu1 %v13775_v8  ;;  %v7863_v16 = vadd.f32 %v7862_v35, %v15760_v9  ;;  %v7882_v30 = vadd.f32 %v7881_v0, %v15763_v1  ;;  %v13770_v26 = vld [vmem:[#allocation5 + $0x7d0] sm:$0xff]  ;;  %v15793_v13 = vperm.slane %v15790_v7, 2  ;;  %v15796_v8 = vperm.slane %v15790_v7, 3  ;;  %v13761_v35 = vld [vmem:[#allocation5 + $0x788] sm:$0xff] }
0x18e3   :  { %v8363_v18 = vpack.c.bf16 %v8058_v23, %v8042_v20  ;;  %v8364_v50 = vpack.c.bf16 %v8059_v6, %v8043_v38  ;;  %9323 = vmatpush.bf16.msra.mxu2 %v13712_v27  ;;  %9342 = vmatpush.bf16.msra.mxu3 %v13720_v47  ;;  %v13747_v20 = vld [vmem:[#allocation5 + $0x718] sm:$0xff]  ;;  %v13769_v0 = vld [vmem:[#allocation5 + $0x7c8] sm:$0xff] }
0x18e4   :  { %v8076_v36 = vmax.f32 %v7863_v16, 0.0  ;;  %v8077_v59 = vmax.f32 %v7882_v30, 0.0  ;;  %v13755_v38 = vld [vmem:[#allocation5 + $0x758] sm:$0xff] }
0x18e5   :  { %9248 = vmatmul.bf16.vlgmr.msrb.gmra.mxu2 %v8363_v18  ;;  %9267 = vmatmul.bf16.vlgmr.msrb.gmra.mxu3 %v8364_v50  ;;  %v15801_v18 = vperm.slane %v15790_v7, 0  ;;  %v15804_v50 = vperm.slane %v15790_v7, 1 }
0x18e6   :  { %v7824_v10 = vpop.f32.mrf.mxu2  ;;  %v7843_v45 = vpop.f32.mrf.mxu3  ;;  %9431 = vmatpush.bf16.msra.mxu0 %v13766_v4  ;;  %9450 = vmatpush.bf16.msra.mxu1 %v13774_v14 }
0x18e7   :  { %9392 = vmatpush.bf16.msrb.mxu2 %v13751_v37  ;;  %9411 = vmatpush.bf16.msrb.mxu3 %v13759_v5  ;;  %v7825_v53 = vadd.f32 %v7824_v10, %v15768_v46  ;;  %v7844_v57 = vadd.f32 %v7843_v45, %v15771_v44  ;;  %v13746_v37 = vld [vmem:[#allocation5 + $0x710] sm:$0xff] }
0x18e8   :  { %v13754_v5 = vld [vmem:[#allocation5 + $0x750] sm:$0xff] }
0x18e9   :  { %v7864_v61 = vpop.f32.mrf.mxu0  ;;  %v7883_v48 = vpop.f32.mrf.mxu1  ;;  %v8074_v40 = vmax.f32 %v7825_v53, 0.0  ;;  %v8075_v56 = vmax.f32 %v7844_v57, 0.0 }
0x18ea   :  { %v7865_v22 = vadd.f32 %v7864_v61, %v15760_v9  ;;  %v7884_v31 = vadd.f32 %v7883_v48, %v15763_v1  ;;  %9432 = vmatpush.bf16.msra.mxu0 %v13765_v15  ;;  %9451 = vmatpush.bf16.msra.mxu1 %v13773_v54  ;;  %v13760_v15 = vld [vmem:[#allocation5 + $0x780] sm:$0xff] }
0x18eb   :  { %9393 = vmatpush.bf16.msrb.mxu2 %v13750_v41  ;;  %9412 = vmatpush.bf16.msrb.mxu3 %v13758_v24  ;;  %v13768_v54 = vld [vmem:[#allocation5 + $0x7c0] sm:$0xff] }
0x18ec   :  { %v8092_v29 = vmax.f32 %v7865_v22, 0.0  ;;  %v8093_v62 = vmax.f32 %v7884_v31, 0.0  ;;  %v13745_v22 = vld [vmem:[#allocation5 + $0x708] sm:$0xff] }
0x18ed   :  { %v13753_v31 = vld [vmem:[#allocation5 + $0x748] sm:$0xff] }
0x18ee   :  { %v7826_v28 = vpop.f32.mrf.mxu2  ;;  %v7845_v9 = vpop.f32.mrf.mxu3  ;;  %v8381_v43 = vpack.c.bf16 %v8092_v29, %v8076_v36  ;;  %v8382_v1 = vpack.c.bf16 %v8093_v62, %v8077_v59  ;;  %9433 = vmatpush.bf16.msra.mxu0 %v13764_v25  ;;  %9452 = vmatpush.bf16.msra.mxu1 %v13772_v2 }
0x18ef   :  { %v7827_v17 = vadd.f32 %v7826_v28, %v15768_v46  ;;  %v7846_v11 = vadd.f32 %v7845_v9, %v15771_v44  ;;  %9394 = vmatpush.bf16.msrb.mxu2 %v13749_v19  ;;  %9413 = vmatpush.bf16.msrb.mxu3 %v13757_v60  ;;  %v13748_v46 = vld [vmem:[#allocation5 + $0x720] sm:$0xff] }
0x18f0   :  { %9291 = vmatmul.bf16.gmra.mxu0 %v8381_v43  ;;  %9310 = vmatmul.bf16.gmra.mxu1 %v8382_v1  ;;  %v13744_v43 = vld [vmem:[#allocation5 + $0x700] sm:$0xff] }
0x18f1   :  { %v8090_v63 = vmax.f32 %v7827_v17, 0.0  ;;  %v8091_v3 = vmax.f32 %v7846_v11, 0.0  ;;  %v7933_v21 = vpop.f32.mrf.mxu0  ;;  %v7952_v39 = vpop.f32.mrf.mxu1  ;;  %v13752_v1 = vld [vmem:[#allocation5 + $0x740] sm:$0xff] }
0x18f2   :  { %9434 = vmatpush.bf16.msra.mxu0 %v13763_v32  ;;  %9453 = vmatpush.bf16.msra.mxu1 %v13771_v49  ;;  %v7934_v27 = vadd.f32 %v7933_v21, %v15793_v13  ;;  %v7953_v47 = vadd.f32 %v7952_v39, %v15796_v8 }
0x18f3   :  { %v8379_v44 = vpack.c.bf16 %v8090_v63, %v8074_v40  ;;  %v8380_v12 = vpack.c.bf16 %v8091_v3, %v8075_v56  ;;  %9395 = vmatpush.bf16.msrb.mxu2 %v13748_v46  ;;  %9414 = vmatpush.bf16.msrb.mxu3 %v13756_v58 }
0x18f4   :  { %v8048_v16 = vmax.f32 %v7934_v27, 0.0  ;;  %v8049_v30 = vmax.f32 %v7953_v47, 0.0 }
0x18f5   :  { %9253 = vmatmul.bf16.gmra.mxu2 %v8379_v44  ;;  %9272 = vmatmul.bf16.gmra.mxu3 %v8380_v12 }
0x18f6   :  { %v7895_v23 = vpop.f32.mrf.mxu2  ;;  %v7914_v6 = vpop.f32.mrf.mxu3  ;;  %9435 = vmatpush.bf16.msra.mxu0 %v13762_v51  ;;  %9454 = vmatpush.bf16.msra.mxu1 %v13770_v26 }
0x18f7   :  { %9396 = vmatpush.bf16.msrb.mxu2 %v13747_v20  ;;  %9415 = vmatpush.bf16.msrb.mxu3 %v13755_v38  ;;  %v7896_v41 = vadd.f32 %v7895_v23, %v15801_v18  ;;  %v7915_v24 = vadd.f32 %v7914_v6, %v15804_v50 }
0x18f9   :  { %v7935_v4 = vpop.f32.mrf.mxu0  ;;  %v7954_v14 = vpop.f32.mrf.mxu1  ;;  %v8046_v53 = vmax.f32 %v7896_v41, 0.0  ;;  %v8047_v57 = vmax.f32 %v7915_v24, 0.0 }
0x18fa   :  { %v7936_v10 = vadd.f32 %v7935_v4, %v15793_v13  ;;  %v7955_v45 = vadd.f32 %v7954_v14, %v15796_v8  ;;  %9436 = vmatpush.bf16.msra.mxu0 %v13761_v35  ;;  %9455 = vmatpush.bf16.msra.mxu1 %v13769_v0 }
0x18fb   :  { %9397 = vmatpush.bf16.msrb.mxu2 %v13746_v37  ;;  %9416 = vmatpush.bf16.msrb.mxu3 %v13754_v5 }
0x18fc   :  { %v8064_v61 = vmax.f32 %v7936_v10, 0.0  ;;  %v8065_v48 = vmax.f32 %v7955_v45, 0.0  ;;  %v7076_v10 = vperm.slane %v15790_v7, 6  ;;  %v7077_v45 = vperm.slane %v15790_v7, 7 }
0x18fe   :  { %v8369_v25 = vpack.c.bf16 %v8064_v61, %v8048_v16  ;;  %v8370_v2 = vpack.c.bf16 %v8065_v48, %v8049_v30  ;;  %v7897_v36 = vpop.f32.mrf.mxu2  ;;  %v7916_v59 = vpop.f32.mrf.mxu3  ;;  %9437 = vmatpush.bf16.msra.mxu0 %v13760_v15  ;;  %9456 = vmatpush.bf16.msra.mxu1 %v13768_v54  ;;  %v7074_v16 = vperm.slane %v15790_v7, 4  ;;  %v7075_v30 = vperm.slane %v15790_v7, 5 }
0x18ff   :  { %v7898_v29 = vadd.f32 %v7897_v36, %v15801_v18  ;;  %v7917_v62 = vadd.f32 %v7916_v59, %v15804_v50  ;;  %9398 = vmatpush.bf16.msrb.mxu2 %v13745_v22  ;;  %9417 = vmatpush.bf16.msrb.mxu3 %v13753_v31 }
0x1900   :  { %9362 = vmatmul.bf16.vlgmr.msrb.gmra.mxu0 %v8369_v25  ;;  %9381 = vmatmul.bf16.vlgmr.msrb.gmra.mxu1 %v8370_v2 }
0x1901   :  { %v8062_v19 = vmax.f32 %v7898_v29, 0.0  ;;  %v8063_v60 = vmax.f32 %v7917_v62, 0.0  ;;  %v7938_v28 = vpop.f32.mrf.mxu0  ;;  %v7957_v9 = vpop.f32.mrf.mxu1 }
0x1902   :  { %v7939_v40 = vadd.f32 %v7938_v28, %v15793_v13  ;;  %v7958_v56 = vadd.f32 %v7957_v9, %v15796_v8 }
0x1903   :  { %v8367_v17 = vpack.c.bf16 %v8062_v19, %v8046_v53  ;;  %v8368_v11 = vpack.c.bf16 %v8063_v60, %v8047_v57  ;;  %9399 = vmatpush.bf16.msrb.mxu2 %v13744_v43  ;;  %9418 = vmatpush.bf16.msrb.mxu3 %v13752_v1 }
0x1904   :  { %v8080_v46 = vmax.f32 %v7939_v40, 0.0  ;;  %v8081_v58 = vmax.f32 %v7958_v56, 0.0 }
0x1905   :  { %9324 = vmatmul.bf16.vlgmr.msra.gmra.mxu2 %v8367_v17  ;;  %9343 = vmatmul.bf16.vlgmr.msra.gmra.mxu3 %v8368_v11 }
0x1906   :  { %v7900_v32 = vpop.f32.mrf.mxu2  ;;  %v7919_v49 = vpop.f32.mrf.mxu3 }
0x1907   :  { %v7901_v51 = vadd.f32 %v7900_v32, %v15801_v18  ;;  %v7920_v26 = vadd.f32 %v7919_v49, %v15804_v50 }
0x1909   :  { %v7940_v63 = vpop.f32.mrf.mxu0  ;;  %v7959_v3 = vpop.f32.mrf.mxu1 }
0x190a   :  { %v7941_v21 = vadd.f32 %v7940_v63, %v15793_v13  ;;  %v7960_v39 = vadd.f32 %v7959_v3, %v15796_v8  ;;  %v8078_v13 = vmax.f32 %v7901_v51, 0.0  ;;  %v8079_v8 = vmax.f32 %v7920_v26, 0.0 }
0x190c   :  { %v8096_v44 = vmax.f32 %v7941_v21, 0.0  ;;  %v8097_v12 = vmax.f32 %v7960_v39, 0.0 }
0x190e   :  { %v8385_v20 = vpack.c.bf16 %v8096_v44, %v8080_v46  ;;  %v8386_v38 = vpack.c.bf16 %v8097_v12, %v8081_v58  ;;  %v7902_v23 = vpop.f32.mrf.mxu2  ;;  %v7921_v6 = vpop.f32.mrf.mxu3 }
0x190f   :  { %v7903_v35 = vadd.f32 %v7902_v23, %v15801_v18  ;;  %v7922_v0 = vadd.f32 %v7921_v6, %v15804_v50 }
0x1910   :  { %9367 = vmatmul.bf16.gmra.mxu0 %v8385_v20  ;;  %9386 = vmatmul.bf16.gmra.mxu1 %v8386_v38 }
0x1911   :  { %v8094_v27 = vmax.f32 %v7903_v35, 0.0  ;;  %v8095_v47 = vmax.f32 %v7922_v0, 0.0  ;;  %v8009_v4 = vpop.f32.mrf.mxu0  ;;  %v8028_v14 = vpop.f32.mrf.mxu1 }
0x1912   :  { %v8010_v54 = vadd.f32 %v8009_v4, %v7076_v10  ;;  %v8029_v50 = vadd.f32 %v8028_v14, %v7077_v45 }
0x1913   :  { %v8383_v37 = vpack.c.bf16 %v8094_v27, %v8078_v13  ;;  %v8384_v5 = vpack.c.bf16 %v8095_v47, %v8079_v8 }
0x1914   :  { %v8052_v22 = vmax.f32 %v8010_v54, 0.0  ;;  %v8053_v31 = vmax.f32 %v8029_v50, 0.0 }
0x1915   :  { %9329 = vmatmul.bf16.gmra.mxu2 %v8383_v37  ;;  %9348 = vmatmul.bf16.gmra.mxu3 %v8384_v5 }
0x1916   :  { %v7971_v15 = vpop.f32.mrf.mxu2  ;;  %v7990_v18 = vpop.f32.mrf.mxu3 }
0x1917   :  { %v7972_v36 = vadd.f32 %v7971_v15, %v7074_v16  ;;  %v7991_v59 = vadd.f32 %v7990_v18, %v7075_v30  ;;  %v13830_v18 = vld [vmem:[%s15907_s17 + $0x1] ss:$0 sm:$0xff] }
0x1919   :  { %v8011_v61 = vpop.f32.mrf.mxu0  ;;  %v8030_v48 = vpop.f32.mrf.mxu1  ;;  %v8050_v28 = vmax.f32 %v7972_v36, 0.0  ;;  %v8051_v7 = vmax.f32 %v7991_v59, 0.0 }
0x191a   :  { %v8012_v41 = vadd.f32 %v8011_v61, %v7076_v10  ;;  %v8031_v24 = vadd.f32 %v8030_v48, %v7077_v45 }
0x191c   :  { %v8068_v25 = vmax.f32 %v8012_v41, 0.0  ;;  %v8069_v2 = vmax.f32 %v8031_v24, 0.0 }
0x191e   :  { %v8373_v29 = vpack.c.bf16 %v8068_v25, %v8052_v22  ;;  %v8374_v62 = vpack.c.bf16 %v8069_v2, %v8053_v31  ;;  %v7973_v53 = vpop.f32.mrf.mxu2  ;;  %v7992_v57 = vpop.f32.mrf.mxu3 }
0x191f   :  { %v7974_v19 = vadd.f32 %v7973_v53, %v7074_v16  ;;  %v7993_v60 = vadd.f32 %v7992_v57, %v7075_v30 }
0x1920   :  { %9438 = vmatmul.bf16.vlgmr.msra.gmra.mxu0 %v8373_v29  ;;  %9457 = vmatmul.bf16.vlgmr.msra.gmra.mxu1 %v8374_v62 }
0x1921   :  { %v8066_v9 = vmax.f32 %v7974_v19, 0.0  ;;  %v8067_v43 = vmax.f32 %v7993_v60, 0.0  ;;  %v8014_v1 = vpop.f32.mrf.mxu0  ;;  %v8033_v17 = vpop.f32.mrf.mxu1 }
0x1922   :  { %v8015_v56 = vadd.f32 %v8014_v1, %v7076_v10  ;;  %v8034_v63 = vadd.f32 %v8033_v17, %v7077_v45 }
0x1923   :  { %v8371_v11 = vpack.c.bf16 %v8066_v9, %v8050_v28  ;;  %v8372_v32 = vpack.c.bf16 %v8067_v43, %v8051_v7 }
0x1924   :  { %v8084_v58 = vmax.f32 %v8015_v56, 0.0  ;;  %v8085_v44 = vmax.f32 %v8034_v63, 0.0 }
0x1925   :  { %9400 = vmatmul.bf16.vlgmr.msrb.gmra.mxu2 %v8371_v11  ;;  %9419 = vmatmul.bf16.vlgmr.msrb.gmra.mxu3 %v8372_v32 }
0x1926   :  { %v7976_v49 = vpop.f32.mrf.mxu2  ;;  %v7995_v40 = vpop.f32.mrf.mxu3 }
0x1927   :  { %v7977_v26 = vadd.f32 %v7976_v49, %v7074_v16  ;;  %v7996_v20 = vadd.f32 %v7995_v40, %v7075_v30 }
0x1929   :  { %v8016_v3 = vpop.f32.mrf.mxu0  ;;  %v8035_v21 = vpop.f32.mrf.mxu1  ;;  %v8082_v8 = vmax.f32 %v7977_v26, 0.0  ;;  %v8083_v27 = vmax.f32 %v7996_v20, 0.0 }
0x192a   :  { %v8017_v39 = vadd.f32 %v8016_v3, %v7076_v10  ;;  %v8036_v46 = vadd.f32 %v8035_v21, %v7077_v45 }
0x192c   :  { %v8100_v12 = vmax.f32 %v8017_v39, 0.0  ;;  %v8101_v51 = vmax.f32 %v8036_v46, 0.0 }
0x192e   :  { %v8389_v38 = vpack.c.bf16 %v8100_v12, %v8084_v58  ;;  %v8390_v23 = vpack.c.bf16 %v8101_v51, %v8085_v44  ;;  %v7978_v6 = vpop.f32.mrf.mxu2  ;;  %v7997_v35 = vpop.f32.mrf.mxu3 }
0x192f   :  { %v7979_v0 = vadd.f32 %v7978_v6, %v7074_v16  ;;  %v7998_v13 = vadd.f32 %v7997_v35, %v7075_v30 }
0x1930   :  { %9443 = vmatmul.bf16.gmra.mxu0 %v8389_v38  ;;  %9462 = vmatmul.bf16.gmra.mxu1 %v8390_v23 }
0x1931   :  { %v8098_v47 = vmax.f32 %v7979_v0, 0.0  ;;  %v8099_v4 = vmax.f32 %v7998_v13, 0.0 }
0x1933   :  { %v8387_v14 = vpack.c.bf16 %v8098_v47, %v8082_v8  ;;  %v8388_v37 = vpack.c.bf16 %v8099_v4, %v8083_v27 }
0x1935   :  { %9405 = vmatmul.bf16.gmra.mxu2 %v8387_v14  ;;  %9424 = vmatmul.bf16.gmra.mxu3 %v8388_v37 }
0x193d   :  { %v9211_v5 = vpop.f32.mrf.mxu0  ;;  %v9230_v10 = vpop.f32.mrf.mxu1 }
0x1945   :  { %v9213_v45 = vpop.f32.mrf.mxu0  ;;  %v9232_v15 = vpop.f32.mrf.mxu1 }
0x1948   :  { %v9173_v54 = vpop.f32.mrf.mxu2  ;;  %v9192_v50 = vpop.f32.mrf.mxu3 }
0x1949   :  { %v9174_v16 = vadd.f32 %v13830_v18, %v9173_v54 }
0x194b   :  { %v9193_v30 = vadd.f32 %v9192_v50, %v9174_v16 }
0x194d   :  { %v9212_v61 = vadd.f32 %v9211_v5, %v9193_v30  ;;  %v9216_v48 = vpop.f32.mrf.mxu0  ;;  %v9235_v41 = vpop.f32.mrf.mxu1 }
0x194f   :  { %v9231_v24 = vadd.f32 %v9230_v10, %v9212_v61 }
0x1950   :  { %v9175_v22 = vpop.f32.mrf.mxu2  ;;  %v9194_v31 = vpop.f32.mrf.mxu3 }
0x1951   :  { %v9176_v25 = vadd.f32 %v13830_v18, %v9175_v22 }
0x1953   :  { %v9195_v2 = vadd.f32 %v9194_v31, %v9176_v25 }
0x1955   :  { %v9214_v36 = vadd.f32 %v9213_v45, %v9195_v2  ;;  %v9218_v59 = vpop.f32.mrf.mxu0  ;;  %v9237_v29 = vpop.f32.mrf.mxu1 }
0x1957   :  { %v9233_v62 = vadd.f32 %v9232_v15, %v9214_v36 }
0x1958   :  { %v9178_v53 = vpop.f32.mrf.mxu2  ;;  %v9197_v57 = vpop.f32.mrf.mxu3 }
0x1959   :  { %v9179_v19 = vadd.f32 %v13830_v18, %v9178_v53 }
0x195b   :  { %v9198_v60 = vadd.f32 %v9197_v57, %v9179_v19 }
0x195d   :  { %v9217_v28 = vadd.f32 %v9216_v48, %v9198_v60  ;;  %v9287_v7 = vpop.f32.mrf.mxu0  ;;  %v9306_v9 = vpop.f32.mrf.mxu1 }
0x195f   :  { %v9236_v43 = vadd.f32 %v9235_v41, %v9217_v28 }
0x1960   :  { %v9180_v1 = vpop.f32.mrf.mxu2  ;;  %v9199_v17 = vpop.f32.mrf.mxu3 }
0x1961   :  { %v9181_v11 = vadd.f32 %v13830_v18, %v9180_v1 }
0x1963   :  { %v9200_v32 = vadd.f32 %v9199_v17, %v9181_v11 }
0x1965   :  { %v9219_v49 = vadd.f32 %v9218_v59, %v9200_v32  ;;  %v9289_v40 = vpop.f32.mrf.mxu0  ;;  %v9308_v56 = vpop.f32.mrf.mxu1 }
0x1967   :  { %v9238_v63 = vadd.f32 %v9237_v29, %v9219_v49 }
0x1968   :  { %v9249_v3 = vpop.f32.mrf.mxu2  ;;  %v9268_v21 = vpop.f32.mrf.mxu3 }
0x1969   :  { %v9250_v47 = vadd.f32 %v9249_v3, %v9231_v24 }
0x196b   :  { %v9269_v37 = vadd.f32 %v9268_v21, %v9250_v47 }
0x196d   :  { %v9292_v39 = vpop.f32.mrf.mxu0  ;;  %v9311_v46 = vpop.f32.mrf.mxu1  ;;  %v9288_v45 = vadd.f32 %v9287_v7, %v9269_v37 }
0x196f   :  { %v9307_v16 = vadd.f32 %v9306_v9, %v9288_v45 }
0x1970   :  { %v9251_v58 = vpop.f32.mrf.mxu2  ;;  %v9270_v44 = vpop.f32.mrf.mxu3 }
0x1971   :  { %v9252_v15 = vadd.f32 %v9251_v58, %v9233_v62 }
0x1973   :  { %v9271_v50 = vadd.f32 %v9270_v44, %v9252_v15 }
0x1975   :  { %v9294_v12 = vpop.f32.mrf.mxu0  ;;  %v9313_v51 = vpop.f32.mrf.mxu1  ;;  %v9290_v48 = vadd.f32 %v9289_v40, %v9271_v50 }
0x1977   :  { %v9309_v36 = vadd.f32 %v9308_v56, %v9290_v48 }
0x1978   :  { %v9254_v26 = vpop.f32.mrf.mxu2  ;;  %v9273_v20 = vpop.f32.mrf.mxu3 }
0x1979   :  { %v9255_v41 = vadd.f32 %v9254_v26, %v9236_v43 }
0x197b   :  { %v9274_v24 = vadd.f32 %v9273_v20, %v9255_v41 }
0x197d   :  { %v9363_v38 = vpop.f32.mrf.mxu0  ;;  %v9382_v23 = vpop.f32.mrf.mxu1  ;;  %v9293_v53 = vadd.f32 %v9292_v39, %v9274_v24 }
0x197f   :  { %v9312_v17 = vadd.f32 %v9311_v46, %v9293_v53 }
0x1980   :  { %v9256_v6 = vpop.f32.mrf.mxu2  ;;  %v9275_v35 = vpop.f32.mrf.mxu3 }
0x1981   :  { %v9257_v57 = vadd.f32 %v9256_v6, %v9238_v63 }
0x1983   :  { %v9276_v1 = vadd.f32 %v9275_v35, %v9257_v57 }
0x1985   :  { %v9365_v0 = vpop.f32.mrf.mxu0  ;;  %v9384_v27 = vpop.f32.mrf.mxu1  ;;  %v9295_v40 = vadd.f32 %v9294_v12, %v9276_v1 }
0x1987   :  { %v9314_v26 = vadd.f32 %v9313_v51, %v9295_v40 }
0x1988   :  { %v9325_v13 = vpop.f32.mrf.mxu2  ;;  %v9344_v8 = vpop.f32.mrf.mxu3 }
0x1989   :  { %v9326_v30 = vadd.f32 %v9325_v13, %v9307_v16 }
0x198b   :  { %v9345_v31 = vadd.f32 %v9344_v8, %v9326_v30 }
0x198d   :  { %v9368_v5 = vpop.f32.mrf.mxu0  ;;  %v9387_v10 = vpop.f32.mrf.mxu1  ;;  %v9364_v59 = vadd.f32 %v9363_v38, %v9345_v31 }
0x198f   :  { %v9383_v28 = vadd.f32 %v9382_v23, %v9364_v59 }
0x1990   :  { %v9327_v4 = vpop.f32.mrf.mxu2  ;;  %v9346_v14 = vpop.f32.mrf.mxu3 }
0x1991   :  { %v9328_v29 = vadd.f32 %v9327_v4, %v9309_v36 }
0x1993   :  { %v9347_v62 = vadd.f32 %v9346_v14, %v9328_v29 }
0x1995   :  { %v9370_v61 = vpop.f32.mrf.mxu0  ;;  %v9389_v22 = vpop.f32.mrf.mxu1  ;;  %v9366_v43 = vadd.f32 %v9365_v0, %v9347_v62 }
0x1997   :  { %v9385_v58 = vadd.f32 %v9384_v27, %v9366_v43 }
0x1998   :  { %v9330_v18 = vpop.f32.mrf.mxu2  ;;  %v9349_v54 = vpop.f32.mrf.mxu3 }
0x1999   :  { %v9331_v32 = vadd.f32 %v9330_v18, %v9312_v17 }
0x199b   :  { %v9350_v21 = vadd.f32 %v9349_v54, %v9331_v32 }
0x199d   :  { %v9439_v19 = vpop.f32.mrf.mxu0  ;;  %v9458_v60 = vpop.f32.mrf.mxu1  ;;  %v9369_v6 = vadd.f32 %v9368_v5, %v9350_v21 }
0x199f   :  { %v9388_v8 = vadd.f32 %v9387_v10, %v9369_v6  ;;  %v13781_v6 = vld [vmem:[%s15910_s20 + $0x28] sm:$0xff] }
0x19a0   :  { %v9332_v25 = vpop.f32.mrf.mxu2  ;;  %v9351_v2 = vpop.f32.mrf.mxu3 }
0x19a1   :  { %v9333_v35 = vadd.f32 %v9332_v25, %v9314_v26 }
0x19a3   :  { %v9352_v13 = vadd.f32 %v9351_v2, %v9333_v35 }
0x19a5   :  { %v9441_v56 = vpop.f32.mrf.mxu0  ;;  %v9460_v23 = vpop.f32.mrf.mxu1  ;;  %v9371_v45 = vadd.f32 %v9370_v61, %v9352_v13 }
0x19a7   :  { %v9390_v18 = vadd.f32 %v9389_v22, %v9371_v45 }
0x19a8   :  { %v9401_v7 = vpop.f32.mrf.mxu2  ;;  %v9420_v9 = vpop.f32.mrf.mxu3 }
0x19a9   :  { %v9402_v11 = vadd.f32 %v9401_v7, %v9383_v28 }
0x19ab   :  { %v9421_v49 = vadd.f32 %v9420_v9, %v9402_v11 }
0x19ad   :  { %v9440_v3 = vadd.f32 %v9439_v19, %v9421_v49  ;;  %v9444_v37 = vpop.f32.mrf.mxu0  ;;  %v9463_v15 = vpop.f32.mrf.mxu1 }
0x19af   :  { %v9459_v44 = vadd.f32 %v9458_v60, %v9440_v3  ;;  %v13783_v3 = vld [vmem:[%s15910_s20 + $0x38] sm:$0xff] }
0x19b0   :  { %v9403_v39 = vpop.f32.mrf.mxu2  ;;  %v9422_v63 = vpop.f32.mrf.mxu3  ;;  %9671 = vmatpush.bf16.msra.mxu2 %v13783_v3 }
0x19b1   :  { %v9404_v20 = vadd.f32 %v9403_v39, %v9385_v58  ;;  %v9468_v38 = vadd.f32 %v9459_v44, %v15647_v55  ;;  %v13782_v44 = vld [vmem:[%s15910_s20 + $0x30] sm:$0xff] }
0x19b3   :  { %v9423_v46 = vadd.f32 %v9422_v63, %v9404_v20  ;;  %9476 = vadd.xlane.f32.xlu0 %v9468_v38 }
0x19b4   :  { %9672 = vmatpush.bf16.msra.mxu2 %v13782_v44 }
0x19b5   :  { %v9442_v0 = vadd.f32 %v9441_v56, %v9423_v46  ;;  %v9446_v48 = vpop.f32.mrf.mxu0  ;;  %v9465_v31 = vpop.f32.mrf.mxu1 }
0x19b7   :  { %v9461_v12 = vadd.f32 %v9460_v23, %v9442_v0 }
0x19b8   :  { %v9406_v47 = vpop.f32.mrf.mxu2  ;;  %v9425_v4 = vpop.f32.mrf.mxu3  ;;  %9673 = vmatpush.bf16.msra.mxu2 %v13781_v6 }
0x19b9   :  { %v9407_v14 = vadd.f32 %v9406_v47, %v9388_v8  ;;  %v9469_v27 = vadd.f32 %v9461_v12, %v15650_v52  ;;  %v13780_v8 = vld [vmem:[%s15910_s20 + $0x20] sm:$0xff] }
0x19bb   :  { %v9426_v51 = vadd.f32 %v9425_v4, %v9407_v14  ;;  %9478 = vadd.xlane.f32.xlu1 %v9469_v27  ;;  %v13831_v14 = vld [vmem:[%s15908_s18 + $0x1] ss:$0 sm:$0xff] }
0x19bc   :  { %9674 = vmatpush.bf16.msra.mxu2 %v13780_v8 }
0x19bd   :  { %v9445_v55 = vadd.f32 %v9444_v37, %v9426_v51 }
0x19bf   :  { %v9464_v5 = vadd.f32 %v9463_v15, %v9445_v55  ;;  %v13779_v15 = vld [vmem:[%s15910_s20 + $0x18] sm:$0xff] }
0x19c0   :  { %v9408_v54 = vpop.f32.mrf.mxu2  ;;  %v9427_v30 = vpop.f32.mrf.mxu3  ;;  %9675 = vmatpush.bf16.msra.mxu2 %v13779_v15 }
0x19c1   :  { %v9409_v50 = vadd.f32 %v9408_v54, %v9390_v18  ;;  %v9470_v16 = vadd.f32 %v9464_v5, %v15689_v34  ;;  %v13778_v18 = vld [vmem:[%s15910_s20 + $0x10] sm:$0xff]  ;;  %v13832_v5 = vld [vmem:[%s15909_s19 + $0x1] ss:$0 sm:$0xff] }
0x19c3   :  { %v9428_v10 = vadd.f32 %v9427_v30, %v9409_v50  ;;  %9480 = vadd.xlane.f32.xlu2 %v9470_v16 }
0x19c4   :  { %9676 = vmatpush.bf16.msra.mxu2 %v13778_v18 }
0x19c5   :  { %v9447_v41 = vadd.f32 %v9446_v48, %v9428_v10  ;;  %v13777_v48 = vld [vmem:[%s15910_s20 + $0x8] sm:$0xff] }
0x19c7   :  { %v9466_v25 = vadd.f32 %v9465_v31, %v9447_v41 }
0x19c8   :  { %9677 = vmatpush.bf16.msra.mxu2 %v13777_v48 }
0x19c9   :  { %v9471_v52 = vadd.f32 %v9466_v25, %v15692_v42 }
0x19cb   :  { %9482 = vadd.xlane.f32.xlu0 %v9471_v52 }
0x1a26   :  { %v9477_v61 = vpop.xlane.xlu0 %9476 }
0x1a27   :  { %v9484_v2 = vmul.f32 %v9477_v61, %v14729_v33 }
0x1a29   :  { %v9488_v24 = vsub.f32 %v9468_v38, %v9484_v2 }
0x1a2b   :  { %v9492_v22 = vmul.f32 %v9488_v24, %v9488_v24 }
0x1a2d   :  { %9496 = vadd.xlane.f32.xlu1 %v9492_v22 }
0x1a2e   :  { %v9479_v36 = vpop.xlane.xlu1 %9478 }
0x1a2f   :  { %v9485_v59 = vmul.f32 %v9479_v36, %v14729_v33  ;;  %v13776_v36 = vld [vmem:[%s15910_s20] sm:$0xff] }
0x1a30   :  { %9678 = vmatpush.bf16.msra.mxu2 %v13776_v36 }
0x1a31   :  { %v15833_v34 = vsub.f32 %v9469_v27, %v9485_v59 }
0x1a33   :  { %v9493_v29 = vmul.f32 %v15833_v34, %v15833_v34 }
0x1a35   :  { %9498 = vadd.xlane.f32.xlu2 %v9493_v29 }
0x1a36   :  { %v9481_v53 = vpop.xlane.xlu2 %9480 }
0x1a37   :  { %v9486_v57 = vmul.f32 %v9481_v53, %v14729_v33 }
0x1a39   :  { %v15838_v42 = vsub.f32 %v9470_v16, %v9486_v57 }
0x1a3b   :  { %v9494_v19 = vmul.f32 %v15838_v42, %v15838_v42 }
0x1a3d   :  { %9500 = vadd.xlane.f32.xlu0 %v9494_v19 }
0x1a3e   :  { %v9483_v62 = vpop.xlane.xlu0 %9482 }
0x1a3f   :  { %v9487_v60 = vmul.f32 %v9483_v62, %v14729_v33 }
0x1a41   :  { %v15843_v28 = vsub.f32 %v9471_v52, %v9487_v60  ;;  %v14083_v52 = vmov 16.0  }
0x1a43   :  { %v9495_v7 = vmul.f32 %v15843_v28, %v15843_v28 }
0x1a45   :  { %9502 = vadd.xlane.f32.xlu1 %v9495_v7 }
0x1aa0   :  { %v9497_v9 = vpop.xlane.xlu1 %9496 }
0x1aa1   :  { %v9504_v1 = vmul.f32 %v9497_v9, %v14729_v33 }
0x1aa3   :  { %v9508_v17 = vadd.f32 1e-05, %v9504_v1 }
0x1aa5   :  { %13988 = vrsqrt.f32 %v9508_v17  ;;  %vm9518_vm10 = vweird.f32 %v9508_v17 }
0x1aa8   :  { %v9499_v11 = vpop.xlane.xlu2 %9498 }
0x1aa9   :  { %v9505_v43 = vmul.f32 %v9499_v11, %v14729_v33 }
0x1aab   :  { %v13989_v32 = vpop.eup %13988  ;;  %v9509_v49 = vadd.f32 1e-05, %v9505_v43 }
0x1aac   :  { %v9513_v40 = vmul.f32 %v13989_v32, %v9508_v17  ;;  %vm9519_vm9 = vweird.f32 %v13989_v32 }
0x1aad   :  { %13990 = vrsqrt.f32 %v9509_v49  ;;  %vm9520_vm11 = vmor %vm9518_vm10, %vm9519_vm9  ;;  %vm9528_vm0 = vweird.f32 %v9509_v49 }
0x1aae   :  { %v9514_v21 = vmul.f32 %v13989_v32, %v9513_v40 }
0x1ab0   :  { %v9515_v56 = vmul.f32 0.5, %v9514_v21  ;;  %v9501_v58 = vpop.xlane.xlu0 %9500 }
0x1ab1   :  { %v9506_v39 = vmul.f32 %v9501_v58, %v14729_v33 }
0x1ab2   :  { %v9516_v63 = vsub.f32 1.5, %v9515_v56 }
0x1ab3   :  { %v13991_v26 = vpop.eup %13990  ;;  %v9510_v20 = vadd.f32 1e-05, %v9506_v39 }
0x1ab4   :  { %v9517_v38 = vmul.f32 %v13989_v32, %v9516_v63  ;;  %v9523_v23 = vmul.f32 %v13991_v26, %v9509_v49  ;;  %vm9529_vm12 = vweird.f32 %v13991_v26 }
0x1ab5   :  { %13992 = vrsqrt.f32 %v9510_v20  ;;  %vm9530_vm1 = vmor %vm9528_vm0, %vm9529_vm12  ;;  %vm9538_vm14 = vweird.f32 %v9510_v20 }
0x1ab6   :  { %v9524_v35 = vmul.f32 %v13991_v26, %v9523_v23  ;;  %v9521_v46 = vsel %vm9520_vm11, %v13989_v32, %v9517_v38 }
0x1ab7   :  { %v9552_v27 = vmul.f32 %v9521_v46, %v9488_v24 }
0x1ab8   :  { %v9525_v0 = vmul.f32 0.5, %v9524_v35  ;;  %v9503_v13 = vpop.xlane.xlu1 %9502 }
0x1ab9   :  { %v9507_v12 = vmul.f32 %v9503_v13, %v14729_v33  ;;  %v9559_v54 = vmul.f32 %v13831_v14, %v9552_v27 }
0x1aba   :  { %v9526_v47 = vsub.f32 1.5, %v9525_v0 }
0x1abb   :  { %v13993_v4 = vpop.eup %13992  ;;  %v9511_v37 = vadd.f32 1e-05, %v9507_v12  ;;  %v9566_v31 = vadd.f32 %v13832_v5, %v9559_v54 }
0x1abc   :  { %v9527_v45 = vmul.f32 %v13991_v26, %v9526_v47  ;;  %v9533_v51 = vmul.f32 %v13993_v4, %v9510_v20  ;;  %vm9539_vm13 = vweird.f32 %v13993_v4 }
0x1abd   :  { %13994 = vrsqrt.f32 %v9511_v37  ;;  %vm9540_vm15 = vmor %vm9538_vm14, %vm9539_vm13  ;;  %vm9548_vm3 = vweird.f32 %v9511_v37 }
0x1abe   :  { %v9531_v33 = vsel %vm9530_vm1, %v13991_v26, %v9527_v45  ;;  %v9534_v55 = vmul.f32 %v13993_v4, %v9533_v51  ;;  %13996 = vrcp.f32 %v14083_v52 }
0x1abf   :  { %v9553_v50 = vmul.f32 %v9531_v33, %v15833_v34 }
0x1ac0   :  { %v9535_v16 = vmul.f32 0.5, %v9534_v55 }
0x1ac1   :  { %v9560_v30 = vmul.f32 %v13831_v14, %v9553_v50 }
0x1ac2   :  { %v9536_v10 = vsub.f32 1.5, %v9535_v16 }
0x1ac3   :  { %v13995_v41 = vpop.eup %13994  ;;  %v9567_v25 = vadd.f32 %v13832_v5, %v9560_v30 }
0x1ac4   :  { %v9537_v61 = vmul.f32 %v13993_v4, %v9536_v10  ;;  %v9543_v2 = vmul.f32 %v13995_v41, %v9511_v37  ;;  %v13997_v53 = vpop.eup %13996  ;;  %vm9549_vm2 = vweird.f32 %v13995_v41 }
0x1ac5   :  { %v9570_v24 = vadd.f32 %v9567_v25, %v9566_v31  ;;  %v9585_v7 = vmul.f32 16.0, %v13997_v53  ;;  %vm9550_vm4 = vmor %vm9548_vm3, %vm9549_vm2  ;;  %vm9589_vm5 = vweird.f32 %v13997_v53 }
0x1ac6   :  { %v9544_v22 = vmul.f32 %v13995_v41, %v9543_v2  ;;  %v9541_v34 = vsel %vm9540_vm15, %v13993_v4, %v9537_v61  ;;  %v13833_v4 = vld [vmem:[%s15911_s21] ss:$0 sm:$0xff] }
0x1ac7   :  { %v9571_v59 = vrot.slane %v9570_v24, 4  ;;  %v9554_v62 = vmul.f32 %v9541_v34, %v15838_v42  ;;  %v9586_v43 = vsub.f32 1.0, %v9585_v7 }
0x1ac8   :  { %v9545_v29 = vmul.f32 0.5, %v9544_v22 }
0x1ac9   :  { %v9572_v19 = vadd.f32 %v9571_v59, %v9570_v24  ;;  %v9561_v17 = vmul.f32 %v13831_v14, %v9554_v62  ;;  %v9587_v21 = vmul.f32 %v13997_v53, %v9586_v43 }
0x1aca   :  { %v9546_v57 = vsub.f32 1.5, %v9545_v29 }
0x1acb   :  { %v9573_v1 = vrot.slane %v9572_v19, 2  ;;  %v9568_v40 = vadd.f32 %v13832_v5, %v9561_v17  ;;  %v9588_v39 = vadd.f32 %v13997_v53, %v9587_v21 }
0x1acc   :  { %v9547_v60 = vmul.f32 %v13995_v41, %v9546_v57 }
0x1acd   :  { %v9574_v49 = vadd.f32 %v9573_v1, %v9572_v19  ;;  %v9590_v20 = vsel %vm9589_vm5, %v13997_v53, %v9588_v39 }
0x1ace   :  { %v9551_v9 = vsel %vm9550_vm4, %v13995_v41, %v9547_v60 }
0x1acf   :  { %v9555_v11 = vmul.f32 %v9551_v9, %v15843_v28  ;;  %v9575_v44 = vrot.slane %v9574_v49, 1 }
0x1ad1   :  { %v9562_v32 = vmul.f32 %v13831_v14, %v9555_v11  ;;  %v9576_v26 = vadd.f32 %v9575_v44, %v9574_v49 }
0x1ad3   :  { %v9569_v3 = vadd.f32 %v13832_v5, %v9562_v32  ;;  %v9591_v6 = vmul.f32 %v9590_v20, %v9576_v26 }
0x1ad5   :  { %v9577_v56 = vadd.f32 %v9569_v3, %v9568_v40  ;;  %v9609_v46 = vpack.c.bf16 %v9591_v6, %v9591_v6 }
0x1ad7   :  { %v9578_v58 = vrot.slane %v9577_v56, 4  ;;  %v9617_v13 = vunpack.c.l.b16 %v9609_v46 }
0x1ad9   :  { %v9579_v42 = vadd.f32 %v9578_v58, %v9577_v56 }
0x1adb   :  { %v9580_v63 = vrot.slane %v9579_v42, 2 }
0x1add   :  { %v9581_v38 = vadd.f32 %v9580_v63, %v9579_v42 }
0x1adf   :  { %v9582_v23 = vrot.slane %v9581_v38, 1 }
0x1ae1   :  { %v9583_v35 = vadd.f32 %v9582_v23, %v9581_v38 }
0x1ae3   :  { %v9592_v28 = vmul.f32 %v9590_v20, %v9583_v35 }
0x1ae5   :  { %v9610_v0 = vpack.c.bf16 %v9592_v28, %v9592_v28 }
0x1ae7   :  { %v9618_v8 = vunpack.c.l.b16 %v9610_v0 }
0x1ae9   :  { %v9620_v12 = vsel %vm9619_vm6, %v9618_v8, %v9617_v13 }
0x1aea   :  { %v9621_v47 = vpack.c.b16 %v9620_v12, %v9620_v12 }
0x1aec   :  { %9679 = vmatmul.bf16.vlgmr.msra.gmra.mxu2 %v9621_v47 }
0x1b6f   :  { %v9680_v14 = vpop.f32.mrf.mxu2 }
0x1b70   :  { %v9681_v27 = vadd.f32 %v13833_v4, %v9680_v14 }
0x1b72   :  { %9684 = vst [vmem:[#allocation7] sm:$0x3] %v9681_v27 }
0x1b73   :  { %9695 = dma.vmem_to_hbm [thread:$0]  %s9691_s13, 32, %s9693_s25, [#allocation4]  }
0x1b77   :  { %v9682_v37 = vpop.f32.mrf.mxu2 }
0x1b78   :  { %14074 = dma.done.wait [#allocation4], 32  }
0x1b79   :  { %14075 = vsyncadd [#allocation4], 4294967264 }
0x1b7a   :  { %9700 = vsyncpa [#allocation3], 1 }
0x1b7b   :  { %9701 = vsyncpa [#allocation6], 1 }
0x1b7c   :  { %9702 = vsyncpa [#allocation4], 1 }

</bundles_post_ra>
